<compile_context>
chip_gen: v5e
topology: v5e:2x2
jax: 0.10.0
libtpu: 0.0.40
codegen_flags: <defaults>
</compile_context>

<pallas_src>
import functools

import jax
import jax.numpy as jnp
from jax.experimental import pallas as pl
from jax.experimental.pallas import tpu as pltpu


_LANE = 128        # TPU lane width: padded row stride is rounded up to this
_CPAD_MIN = 16     # channel-band padding (bf16 sublane-packing granularity)


def _round_up(v, m):
    return ((v + m - 1) // m) * m


def _make_batch(x):
    # Mirrors FrameGenModel.make_batch: promote CHW -> 1CHW.
    if x.ndim == 3:
        x = x[None]
    return x


# ----------------------------------------------------------------------------
# Fused kernel.  One grid step = one batch element.
#
# Padded flat layout ("layout A"): a buffer holds (CPAD, (H+4)*Wp) with
#   rows 0..1        : zeros (top padding + slack)
#   rows 2..H+1      : real rows; real pixel (h, w) at flat (h+2)*Wp + w,
#                      cols W..Wp-1 of each real row are zero (right pad, also serves
#                      as the left pad of the next row in flat addressing)
#   rows H+2..H+3    : zeros (bottom padding + tap-overrun slack)
# Conv output column q = h*Wp + w; tap (kh, kw) reads flat q + (kh+1)*Wp + (kw-1).
# Columns with (q mod Wp) >= W are row-wrap garbage and are masked to zero before
# being scattered (at the lane-aligned offset 2*Wp) into the next layer's buffer.
# ----------------------------------------------------------------------------
def _frame_gen_kernel(x1_ref, x2_ref, wf_ref, bf_ref, wc_ref, bc_ref,
                      wg_ref, bg_ref, o_ref, feats_ref, comb_ref, slab_ref,
                      *, H, W, Wp, CPAD):
    L = H * Wp
    Fch = wf_ref.shape[0]

    # Valid conv-output columns: q = h*Wp + w is valid iff w < W.
    col = jax.lax.broadcasted_iota(jnp.int32, (1, L), 1)
    valid = (col % Wp) < W

    def build_slab(src_ref, col0):
        # im2col: 9 shifted copies of the padded activation, tap t in rows
        # [t*CPAD, (t+1)*CPAD) (16-row aligned bands), written at lane-aligned col0.
        for t in range(9):
            kh, kw = divmod(t, 3)
            d = (kh + 1) * Wp + (kw - 1)
            slab_ref[t * CPAD:(t + 1) * CPAD, col0:col0 + L] = src_ref[:, d:d + L]

    def zero_borders(buf_ref):
        # Only the padding border needs (re-)zeroing; the interior rows 2..H+1 are
        # fully rewritten (masked) by the scatter below each step.
        zero = jnp.zeros((CPAD, 2 * Wp), buf_ref.dtype)
        buf_ref[:, 0:2 * Wp] = zero                                # rows 0..1
        buf_ref[:, (H + 2) * Wp:(H + 4) * Wp] = zero               # rows H+2..H+3

    # ---- featureModel on x1 | x2 stacked along the lane axis (shared weights) ----
    build_slab(x1_ref, 0)
    build_slab(x2_ref, L)
    f = jnp.dot(wf_ref[...], slab_ref[...],
                preferred_element_type=jnp.float32)                # (F, 2L) f32
    bfv = bf_ref[...]
    f1 = jnp.where(valid, jnp.maximum(f[:, :L] + bfv, 0.0), 0.0)
    f2 = jnp.where(valid, jnp.maximum(f[:, L:] + bfv, 0.0), 0.0)
    f_cat = jnp.concatenate([f1, f2], axis=0)                      # channel concat
    if 2 * Fch < CPAD:
        f_cat = jnp.concatenate(
            [f_cat, jnp.zeros((CPAD - 2 * Fch, L), f_cat.dtype)], axis=0)
    zero_borders(feats_ref)
    feats_ref[:, 2 * Wp:2 * Wp + L] = f_cat.astype(feats_ref.dtype)

    # ---- combineModel (Cout padded to CPAD with zero weights/bias) ---------------
    build_slab(feats_ref, 0)
    c = jnp.dot(wc_ref[...], slab_ref[:, :L],
                preferred_element_type=jnp.float32)                # (CPAD, L) f32
    c = jnp.where(valid, jnp.maximum(c + bc_ref[...], 0.0), 0.0)
    zero_borders(comb_ref)
    comb_ref[:, 2 * Wp:2 * Wp + L] = c.astype(comb_ref.dtype)

    # ---- generationModel --------------------------------------------------------
    build_slab(comb_ref, 0)
    g = jnp.dot(wg_ref[...], slab_ref[:, :L],
                preferred_element_type=jnp.float32)                # (Cg, L) f32
    o_ref[...] = jax.nn.sigmoid(g + bg_ref[...]).astype(o_ref.dtype)
    # Garbage columns (w >= W) are dropped by the wrapper slice.


# ----------------------------------------------------------------------------
# FrameGenModel forward (Pallas-backed), NCHW in / NCHW out.
# ----------------------------------------------------------------------------
@jax.jit
def frame_gen_forward(params, in_x_1, in_x_2):
    x1 = _make_batch(in_x_1).astype(jnp.float32)
    x2 = _make_batch(in_x_2).astype(jnp.float32)
    N, C, H, W = x1.shape

    F = params["feat_w"].shape[-1]
    M = params["comb_w"].shape[-1]
    Cg = params["gen_w"].shape[-1]

    CPAD = max(_CPAD_MIN, _round_up(C, 16), _round_up(2 * F, 16), _round_up(M, 16))
    Wp = _round_up(W + 2, _LANE)        # 128-aligned padded row stride
    L = H * Wp                          # conv-output slab width (lane-dense)
    Sp = (H + 4) * Wp                   # padded flat buffer size (2 zero rows each end)

    # Inputs: bf16, channels padded to CPAD, layout A, flattened spatial.  Single fused
    # cast+pad+reshape pass under jit (no extra standalone HBM round trips).
    def pad_input(x):
        xb = x.astype(jnp.bfloat16)
        xb = jnp.pad(xb, ((0, 0), (0, CPAD - C), (2, 2), (0, Wp - W)))
        return xb.reshape(N, CPAD, Sp)

    x1p = pad_input(x1)
    x2p = pad_input(x2)

    # Weights: (3,3,Cin,Cout) HWIO -> (Cout[_pad], 9*CPAD) bf16, tap t = kh*3+kw in
    # columns [t*CPAD, t*CPAD+Cin); padded columns are zero (match zero slab rows).
    def prep_w(w_hwio, cout_pad=None):
        cin, cout = w_hwio.shape[2], w_hwio.shape[3]
        cop = cout if cout_pad is None else cout_pad
        w = jnp.transpose(w_hwio, (0, 1, 3, 2)).reshape(9, cout, cin)
        w = jnp.pad(w, ((0, 0), (0, cop - cout), (0, CPAD - cin)))
        return jnp.transpose(w, (1, 0, 2)).reshape(cop, 9 * CPAD).astype(jnp.bfloat16)

    wf = prep_w(params["feat_w"])                    # (F, 9*CPAD)
    wc = prep_w(params["comb_w"], cout_pad=CPAD)     # (CPAD, 9*CPAD)
    wg = prep_w(params["gen_w"])                     # (Cg, 9*CPAD)
    bf = params["feat_b"].reshape(F, 1).astype(jnp.float32)
    bc = jnp.pad(params["comb_b"], (0, CPAD - M)).reshape(CPAD, 1).astype(jnp.float32)
    bg = params["gen_b"].reshape(Cg, 1).astype(jnp.float32)

    out_flat = pl.pallas_call(
        functools.partial(_frame_gen_kernel, H=H, W=W, Wp=Wp, CPAD=CPAD),
        out_shape=jax.ShapeDtypeStruct((N, Cg, L), jnp.float32),
        grid=(N,),
        in_specs=[
            pl.BlockSpec((None, CPAD, Sp), lambda n: (n, 0, 0)),     # x1 (padded, flat)
            pl.BlockSpec((None, CPAD, Sp), lambda n: (n, 0, 0)),     # x2 (padded, flat)
            pl.BlockSpec((F, 9 * CPAD), lambda n: (0, 0)),           # feature weights
            pl.BlockSpec((F, 1), lambda n: (0, 0)),                  # feature bias
            pl.BlockSpec((CPAD, 9 * CPAD), lambda n: (0, 0)),        # combine weights
            pl.BlockSpec((CPAD, 1), lambda n: (0, 0)),               # combine bias
            pl.BlockSpec((Cg, 9 * CPAD), lambda n: (0, 0)),          # generation weights
            pl.BlockSpec((Cg, 1), lambda n: (0, 0)),                 # generation bias
        ],
        out_specs=pl.BlockSpec((None, Cg, L), lambda n: (n, 0, 0)),
        scratch_shapes=[
            pltpu.VMEM((CPAD, Sp), jnp.bfloat16),                    # padded cat(f1,f2)
            pltpu.VMEM((CPAD, Sp), jnp.bfloat16),                    # padded combine out
            pltpu.VMEM((9 * CPAD, 2 * L), jnp.bfloat16),             # shared im2col slab
        ],
        compiler_params=pltpu.CompilerParams(
            dimension_semantics=("parallel",)),
    )(x1p, x2p, wf, bf, wc, bc, wg, bg)

    # Drop the per-row alignment/wrap columns and restore NCHW (fused under jit).
    return out_flat.reshape(N, Cg, H, Wp)[:, :, :, :W]


# ----------------------------------------------------------------------------
# Pure-JAX references (correctness check only).
# quantize=True mirrors the kernel's bf16 storage of inputs/weights/intermediates
# (accumulation stays f32), quantize=False is the full-f32 module semantics.
# ----------------------------------------------------------------------------
def frame_gen_forward_ref(params, in_x_1, in_x_2, quantize):
    x1 = _make_batch(in_x_1).astype(jnp.float32)
    x2 = _make_batch(in_x_2).astype(jnp.float32)

    def q(a):
        return a.astype(jnp.bfloat16).astype(jnp.float32) if quantize else a

    def conv(x, w, b):
        y = jax.lax.conv_general_dilated(
            q(x), q(w), (1, 1), "SAME",
            dimension_numbers=("NCHW", "HWIO", "NCHW"),
            preferred_element_type=jnp.float32)
        return y + b[None, :, None, None]

    f1 = q(jax.nn.relu(conv(x1, params["feat_w"], params["feat_b"])))
    f2 = q(jax.nn.relu(conv(x2, params["feat_w"], params["feat_b"])))
    feats = jnp.concatenate([f1, f2], axis=1)
    comb = q(jax.nn.relu(conv(feats, params["comb_w"], params["comb_b"])))
    return jax.nn.sigmoid(conv(comb, params["gen_w"], params["gen_b"]))


# ----------------------------------------------------------------------------
# Deterministic parameter init (PyTorch Conv2d-style uniform fan-in init, HWIO).
# ----------------------------------------------------------------------------
def init_params(key, c_in, f, m):
    ks = jax.random.split(key, 6)

    def conv_init(kw, kb, cin, cout):
        fan_in = 9 * cin
        scale = 1.0 / jnp.sqrt(jnp.float32(fan_in))
        w = jax.random.uniform(kw, (3, 3, cin, cout), jnp.float32, -scale, scale)
        b = jax.random.uniform(kb, (cout,), jnp.float32, -scale, scale)
        return w, b

    feat_w, feat_b = conv_init(ks[0], ks[1], c_in, f)
    comb_w, comb_b = conv_init(ks[2], ks[3], 2 * f, m)
    gen_w, gen_b = conv_init(ks[4], ks[5], m, c_in)
    return {
        "feat_w": feat_w, "feat_b": feat_b,
        "comb_w": comb_w, "comb_b": comb_b,
        "gen_w": gen_w, "gen_b": gen_b,
    }


if __name__ == "__main__":
    N, C, H, W = 2, 3, 16, 16     # batch, image channels, spatial
    F, M = 8, 8                   # feature channels, combine channels

    key = jax.random.PRNGKey(0)
    k_p, k_x1, k_x2 = jax.random.split(key, 3)
    params = init_params(k_p, C, F, M)

    in_x_1 = jax.random.normal(k_x1, (N, C, H, W), jnp.float32)
    in_x_2 = jax.random.normal(k_x2, (N, C, H, W), jnp.float32)

    out = jax.block_until_ready(frame_gen_forward(params, in_x_1, in_x_2))
    assert out.shape == (N, C, H, W)

    ref_q = jax.block_until_ready(
        frame_gen_forward_ref(params, in_x_1, in_x_2, quantize=True))
    ref_f32 = jax.block_until_ready(
        frame_gen_forward_ref(params, in_x_1, in_x_2, quantize=False))

    # Tight check against the bf16-quantization-matched reference, loose check against
    # the full-f32 module semantics (bf16 storage, f32 accumulation).
    assert jnp.allclose(out, ref_q, atol=1e-2, rtol=1e-2), "mismatch vs bf16-matched ref"
    assert jnp.allclose(out, ref_f32, atol=3e-2, rtol=3e-2), "mismatch vs f32 reference"

    print("KERNEL_OK")
</pallas_src>

<mosaic_0001>
module attributes {stable_mosaic.version = 11 : i64} {
  func.func @_frame_gen_kernel(%arg0: i32, %arg1: memref<1x16x2560xbf16, #tpu.memory_space<vmem>>, %arg2: memref<1x16x2560xbf16, #tpu.memory_space<vmem>>, %arg3: memref<8x144xbf16, #tpu.memory_space<vmem>>, %arg4: memref<8x1xf32, #tpu.memory_space<vmem>>, %arg5: memref<16x144xbf16, #tpu.memory_space<vmem>>, %arg6: memref<16x1xf32, #tpu.memory_space<vmem>>, %arg7: memref<3x144xbf16, #tpu.memory_space<vmem>>, %arg8: memref<3x1xf32, #tpu.memory_space<vmem>>, %arg9: memref<1x3x2048xf32, #tpu.memory_space<vmem>>, %arg10: memref<16x2560xbf16, #tpu.memory_space<vmem>>, %arg11: memref<16x2560xbf16, #tpu.memory_space<vmem>>, %arg12: memref<144x4096xbf16, #tpu.memory_space<vmem>>) attributes {dimension_semantics = [#tpu.dimension_semantics<parallel>], iteration_bounds = array<i64: 2>, scalar_prefetch = 0 : i64, scratch_operands = 3 : i64, tpu.core_type = #tpu.core_type<tc>, window_params = [{transform_indices = @transform_0, window_bounds = array<i64: 1, 16, 2560>}, {transform_indices = @transform_1, window_bounds = array<i64: 1, 16, 2560>}, {pipeline_mode = #tpu.pipeline_mode<synchronous>, transform_indices = @transform_2, window_bounds = array<i64: 8, 144>}, {pipeline_mode = #tpu.pipeline_mode<synchronous>, transform_indices = @transform_3, window_bounds = array<i64: 8, 1>}, {pipeline_mode = #tpu.pipeline_mode<synchronous>, transform_indices = @transform_4, window_bounds = array<i64: 16, 144>}, {pipeline_mode = #tpu.pipeline_mode<synchronous>, transform_indices = @transform_5, window_bounds = array<i64: 16, 1>}, {pipeline_mode = #tpu.pipeline_mode<synchronous>, transform_indices = @transform_6, window_bounds = array<i64: 3, 144>}, {pipeline_mode = #tpu.pipeline_mode<synchronous>, transform_indices = @transform_7, window_bounds = array<i64: 3, 1>}, {transform_indices = @transform_8, window_bounds = array<i64: 1, 3, 2048>}]} {
    %0 = tpu.iota {dimensions = array<i32: 1>} : vector<1x2048xi32>
    %c128_i32 = arith.constant 128 : i32
    %c0_i32 = arith.constant 0 : i32
    %1 = arith.cmpi eq, %c128_i32, %c0_i32 : i32
    %c1_i32 = arith.constant 1 : i32
    %2 = arith.select %1, %c1_i32, %c128_i32 : i32
    %3 = vector.broadcast %2 : i32 to vector<1x2048xi32>
    %4 = arith.remsi %0, %3 : vector<1x2048xi32>
    %c0_i32_0 = arith.constant 0 : i32
    %5 = vector.broadcast %c0_i32_0 : i32 to vector<1x2048xi32>
    %6 = arith.cmpi ne, %4, %5 : vector<1x2048xi32>
    %c0_i32_1 = arith.constant 0 : i32
    %7 = vector.broadcast %c0_i32_1 : i32 to vector<1x2048xi32>
    %8 = arith.cmpi slt, %4, %7 : vector<1x2048xi32>
    %c0_i32_2 = arith.constant 0 : i32
    %9 = arith.cmpi slt, %2, %c0_i32_2 : i32
    %10 = vector.broadcast %9 : i1 to vector<1x2048xi1>
    %11 = vector.broadcast %10 : vector<1x2048xi1> to vector<1x2048xi1>
    %12 = arith.xori %8, %11 : vector<1x2048xi1>
    %13 = arith.andi %12, %6 : vector<1x2048xi1>
    %14 = vector.broadcast %2 : i32 to vector<1x2048xi32>
    %15 = arith.addi %4, %14 : vector<1x2048xi32>
    %16 = arith.select %13, %15, %4 : vector<1x2048xi1>, vector<1x2048xi32>
    %c16_i32 = arith.constant 16 : i32
    %17 = vector.broadcast %c16_i32 : i32 to vector<1x2048xi32>
    %18 = arith.cmpi slt, %16, %17 : vector<1x2048xi32>
    %c0 = arith.constant 0 : index
    %c0_3 = arith.constant 0 : index
    %c127 = arith.constant 127 : index
    %19 = vector.load %arg1[%c0, %c0_3, %c127] : memref<1x16x2560xbf16, #tpu.memory_space<vmem>>, vector<1x16x2048xbf16>
    %20 = vector.shape_cast %19 : vector<1x16x2048xbf16> to vector<16x2048xbf16>
    %c0_4 = arith.constant 0 : index
    %c0_5 = arith.constant 0 : index
    %21 = vector.load %arg12[%c0_4, %c0_5] : memref<144x4096xbf16, #tpu.memory_space<vmem>>, vector<16x2048xbf16>
    tpu.vector_store %arg12[%c0_4, %c0_5], %20 {strides = array<i32>} : memref<144x4096xbf16, #tpu.memory_space<vmem>>, vector<16x2048xbf16>,
    %c0_6 = arith.constant 0 : index
    %c0_7 = arith.constant 0 : index
    %c128 = arith.constant 128 : index
    %22 = vector.load %arg1[%c0_6, %c0_7, %c128] : memref<1x16x2560xbf16, #tpu.memory_space<vmem>>, vector<1x16x2048xbf16>
    %23 = vector.shape_cast %22 : vector<1x16x2048xbf16> to vector<16x2048xbf16>
    %c16 = arith.constant 16 : index
    %c0_8 = arith.constant 0 : index
    %24 = vector.load %arg12[%c16, %c0_8] : memref<144x4096xbf16, #tpu.memory_space<vmem>>, vector<16x2048xbf16>
    tpu.vector_store %arg12[%c16, %c0_8], %23 {strides = array<i32>} : memref<144x4096xbf16, #tpu.memory_space<vmem>>, vector<16x2048xbf16>,
    %c0_9 = arith.constant 0 : index
    %c0_10 = arith.constant 0 : index
    %c129 = arith.constant 129 : index
    %25 = vector.load %arg1[%c0_9, %c0_10, %c129] : memref<1x16x2560xbf16, #tpu.memory_space<vmem>>, vector<1x16x2048xbf16>
    %26 = vector.shape_cast %25 : vector<1x16x2048xbf16> to vector<16x2048xbf16>
    %c32 = arith.constant 32 : index
    %c0_11 = arith.constant 0 : index
    %27 = vector.load %arg12[%c32, %c0_11] : memref<144x4096xbf16, #tpu.memory_space<vmem>>, vector<16x2048xbf16>
    tpu.vector_store %arg12[%c32, %c0_11], %26 {strides = array<i32>} : memref<144x4096xbf16, #tpu.memory_space<vmem>>, vector<16x2048xbf16>,
    %c0_12 = arith.constant 0 : index
    %c0_13 = arith.constant 0 : index
    %c255 = arith.constant 255 : index
    %28 = vector.load %arg1[%c0_12, %c0_13, %c255] : memref<1x16x2560xbf16, #tpu.memory_space<vmem>>, vector<1x16x2048xbf16>
    %29 = vector.shape_cast %28 : vector<1x16x2048xbf16> to vector<16x2048xbf16>
    %c48 = arith.constant 48 : index
    %c0_14 = arith.constant 0 : index
    %30 = vector.load %arg12[%c48, %c0_14] : memref<144x4096xbf16, #tpu.memory_space<vmem>>, vector<16x2048xbf16>
    tpu.vector_store %arg12[%c48, %c0_14], %29 {strides = array<i32>} : memref<144x4096xbf16, #tpu.memory_space<vmem>>, vector<16x2048xbf16>,
    %c0_15 = arith.constant 0 : index
    %c0_16 = arith.constant 0 : index
    %c256 = arith.constant 256 : index
    %31 = vector.load %arg1[%c0_15, %c0_16, %c256] : memref<1x16x2560xbf16, #tpu.memory_space<vmem>>, vector<1x16x2048xbf16>
    %32 = vector.shape_cast %31 : vector<1x16x2048xbf16> to vector<16x2048xbf16>
    %c64 = arith.constant 64 : index
    %c0_17 = arith.constant 0 : index
    %33 = vector.load %arg12[%c64, %c0_17] : memref<144x4096xbf16, #tpu.memory_space<vmem>>, vector<16x2048xbf16>
    tpu.vector_store %arg12[%c64, %c0_17], %32 {strides = array<i32>} : memref<144x4096xbf16, #tpu.memory_space<vmem>>, vector<16x2048xbf16>,
    %c0_18 = arith.constant 0 : index
    %c0_19 = arith.constant 0 : index
    %c257 = arith.constant 257 : index
    %34 = vector.load %arg1[%c0_18, %c0_19, %c257] : memref<1x16x2560xbf16, #tpu.memory_space<vmem>>, vector<1x16x2048xbf16>
    %35 = vector.shape_cast %34 : vector<1x16x2048xbf16> to vector<16x2048xbf16>
    %c80 = arith.constant 80 : index
    %c0_20 = arith.constant 0 : index
    %36 = vector.load %arg12[%c80, %c0_20] : memref<144x4096xbf16, #tpu.memory_space<vmem>>, vector<16x2048xbf16>
    tpu.vector_store %arg12[%c80, %c0_20], %35 {strides = array<i32>} : memref<144x4096xbf16, #tpu.memory_space<vmem>>, vector<16x2048xbf16>,
    %c0_21 = arith.constant 0 : index
    %c0_22 = arith.constant 0 : index
    %c383 = arith.constant 383 : index
    %37 = vector.load %arg1[%c0_21, %c0_22, %c383] : memref<1x16x2560xbf16, #tpu.memory_space<vmem>>, vector<1x16x2048xbf16>
    %38 = vector.shape_cast %37 : vector<1x16x2048xbf16> to vector<16x2048xbf16>
    %c96 = arith.constant 96 : index
    %c0_23 = arith.constant 0 : index
    %39 = vector.load %arg12[%c96, %c0_23] : memref<144x4096xbf16, #tpu.memory_space<vmem>>, vector<16x2048xbf16>
    tpu.vector_store %arg12[%c96, %c0_23], %38 {strides = array<i32>} : memref<144x4096xbf16, #tpu.memory_space<vmem>>, vector<16x2048xbf16>,
    %c0_24 = arith.constant 0 : index
    %c0_25 = arith.constant 0 : index
    %c384 = arith.constant 384 : index
    %40 = vector.load %arg1[%c0_24, %c0_25, %c384] : memref<1x16x2560xbf16, #tpu.memory_space<vmem>>, vector<1x16x2048xbf16>
    %41 = vector.shape_cast %40 : vector<1x16x2048xbf16> to vector<16x2048xbf16>
    %c112 = arith.constant 112 : index
    %c0_26 = arith.constant 0 : index
    %42 = vector.load %arg12[%c112, %c0_26] : memref<144x4096xbf16, #tpu.memory_space<vmem>>, vector<16x2048xbf16>
    tpu.vector_store %arg12[%c112, %c0_26], %41 {strides = array<i32>} : memref<144x4096xbf16, #tpu.memory_space<vmem>>, vector<16x2048xbf16>,
    %c0_27 = arith.constant 0 : index
    %c0_28 = arith.constant 0 : index
    %c385 = arith.constant 385 : index
    %43 = vector.load %arg1[%c0_27, %c0_28, %c385] : memref<1x16x2560xbf16, #tpu.memory_space<vmem>>, vector<1x16x2048xbf16>
    %44 = vector.shape_cast %43 : vector<1x16x2048xbf16> to vector<16x2048xbf16>
    %c128_29 = arith.constant 128 : index
    %c0_30 = arith.constant 0 : index
    %45 = vector.load %arg12[%c128_29, %c0_30] : memref<144x4096xbf16, #tpu.memory_space<vmem>>, vector<16x2048xbf16>
    tpu.vector_store %arg12[%c128_29, %c0_30], %44 {strides = array<i32>} : memref<144x4096xbf16, #tpu.memory_space<vmem>>, vector<16x2048xbf16>,
    %c0_31 = arith.constant 0 : index
    %c0_32 = arith.constant 0 : index
    %c127_33 = arith.constant 127 : index
    %46 = vector.load %arg2[%c0_31, %c0_32, %c127_33] : memref<1x16x2560xbf16, #tpu.memory_space<vmem>>, vector<1x16x2048xbf16>
    %47 = vector.shape_cast %46 : vector<1x16x2048xbf16> to vector<16x2048xbf16>
    %c0_34 = arith.constant 0 : index
    %c2048 = arith.constant 2048 : index
    %48 = vector.load %arg12[%c0_34, %c2048] : memref<144x4096xbf16, #tpu.memory_space<vmem>>, vector<16x2048xbf16>
    tpu.vector_store %arg12[%c0_34, %c2048], %47 {strides = array<i32>} : memref<144x4096xbf16, #tpu.memory_space<vmem>>, vector<16x2048xbf16>,
    %c0_35 = arith.constant 0 : index
    %c0_36 = arith.constant 0 : index
    %c128_37 = arith.constant 128 : index
    %49 = vector.load %arg2[%c0_35, %c0_36, %c128_37] : memref<1x16x2560xbf16, #tpu.memory_space<vmem>>, vector<1x16x2048xbf16>
    %50 = vector.shape_cast %49 : vector<1x16x2048xbf16> to vector<16x2048xbf16>
    %c16_38 = arith.constant 16 : index
    %c2048_39 = arith.constant 2048 : index
    %51 = vector.load %arg12[%c16_38, %c2048_39] : memref<144x4096xbf16, #tpu.memory_space<vmem>>, vector<16x2048xbf16>
    tpu.vector_store %arg12[%c16_38, %c2048_39], %50 {strides = array<i32>} : memref<144x4096xbf16, #tpu.memory_space<vmem>>, vector<16x2048xbf16>,
    %c0_40 = arith.constant 0 : index
    %c0_41 = arith.constant 0 : index
    %c129_42 = arith.constant 129 : index
    %52 = vector.load %arg2[%c0_40, %c0_41, %c129_42] : memref<1x16x2560xbf16, #tpu.memory_space<vmem>>, vector<1x16x2048xbf16>
    %53 = vector.shape_cast %52 : vector<1x16x2048xbf16> to vector<16x2048xbf16>
    %c32_43 = arith.constant 32 : index
    %c2048_44 = arith.constant 2048 : index
    %54 = vector.load %arg12[%c32_43, %c2048_44] : memref<144x4096xbf16, #tpu.memory_space<vmem>>, vector<16x2048xbf16>
    tpu.vector_store %arg12[%c32_43, %c2048_44], %53 {strides = array<i32>} : memref<144x4096xbf16, #tpu.memory_space<vmem>>, vector<16x2048xbf16>,
    %c0_45 = arith.constant 0 : index
    %c0_46 = arith.constant 0 : index
    %c255_47 = arith.constant 255 : index
    %55 = vector.load %arg2[%c0_45, %c0_46, %c255_47] : memref<1x16x2560xbf16, #tpu.memory_space<vmem>>, vector<1x16x2048xbf16>
    %56 = vector.shape_cast %55 : vector<1x16x2048xbf16> to vector<16x2048xbf16>
    %c48_48 = arith.constant 48 : index
    %c2048_49 = arith.constant 2048 : index
    %57 = vector.load %arg12[%c48_48, %c2048_49] : memref<144x4096xbf16, #tpu.memory_space<vmem>>, vector<16x2048xbf16>
    tpu.vector_store %arg12[%c48_48, %c2048_49], %56 {strides = array<i32>} : memref<144x4096xbf16, #tpu.memory_space<vmem>>, vector<16x2048xbf16>,
    %c0_50 = arith.constant 0 : index
    %c0_51 = arith.constant 0 : index
    %c256_52 = arith.constant 256 : index
    %58 = vector.load %arg2[%c0_50, %c0_51, %c256_52] : memref<1x16x2560xbf16, #tpu.memory_space<vmem>>, vector<1x16x2048xbf16>
    %59 = vector.shape_cast %58 : vector<1x16x2048xbf16> to vector<16x2048xbf16>
    %c64_53 = arith.constant 64 : index
    %c2048_54 = arith.constant 2048 : index
    %60 = vector.load %arg12[%c64_53, %c2048_54] : memref<144x4096xbf16, #tpu.memory_space<vmem>>, vector<16x2048xbf16>
    tpu.vector_store %arg12[%c64_53, %c2048_54], %59 {strides = array<i32>} : memref<144x4096xbf16, #tpu.memory_space<vmem>>, vector<16x2048xbf16>,
    %c0_55 = arith.constant 0 : index
    %c0_56 = arith.constant 0 : index
    %c257_57 = arith.constant 257 : index
    %61 = vector.load %arg2[%c0_55, %c0_56, %c257_57] : memref<1x16x2560xbf16, #tpu.memory_space<vmem>>, vector<1x16x2048xbf16>
    %62 = vector.shape_cast %61 : vector<1x16x2048xbf16> to vector<16x2048xbf16>
    %c80_58 = arith.constant 80 : index
    %c2048_59 = arith.constant 2048 : index
    %63 = vector.load %arg12[%c80_58, %c2048_59] : memref<144x4096xbf16, #tpu.memory_space<vmem>>, vector<16x2048xbf16>
    tpu.vector_store %arg12[%c80_58, %c2048_59], %62 {strides = array<i32>} : memref<144x4096xbf16, #tpu.memory_space<vmem>>, vector<16x2048xbf16>,
    %c0_60 = arith.constant 0 : index
    %c0_61 = arith.constant 0 : index
    %c383_62 = arith.constant 383 : index
    %64 = vector.load %arg2[%c0_60, %c0_61, %c383_62] : memref<1x16x2560xbf16, #tpu.memory_space<vmem>>, vector<1x16x2048xbf16>
    %65 = vector.shape_cast %64 : vector<1x16x2048xbf16> to vector<16x2048xbf16>
    %c96_63 = arith.constant 96 : index
    %c2048_64 = arith.constant 2048 : index
    %66 = vector.load %arg12[%c96_63, %c2048_64] : memref<144x4096xbf16, #tpu.memory_space<vmem>>, vector<16x2048xbf16>
    tpu.vector_store %arg12[%c96_63, %c2048_64], %65 {strides = array<i32>} : memref<144x4096xbf16, #tpu.memory_space<vmem>>, vector<16x2048xbf16>,
    %c0_65 = arith.constant 0 : index
    %c0_66 = arith.constant 0 : index
    %c384_67 = arith.constant 384 : index
    %67 = vector.load %arg2[%c0_65, %c0_66, %c384_67] : memref<1x16x2560xbf16, #tpu.memory_space<vmem>>, vector<1x16x2048xbf16>
    %68 = vector.shape_cast %67 : vector<1x16x2048xbf16> to vector<16x2048xbf16>
    %c112_68 = arith.constant 112 : index
    %c2048_69 = arith.constant 2048 : index
    %69 = vector.load %arg12[%c112_68, %c2048_69] : memref<144x4096xbf16, #tpu.memory_space<vmem>>, vector<16x2048xbf16>
    tpu.vector_store %arg12[%c112_68, %c2048_69], %68 {strides = array<i32>} : memref<144x4096xbf16, #tpu.memory_space<vmem>>, vector<16x2048xbf16>,
    %c0_70 = arith.constant 0 : index
    %c0_71 = arith.constant 0 : index
    %c385_72 = arith.constant 385 : index
    %70 = vector.load %arg2[%c0_70, %c0_71, %c385_72] : memref<1x16x2560xbf16, #tpu.memory_space<vmem>>, vector<1x16x2048xbf16>
    %71 = vector.shape_cast %70 : vector<1x16x2048xbf16> to vector<16x2048xbf16>
    %c128_73 = arith.constant 128 : index
    %c2048_74 = arith.constant 2048 : index
    %72 = vector.load %arg12[%c128_73, %c2048_74] : memref<144x4096xbf16, #tpu.memory_space<vmem>>, vector<16x2048xbf16>
    tpu.vector_store %arg12[%c128_73, %c2048_74], %71 {strides = array<i32>} : memref<144x4096xbf16, #tpu.memory_space<vmem>>, vector<16x2048xbf16>,
    %c0_75 = arith.constant 0 : index
    %c0_76 = arith.constant 0 : index
    %73 = vector.load %arg3[%c0_75, %c0_76] : memref<8x144xbf16, #tpu.memory_space<vmem>>, vector<8x144xbf16>
    %c0_77 = arith.constant 0 : index
    %c0_78 = arith.constant 0 : index
    %74 = vector.load %arg12[%c0_77, %c0_78] : memref<144x4096xbf16, #tpu.memory_space<vmem>>, vector<144x4096xbf16>
    %cst = arith.constant dense<0.000000e+00> : vector<8x4096xf32>
    %75 = tpu.matmul %73, %74, %cst {dimension_numbers = #tpu.dot_dimension_numbers<[1], [0], [0], [1], [0, 0, 1, 1], [], []>} : vector<8x144xbf16>, vector<144x4096xbf16>, vector<8x4096xf32> -> vector<8x4096xf32>
    %c0_79 = arith.constant 0 : index
    %c0_80 = arith.constant 0 : index
    %76 = vector.load %arg4[%c0_79, %c0_80] : memref<8x1xf32, #tpu.memory_space<vmem>>, vector<8x1xf32>
    %77 = vector.extract_strided_slice %75 {offsets = [0, 0], sizes = [8, 2048], strides = [1, 1]} : vector<8x4096xf32> to vector<8x2048xf32>
    %78 = vector.broadcast %76 : vector<8x1xf32> to vector<8x2048xf32>
    %79 = arith.addf %77, %78 : vector<8x2048xf32>
    %cst_81 = arith.constant 0.000000e+00 : f32
    %80 = vector.broadcast %cst_81 : f32 to vector<8x2048xf32>
    %81 = arith.maximumf %79, %80 : vector<8x2048xf32>
    %cst_82 = arith.constant 0.000000e+00 : f32
    %82 = vector.shape_cast %18 : vector<1x2048xi1> to vector<1x2048xi1>
    %83 = vector.broadcast %82 : vector<1x2048xi1> to vector<8x2048xi1>
    %84 = vector.broadcast %cst_82 : f32 to vector<8x2048xf32>
    %85 = arith.select %83, %81, %84 : vector<8x2048xi1>, vector<8x2048xf32>
    %86 = vector.extract_strided_slice %75 {offsets = [0, 2048], sizes = [8, 2048], strides = [1, 1]} : vector<8x4096xf32> to vector<8x2048xf32>
    %87 = vector.broadcast %76 : vector<8x1xf32> to vector<8x2048xf32>
    %88 = arith.addf %86, %87 : vector<8x2048xf32>
    %cst_83 = arith.constant 0.000000e+00 : f32
    %89 = vector.broadcast %cst_83 : f32 to vector<8x2048xf32>
    %90 = arith.maximumf %88, %89 : vector<8x2048xf32>
    %cst_84 = arith.constant 0.000000e+00 : f32
    %91 = vector.shape_cast %18 : vector<1x2048xi1> to vector<1x2048xi1>
    %92 = vector.broadcast %91 : vector<1x2048xi1> to vector<8x2048xi1>
    %93 = vector.broadcast %cst_84 : f32 to vector<8x2048xf32>
    %94 = arith.select %92, %90, %93 : vector<8x2048xi1>, vector<8x2048xf32>
    %95 = tpu.concatenate %85, %94 in 0 : vector<8x2048xf32>, vector<8x2048xf32> -> vector<16x2048xf32>
    %cst_85 = arith.constant 0.000000e+00 : bf16
    %96 = vector.broadcast %cst_85 : bf16 to vector<16x256xbf16>
    %c0_86 = arith.constant 0 : index
    %c0_87 = arith.constant 0 : index
    %97 = vector.load %arg10[%c0_86, %c0_87] : memref<16x2560xbf16, #tpu.memory_space<vmem>>, vector<16x256xbf16>
    tpu.vector_store %arg10[%c0_86, %c0_87], %96 {strides = array<i32>} : memref<16x2560xbf16, #tpu.memory_space<vmem>>, vector<16x256xbf16>,
    %c0_88 = arith.constant 0 : index
    %c2304 = arith.constant 2304 : index
    %98 = vector.load %arg10[%c0_88, %c2304] : memref<16x2560xbf16, #tpu.memory_space<vmem>>, vector<16x256xbf16>
    tpu.vector_store %arg10[%c0_88, %c2304], %96 {strides = array<i32>} : memref<16x2560xbf16, #tpu.memory_space<vmem>>, vector<16x256xbf16>,
    %99 = arith.truncf %95 : vector<16x2048xf32> to vector<16x2048xbf16>
    %c0_89 = arith.constant 0 : index
    %c256_90 = arith.constant 256 : index
    %100 = vector.load %arg10[%c0_89, %c256_90] : memref<16x2560xbf16, #tpu.memory_space<vmem>>, vector<16x2048xbf16>
    tpu.vector_store %arg10[%c0_89, %c256_90], %99 {strides = array<i32>} : memref<16x2560xbf16, #tpu.memory_space<vmem>>, vector<16x2048xbf16>,
    %c0_91 = arith.constant 0 : index
    %c127_92 = arith.constant 127 : index
    %101 = vector.load %arg10[%c0_91, %c127_92] : memref<16x2560xbf16, #tpu.memory_space<vmem>>, vector<16x2048xbf16>
    %c0_93 = arith.constant 0 : index
    %c0_94 = arith.constant 0 : index
    %102 = vector.load %arg12[%c0_93, %c0_94] : memref<144x4096xbf16, #tpu.memory_space<vmem>>, vector<16x2048xbf16>
    tpu.vector_store %arg12[%c0_93, %c0_94], %101 {strides = array<i32>} : memref<144x4096xbf16, #tpu.memory_space<vmem>>, vector<16x2048xbf16>,
    %c0_95 = arith.constant 0 : index
    %c128_96 = arith.constant 128 : index
    %103 = vector.load %arg10[%c0_95, %c128_96] : memref<16x2560xbf16, #tpu.memory_space<vmem>>, vector<16x2048xbf16>
    %c16_97 = arith.constant 16 : index
    %c0_98 = arith.constant 0 : index
    %104 = vector.load %arg12[%c16_97, %c0_98] : memref<144x4096xbf16, #tpu.memory_space<vmem>>, vector<16x2048xbf16>
    tpu.vector_store %arg12[%c16_97, %c0_98], %103 {strides = array<i32>} : memref<144x4096xbf16, #tpu.memory_space<vmem>>, vector<16x2048xbf16>,
    %c0_99 = arith.constant 0 : index
    %c129_100 = arith.constant 129 : index
    %105 = vector.load %arg10[%c0_99, %c129_100] : memref<16x2560xbf16, #tpu.memory_space<vmem>>, vector<16x2048xbf16>
    %c32_101 = arith.constant 32 : index
    %c0_102 = arith.constant 0 : index
    %106 = vector.load %arg12[%c32_101, %c0_102] : memref<144x4096xbf16, #tpu.memory_space<vmem>>, vector<16x2048xbf16>
    tpu.vector_store %arg12[%c32_101, %c0_102], %105 {strides = array<i32>} : memref<144x4096xbf16, #tpu.memory_space<vmem>>, vector<16x2048xbf16>,
    %c0_103 = arith.constant 0 : index
    %c255_104 = arith.constant 255 : index
    %107 = vector.load %arg10[%c0_103, %c255_104] : memref<16x2560xbf16, #tpu.memory_space<vmem>>, vector<16x2048xbf16>
    %c48_105 = arith.constant 48 : index
    %c0_106 = arith.constant 0 : index
    %108 = vector.load %arg12[%c48_105, %c0_106] : memref<144x4096xbf16, #tpu.memory_space<vmem>>, vector<16x2048xbf16>
    tpu.vector_store %arg12[%c48_105, %c0_106], %107 {strides = array<i32>} : memref<144x4096xbf16, #tpu.memory_space<vmem>>, vector<16x2048xbf16>,
    %c0_107 = arith.constant 0 : index
    %c256_108 = arith.constant 256 : index
    %109 = vector.load %arg10[%c0_107, %c256_108] : memref<16x2560xbf16, #tpu.memory_space<vmem>>, vector<16x2048xbf16>
    %c64_109 = arith.constant 64 : index
    %c0_110 = arith.constant 0 : index
    %110 = vector.load %arg12[%c64_109, %c0_110] : memref<144x4096xbf16, #tpu.memory_space<vmem>>, vector<16x2048xbf16>
    tpu.vector_store %arg12[%c64_109, %c0_110], %109 {strides = array<i32>} : memref<144x4096xbf16, #tpu.memory_space<vmem>>, vector<16x2048xbf16>,
    %c0_111 = arith.constant 0 : index
    %c257_112 = arith.constant 257 : index
    %111 = vector.load %arg10[%c0_111, %c257_112] : memref<16x2560xbf16, #tpu.memory_space<vmem>>, vector<16x2048xbf16>
    %c80_113 = arith.constant 80 : index
    %c0_114 = arith.constant 0 : index
    %112 = vector.load %arg12[%c80_113, %c0_114] : memref<144x4096xbf16, #tpu.memory_space<vmem>>, vector<16x2048xbf16>
    tpu.vector_store %arg12[%c80_113, %c0_114], %111 {strides = array<i32>} : memref<144x4096xbf16, #tpu.memory_space<vmem>>, vector<16x2048xbf16>,
    %c0_115 = arith.constant 0 : index
    %c383_116 = arith.constant 383 : index
    %113 = vector.load %arg10[%c0_115, %c383_116] : memref<16x2560xbf16, #tpu.memory_space<vmem>>, vector<16x2048xbf16>
    %c96_117 = arith.constant 96 : index
    %c0_118 = arith.constant 0 : index
    %114 = vector.load %arg12[%c96_117, %c0_118] : memref<144x4096xbf16, #tpu.memory_space<vmem>>, vector<16x2048xbf16>
    tpu.vector_store %arg12[%c96_117, %c0_118], %113 {strides = array<i32>} : memref<144x4096xbf16, #tpu.memory_space<vmem>>, vector<16x2048xbf16>,
    %c0_119 = arith.constant 0 : index
    %c384_120 = arith.constant 384 : index
    %115 = vector.load %arg10[%c0_119, %c384_120] : memref<16x2560xbf16, #tpu.memory_space<vmem>>, vector<16x2048xbf16>
    %c112_121 = arith.constant 112 : index
    %c0_122 = arith.constant 0 : index
    %116 = vector.load %arg12[%c112_121, %c0_122] : memref<144x4096xbf16, #tpu.memory_space<vmem>>, vector<16x2048xbf16>
    tpu.vector_store %arg12[%c112_121, %c0_122], %115 {strides = array<i32>} : memref<144x4096xbf16, #tpu.memory_space<vmem>>, vector<16x2048xbf16>,
    %c0_123 = arith.constant 0 : index
    %c385_124 = arith.constant 385 : index
    %117 = vector.load %arg10[%c0_123, %c385_124] : memref<16x2560xbf16, #tpu.memory_space<vmem>>, vector<16x2048xbf16>
    %c128_125 = arith.constant 128 : index
    %c0_126 = arith.constant 0 : index
    %118 = vector.load %arg12[%c128_125, %c0_126] : memref<144x4096xbf16, #tpu.memory_space<vmem>>, vector<16x2048xbf16>
    tpu.vector_store %arg12[%c128_125, %c0_126], %117 {strides = array<i32>} : memref<144x4096xbf16, #tpu.memory_space<vmem>>, vector<16x2048xbf16>,
    %c0_127 = arith.constant 0 : index
    %c0_128 = arith.constant 0 : index
    %119 = vector.load %arg5[%c0_127, %c0_128] : memref<16x144xbf16, #tpu.memory_space<vmem>>, vector<16x144xbf16>
    %c0_129 = arith.constant 0 : index
    %c0_130 = arith.constant 0 : index
    %120 = vector.load %arg12[%c0_129, %c0_130] : memref<144x4096xbf16, #tpu.memory_space<vmem>>, vector<144x2048xbf16>
    %cst_131 = arith.constant dense<0.000000e+00> : vector<16x2048xf32>
    %121 = tpu.matmul %119, %120, %cst_131 {dimension_numbers = #tpu.dot_dimension_numbers<[1], [0], [0], [1], [0, 0, 1, 1], [], []>} : vector<16x144xbf16>, vector<144x2048xbf16>, vector<16x2048xf32> -> vector<16x2048xf32>
    %c0_132 = arith.constant 0 : index
    %c0_133 = arith.constant 0 : index
    %122 = vector.load %arg6[%c0_132, %c0_133] : memref<16x1xf32, #tpu.memory_space<vmem>>, vector<16x1xf32>
    %123 = vector.broadcast %122 : vector<16x1xf32> to vector<16x2048xf32>
    %124 = arith.addf %121, %123 : vector<16x2048xf32>
    %cst_134 = arith.constant 0.000000e+00 : f32
    %125 = vector.broadcast %cst_134 : f32 to vector<16x2048xf32>
    %126 = arith.maximumf %124, %125 : vector<16x2048xf32>
    %cst_135 = arith.constant 0.000000e+00 : f32
    %127 = vector.shape_cast %18 : vector<1x2048xi1> to vector<1x2048xi1>
    %128 = vector.broadcast %127 : vector<1x2048xi1> to vector<16x2048xi1>
    %129 = vector.broadcast %cst_135 : f32 to vector<16x2048xf32>
    %130 = arith.select %128, %126, %129 : vector<16x2048xi1>, vector<16x2048xf32>
    %cst_136 = arith.constant 0.000000e+00 : bf16
    %131 = vector.broadcast %cst_136 : bf16 to vector<16x256xbf16>
    %c0_137 = arith.constant 0 : index
    %c0_138 = arith.constant 0 : index
    %132 = vector.load %arg11[%c0_137, %c0_138] : memref<16x2560xbf16, #tpu.memory_space<vmem>>, vector<16x256xbf16>
    tpu.vector_store %arg11[%c0_137, %c0_138], %131 {strides = array<i32>} : memref<16x2560xbf16, #tpu.memory_space<vmem>>, vector<16x256xbf16>,
    %c0_139 = arith.constant 0 : index
    %c2304_140 = arith.constant 2304 : index
    %133 = vector.load %arg11[%c0_139, %c2304_140] : memref<16x2560xbf16, #tpu.memory_space<vmem>>, vector<16x256xbf16>
    tpu.vector_store %arg11[%c0_139, %c2304_140], %131 {strides = array<i32>} : memref<16x2560xbf16, #tpu.memory_space<vmem>>, vector<16x256xbf16>,
    %134 = arith.truncf %130 : vector<16x2048xf32> to vector<16x2048xbf16>
    %c0_141 = arith.constant 0 : index
    %c256_142 = arith.constant 256 : index
    %135 = vector.load %arg11[%c0_141, %c256_142] : memref<16x2560xbf16, #tpu.memory_space<vmem>>, vector<16x2048xbf16>
    tpu.vector_store %arg11[%c0_141, %c256_142], %134 {strides = array<i32>} : memref<16x2560xbf16, #tpu.memory_space<vmem>>, vector<16x2048xbf16>,
    %c0_143 = arith.constant 0 : index
    %c127_144 = arith.constant 127 : index
    %136 = vector.load %arg11[%c0_143, %c127_144] : memref<16x2560xbf16, #tpu.memory_space<vmem>>, vector<16x2048xbf16>
    %c0_145 = arith.constant 0 : index
    %c0_146 = arith.constant 0 : index
    %137 = vector.load %arg12[%c0_145, %c0_146] : memref<144x4096xbf16, #tpu.memory_space<vmem>>, vector<16x2048xbf16>
    tpu.vector_store %arg12[%c0_145, %c0_146], %136 {strides = array<i32>} : memref<144x4096xbf16, #tpu.memory_space<vmem>>, vector<16x2048xbf16>,
    %c0_147 = arith.constant 0 : index
    %c128_148 = arith.constant 128 : index
    %138 = vector.load %arg11[%c0_147, %c128_148] : memref<16x2560xbf16, #tpu.memory_space<vmem>>, vector<16x2048xbf16>
    %c16_149 = arith.constant 16 : index
    %c0_150 = arith.constant 0 : index
    %139 = vector.load %arg12[%c16_149, %c0_150] : memref<144x4096xbf16, #tpu.memory_space<vmem>>, vector<16x2048xbf16>
    tpu.vector_store %arg12[%c16_149, %c0_150], %138 {strides = array<i32>} : memref<144x4096xbf16, #tpu.memory_space<vmem>>, vector<16x2048xbf16>,
    %c0_151 = arith.constant 0 : index
    %c129_152 = arith.constant 129 : index
    %140 = vector.load %arg11[%c0_151, %c129_152] : memref<16x2560xbf16, #tpu.memory_space<vmem>>, vector<16x2048xbf16>
    %c32_153 = arith.constant 32 : index
    %c0_154 = arith.constant 0 : index
    %141 = vector.load %arg12[%c32_153, %c0_154] : memref<144x4096xbf16, #tpu.memory_space<vmem>>, vector<16x2048xbf16>
    tpu.vector_store %arg12[%c32_153, %c0_154], %140 {strides = array<i32>} : memref<144x4096xbf16, #tpu.memory_space<vmem>>, vector<16x2048xbf16>,
    %c0_155 = arith.constant 0 : index
    %c255_156 = arith.constant 255 : index
    %142 = vector.load %arg11[%c0_155, %c255_156] : memref<16x2560xbf16, #tpu.memory_space<vmem>>, vector<16x2048xbf16>
    %c48_157 = arith.constant 48 : index
    %c0_158 = arith.constant 0 : index
    %143 = vector.load %arg12[%c48_157, %c0_158] : memref<144x4096xbf16, #tpu.memory_space<vmem>>, vector<16x2048xbf16>
    tpu.vector_store %arg12[%c48_157, %c0_158], %142 {strides = array<i32>} : memref<144x4096xbf16, #tpu.memory_space<vmem>>, vector<16x2048xbf16>,
    %c0_159 = arith.constant 0 : index
    %c256_160 = arith.constant 256 : index
    %144 = vector.load %arg11[%c0_159, %c256_160] : memref<16x2560xbf16, #tpu.memory_space<vmem>>, vector<16x2048xbf16>
    %c64_161 = arith.constant 64 : index
    %c0_162 = arith.constant 0 : index
    %145 = vector.load %arg12[%c64_161, %c0_162] : memref<144x4096xbf16, #tpu.memory_space<vmem>>, vector<16x2048xbf16>
    tpu.vector_store %arg12[%c64_161, %c0_162], %144 {strides = array<i32>} : memref<144x4096xbf16, #tpu.memory_space<vmem>>, vector<16x2048xbf16>,
    %c0_163 = arith.constant 0 : index
    %c257_164 = arith.constant 257 : index
    %146 = vector.load %arg11[%c0_163, %c257_164] : memref<16x2560xbf16, #tpu.memory_space<vmem>>, vector<16x2048xbf16>
    %c80_165 = arith.constant 80 : index
    %c0_166 = arith.constant 0 : index
    %147 = vector.load %arg12[%c80_165, %c0_166] : memref<144x4096xbf16, #tpu.memory_space<vmem>>, vector<16x2048xbf16>
    tpu.vector_store %arg12[%c80_165, %c0_166], %146 {strides = array<i32>} : memref<144x4096xbf16, #tpu.memory_space<vmem>>, vector<16x2048xbf16>,
    %c0_167 = arith.constant 0 : index
    %c383_168 = arith.constant 383 : index
    %148 = vector.load %arg11[%c0_167, %c383_168] : memref<16x2560xbf16, #tpu.memory_space<vmem>>, vector<16x2048xbf16>
    %c96_169 = arith.constant 96 : index
    %c0_170 = arith.constant 0 : index
    %149 = vector.load %arg12[%c96_169, %c0_170] : memref<144x4096xbf16, #tpu.memory_space<vmem>>, vector<16x2048xbf16>
    tpu.vector_store %arg12[%c96_169, %c0_170], %148 {strides = array<i32>} : memref<144x4096xbf16, #tpu.memory_space<vmem>>, vector<16x2048xbf16>,
    %c0_171 = arith.constant 0 : index
    %c384_172 = arith.constant 384 : index
    %150 = vector.load %arg11[%c0_171, %c384_172] : memref<16x2560xbf16, #tpu.memory_space<vmem>>, vector<16x2048xbf16>
    %c112_173 = arith.constant 112 : index
    %c0_174 = arith.constant 0 : index
    %151 = vector.load %arg12[%c112_173, %c0_174] : memref<144x4096xbf16, #tpu.memory_space<vmem>>, vector<16x2048xbf16>
    tpu.vector_store %arg12[%c112_173, %c0_174], %150 {strides = array<i32>} : memref<144x4096xbf16, #tpu.memory_space<vmem>>, vector<16x2048xbf16>,
    %c0_175 = arith.constant 0 : index
    %c385_176 = arith.constant 385 : index
    %152 = vector.load %arg11[%c0_175, %c385_176] : memref<16x2560xbf16, #tpu.memory_space<vmem>>, vector<16x2048xbf16>
    %c128_177 = arith.constant 128 : index
    %c0_178 = arith.constant 0 : index
    %153 = vector.load %arg12[%c128_177, %c0_178] : memref<144x4096xbf16, #tpu.memory_space<vmem>>, vector<16x2048xbf16>
    tpu.vector_store %arg12[%c128_177, %c0_178], %152 {strides = array<i32>} : memref<144x4096xbf16, #tpu.memory_space<vmem>>, vector<16x2048xbf16>,
    %c0_179 = arith.constant 0 : index
    %c0_180 = arith.constant 0 : index
    %154 = vector.load %arg7[%c0_179, %c0_180] : memref<3x144xbf16, #tpu.memory_space<vmem>>, vector<3x144xbf16>
    %c0_181 = arith.constant 0 : index
    %c0_182 = arith.constant 0 : index
    %155 = vector.load %arg12[%c0_181, %c0_182] : memref<144x4096xbf16, #tpu.memory_space<vmem>>, vector<144x2048xbf16>
    %cst_183 = arith.constant dense<0.000000e+00> : vector<3x2048xf32>
    %156 = tpu.matmul %154, %155, %cst_183 {dimension_numbers = #tpu.dot_dimension_numbers<[1], [0], [0], [1], [0, 0, 1, 1], [], []>} : vector<3x144xbf16>, vector<144x2048xbf16>, vector<3x2048xf32> -> vector<3x2048xf32>
    %c0_184 = arith.constant 0 : index
    %c0_185 = arith.constant 0 : index
    %157 = vector.load %arg8[%c0_184, %c0_185] : memref<3x1xf32, #tpu.memory_space<vmem>>, vector<3x1xf32>
    %158 = vector.broadcast %157 : vector<3x1xf32> to vector<3x2048xf32>
    %159 = arith.addf %156, %158 : vector<3x2048xf32>
    %160 = arith.negf %159 : vector<3x2048xf32>
    %161 = math.exp %160 : vector<3x2048xf32>
    %cst_186 = arith.constant 1.000000e+00 : f32
    %162 = vector.broadcast %cst_186 : f32 to vector<3x2048xf32>
    %163 = arith.addf %162, %161 : vector<3x2048xf32>
    %164 = arith.divf %162, %163 : vector<3x2048xf32>
    %c0_187 = arith.constant 0 : index
    %c0_188 = arith.constant 0 : index
    %c0_189 = arith.constant 0 : index
    %165 = vector.load %arg9[%c0_187, %c0_188, %c0_189] : memref<1x3x2048xf32, #tpu.memory_space<vmem>>, vector<1x3x2048xf32>
    %166 = vector.shape_cast %165 : vector<1x3x2048xf32> to vector<3x2048xf32>
    %167 = vector.shape_cast %164 : vector<3x2048xf32> to vector<1x3x2048xf32>
    tpu.vector_store %arg9[%c0_187, %c0_188, %c0_189], %167 {strides = array<i32>} : memref<1x3x2048xf32, #tpu.memory_space<vmem>>, vector<1x3x2048xf32>,
    return
  }
  func.func @transform_0(%arg0: i32) -> (i32, i32, i32) {
    %c0_i32 = arith.constant 0 : i32
    %c0_i32_0 = arith.constant 0 : i32
    %c0_i32_1 = arith.constant 0 : i32
    return %arg0, %c0_i32, %c0_i32_0 : i32, i32, i32
  }
  func.func @transform_1(%arg0: i32) -> (i32, i32, i32) {
    %c0_i32 = arith.constant 0 : i32
    %c0_i32_0 = arith.constant 0 : i32
    %c0_i32_1 = arith.constant 0 : i32
    return %arg0, %c0_i32, %c0_i32_0 : i32, i32, i32
  }
  func.func @transform_2(%arg0: i32) -> (i32, i32) {
    %c0_i32 = arith.constant 0 : i32
    %c0_i32_0 = arith.constant 0 : i32
    %c0_i32_1 = arith.constant 0 : i32
    return %c0_i32, %c0_i32_0 : i32, i32
  }
  func.func @transform_3(%arg0: i32) -> (i32, i32) {
    %c0_i32 = arith.constant 0 : i32
    %c0_i32_0 = arith.constant 0 : i32
    %c0_i32_1 = arith.constant 0 : i32
    return %c0_i32, %c0_i32_0 : i32, i32
  }
  func.func @transform_4(%arg0: i32) -> (i32, i32) {
    %c0_i32 = arith.constant 0 : i32
    %c0_i32_0 = arith.constant 0 : i32
    %c0_i32_1 = arith.constant 0 : i32
    return %c0_i32, %c0_i32_0 : i32, i32
  }
  func.func @transform_5(%arg0: i32) -> (i32, i32) {
    %c0_i32 = arith.constant 0 : i32
    %c0_i32_0 = arith.constant 0 : i32
    %c0_i32_1 = arith.constant 0 : i32
    return %c0_i32, %c0_i32_0 : i32, i32
  }
  func.func @transform_6(%arg0: i32) -> (i32, i32) {
    %c0_i32 = arith.constant 0 : i32
    %c0_i32_0 = arith.constant 0 : i32
    %c0_i32_1 = arith.constant 0 : i32
    return %c0_i32, %c0_i32_0 : i32, i32
  }
  func.func @transform_7(%arg0: i32) -> (i32, i32) {
    %c0_i32 = arith.constant 0 : i32
    %c0_i32_0 = arith.constant 0 : i32
    %c0_i32_1 = arith.constant 0 : i32
    return %c0_i32, %c0_i32_0 : i32, i32
  }
  func.func @transform_8(%arg0: i32) -> (i32, i32, i32) {
    %c0_i32 = arith.constant 0 : i32
    %c0_i32_0 = arith.constant 0 : i32
    %c0_i32_1 = arith.constant 0 : i32
    return %arg0, %c0_i32, %c0_i32_0 : i32, i32, i32
  }
}

</mosaic_0001>

<bundles_post_ra>
// kernel: frame_gen_forward.1
= control target key start
LH: loop header
LB: loop body
LE: loop exit
PB: predicated region body
PF: predicated region fallthrough
CT: control target
= control target key end

     0   :  { %s13689_s27 = smov 0   ;;  %s18275_s0 = inlined_call_operand.vmem [shape: bf16[2,16,2560], index: 0, kind: input, shape index: {}]   ;;  %s18276_s1 = inlined_call_operand.vmem [shape: bf16[2,16,2560], index: 1, kind: input, shape index: {}]   ;;  %s18277_s2 = inlined_call_operand.vmem [shape: bf16[8,144], index: 2, kind: input, shape index: {}]   ;;  %s18278_s3 = inlined_call_operand.vmem [shape: f32[8,1], index: 3, kind: input, shape index: {}]   ;;  %s18279_s4 = inlined_call_operand.vmem [shape: bf16[16,144], index: 4, kind: input, shape index: {}]   ;;  %s18280_s5 = inlined_call_operand.vmem [shape: f32[16,1], index: 5, kind: input, shape index: {}]   ;;  %s18281_s6 = inlined_call_operand.vmem [shape: bf16[3,144], index: 6, kind: input, shape index: {}]   ;;  %s18282_s7 = inlined_call_operand.vmem [shape: f32[3,1], index: 7, kind: input, shape index: {}]   ;;  %s18283_s8 = inlined_call_operand.vmem [shape: f32[2,3,2048], index: 8, kind: output, shape index: {}]  }
   0x1 LB: > { %s10528_s28 = sadd.s32 4294967295, %s13639_s27   ;;  %p10532_p0 = scmp.ge.s32.totalorder %s13639_s27, 1  ;;  %s13639_s27 = sphi %s13689_s27, %s18_s27  }
   0x2   : > { %p272_p1 = scmp.lt.s32.totalorder %s13639_s27, 3 }
   0x4   : > { %p273_p2 = pnand %p10532_p0, %p272_p1 }
   0x6   : > { %276 = sbr.rel (%p273_p2) target bundleno = 1865 (0x749), region = 52 }
   0xb   : > { %p311_p3 = scmp.lt.s32.totalorder %s10528_s28, 1  ;;  %s13641_s11 = smov 1   ;;  %vm18300_vm0 = vcmask 1043456   ;;  %vm18299_vm1 = vcmask 7168   ;;  %vm18298_vm2 = vcmask 1039360   ;;  %vm18302_vm3 = vcmask 130048  }
   0xc   : > { %s13642_s12 = smov 127  }
   0xd   : > { %s18808_s28 = smov (!%p311_p3, %s10528_s28), 1 }
   0xe   : > { %s13510_s29 = smul.u32 160, %s18808_s28 }
  0x10   : > { %s13705_s10 = scalar_lea.vmem %s18275_s0, %s13510_s29  ;;  %s14185_s15 = scalar_lea.vmem %s18276_s1, %s13510_s29 }
  0x11   : > { %v13708_v0 = vld [vmem:[%s13705_s10 + $0x20] sm:$0xff]  ;;  %v13711_v1 = vld [vmem:[%s13705_s10 + $0x10] sm:$0xff]  ;;  %v13720_v3 = vld [vmem:[%s13705_s10 + $0x28] sm:$0xff] }
  0x12   : > { %v552_v2 = vld [vmem:[%s13705_s10] sm:$0xff]  ;;  %596 = vrot.lane.b32.xlu2 %v13708_v0, %s13641_s11  ;;  %592 = vrot.lane.b32.xlu1 %v13711_v1, %s13641_s11  ;;  %v13723_v4 = vld [vmem:[%s13705_s10 + $0x18] sm:$0xff] }
  0x13   : > { %588 = vrot.lane.b32.xlu0 %v552_v2, %s13641_s11  ;;  %v13726_v5 = vld [vmem:[%s13705_s10 + $0x8] sm:$0xff]  ;;  %v560_v6 = vld [vmem:[%s13705_s10 + $0x40] sm:$0xf]  ;;  %v13736_v7 = vld [vmem:[%s13705_s10 + $0x38] sm:$0xff] }
  0x14   : > { %v13739_v8 = vld [vmem:[%s13705_s10 + $0x30] sm:$0xff]  ;;  %v13747_v9 = vld [vmem:[%s13705_s10 + $0x60] sm:$0xff]  ;;  %v13750_v10 = vld [vmem:[%s13705_s10 + $0x58] sm:$0xff] }
  0x15   : > { %v561_v11 = vld [vmem:[%s13705_s10 + $0x50] sm:$0xff]  ;;  %v13759_v12 = vld [vmem:[%s13705_s10 + $0x78] sm:$0xff]  ;;  %v13765_v14 = vld [vmem:[%s13705_s10 + $0x68] sm:$0xff] }
  0x16   : > { %v13762_v13 = vld [vmem:[%s13705_s10 + $0x70] sm:$0xff]  ;;  %v13775_v16 = vld [vmem:[%s13705_s10 + $0x88] sm:$0xff]  ;;  %v13778_v17 = vld [vmem:[%s13705_s10 + $0x80] sm:$0xff] }
  0x17   : > { %v569_v15 = vld [vmem:[%s13705_s10 + $0x90] sm:$0xf]  ;;  %v13786_v18 = vld [vmem:[%s13705_s10 + $0x14] sm:$0xff]  ;;  %v740_v20 = vld [vmem:[%s13705_s10 + $0x4] sm:$0xff] }
  0x18   : > { %v13789_v19 = vld [vmem:[%s13705_s10 + $0xc] sm:$0xff]  ;;  %v13801_v22 = vld [vmem:[%s13705_s10 + $0x24] sm:$0xff]  ;;  %v13804_v23 = vld [vmem:[%s13705_s10 + $0x1c] sm:$0xff] }
  0x19   : > { %v13798_v21 = vld [vmem:[%s13705_s10 + $0x2c] sm:$0xff]  ;;  %v748_v24 = vld [vmem:[%s13705_s10 + $0x44] sm:$0xf]  ;;  %v13814_v25 = vld [vmem:[%s13705_s10 + $0x3c] sm:$0xff] }
  0x1a   : > { %598 = vrot.lane.b32.xlu2 %v13720_v3, %s13641_s11  ;;  %594 = vrot.lane.b32.xlu1 %v13723_v4, %s13641_s11  ;;  %v13817_v26 = vld [vmem:[%s13705_s10 + $0x34] sm:$0xff]  ;;  %v13825_v27 = vld [vmem:[%s13705_s10 + $0x64] sm:$0xff] }
  0x1b   : > { %590 = vrot.lane.b32.xlu0 %v13726_v5, %s13641_s11  ;;  %v13828_v28 = vld [vmem:[%s13705_s10 + $0x5c] sm:$0xff]  ;;  %v749_v29 = vld [vmem:[%s13705_s10 + $0x54] sm:$0xff]  ;;  %v13843_v32 = vld [vmem:[%s13705_s10 + $0x6c] sm:$0xff] }
  0x1c   : > { %v13837_v30 = vld [vmem:[%s13705_s10 + $0x7c] sm:$0xff]  ;;  %v13840_v31 = vld [vmem:[%s13705_s10 + $0x74] sm:$0xff]  ;;  %v13853_v34 = vld [vmem:[%s13705_s10 + $0x8c] sm:$0xff] }
  0x1d   : > { %v757_v33 = vld [vmem:[%s13705_s10 + $0x94] sm:$0xf]  ;;  %v13856_v35 = vld [vmem:[%s13705_s10 + $0x84] sm:$0xff] }
  0x1e   : > { %v903_v43 = vld [vmem:[%s13705_s10 + $0x44] sm:$0xf] }
  0x22   : > { %604 = vrot.lane.b32.xlu2 %v560_v6, %s13641_s11  ;;  %602 = vrot.lane.b32.xlu1 %v13736_v7, %s13641_s11 }
  0x23   : > { %600 = vrot.lane.b32.xlu0 %v13739_v8, %s13641_s11 }
  0x2a   : > { %610 = vrot.lane.b32.xlu2 %v13747_v9, %s13641_s11  ;;  %608 = vrot.lane.b32.xlu1 %v13750_v10, %s13641_s11 }
  0x2b   : > { %606 = vrot.lane.b32.xlu0 %v561_v11, %s13641_s11 }
  0x32   : > { %616 = vrot.lane.b32.xlu2 %v13759_v12, %s13641_s11  ;;  %614 = vrot.lane.b32.xlu1 %v13762_v13, %s13641_s11 }
  0x33   : > { %612 = vrot.lane.b32.xlu0 %v13765_v14, %s13641_s11 }
  0x3a   : > { %622 = vrot.lane.b32.xlu2 %v569_v15, %s13641_s11  ;;  %620 = vrot.lane.b32.xlu1 %v13775_v16, %s13641_s11 }
  0x3b   : > { %618 = vrot.lane.b32.xlu0 %v13778_v17, %s13641_s11 }
  0x42   : > { %780 = vrot.lane.b32.xlu2 %v13786_v18, %s13642_s12  ;;  %778 = vrot.lane.b32.xlu1 %v13789_v19, %s13642_s12 }
  0x43   : > { %776 = vrot.lane.b32.xlu0 %v740_v20, %s13642_s12 }
  0x4a   : > { %786 = vrot.lane.b32.xlu2 %v13798_v21, %s13642_s12  ;;  %784 = vrot.lane.b32.xlu1 %v13801_v22, %s13642_s12 }
  0x4b   : > { %782 = vrot.lane.b32.xlu0 %v13804_v23, %s13642_s12 }
  0x52   : > { %792 = vrot.lane.b32.xlu2 %v748_v24, %s13642_s12  ;;  %790 = vrot.lane.b32.xlu1 %v13814_v25, %s13642_s12  ;;  %v912_v24 = vld [vmem:[%s13705_s10 + $0x94] sm:$0xf] }
  0x53   : > { %788 = vrot.lane.b32.xlu0 %v13817_v26, %s13642_s12 }
  0x5a   : > { %798 = vrot.lane.b32.xlu2 %v13825_v27, %s13642_s12  ;;  %796 = vrot.lane.b32.xlu1 %v13828_v28, %s13642_s12 }
  0x5b   : > { %794 = vrot.lane.b32.xlu0 %v749_v29, %s13642_s12 }
  0x62   : > { %804 = vrot.lane.b32.xlu2 %v13837_v30, %s13642_s12  ;;  %802 = vrot.lane.b32.xlu1 %v13840_v31, %s13642_s12 }
  0x63   : > { %800 = vrot.lane.b32.xlu0 %v13843_v32, %s13642_s12 }
  0x6a   : > { %810 = vrot.lane.b32.xlu2 %v757_v33, %s13642_s12  ;;  %808 = vrot.lane.b32.xlu1 %v13853_v34, %s13642_s12 }
  0x6b   : > { %806 = vrot.lane.b32.xlu0 %v13856_v35, %s13642_s12 }
  0x6c   : > { %v597_v36 = vpop.permute.xlu2 %596 }
  0x6d   : > { %v628_v37 = vrot.slane %v597_v36, 4 }
  0x72   : > { %935 = vrot.lane.b32.xlu2 %v13786_v18, %s13641_s11  ;;  %933 = vrot.lane.b32.xlu1 %v13789_v19, %s13641_s11 }
  0x73   : > { %931 = vrot.lane.b32.xlu0 %v740_v20, %s13641_s11 }
  0x74   : > { %v599_v38 = vpop.permute.xlu2 %598 }
  0x75   : > { %v629_v39 = vrot.slane %v599_v38, 4 }
  0x77   : > { %v652_v40 = vsel %vm18300_vm0, %v628_v37, %v629_v39 }
  0x78   : > { %v653_v41 = vsel %vm18299_vm1, %v597_v36, %v652_v40 }
  0x79   : > { %696 = vst [vmem:[#allocation4 + $0x20] sm:$0xff] %v653_v41 }
  0x7a   : > { %941 = vrot.lane.b32.xlu2 %v13798_v21, %s13641_s11  ;;  %939 = vrot.lane.b32.xlu1 %v13801_v22, %s13641_s11 }
  0x7b   : > { %937 = vrot.lane.b32.xlu0 %v13804_v23, %s13641_s11 }
  0x7c   : > { %v605_v42 = vpop.permute.xlu2 %604 }
  0x7d   : > { %v632_v62 = vrot.slane %v605_v42, 4 }
  0x82   : > { %947 = vrot.lane.b32.xlu2 %v903_v43, %s13641_s11  ;;  %945 = vrot.lane.b32.xlu1 %v13814_v25, %s13641_s11 }
  0x83   : > { %943 = vrot.lane.b32.xlu0 %v13817_v26, %s13641_s11 }
  0x84   : > { %v13882_v44 = vpop.permute.xlu2 %610  ;;  %v593_v45 = vpop.permute.xlu1 %592 }
  0x85   : > { %v589_v46 = vpop.permute.xlu0 %588  ;;  %v626_v49 = vrot.slane %v593_v45, 4  ;;  %v635_v41 = vrot.slane %v13882_v44, 4 }
  0x86   : > { %v624_v52 = vrot.slane %v589_v46, 4 }
  0x8a   : > { %953 = vrot.lane.b32.xlu2 %v13825_v27, %s13641_s11  ;;  %951 = vrot.lane.b32.xlu1 %v13828_v28, %s13641_s11 }
  0x8b   : > { %949 = vrot.lane.b32.xlu0 %v749_v29, %s13641_s11 }
  0x8c   : > { %v13889_v47 = vpop.permute.xlu2 %616  ;;  %v595_v48 = vpop.permute.xlu1 %594 }
  0x8d   : > { %v627_v50 = vrot.slane %v595_v48, 4  ;;  %v591_v51 = vpop.permute.xlu0 %590 }
  0x8e   : > { %v625_v53 = vrot.slane %v591_v51, 4 }
  0x8f   : > { %v648_v54 = vsel %vm18300_vm0, %v626_v49, %v627_v50  ;;  %v650_v55 = vsel %vm18300_vm0, %v627_v50, %v628_v37 }
  0x90   : > { %v649_v56 = vsel %vm18299_vm1, %v593_v45, %v648_v54  ;;  %v651_v57 = vsel %vm18299_vm1, %v595_v48, %v650_v55  ;;  %v643_v58 = vsel %vm18300_vm0, %v624_v52, %v625_v53  ;;  %v646_v59 = vsel %vm18300_vm0, %v625_v53, %v626_v49 }
  0x91   : > { %694 = vst [vmem:[#allocation4 + $0x10] sm:$0xff] %v649_v56  ;;  %v645_v60 = vsel %vm18299_vm1, %v589_v46, %v643_v58  ;;  %v647_v61 = vsel %vm18299_vm1, %v591_v51, %v646_v59  ;;  %v638_v51 = vrot.slane %v13889_v47, 4 }
  0x92   : > { %695 = vst [vmem:[#allocation4 + $0x18] sm:$0xff] %v651_v57  ;;  %959 = vrot.lane.b32.xlu2 %v13837_v30, %s13641_s11  ;;  %957 = vrot.lane.b32.xlu1 %v13840_v31, %s13641_s11 }
  0x93   : > { %692 = vst [vmem:[#allocation4] sm:$0xff] %v645_v60  ;;  %955 = vrot.lane.b32.xlu0 %v13843_v32, %s13641_s11 }
  0x94   : > { %693 = vst [vmem:[#allocation4 + $0x8] sm:$0xff] %v647_v61  ;;  %v623_v63 = vpop.permute.xlu2 %622  ;;  %v603_v2 = vpop.permute.xlu1 %602 }
  0x95   : > { %v631_v6 = vrot.slane %v603_v2, 4  ;;  %v601_v11 = vpop.permute.xlu0 %600 }
  0x96   : > { %v630_v15 = vrot.slane %v601_v11, 4 }
  0x97   : > { %v658_v20 = vsel %vm18300_vm0, %v631_v6, %v632_v62 }
  0x98   : > { %v659_v29 = vsel %vm18299_vm1, %v603_v2, %v658_v20  ;;  %v654_v33 = vsel %vm18300_vm0, %v629_v39, %v630_v15  ;;  %v656_v36 = vsel %vm18300_vm0, %v630_v15, %v631_v6  ;;  %v641_v2 = vrot.slane %v623_v63, 4 }
  0x99   : > { %699 = vst [vmem:[#allocation4 + $0x38] sm:$0xff] %v659_v29  ;;  %v655_v37 = vsel %vm18299_vm1, %v599_v38, %v654_v33  ;;  %v657_v40 = vsel %vm18299_vm1, %v601_v11, %v656_v36  ;;  %v1089_v29 = vld [vmem:[%s13705_s10 + $0x48] sm:$0xf]  ;;  %v13949_v33 = vld [vmem:[%s13705_s10 + $0x40] sm:$0xff] }
  0x9a   : > { %697 = vst [vmem:[#allocation4 + $0x28] sm:$0xff] %v655_v37  ;;  %965 = vrot.lane.b32.xlu2 %v912_v24, %s13641_s11  ;;  %963 = vrot.lane.b32.xlu1 %v13853_v34, %s13641_s11 }
  0x9b   : > { %698 = vst [vmem:[#allocation4 + $0x30] sm:$0xff] %v657_v40  ;;  %961 = vrot.lane.b32.xlu0 %v13856_v35, %s13641_s11 }
  0x9c   : > { %v13918_v39 = vpop.permute.xlu2 %780  ;;  %v609_v42 = vpop.permute.xlu1 %608 }
  0x9d   : > { %v634_v43 = vrot.slane %v609_v42, 4  ;;  %v607_v45 = vpop.permute.xlu0 %606 }
  0x9e   : > { %v633_v38 = vrot.slane %v607_v45, 4 }
  0x9f   : > { %v662_v46 = vsel %vm18300_vm0, %v634_v43, %v635_v41 }
  0xa0   : > { %v663_v48 = vsel %vm18299_vm1, %v609_v42, %v662_v46  ;;  %v660_v49 = vsel %vm18300_vm0, %v633_v38, %v634_v43  ;;  %v814_v42 = vrot.slane %v13918_v39, 4 }
  0xa1   : > { %701 = vst [vmem:[#allocation4 + $0x88] sm:$0xff] %v663_v48  ;;  %v661_v50 = vsel %vm18299_vm1, %v607_v45, %v660_v49 }
  0xa2   : > { %700 = vst [vmem:[#allocation4 + $0x80] sm:$0xff] %v661_v50  ;;  %1121 = vrot.lane.b32.xlu2 %v13723_v4, %s13642_s12  ;;  %1119 = vrot.lane.b32.xlu1 %v13711_v1, %s13642_s12 }
  0xa3   : > { %1117 = vrot.lane.b32.xlu0 %v13726_v5, %s13642_s12 }
  0xa4   : > { %v13931_v52 = vpop.permute.xlu2 %786  ;;  %v615_v53 = vpop.permute.xlu1 %614 }
  0xa5   : > { %v637_v54 = vrot.slane %v615_v53, 4  ;;  %v613_v55 = vpop.permute.xlu0 %612 }
  0xa6   : > { %v636_v56 = vrot.slane %v613_v55, 4 }
  0xa7   : > { %v668_v57 = vsel %vm18300_vm0, %v637_v54, %v638_v51 }
  0xa8   : > { %v669_v58 = vsel %vm18299_vm1, %v615_v53, %v668_v57  ;;  %v664_v59 = vsel %vm18300_vm0, %v635_v41, %v636_v56  ;;  %v666_v60 = vsel %vm18300_vm0, %v636_v56, %v637_v54  ;;  %v817_v53 = vrot.slane %v13931_v52, 4 }
  0xa9   : > { %704 = vst [vmem:[#allocation4 + $0xa0] sm:$0xff] %v669_v58  ;;  %v665_v61 = vsel %vm18299_vm1, %v13882_v44, %v664_v59  ;;  %v667_v62 = vsel %vm18299_vm1, %v613_v55, %v666_v60 }
  0xaa   : > { %702 = vst [vmem:[#allocation4 + $0x90] sm:$0xff] %v665_v61  ;;  %1127 = vrot.lane.b32.xlu2 %v13739_v8, %s13642_s12  ;;  %1125 = vrot.lane.b32.xlu1 %v13720_v3, %s13642_s12 }
  0xab   : > { %703 = vst [vmem:[#allocation4 + $0x98] sm:$0xff] %v667_v62  ;;  %1123 = vrot.lane.b32.xlu0 %v13708_v0, %s13642_s12 }
  0xac   : > { %v793_v6 = vpop.permute.xlu2 %792  ;;  %v621_v11 = vpop.permute.xlu1 %620 }
  0xad   : > { %v640_v15 = vrot.slane %v621_v11, 4  ;;  %v619_v20 = vpop.permute.xlu0 %618 }
  0xae   : > { %v639_v24 = vrot.slane %v619_v20, 4 }
  0xaf   : > { %v674_v44 = vsel %vm18300_vm0, %v640_v15, %v641_v2 }
  0xb0   : > { %v675_v36 = vsel %vm18299_vm1, %v621_v11, %v674_v44  ;;  %v670_v37 = vsel %vm18300_vm0, %v638_v51, %v639_v24  ;;  %v672_v63 = vsel %vm18300_vm0, %v639_v24, %v640_v15  ;;  %v820_v15 = vrot.slane %v793_v6, 4 }
  0xb1   : > { %707 = vst [vmem:[#allocation4 + $0xb8] sm:$0xff] %v675_v36  ;;  %v671_v40 = vsel %vm18299_vm1, %v13889_v47, %v670_v37  ;;  %v673_v41 = vsel %vm18299_vm1, %v619_v20, %v672_v63  ;;  %v1098_v37 = vld [vmem:[%s13705_s10 + $0x98] sm:$0xf]  ;;  %v13994_v63 = vld [vmem:[%s13705_s10 + $0x90] sm:$0xff] }
  0xb2   : > { %705 = vst [vmem:[#allocation4 + $0xa8] sm:$0xff] %v671_v40  ;;  %1133 = vrot.lane.b32.xlu2 %v1089_v29, %s13642_s12  ;;  %1131 = vrot.lane.b32.xlu1 %v13949_v33, %s13642_s12 }
  0xb3   : > { %706 = vst [vmem:[#allocation4 + $0xb0] sm:$0xff] %v673_v41  ;;  %1129 = vrot.lane.b32.xlu0 %v13736_v7, %s13642_s12 }
  0xb4   : > { %v13963_v43 = vpop.permute.xlu2 %798  ;;  %v779_v45 = vpop.permute.xlu1 %778 }
  0xb5   : > { %v813_v38 = vrot.slane %v779_v45, 4  ;;  %v777_v47 = vpop.permute.xlu0 %776 }
  0xb6   : > { %v812_v46 = vrot.slane %v777_v47, 4 }
  0xb7   : > { %v833_v48 = vsel %vm18300_vm0, %v813_v38, %v814_v42 }
  0xb8   : > { %v834_v49 = vsel %vm18298_vm2, %v779_v45, %v833_v48  ;;  %v830_v50 = vsel %vm18300_vm0, %v812_v46, %v813_v38  ;;  %v823_v38 = vrot.slane %v13963_v43, 4 }
  0xb9   : > { %880 = vst [vmem:[#allocation4 + $0x208] sm:$0xff] %v834_v49  ;;  %v832_v51 = vsel %vm18298_vm2, %v777_v47, %v830_v50 }
  0xba   : > { %879 = vst [vmem:[#allocation4 + $0x200] sm:$0xff] %v832_v51  ;;  %1139 = vrot.lane.b32.xlu2 %v13765_v14, %s13642_s12  ;;  %1137 = vrot.lane.b32.xlu1 %v13747_v9, %s13642_s12 }
  0xbb   : > { %1135 = vrot.lane.b32.xlu0 %v13750_v10, %s13642_s12 }
  0xbc   : > { %v13976_v54 = vpop.permute.xlu2 %804  ;;  %v785_v55 = vpop.permute.xlu1 %784 }
  0xbd   : > { %v816_v56 = vrot.slane %v785_v55, 4  ;;  %v783_v57 = vpop.permute.xlu0 %782 }
  0xbe   : > { %v815_v58 = vrot.slane %v783_v57, 4 }
  0xbf   : > { %v839_v59 = vsel %vm18300_vm0, %v816_v56, %v817_v53 }
  0xc0   : > { %v840_v60 = vsel %vm18298_vm2, %v785_v55, %v839_v59  ;;  %v835_v61 = vsel %vm18300_vm0, %v814_v42, %v815_v58  ;;  %v837_v62 = vsel %vm18300_vm0, %v815_v58, %v816_v56  ;;  %v826_v56 = vrot.slane %v13976_v54, 4 }
  0xc1   : > { %883 = vst [vmem:[#allocation4 + $0x220] sm:$0xff] %v840_v60  ;;  %v836_v2 = vsel %vm18298_vm2, %v13918_v39, %v835_v61  ;;  %v838_v11 = vsel %vm18298_vm2, %v783_v57, %v837_v62 }
  0xc2   : > { %881 = vst [vmem:[#allocation4 + $0x210] sm:$0xff] %v836_v2  ;;  %1145 = vrot.lane.b32.xlu2 %v13778_v17, %s13642_s12  ;;  %1143 = vrot.lane.b32.xlu1 %v13759_v12, %s13642_s12 }
  0xc3   : > { %882 = vst [vmem:[#allocation4 + $0x218] sm:$0xff] %v838_v11  ;;  %1141 = vrot.lane.b32.xlu0 %v13762_v13, %s13642_s12 }
  0xc4   : > { %v811_v20 = vpop.permute.xlu2 %810  ;;  %v791_v24 = vpop.permute.xlu1 %790 }
  0xc5   : > { %v819_v44 = vrot.slane %v791_v24, 4  ;;  %v789_v29 = vpop.permute.xlu0 %788 }
  0xc6   : > { %v818_v36 = vrot.slane %v789_v29, 4 }
  0xc7   : > { %v845_v39 = vsel %vm18300_vm0, %v819_v44, %v820_v15  ;;  %v829_v15 = vrot.slane %v811_v20, 4 }
  0xc8   : > { %v846_v40 = vsel %vm18298_vm2, %v791_v24, %v845_v39  ;;  %v841_v41 = vsel %vm18300_vm0, %v817_v53, %v818_v36  ;;  %v843_v6 = vsel %vm18300_vm0, %v818_v36, %v819_v44 }
  0xc9   : > { %886 = vst [vmem:[#allocation4 + $0x238] sm:$0xff] %v846_v40  ;;  %v842_v42 = vsel %vm18298_vm2, %v13931_v52, %v841_v41  ;;  %v844_v45 = vsel %vm18298_vm2, %v789_v29, %v843_v6 }
  0xca   : > { %884 = vst [vmem:[#allocation4 + $0x228] sm:$0xff] %v842_v42  ;;  %1151 = vrot.lane.b32.xlu2 %v1098_v37, %s13642_s12  ;;  %1149 = vrot.lane.b32.xlu1 %v13994_v63, %s13642_s12  ;;  %v1243_v37 = vld [vmem:[%s13705_s10 + $0x48] sm:$0xf] }
  0xcb   : > { %885 = vst [vmem:[#allocation4 + $0x230] sm:$0xff] %v844_v45  ;;  %1147 = vrot.lane.b32.xlu0 %v13775_v16, %s13642_s12 }
  0xcc   : > { %v14008_v47 = vpop.permute.xlu2 %935  ;;  %v797_v46 = vpop.permute.xlu1 %796 }
  0xcd   : > { %v822_v48 = vrot.slane %v797_v46, 4  ;;  %v795_v49 = vpop.permute.xlu0 %794  ;;  %v969_v20 = vrot.slane %v14008_v47, 4 }
  0xce   : > { %v821_v52 = vrot.slane %v795_v49, 4 }
  0xcf   : > { %v849_v50 = vsel %vm18300_vm0, %v822_v48, %v823_v38 }
  0xd0   : > { %v850_v51 = vsel %vm18298_vm2, %v797_v46, %v849_v50  ;;  %v847_v53 = vsel %vm18300_vm0, %v821_v52, %v822_v48 }
  0xd1   : > { %888 = vst [vmem:[#allocation4 + $0x288] sm:$0xff] %v850_v51  ;;  %v848_v55 = vsel %vm18298_vm2, %v795_v49, %v847_v53 }
  0xd2   : > { %887 = vst [vmem:[#allocation4 + $0x280] sm:$0xff] %v848_v55  ;;  %1275 = vrot.lane.b32.xlu2 %v13723_v4, %s13641_s11  ;;  %1273 = vrot.lane.b32.xlu1 %v13711_v1, %s13641_s11 }
  0xd3   : > { %1271 = vrot.lane.b32.xlu0 %v13726_v5, %s13641_s11 }
  0xd4   : > { %v14021_v57 = vpop.permute.xlu2 %941  ;;  %v803_v58 = vpop.permute.xlu1 %802 }
  0xd5   : > { %v825_v59 = vrot.slane %v803_v58, 4  ;;  %v801_v60 = vpop.permute.xlu0 %800 }
  0xd6   : > { %v824_v61 = vrot.slane %v801_v60, 4 }
  0xd7   : > { %v855_v62 = vsel %vm18300_vm0, %v825_v59, %v826_v56 }
  0xd8   : > { %v856_v2 = vsel %vm18298_vm2, %v803_v58, %v855_v62  ;;  %v851_v4 = vsel %vm18300_vm0, %v823_v38, %v824_v61  ;;  %v853_v11 = vsel %vm18300_vm0, %v824_v61, %v825_v59 }
  0xd9   : > { %891 = vst [vmem:[#allocation4 + $0x2a0] sm:$0xff] %v856_v2  ;;  %v852_v1 = vsel %vm18298_vm2, %v13963_v43, %v851_v4  ;;  %v854_v5 = vsel %vm18298_vm2, %v801_v60, %v853_v11 }
  0xda   : > { %889 = vst [vmem:[#allocation4 + $0x290] sm:$0xff] %v852_v1  ;;  %1281 = vrot.lane.b32.xlu2 %v13739_v8, %s13641_s11  ;;  %1279 = vrot.lane.b32.xlu1 %v13720_v3, %s13641_s11  ;;  %v1252_v1 = vld [vmem:[%s13705_s10 + $0x98] sm:$0xf] }
  0xdb   : > { %890 = vst [vmem:[#allocation4 + $0x298] sm:$0xff] %v854_v5  ;;  %1277 = vrot.lane.b32.xlu0 %v13708_v0, %s13641_s11 }
  0xdc   : > { %v948_v24 = vpop.permute.xlu2 %947  ;;  %v809_v44 = vpop.permute.xlu1 %808 }
  0xdd   : > { %v828_v29 = vrot.slane %v809_v44, 4  ;;  %v807_v36 = vpop.permute.xlu0 %806  ;;  %v975_v60 = vrot.slane %v948_v24, 4 }
  0xde   : > { %v827_v39 = vrot.slane %v807_v36, 4 }
  0xdf   : > { %v861_v43 = vsel %vm18300_vm0, %v828_v29, %v829_v15 }
  0xe0   : > { %v862_v40 = vsel %vm18298_vm2, %v809_v44, %v861_v43  ;;  %v857_v8 = vsel %vm18300_vm0, %v826_v56, %v827_v39  ;;  %v859_v41 = vsel %vm18300_vm0, %v827_v39, %v828_v29 }
  0xe1   : > { %894 = vst [vmem:[#allocation4 + $0x2b8] sm:$0xff] %v862_v40  ;;  %v858_v3 = vsel %vm18298_vm2, %v13976_v54, %v857_v8  ;;  %v860_v0 = vsel %vm18298_vm2, %v807_v36, %v859_v41 }
  0xe2   : > { %892 = vst [vmem:[#allocation4 + $0x2a8] sm:$0xff] %v858_v3  ;;  %1287 = vrot.lane.b32.xlu2 %v1243_v37, %s13641_s11  ;;  %1285 = vrot.lane.b32.xlu1 %v13949_v33, %s13641_s11 }
  0xe3   : > { %893 = vst [vmem:[#allocation4 + $0x2b0] sm:$0xff] %v860_v0  ;;  %1283 = vrot.lane.b32.xlu0 %v13736_v7, %s13641_s11  ;;  %v972_v7 = vrot.slane %v14021_v57, 4 }
  0xe4   : > { %v14050_v6 = vpop.permute.xlu2 %953  ;;  %v934_v42 = vpop.permute.xlu1 %933 }
  0xe5   : > { %v968_v45 = vrot.slane %v934_v42, 4  ;;  %v932_v38 = vpop.permute.xlu0 %931  ;;  %v978_v24 = vrot.slane %v14050_v6, 4 }
  0xe6   : > { %v967_v54 = vrot.slane %v932_v38, 4 }
  0xe7   : > { %v987_v46 = vsel %vm18300_vm0, %v968_v45, %v969_v20 }
  0xe8   : > { %v988_v48 = vsel %vm18299_vm1, %v934_v42, %v987_v46  ;;  %v985_v49 = vsel %vm18300_vm0, %v967_v54, %v968_v45 }
  0xe9   : > { %1034 = vst [vmem:[#allocation4 + $0x308] sm:$0xff] %v988_v48  ;;  %v986_v33 = vsel %vm18299_vm1, %v932_v38, %v985_v49 }
  0xea   : > { %1033 = vst [vmem:[#allocation4 + $0x300] sm:$0xff] %v986_v33  ;;  %1293 = vrot.lane.b32.xlu2 %v13765_v14, %s13641_s11  ;;  %1291 = vrot.lane.b32.xlu1 %v13747_v9, %s13641_s11 }
  0xeb   : > { %1289 = vrot.lane.b32.xlu0 %v13750_v10, %s13641_s11 }
  0xec   : > { %v14063_v52 = vpop.permute.xlu2 %959  ;;  %v940_v50 = vpop.permute.xlu1 %939 }
  0xed   : > { %v971_v51 = vrot.slane %v940_v50, 4  ;;  %v938_v53 = vpop.permute.xlu0 %937 }
  0xee   : > { %v970_v55 = vrot.slane %v938_v53, 4 }
  0xef   : > { %v993_v56 = vsel %vm18300_vm0, %v971_v51, %v972_v7 }
  0xf0   : > { %v994_v58 = vsel %vm18299_vm1, %v940_v50, %v993_v56  ;;  %v989_v14 = vsel %vm18300_vm0, %v969_v20, %v970_v55  ;;  %v991_v59 = vsel %vm18300_vm0, %v970_v55, %v971_v51  ;;  %v1429_v50 = vld [vmem:[%s13705_s10 + $0x4c] sm:$0xf]  ;;  %v1428_v51 = vld [vmem:[%s13705_s10 + $0x44] sm:$0xff] }
  0xf1   : > { %1037 = vst [vmem:[#allocation4 + $0x320] sm:$0xff] %v994_v58  ;;  %v990_v9 = vsel %vm18299_vm1, %v14008_v47, %v989_v14  ;;  %v992_v10 = vsel %vm18299_vm1, %v938_v53, %v991_v59 }
  0xf2   : > { %1035 = vst [vmem:[#allocation4 + $0x310] sm:$0xff] %v990_v9  ;;  %1299 = vrot.lane.b32.xlu2 %v13778_v17, %s13641_s11  ;;  %1297 = vrot.lane.b32.xlu1 %v13759_v12, %s13641_s11 }
  0xf3   : > { %1036 = vst [vmem:[#allocation4 + $0x318] sm:$0xff] %v992_v10  ;;  %1295 = vrot.lane.b32.xlu0 %v13762_v13, %s13641_s11 }
  0xf4   : > { %v966_v61 = vpop.permute.xlu2 %965  ;;  %v946_v62 = vpop.permute.xlu1 %945 }
  0xf5   : > { %v974_v2 = vrot.slane %v946_v62, 4  ;;  %v944_v4 = vpop.permute.xlu0 %943  ;;  %v984_v54 = vrot.slane %v966_v61, 4 }
  0xf6   : > { %v973_v11 = vrot.slane %v944_v4, 4 }
  0xf7   : > { %v999_v47 = vsel %vm18300_vm0, %v974_v2, %v975_v60 }
  0xf8   : > { %v1000_v5 = vsel %vm18299_vm1, %v946_v62, %v999_v47  ;;  %v995_v17 = vsel %vm18300_vm0, %v972_v7, %v973_v11  ;;  %v997_v15 = vsel %vm18300_vm0, %v973_v11, %v974_v2 }
  0xf9   : > { %1040 = vst [vmem:[#allocation4 + $0x338] sm:$0xff] %v1000_v5  ;;  %v996_v12 = vsel %vm18299_vm1, %v14021_v57, %v995_v17  ;;  %v998_v13 = vsel %vm18299_vm1, %v944_v4, %v997_v15 }
  0xfa   : > { %1038 = vst [vmem:[#allocation4 + $0x328] sm:$0xff] %v996_v12  ;;  %1305 = vrot.lane.b32.xlu2 %v1252_v1, %s13641_s11  ;;  %1303 = vrot.lane.b32.xlu1 %v13994_v63, %s13641_s11 }
  0xfb   : > { %1039 = vst [vmem:[#allocation4 + $0x330] sm:$0xff] %v998_v13  ;;  %1301 = vrot.lane.b32.xlu0 %v13775_v16, %s13641_s11  ;;  %v981_v16 = vrot.slane %v14063_v52, 4 }
  0xfc   : > { %v14092_v44 = vpop.permute.xlu2 %1121  ;;  %v952_v29 = vpop.permute.xlu1 %951 }
  0xfd   : > { %v977_v36 = vrot.slane %v952_v29, 4  ;;  %v950_v39 = vpop.permute.xlu0 %949  ;;  %v1155_v56 = vrot.slane %v14092_v44, 4 }
  0xfe   : > { %v976_v57 = vrot.slane %v950_v39, 4 }
  0xff   : > { %v1003_v43 = vsel %vm18300_vm0, %v977_v36, %v978_v24 }
 0x100   : > { %v1004_v37 = vsel %vm18299_vm1, %v952_v29, %v1003_v43  ;;  %v1001_v40 = vsel %vm18300_vm0, %v976_v57, %v977_v36  ;;  %v1438_v57 = vld [vmem:[%s13705_s10 + $0x9c] sm:$0xf]  ;;  %v1437_v43 = vld [vmem:[%s13705_s10 + $0x94] sm:$0xff] }
 0x101   : > { %1042 = vst [vmem:[#allocation4 + $0x388] sm:$0xff] %v1004_v37  ;;  %v1002_v63 = vsel %vm18299_vm1, %v950_v39, %v1001_v40 }
 0x102   : > { %1041 = vst [vmem:[#allocation4 + $0x380] sm:$0xff] %v1002_v63  ;;  %1461 = vrot.lane.b32.xlu2 %v13804_v23, %s13642_s12  ;;  %1459 = vrot.lane.b32.xlu1 %v13786_v18, %s13642_s12 }
 0x103   : > { %1457 = vrot.lane.b32.xlu0 %v13789_v19, %s13642_s12 }
 0x104   : > { %v14105_v8 = vpop.permute.xlu2 %1127  ;;  %v958_v41 = vpop.permute.xlu1 %957 }
 0x105   : > { %v980_v3 = vrot.slane %v958_v41, 4  ;;  %v956_v0 = vpop.permute.xlu0 %955 }
 0x106   : > { %v979_v20 = vrot.slane %v956_v0, 4 }
 0x107   : > { %v1009_v42 = vsel %vm18300_vm0, %v980_v3, %v981_v16 }
 0x108   : > { %v1010_v45 = vsel %vm18299_vm1, %v958_v41, %v1009_v42  ;;  %v1005_v23 = vsel %vm18300_vm0, %v978_v24, %v979_v20  ;;  %v1007_v38 = vsel %vm18300_vm0, %v979_v20, %v980_v3  ;;  %v1577_v42 = vld [vmem:[%s14185_s15 + $0x10] sm:$0xff] }
 0x109   : > { %1045 = vst [vmem:[#allocation4 + $0x3a0] sm:$0xff] %v1010_v45  ;;  %v1006_v18 = vsel %vm18299_vm1, %v14050_v6, %v1005_v23  ;;  %v1008_v19 = vsel %vm18299_vm1, %v956_v0, %v1007_v38  ;;  %v14190_v45 = vld [vmem:[%s14185_s15 + $0x8] sm:$0xff]  ;;  %v1575_v38 = vld [vmem:[%s14185_s15] sm:$0xff] }
 0x10a   : > { %1043 = vst [vmem:[#allocation4 + $0x390] sm:$0xff] %v1006_v18  ;;  %1467 = vrot.lane.b32.xlu2 %v13817_v26, %s13642_s12  ;;  %1465 = vrot.lane.b32.xlu1 %v13798_v21, %s13642_s12 }
 0x10b   : > { %1044 = vst [vmem:[#allocation4 + $0x398] sm:$0xff] %v1008_v19  ;;  %1463 = vrot.lane.b32.xlu0 %v13801_v22, %s13642_s12 }
 0x10c   : > { %v1134_v46 = vpop.permute.xlu2 %1133  ;;  %v964_v48 = vpop.permute.xlu1 %963 }
 0x10d   : > { %v983_v49 = vrot.slane %v964_v48, 4  ;;  %v962_v33 = vpop.permute.xlu0 %961  ;;  %v1161_v12 = vrot.slane %v1134_v46, 4 }
 0x10e   : > { %v982_v7 = vrot.slane %v962_v33, 4 }
 0x10f   : > { %v1015_v6 = vsel %vm18300_vm0, %v983_v49, %v984_v54 }
 0x110   : > { %v1016_v53 = vsel %vm18299_vm1, %v964_v48, %v1015_v6  ;;  %v1011_v26 = vsel %vm18300_vm0, %v981_v16, %v982_v7  ;;  %v1013_v21 = vsel %vm18300_vm0, %v982_v7, %v983_v49  ;;  %v1580_v6 = vld [vmem:[%s14185_s15 + $0x28] sm:$0xff] }
 0x111   : > { %1048 = vst [vmem:[#allocation4 + $0x3b8] sm:$0xff] %v1016_v53  ;;  %v1012_v55 = vsel %vm18299_vm1, %v14063_v52, %v1011_v26  ;;  %v1014_v22 = vsel %vm18299_vm1, %v962_v33, %v1013_v21  ;;  %v1578_v21 = vld [vmem:[%s14185_s15 + $0x18] sm:$0xff] }
 0x112   : > { %1046 = vst [vmem:[#allocation4 + $0x3a8] sm:$0xff] %v1012_v55  ;;  %1473 = vrot.lane.b32.xlu2 %v1429_v50, %s13642_s12  ;;  %1471 = vrot.lane.b32.xlu1 %v1428_v51, %s13642_s12  ;;  %v1579_v50 = vld [vmem:[%s14185_s15 + $0x20] sm:$0xff] }
 0x113   : > { %1047 = vst [vmem:[#allocation4 + $0x3b0] sm:$0xff] %v1014_v22  ;;  %1469 = vrot.lane.b32.xlu0 %v13814_v25, %s13642_s12  ;;  %v1158_v25 = vrot.slane %v14105_v8, 4 }
 0x114   : > { %v14134_v58 = vpop.permute.xlu2 %1139  ;;  %v1120_v14 = vpop.permute.xlu1 %1119 }
 0x115   : > { %v1154_v59 = vrot.slane %v1120_v14, 4  ;;  %v1118_v9 = vpop.permute.xlu0 %1117  ;;  %v1164_v63 = vrot.slane %v14134_v58, 4 }
 0x116   : > { %v1153_v10 = vrot.slane %v1118_v9, 4 }
 0x117   : > { %v1173_v52 = vsel %vm18300_vm0, %v1154_v59, %v1155_v56 }
 0x118   : > { %v1174_v60 = vsel %vm18298_vm2, %v1120_v14, %v1173_v52  ;;  %v1171_v61 = vsel %vm18300_vm0, %v1153_v10, %v1154_v59 }
 0x119   : > { %1220 = vst [vmem:[#allocation4 + $0x508] sm:$0xff] %v1174_v60  ;;  %v1172_v62 = vsel %vm18298_vm2, %v1118_v9, %v1171_v61  ;;  %v1583_v60 = vld [vmem:[%s14185_s15 + $0x40] sm:$0xf]  ;;  %v1582_v61 = vld [vmem:[%s14185_s15 + $0x38] sm:$0xff] }
 0x11a   : > { %1219 = vst [vmem:[#allocation4 + $0x500] sm:$0xff] %v1172_v62  ;;  %1479 = vrot.lane.b32.xlu2 %v13843_v32, %s13642_s12  ;;  %1477 = vrot.lane.b32.xlu1 %v13825_v27, %s13642_s12  ;;  %v1389_v62 = vld [vmem:[%s13705_s10 + $0xc] sm:$0xff] }
 0x11b   : > { %1475 = vrot.lane.b32.xlu0 %v13828_v28, %s13642_s12  ;;  %1405 = vst [vmem:[#allocation4 + $0x700] sm:$0xff] %v1389_v62 }
 0x11c   : > { %v14147_v2 = vpop.permute.xlu2 %1145  ;;  %v1126_v4 = vpop.permute.xlu1 %1125  ;;  %725 = vst [vmem:[#allocation4 + $0x108] sm:$0xff] %v1389_v62 }
 0x11d   : > { %v1157_v11 = vrot.slane %v1126_v4, 4  ;;  %v1124_v47 = vpop.permute.xlu0 %1123  ;;  %v1167_v19 = vrot.slane %v14147_v2, 4 }
 0x11e   : > { %v1156_v1 = vrot.slane %v1124_v47, 4 }
 0x11f   : > { %v1179_v5 = vsel %vm18300_vm0, %v1157_v11, %v1158_v25 }
 0x120   : > { %v1180_v17 = vsel %vm18298_vm2, %v1126_v4, %v1179_v5  ;;  %v1175_v32 = vsel %vm18300_vm0, %v1155_v56, %v1156_v1  ;;  %v1177_v15 = vsel %vm18300_vm0, %v1156_v1, %v1157_v11 }
 0x121   : > { %1223 = vst [vmem:[#allocation4 + $0x520] sm:$0xff] %v1180_v17  ;;  %v1176_v27 = vsel %vm18298_vm2, %v14092_v44, %v1175_v32  ;;  %v1178_v28 = vsel %vm18298_vm2, %v1124_v47, %v1177_v15  ;;  %v1581_v47 = vld [vmem:[%s14185_s15 + $0x30] sm:$0xff]  ;;  %v1397_v17 = vld [vmem:[%s13705_s10 + $0x5c] sm:$0xff] }
 0x122   : > { %1221 = vst [vmem:[#allocation4 + $0x510] sm:$0xff] %v1176_v27  ;;  %1485 = vrot.lane.b32.xlu2 %v13856_v35, %s13642_s12  ;;  %1483 = vrot.lane.b32.xlu1 %v13837_v30, %s13642_s12  ;;  %v1390_v32 = vld [vmem:[%s13705_s10 + $0x14] sm:$0xff]  ;;  %v1398_v27 = vld [vmem:[%s13705_s10 + $0x64] sm:$0xff] }
 0x123   : > { %1222 = vst [vmem:[#allocation4 + $0x518] sm:$0xff] %v1178_v28  ;;  %1481 = vrot.lane.b32.xlu0 %v13840_v31, %s13642_s12 }
 0x124   : > { %v14162_v13 = vpop.permute.xlu2 %1151  ;;  %v1132_v24 = vpop.permute.xlu1 %1131  ;;  %1413 = vst [vmem:[#allocation4 + $0x780] sm:$0xff] %v1397_v17 }
 0x125   : > { %v1160_v29 = vrot.slane %v1132_v24, 4  ;;  %v1130_v36 = vpop.permute.xlu0 %1129  ;;  %v1170_v56 = vrot.slane %v14162_v13, 4  ;;  %1406 = vst [vmem:[#allocation4 + $0x708] sm:$0xff] %v1390_v32 }
 0x126   : > { %v1159_v44 = vrot.slane %v1130_v36, 4  ;;  %1414 = vst [vmem:[#allocation4 + $0x788] sm:$0xff] %v1398_v27 }
 0x127   : > { %v1185_v39 = vsel %vm18300_vm0, %v1160_v29, %v1161_v12  ;;  %733 = vst [vmem:[#allocation4 + $0x188] sm:$0xff] %v1397_v17 }
 0x128   : > { %v1186_v35 = vsel %vm18298_vm2, %v1132_v24, %v1185_v39  ;;  %v1181_v30 = vsel %vm18300_vm0, %v1158_v25, %v1159_v44  ;;  %v1183_v37 = vsel %vm18300_vm0, %v1159_v44, %v1160_v29  ;;  %v14244_v44 = vld [vmem:[%s14185_s15 + $0x58] sm:$0xff]  ;;  %726 = vst [vmem:[#allocation4 + $0x110] sm:$0xff] %v1390_v32 }
 0x129   : > { %1226 = vst [vmem:[#allocation4 + $0x538] sm:$0xff] %v1186_v35  ;;  %v1182_v31 = vsel %vm18298_vm2, %v14105_v8, %v1181_v30  ;;  %v1184_v40 = vsel %vm18298_vm2, %v1130_v36, %v1183_v37  ;;  %v14241_v36 = vld [vmem:[%s14185_s15 + $0x60] sm:$0xff]  ;;  %v11435_v30 = vld [vmem:[#allocation4 + $0x700] sm:$0xf] }
 0x12a   : > { %1224 = vst [vmem:[#allocation4 + $0x528] sm:$0xff] %v1182_v31  ;;  %1491 = vrot.lane.b32.xlu2 %v1438_v57, %s13642_s12  ;;  %1489 = vrot.lane.b32.xlu1 %v1437_v43, %s13642_s12  ;;  %v1584_v43 = vld [vmem:[%s14185_s15 + $0x50] sm:$0xff] }
 0x12b   : > { %1225 = vst [vmem:[#allocation4 + $0x530] sm:$0xff] %v1184_v40  ;;  %1487 = vrot.lane.b32.xlu0 %v13853_v34, %s13642_s12  ;;  %v13172_v31 = vld [vmem:[#allocation4 + $0x77c] sm:$0xf0] }
 0x12c   : > { %v14178_v16 = vpop.permute.xlu2 %1275  ;;  %v1138_v41 = vpop.permute.xlu1 %1137  ;;  %734 = vst [vmem:[#allocation4 + $0x190] sm:$0xff] %v1398_v27  ;;  %v14301_v27 = vld [vmem:[%s14185_s15 + $0xc] sm:$0xff] }
 0x12d   : > { %v1163_v8 = vrot.slane %v1138_v41, 4  ;;  %v1136_v3 = vpop.permute.xlu0 %1135  ;;  %v1309_v15 = vrot.slane %v14178_v16, 4 }
 0x12e   : > { %v1162_v0 = vrot.slane %v1136_v3, 4 }
 0x12f   : > { %v1189_v20 = vsel %vm18300_vm0, %v1163_v8, %v1164_v63 }
 0x130   : > { %v1190_v34 = vsel %vm18298_vm2, %v1138_v41, %v1189_v20  ;;  %v1187_v23 = vsel %vm18300_vm0, %v1162_v0, %v1163_v8  ;;  %v11436_v41 = vor.u32 %v13172_v31, %v11435_v30  ;;  %v11443_v8 = vld [vmem:[#allocation4 + $0x708] sm:$0xf] }
 0x131   : > { %1228 = vst [vmem:[#allocation4 + $0x588] sm:$0xff] %v1190_v34  ;;  %v1188_v18 = vsel %vm18298_vm2, %v1136_v3, %v1187_v23  ;;  %v1049_v3 = vld [vmem:[%s13705_s10 + $0x8] sm:$0xff]  ;;  %v1057_v34 = vld [vmem:[%s13705_s10 + $0x58] sm:$0xff] }
 0x132   : > { %1227 = vst [vmem:[#allocation4 + $0x580] sm:$0xff] %v1188_v18  ;;  %1615 = vrot.lane.b32.xlu2 %v1577_v42, %s13641_s11  ;;  %1613 = vrot.lane.b32.xlu1 %v14190_v45, %s13641_s11  ;;  %v13173_v42 = vld [vmem:[#allocation4 + $0x784] sm:$0xf0] }
 0x133   : > { %1611 = vrot.lane.b32.xlu0 %v1575_v38, %s13641_s11  ;;  %1065 = vst [vmem:[#allocation4 + $0x400] sm:$0xff] %v1049_v3  ;;  %4334 = vmatpush.bf16.msra.mxu0 %v11436_v41  ;;  %v11444_v38 = vor.u32 %v13173_v42, %v11443_v8  ;;  %v1050_v18 = vld [vmem:[%s13705_s10 + $0x10] sm:$0xff] }
 0x134   : > { %v14201_v54 = vpop.permute.xlu2 %1281  ;;  %v1144_v46 = vpop.permute.xlu1 %1143  ;;  %1073 = vst [vmem:[#allocation4 + $0x480] sm:$0xff] %v1057_v34  ;;  %v14320_v31 = vld [vmem:[%s14185_s15 + $0x2c] sm:$0xff] }
 0x135   : > { %v1166_v48 = vrot.slane %v1144_v46, 4  ;;  %v1142_v49 = vpop.permute.xlu0 %1141  ;;  %v1312_v37 = vrot.slane %v14201_v54, 4  ;;  %1066 = vst [vmem:[#allocation4 + $0x408] sm:$0xff] %v1050_v18  ;;  %4386 = vmatpush.bf16.msra.mxu1 %v11444_v38 }
 0x136   : > { %v1165_v33 = vrot.slane %v1142_v49, 4 }
 0x137   : > { %v1195_v7 = vsel %vm18300_vm0, %v1166_v48, %v1167_v19 }
 0x138   : > { %v1196_v51 = vsel %vm18298_vm2, %v1144_v46, %v1195_v7  ;;  %v1191_v53 = vsel %vm18300_vm0, %v1164_v63, %v1165_v33  ;;  %v1193_v26 = vsel %vm18300_vm0, %v1165_v33, %v1166_v48  ;;  %v1589_v48 = vld [vmem:[%s14185_s15 + $0x78] sm:$0xff] }
 0x139   : > { %1231 = vst [vmem:[#allocation4 + $0x5a0] sm:$0xff] %v1196_v51  ;;  %v1192_v55 = vsel %vm18298_vm2, %v14134_v58, %v1191_v53  ;;  %v1194_v22 = vsel %vm18298_vm2, %v1142_v49, %v1193_v26  ;;  %v1588_v49 = vld [vmem:[%s14185_s15 + $0x70] sm:$0xff] }
 0x13a   : > { %1229 = vst [vmem:[#allocation4 + $0x590] sm:$0xff] %v1192_v55  ;;  %1621 = vrot.lane.b32.xlu2 %v1580_v6, %s13641_s11  ;;  %1619 = vrot.lane.b32.xlu1 %v1579_v50, %s13641_s11  ;;  %v1587_v50 = vld [vmem:[%s14185_s15 + $0x68] sm:$0xff] }
 0x13b   : > { %1230 = vst [vmem:[#allocation4 + $0x598] sm:$0xff] %v1194_v22  ;;  %1617 = vrot.lane.b32.xlu0 %v1578_v21, %s13641_s11 }
 0x13c   : > { %v14217_v14 = vpop.permute.xlu2 %1287  ;;  %v1150_v59 = vpop.permute.xlu1 %1149 }
 0x13d   : > { %v1169_v9 = vrot.slane %v1150_v59, 4  ;;  %v1148_v58 = vpop.permute.xlu0 %1147  ;;  %v1315_v26 = vrot.slane %v14217_v14, 4 }
 0x13e   : > { %v1168_v10 = vrot.slane %v1148_v58, 4 }
 0x13f   : > { %v1201_v52 = vsel %vm18300_vm0, %v1169_v9, %v1170_v56 }
 0x140   : > { %v1202_v25 = vsel %vm18298_vm2, %v1150_v59, %v1201_v52  ;;  %v1197_v4 = vsel %vm18300_vm0, %v1167_v19, %v1168_v10  ;;  %v1199_v11 = vsel %vm18300_vm0, %v1168_v10, %v1169_v9  ;;  %v1058_v19 = vld [vmem:[%s13705_s10 + $0x60] sm:$0xff]  ;;  %v1592_v9 = vld [vmem:[%s14185_s15 + $0x90] sm:$0xf] }
 0x141   : > { %1234 = vst [vmem:[#allocation4 + $0x5b8] sm:$0xff] %v1202_v25  ;;  %v1198_v1 = vsel %vm18298_vm2, %v14147_v2, %v1197_v4  ;;  %v1200_v5 = vsel %vm18298_vm2, %v1148_v58, %v1199_v11  ;;  %v1591_v58 = vld [vmem:[%s14185_s15 + $0x88] sm:$0xff]  ;;  %v716_v4 = vld [vmem:[%s13705_s10 + $0x54] sm:$0xff] }
 0x142   : > { %1232 = vst [vmem:[#allocation4 + $0x5a8] sm:$0xff] %v1198_v1  ;;  %1627 = vrot.lane.b32.xlu2 %v1583_v60, %s13641_s11  ;;  %1625 = vrot.lane.b32.xlu1 %v1582_v61, %s13641_s11  ;;  %v708_v10 = vld [vmem:[%s13705_s10 + $0x4] sm:$0xff] }
 0x143   : > { %1233 = vst [vmem:[#allocation4 + $0x5b0] sm:$0xff] %v1200_v5  ;;  %1623 = vrot.lane.b32.xlu0 %v1581_v47, %s13641_s11  ;;  %v1590_v61 = vld [vmem:[%s14185_s15 + $0x80] sm:$0xff] }
 0x144   : > { %v14237_v28 = vpop.permute.xlu2 %1293  ;;  %v1274_v2 = vpop.permute.xlu1 %1273  ;;  %1074 = vst [vmem:[#allocation4 + $0x488] sm:$0xff] %v1058_v19 }
 0x145   : > { %v1308_v12 = vrot.slane %v1274_v2, 4  ;;  %v1272_v13 = vpop.permute.xlu0 %1271  ;;  %724 = vst [vmem:[#allocation4 + $0x100] sm:$0xff] %v708_v10  ;;  %v1318_v11 = vrot.slane %v14237_v28, 4  ;;  %v14346_v10 = vld [vmem:[%s14185_s15 + $0x3c] sm:$0xff] }
 0x146   : > { %v1307_v24 = vrot.slane %v1272_v13, 4  ;;  %732 = vst [vmem:[#allocation4 + $0x180] sm:$0xff] %v716_v4 }
 0x147   : > { %v1327_v29 = vsel %vm18300_vm0, %v1308_v12, %v1309_v15 }
 0x148   : > { %v1328_v39 = vsel %vm18299_vm1, %v1274_v2, %v1327_v29  ;;  %v1325_v57 = vsel %vm18300_vm0, %v1307_v24, %v1308_v12 }
 0x149   : > { %1374 = vst [vmem:[#allocation4 + $0x608] sm:$0xff] %v1328_v39  ;;  %v1326_v35 = vsel %vm18299_vm1, %v1272_v13, %v1325_v57  ;;  %v14306_v13 = vld [vmem:[%s14185_s15 + $0x4] sm:$0xff] }
 0x14a   : > { %1373 = vst [vmem:[#allocation4 + $0x600] sm:$0xff] %v1326_v35  ;;  %1633 = vrot.lane.b32.xlu2 %v14241_v36, %s13641_s11  ;;  %1631 = vrot.lane.b32.xlu1 %v14244_v44, %s13641_s11 }
 0x14b   : > { %1629 = vrot.lane.b32.xlu0 %v1584_v43, %s13641_s11 }
 0x14c   : > { %v14256_v40 = vpop.permute.xlu2 %1299  ;;  %v1280_v63 = vpop.permute.xlu1 %1279 }
 0x14d   : > { %v1311_v0 = vrot.slane %v1280_v63, 4  ;;  %v1278_v20 = vpop.permute.xlu0 %1277  ;;  %v1321_v29 = vrot.slane %v14256_v40, 4 }
 0x14e   : > { %v1310_v23 = vrot.slane %v1278_v20, 4 }
 0x14f   : > { %v1333_v46 = vsel %vm18300_vm0, %v1311_v0, %v1312_v37 }
 0x150   : > { %v1334_v33 = vsel %vm18299_vm1, %v1280_v63, %v1333_v46  ;;  %v1329_v7 = vsel %vm18300_vm0, %v1309_v15, %v1310_v23  ;;  %v1331_v6 = vsel %vm18300_vm0, %v1310_v23, %v1311_v0  ;;  %v14298_v15 = vld [vmem:[%s14185_s15 + $0x14] sm:$0xff]  ;;  %v14323_v63 = vld [vmem:[%s14185_s15 + $0x24] sm:$0xff]  ;;  %v14329_v0 = vld [vmem:[%s14185_s15 + $0x1c] sm:$0xff] }
 0x151   : > { %1377 = vst [vmem:[#allocation4 + $0x620] sm:$0xff] %v1334_v33  ;;  %v1330_v51 = vsel %vm18299_vm1, %v14178_v16, %v1329_v7  ;;  %v1332_v53 = vsel %vm18299_vm1, %v1278_v20, %v1331_v6  ;;  %v11315_v20 = vld [vmem:[#allocation4 + $0x608] sm:$0xf]  ;;  %v11307_v38 = vld [vmem:[#allocation4 + $0x600] sm:$0xf] }
 0x152   : > { %1375 = vst [vmem:[#allocation4 + $0x610] sm:$0xff] %v1330_v51  ;;  %1639 = vrot.lane.b32.xlu2 %v1589_v48, %s13641_s11  ;;  %1637 = vrot.lane.b32.xlu1 %v1588_v49, %s13641_s11  ;;  %v13109_v48 = vld [vmem:[#allocation4 + $0x584] sm:$0xf0] }
 0x153   : > { %1376 = vst [vmem:[#allocation4 + $0x618] sm:$0xff] %v1332_v53  ;;  %1635 = vrot.lane.b32.xlu0 %v1587_v50, %s13641_s11  ;;  %v11187_v33 = vld [vmem:[#allocation4 + $0x508] sm:$0xf]  ;;  %v11179_v50 = vld [vmem:[#allocation4 + $0x500] sm:$0xf] }
 0x154   : > { %v14276_v21 = vpop.permute.xlu2 %1305  ;;  %v1286_v55 = vpop.permute.xlu1 %1285  ;;  %v11059_v51 = vld [vmem:[#allocation4 + $0x408] sm:$0xf] }
 0x155   : > { %v1314_v22 = vrot.slane %v1286_v55, 4  ;;  %v1284_v16 = vpop.permute.xlu0 %1283  ;;  %v1324_v49 = vrot.slane %v14276_v21, 4  ;;  %v13077_v53 = vld [vmem:[#allocation4 + $0x484] sm:$0xf0]  ;;  %v11188_v21 = vor.u32 %v13109_v48, %v11187_v33  ;;  %v12980_v33 = vld [vmem:[#allocation4 + $0x17c] sm:$0xf0] }
 0x156   : > { %v1313_v56 = vrot.slane %v1284_v16, 4 }
 0x157   : > { %v1339_v59 = vsel %vm18300_vm0, %v1314_v22, %v1315_v26 }
 0x158   : > { %v1340_v52 = vsel %vm18299_vm1, %v1286_v55, %v1339_v59  ;;  %v1335_v60 = vsel %vm18300_vm0, %v1312_v37, %v1313_v56  ;;  %v1337_v14 = vsel %vm18300_vm0, %v1313_v56, %v1314_v22  ;;  %v11051_v22 = vld [vmem:[#allocation4 + $0x400] sm:$0xf] }
 0x159   : > { %1380 = vst [vmem:[#allocation4 + $0x638] sm:$0xff] %v1340_v52  ;;  %v1336_v62 = vsel %vm18299_vm1, %v14201_v54, %v1335_v60  ;;  %v1338_v25 = vsel %vm18299_vm1, %v1284_v16, %v1337_v14  ;;  %v13076_v16 = vld [vmem:[#allocation4 + $0x47c] sm:$0xf0]  ;;  %v11060_v52 = vor.u32 %v13077_v53, %v11059_v51  ;;  %v14389_v53 = vld [vmem:[%s18277_s2] sm:$0xff] }
 0x15a   : > { %1378 = vst [vmem:[#allocation4 + $0x628] sm:$0xff] %v1336_v62  ;;  %1645 = vrot.lane.b32.xlu2 %v1592_v9, %s13641_s11  ;;  %1643 = vrot.lane.b32.xlu1 %v1591_v58, %s13641_s11  ;;  %v1769_v58 = vld [vmem:[%s14185_s15 + $0x44] sm:$0xf]  ;;  %v14352_v62 = vld [vmem:[%s14185_s15 + $0x34] sm:$0xff] }
 0x15b   : > { %1379 = vst [vmem:[#allocation4 + $0x630] sm:$0xff] %v1338_v25  ;;  %1641 = vrot.lane.b32.xlu0 %v1590_v61, %s13641_s11  ;;  %v11052_v25 = vor.u32 %v13076_v16, %v11051_v22 }
 0x15c   : > { %v14294_v47 = vpop.permute.xlu2 %1461  ;;  %v1292_v1 = vpop.permute.xlu1 %1291 }
 0x15d   : > { %v1317_v54 = vrot.slane %v1292_v1, 4  ;;  %v1290_v5 = vpop.permute.xlu0 %1289 }
 0x15e   : > { %v1316_v17 = vrot.slane %v1290_v5, 4 }
 0x15f   : > { %v1343_v32 = vsel %vm18300_vm0, %v1317_v54, %v1318_v11 }
 0x160   : > { %v1344_v2 = vsel %vm18299_vm1, %v1292_v1, %v1343_v32  ;;  %v1341_v12 = vsel %vm18300_vm0, %v1316_v17, %v1317_v54  ;;  %v13045_v1 = vld [vmem:[#allocation4 + $0x384] sm:$0xf0]  ;;  %v1495_v54 = vrot.slane %v14294_v47, 4 }
 0x161   : > { %1382 = vst [vmem:[#allocation4 + $0x688] sm:$0xff] %v1344_v2  ;;  %v1342_v24 = vsel %vm18299_vm1, %v1290_v5, %v1341_v12  ;;  %v13044_v5 = vld [vmem:[#allocation4 + $0x37c] sm:$0xf0]  ;;  %v10931_v32 = vld [vmem:[#allocation4 + $0x308] sm:$0xf]  ;;  %v1391_v2 = vld [vmem:[%s13705_s10 + $0x1c] sm:$0xff] }
 0x162   : > { %1381 = vst [vmem:[#allocation4 + $0x680] sm:$0xff] %v1342_v24  ;;  %1801 = vrot.lane.b32.xlu2 %v14298_v15, %s13642_s12  ;;  %1799 = vrot.lane.b32.xlu1 %v14301_v27, %s13642_s12  ;;  %v1399_v12 = vld [vmem:[%s13705_s10 + $0x6c] sm:$0xff] }
 0x163   : > { %1797 = vrot.lane.b32.xlu0 %v14306_v13, %s13642_s12  ;;  %1407 = vst [vmem:[#allocation4 + $0x710] sm:$0xff] %v1391_v2 }
 0x164   : > { %v14316_v39 = vpop.permute.xlu2 %1467  ;;  %v1298_v57 = vpop.permute.xlu1 %1297  ;;  %1415 = vst [vmem:[#allocation4 + $0x790] sm:$0xff] %v1399_v12 }
 0x165   : > { %v1320_v43 = vrot.slane %v1298_v57, 4  ;;  %v1296_v35 = vpop.permute.xlu0 %1295  ;;  %727 = vst [vmem:[#allocation4 + $0x118] sm:$0xff] %v1391_v2 }
 0x166   : > { %v1319_v30 = vrot.slane %v1296_v35, 4  ;;  %735 = vst [vmem:[#allocation4 + $0x198] sm:$0xff] %v1399_v12  ;;  %v1392_v12 = vld [vmem:[%s13705_s10 + $0x24] sm:$0xff] }
 0x167   : > { %v1349_v37 = vsel %vm18300_vm0, %v1320_v43, %v1321_v29  ;;  %1408 = vst [vmem:[#allocation4 + $0x718] sm:$0xff] %v1392_v12 }
 0x168   : > { %v1350_v41 = vsel %vm18299_vm1, %v1298_v57, %v1349_v37  ;;  %v1345_v8 = vsel %vm18300_vm0, %v1318_v11, %v1319_v30  ;;  %v1347_v3 = vsel %vm18300_vm0, %v1319_v30, %v1320_v43  ;;  %v13141_v42 = vld [vmem:[#allocation4 + $0x684] sm:$0xf0]  ;;  %v10923_v57 = vld [vmem:[#allocation4 + $0x300] sm:$0xf]  ;;  %v10932_v43 = vor.u32 %v13045_v1, %v10931_v32  ;;  %728 = vst [vmem:[#allocation4 + $0x120] sm:$0xff] %v1392_v12 }
 0x169   : > { %1385 = vst [vmem:[#allocation4 + $0x6a0] sm:$0xff] %v1350_v41  ;;  %v1346_v34 = vsel %vm18299_vm1, %v14237_v28, %v1345_v8  ;;  %v1348_v23 = vsel %vm18299_vm1, %v1296_v35, %v1347_v3  ;;  %v13140_v18 = vld [vmem:[#allocation4 + $0x67c] sm:$0xf0]  ;;  %v11316_v19 = vor.u32 %v13141_v42, %v11315_v20  ;;  %v10924_v30 = vor.u32 %v13044_v5, %v10923_v57  ;;  %v10803_v37 = vld [vmem:[#allocation4 + $0x208] sm:$0xf]  ;;  %v14372_v20 = vld [vmem:[%s14185_s15 + $0x5c] sm:$0xff] }
 0x16a   : > { %1383 = vst [vmem:[#allocation4 + $0x690] sm:$0xff] %v1346_v34  ;;  %1807 = vrot.lane.b32.xlu2 %v14320_v31, %s13642_s12  ;;  %1805 = vrot.lane.b32.xlu1 %v14323_v63, %s13642_s12  ;;  %v11308_v46 = vor.u32 %v13140_v18, %v11307_v38  ;;  %v13108_v28 = vld [vmem:[#allocation4 + $0x57c] sm:$0xf0]  ;;  %v13013_v41 = vld [vmem:[#allocation4 + $0x284] sm:$0xf0]  ;;  %v14377_v18 = vld [vmem:[%s14185_s15 + $0x54] sm:$0xff] }
 0x16b   : > { %1384 = vst [vmem:[#allocation4 + $0x698] sm:$0xff] %v1348_v23  ;;  %1803 = vrot.lane.b32.xlu0 %v14329_v0, %s13642_s12  ;;  %4387 = vmatpush.bf16.msra.mxu1 %v11316_v19  ;;  %v11180_v59 = vor.u32 %v13108_v28, %v11179_v50  ;;  %v1772_v3 = vld [vmem:[%s14185_s15 + $0x64] sm:$0xff]  ;;  %v10675_v19 = vld [vmem:[#allocation4 + $0x108] sm:$0xf]  ;;  %v1498_v50 = vrot.slane %v14316_v39, 4 }
 0x16c   : > { %4335 = vmatpush.bf16.msra.mxu0 %v11308_v46  ;;  %v14341_v7 = vpop.permute.xlu2 %1473  ;;  %v1304_v6 = vpop.permute.xlu1 %1303  ;;  %v10795_v42 = vld [vmem:[#allocation4 + $0x200] sm:$0xf]  ;;  %v12981_v46 = vld [vmem:[#allocation4 + $0x184] sm:$0xf0]  ;;  %v13157_v12 = vld [vmem:[#allocation4 + $0x70c] sm:$0xf] }
 0x16d   : > { %v1323_v26 = vrot.slane %v1304_v6, 4  ;;  %v1302_v55 = vpop.permute.xlu0 %1301  ;;  %v13012_v34 = vld [vmem:[#allocation4 + $0x27c] sm:$0xf0]  ;;  %v10676_v51 = vor.u32 %v12981_v46, %v10675_v19  ;;  %v10547_v1 = vld [vmem:[#allocation4 + $0x8] sm:$0xf]  ;;  %v1501_v57 = vrot.slane %v14341_v7, 4 }
 0x16e   : > { %v1322_v56 = vrot.slane %v1302_v55, 4  ;;  %v10667_v28 = vld [vmem:[#allocation4 + $0x100] sm:$0xf] }
 0x16f   : > { %v1355_v9 = vsel %vm18300_vm0, %v1323_v26, %v1324_v49  ;;  %4388 = vmatpush.bf16.msra.mxu1 %v11188_v21  ;;  %v10804_v49 = vor.u32 %v13013_v41, %v10803_v37  ;;  %v10668_v21 = vor.u32 %v12980_v33, %v10667_v28  ;;  %v10539_v32 = vld [vmem:[#allocation4] sm:$0xf]  ;;  %v1052_v28 = vld [vmem:[%s13705_s10 + $0x20] sm:$0xff] }
 0x170   : > { %v1356_v60 = vsel %vm18299_vm1, %v1304_v6, %v1355_v9  ;;  %v1351_v14 = vsel %vm18300_vm0, %v1321_v29, %v1322_v56  ;;  %v1353_v61 = vsel %vm18300_vm0, %v1322_v56, %v1323_v26  ;;  %4336 = vmatpush.bf16.msra.mxu0 %v11180_v59  ;;  %v10796_v6 = vor.u32 %v13012_v34, %v10795_v42  ;;  %v12949_v59 = vld [vmem:[#allocation4 + $0x84] sm:$0xf0]  ;;  %v1776_v19 = vld [vmem:[%s14185_s15 + $0x84] sm:$0xff] }
 0x171   : > { %1388 = vst [vmem:[#allocation4 + $0x6b8] sm:$0xff] %v1356_v60  ;;  %v1352_v4 = vsel %vm18299_vm1, %v14256_v40, %v1351_v14  ;;  %v1354_v11 = vsel %vm18299_vm1, %v1302_v55, %v1353_v61  ;;  %v2885_v9 = vunpack.c.l.b16 %v14389_v53  ;;  %v1774_v60 = vld [vmem:[%s14185_s15 + $0x74] sm:$0xff]  ;;  %v12948_v14 = vld [vmem:[#allocation4 + $0x7c] sm:$0xf0]  ;;  %v10548_v2 = vor.u32 %v12949_v59, %v10547_v1  ;;  %v1777_v42 = vld [vmem:[%s14185_s15 + $0x8c] sm:$0xff] }
 0x172   : > { %1386 = vst [vmem:[#allocation4 + $0x6a8] sm:$0xff] %v1352_v4  ;;  %1813 = vrot.lane.b32.xlu2 %v1769_v58, %s13642_s12  ;;  %1811 = vrot.lane.b32.xlu1 %v14346_v10, %s13642_s12 }
 0x173   : > { %1387 = vst [vmem:[#allocation4 + $0x6b0] sm:$0xff] %v1354_v11  ;;  %1809 = vrot.lane.b32.xlu0 %v14352_v62, %s13642_s12  ;;  %4389 = vmatpush.bf16.msra.mxu1 %v11060_v52  ;;  %v1775_v52 = vld [vmem:[%s14185_s15 + $0x7c] sm:$0xff]  ;;  %v1773_v11 = vld [vmem:[%s14185_s15 + $0x6c] sm:$0xff] }
 0x174   : > { %4337 = vmatpush.bf16.msra.mxu0 %v11052_v25  ;;  %v14363_v40 = vpop.permute.xlu2 %1479  ;;  %v1460_v17 = vpop.permute.xlu1 %1459  ;;  %1068 = vst [vmem:[#allocation4 + $0x418] sm:$0xff] %v1052_v28 }
 0x175   : > { %v1494_v24 = vrot.slane %v1460_v17, 4  ;;  %v1458_v29 = vpop.permute.xlu0 %1457 }
 0x176   : > { %v1493_v35 = vrot.slane %v1458_v29, 4 }
 0x177   : > { %v1513_v8 = vsel %vm18300_vm0, %v1494_v24, %v1495_v54  ;;  %4390 = vmatpush.bf16.msra.mxu1 %v10932_v43 }
 0x178   : > { %v1514_v23 = vsel %vm18298_vm2, %v1460_v17, %v1513_v8  ;;  %v1511_v38 = vsel %vm18300_vm0, %v1493_v35, %v1494_v24  ;;  %4338 = vmatpush.bf16.msra.mxu0 %v10924_v30  ;;  %v14409_v24 = vpack.c.b16 %v2885_v9, %v2885_v9  ;;  %v1059_v30 = vld [vmem:[%s13705_s10 + $0x68] sm:$0xff] }
 0x179   : > { %1560 = vst [vmem:[#allocation4 + $0x808] sm:$0xff] %v1514_v23  ;;  %v1512_v48 = vsel %vm18298_vm2, %v1458_v29, %v1511_v38  ;;  %v1400_v29 = vld [vmem:[%s13705_s10 + $0x74] sm:$0xff] }
 0x17a   : > { %1559 = vst [vmem:[#allocation4 + $0x800] sm:$0xff] %v1512_v48  ;;  %1819 = vrot.lane.b32.xlu2 %v1772_v3, %s13642_s12  ;;  %1817 = vrot.lane.b32.xlu1 %v14372_v20, %s13642_s12  ;;  %v1778_v3 = vld [vmem:[%s14185_s15 + $0x94] sm:$0xf] }
 0x17b   : > { %1815 = vrot.lane.b32.xlu0 %v14377_v18, %s13642_s12  ;;  %4391 = vmatpush.bf16.msra.mxu1 %v10804_v49  ;;  %1416 = vst [vmem:[#allocation4 + $0x798] sm:$0xff] %v1400_v29  ;;  %v1504_v49 = vrot.slane %v14363_v40, 4 }
 0x17c   : > { %4339 = vmatpush.bf16.msra.mxu0 %v10796_v6  ;;  %v14391_v26 = vpop.permute.xlu2 %1485  ;;  %v1466_v55 = vpop.permute.xlu1 %1465  ;;  %1075 = vst [vmem:[#allocation4 + $0x490] sm:$0xff] %v1059_v30 }
 0x17d   : > { %v1497_v22 = vrot.slane %v1466_v55, 4  ;;  %v1464_v16 = vpop.permute.xlu0 %1463  ;;  %736 = vst [vmem:[#allocation4 + $0x1a0] sm:$0xff] %v1400_v29  ;;  %v1507_v59 = vrot.slane %v14391_v26, 4 }
 0x17e   : > { %v1496_v56 = vrot.slane %v1464_v16, 4 }
 0x17f   : > { %v1519_v58 = vsel %vm18300_vm0, %v1497_v22, %v1498_v50  ;;  %4392 = vmatpush.bf16.msra.mxu1 %v10676_v51 }
 0x180   : > { %v1520_v61 = vsel %vm18298_vm2, %v1466_v55, %v1519_v58  ;;  %v1515_v25 = vsel %vm18300_vm0, %v1495_v54, %v1496_v56  ;;  %v1517_v4 = vsel %vm18300_vm0, %v1496_v56, %v1497_v22  ;;  %4340 = vmatpush.bf16.msra.mxu0 %v10668_v21  ;;  %v10540_v54 = vor.u32 %v12948_v14, %v10539_v32  ;;  %v11571_v1 = vld [vmem:[#allocation4 + $0x808] sm:$0xf] }
 0x181   : > { %1563 = vst [vmem:[#allocation4 + $0x820] sm:$0xff] %v1520_v61  ;;  %v1516_v5 = vsel %vm18298_vm2, %v14294_v47, %v1515_v25  ;;  %v1518_v17 = vsel %vm18298_vm2, %v1464_v16, %v1517_v4  ;;  %v1051_v47 = vld [vmem:[%s13705_s10 + $0x18] sm:$0xff]  ;;  %v11563_v32 = vld [vmem:[#allocation4 + $0x800] sm:$0xf] }
 0x182   : > { %1561 = vst [vmem:[#allocation4 + $0x810] sm:$0xff] %v1516_v5  ;;  %1825 = vrot.lane.b32.xlu2 %v1775_v52, %s13642_s12  ;;  %1823 = vrot.lane.b32.xlu1 %v1774_v60, %s13642_s12  ;;  %v13156_v52 = vld [vmem:[#allocation4 + $0x704] sm:$0xf]  ;;  %v13158_v25 = vld [vmem:[#allocation4 + $0x714] sm:$0xf] }
 0x183   : > { %1562 = vst [vmem:[#allocation4 + $0x818] sm:$0xff] %v1518_v17  ;;  %1821 = vrot.lane.b32.xlu0 %v1773_v11, %s13642_s12  ;;  %4393 = vmatpush.bf16.msra.mxu1 %v10548_v2  ;;  %v11437_v60 = vld [vmem:[#allocation4 + $0x780] sm:$0xf0]  ;;  %v11453_v4 = vld [vmem:[#allocation4 + $0x790] sm:$0xf0]  ;;  %v2886_v2 = vunpack.c.h.b16 %v14389_v53 }
 0x184   : > { %4341 = vmatpush.bf16.msra.mxu0 %v10540_v54  ;;  %v14415_v43 = vpop.permute.xlu2 %1491  ;;  %v1472_v35 = vpop.permute.xlu1 %1471  ;;  %1067 = vst [vmem:[#allocation4 + $0x410] sm:$0xff] %v1051_v47  ;;  %v1393_v5 = vld [vmem:[%s13705_s10 + $0x2c] sm:$0xff]  ;;  %v1401_v17 = vld [vmem:[%s13705_s10 + $0x7c] sm:$0xff]  ;;  %v11445_v54 = vld [vmem:[#allocation4 + $0x788] sm:$0xf0]  ;;  %v11440_v30 = vor.u32 %v13156_v52, %v11437_v60 }
 0x185   : > { %v1500_v37 = vrot.slane %v1472_v35, 4  ;;  %v1470_v41 = vpop.permute.xlu0 %1469  ;;  %1409 = vst [vmem:[#allocation4 + $0x720] sm:$0xff] %v1393_v5  ;;  %v11197_v52 = vld [vmem:[#allocation4 + $0x590] sm:$0xf0] }
 0x186   : > { %v1499_v8 = vrot.slane %v1470_v41, 4  ;;  %4394 = vmatmul.bf16.vlgmr.msra.gmra.mxu1 %v14409_v24  ;;  %1417 = vst [vmem:[#allocation4 + $0x7a0] sm:$0xff] %v1401_v17 }
 0x187   : > { %v1525_v7 = vsel %vm18300_vm0, %v1500_v37, %v1501_v57  ;;  %4342 = vmatmul.bf16.vlgmr.msra.gmra.mxu0 %v14409_v24  ;;  %729 = vst [vmem:[#allocation4 + $0x128] sm:$0xff] %v1393_v5 }
 0x188   : > { %v1526_v34 = vsel %vm18298_vm2, %v1472_v35, %v1525_v7  ;;  %v1521_v23 = vsel %vm18300_vm0, %v1498_v50, %v1499_v8  ;;  %v1523_v38 = vsel %vm18300_vm0, %v1499_v8, %v1500_v37  ;;  %v1060_v50 = vld [vmem:[%s13705_s10 + $0x70] sm:$0xff]  ;;  %737 = vst [vmem:[#allocation4 + $0x1a8] sm:$0xff] %v1401_v17 }
 0x189   : > { %1566 = vst [vmem:[#allocation4 + $0x838] sm:$0xff] %v1526_v34  ;;  %v1522_v46 = vsel %vm18298_vm2, %v14316_v39, %v1521_v23  ;;  %v1524_v48 = vsel %vm18298_vm2, %v1470_v41, %v1523_v38  ;;  %v11456_v38 = vor.u32 %v13158_v25, %v11453_v4  ;;  %v13092_v25 = vld [vmem:[#allocation4 + $0x504] sm:$0xf]  ;;  %v13190_v4 = vld [vmem:[#allocation4 + $0x814] sm:$0xf] }
 0x18a   : > { %1564 = vst [vmem:[#allocation4 + $0x828] sm:$0xff] %v1522_v46  ;;  %1831 = vrot.lane.b32.xlu2 %v1778_v3, %s13642_s12  ;;  %1829 = vrot.lane.b32.xlu1 %v1777_v42, %s13642_s12 }
 0x18b   : > { %1565 = vst [vmem:[#allocation4 + $0x830] sm:$0xff] %v1524_v48  ;;  %1827 = vrot.lane.b32.xlu0 %v1776_v19, %s13642_s12  ;;  %v1510_v19 = vrot.slane %v14415_v43, 4  ;;  %v11448_v48 = vor.u32 %v13157_v12, %v11445_v54 }
 0x18c   : > { %v14435_v33 = vpop.permute.xlu2 %1615  ;;  %v1478_v6 = vpop.permute.xlu1 %1477  ;;  %1076 = vst [vmem:[#allocation4 + $0x498] sm:$0xff] %v1060_v50  ;;  %v13126_v50 = vld [vmem:[#allocation4 + $0x614] sm:$0xf] }
 0x18d   : > { %v1503_v51 = vrot.slane %v1478_v6, 4  ;;  %v1476_v39 = vpop.permute.xlu0 %1475  ;;  %v1649_v12 = vrot.slane %v14435_v33, 4 }
 0x18e   : > { %v1502_v55 = vrot.slane %v1476_v39, 4 }
 0x18f   : > { %v1529_v21 = vsel %vm18300_vm0, %v1503_v51, %v1504_v49 }
 0x190   : > { %v1530_v22 = vsel %vm18298_vm2, %v1478_v6, %v1529_v21  ;;  %v1527_v16 = vsel %vm18300_vm0, %v1502_v55, %v1503_v51  ;;  %v13124_v6 = vld [vmem:[#allocation4 + $0x604] sm:$0xf]  ;;  %v11317_v51 = vld [vmem:[#allocation4 + $0x688] sm:$0xf0] }
 0x191   : > { %1568 = vst [vmem:[#allocation4 + $0x888] sm:$0xff] %v1530_v22  ;;  %v1528_v56 = vsel %vm18298_vm2, %v1476_v39, %v1527_v16  ;;  %v11181_v39 = vld [vmem:[#allocation4 + $0x580] sm:$0xf0]  ;;  %v1923_v16 = vld [vmem:[%s14185_s15 + $0x44] sm:$0xf] }
 0x192   : > { %1567 = vst [vmem:[#allocation4 + $0x880] sm:$0xff] %v1528_v56  ;;  %1955 = vrot.lane.b32.xlu2 %v14298_v15, %s13641_s11  ;;  %1953 = vrot.lane.b32.xlu1 %v14301_v27, %s13641_s11  ;;  %v13189_v15 = vld [vmem:[#allocation4 + $0x80c] sm:$0xf] }
 0x193   : > { %1951 = vrot.lane.b32.xlu0 %v14306_v13, %s13641_s11  ;;  %v13188_v13 = vld [vmem:[#allocation4 + $0x804] sm:$0xf]  ;;  %v13125_v56 = vld [vmem:[#allocation4 + $0x60c] sm:$0xf] }
 0x194   : > { %v14449_v9 = vpop.permute.xlu2 %1621  ;;  %v1484_v58 = vpop.permute.xlu1 %1483  ;;  %v11320_v17 = vor.u32 %v13125_v56, %v11317_v51  ;;  %v10925_v51 = vld [vmem:[#allocation4 + $0x380] sm:$0xf0]  ;;  %v10933_v56 = vld [vmem:[#allocation4 + $0x388] sm:$0xf0] }
 0x195   : > { %v1506_v14 = vrot.slane %v1484_v58, 4  ;;  %v1482_v61 = vpop.permute.xlu0 %1481 }
 0x196   : > { %v1505_v11 = vrot.slane %v1482_v61, 4 }
 0x197   : > { %v1535_v27 = vsel %vm18300_vm0, %v1506_v14, %v1507_v59 }
 0x198   : > { %v1536_v29 = vsel %vm18298_vm2, %v1484_v58, %v1535_v27  ;;  %v1531_v57 = vsel %vm18300_vm0, %v1504_v49, %v1505_v11  ;;  %v1533_v47 = vsel %vm18300_vm0, %v1505_v11, %v1506_v14  ;;  %v11573_v35 = vld [vmem:[#allocation4 + $0x888] sm:$0xf0]  ;;  %v13205_v37 = vld [vmem:[#allocation4 + $0x884] sm:$0xf0]  ;;  %v11325_v49 = vld [vmem:[#allocation4 + $0x690] sm:$0xf0] }
 0x199   : > { %1571 = vst [vmem:[#allocation4 + $0x8a0] sm:$0xff] %v1536_v29  ;;  %v1532_v41 = vsel %vm18298_vm2, %v14363_v40, %v1531_v57  ;;  %v1534_v8 = vsel %vm18298_vm2, %v1482_v61, %v1533_v47  ;;  %v13204_v53 = vld [vmem:[#allocation4 + $0x87c] sm:$0xf0]  ;;  %v11565_v7 = vld [vmem:[#allocation4 + $0x880] sm:$0xf0]  ;;  %v11576_v3 = vor.u32 %v13189_v15, %v11573_v35  ;;  %v11572_v42 = vor.u32 %v13205_v37, %v11571_v1 }
 0x19a   : > { %1569 = vst [vmem:[#allocation4 + $0x890] sm:$0xff] %v1532_v41  ;;  %1961 = vrot.lane.b32.xlu2 %v14320_v31, %s13641_s11  ;;  %1959 = vrot.lane.b32.xlu1 %v14323_v63, %s13641_s11  ;;  %v11564_v34 = vor.u32 %v13204_v53, %v11563_v32  ;;  %v11568_v23 = vor.u32 %v13188_v13, %v11565_v7  ;;  %v11309_v63 = vld [vmem:[#allocation4 + $0x680] sm:$0xf0]  ;;  %v11579_v58 = vld [vmem:[#allocation4 + $0x810] sm:$0xf]  ;;  %v14500_v37 = vld [vmem:[%s13705_s10 + $0x84] sm:$0xff] }
 0x19b   : > { %1570 = vst [vmem:[#allocation4 + $0x898] sm:$0xff] %v1534_v8  ;;  %1957 = vrot.lane.b32.xlu0 %v14329_v0, %s13641_s11  ;;  %4432 = vmatpush.bf16.msrb.mxu0 %v11576_v3  ;;  %v14470_v40 = vpack.c.b16 %v2886_v2, %v2886_v2  ;;  %v11312_v21 = vor.u32 %v13124_v6, %v11309_v63  ;;  %v13159_v11 = vld [vmem:[#allocation4 + $0x71c] sm:$0xf]  ;;  %v13094_v27 = vld [vmem:[#allocation4 + $0x514] sm:$0xf]  ;;  %v14491_v2 = vld [vmem:[%s13705_s10 + $0x34] sm:$0xff] }
 0x19c   : > { %4354 = vmatpush.bf16.msra.mxu2 %v11564_v34  ;;  %4380 = vmatpush.bf16.msra.mxu3 %v11568_v23  ;;  %v14472_v46 = vpop.permute.xlu2 %1627  ;;  %v1490_v31 = vpop.permute.xlu1 %1489  ;;  %v11328_v22 = vor.u32 %v13126_v50, %v11325_v49  ;;  %v11461_v15 = vld [vmem:[#allocation4 + $0x798] sm:$0xf0]  ;;  %v11189_v13 = vld [vmem:[#allocation4 + $0x588] sm:$0xf0]  ;;  %v11053_v57 = vld [vmem:[#allocation4 + $0x480] sm:$0xf0]  ;;  %v11184_v47 = vor.u32 %v13092_v25, %v11181_v39  ;;  %v11200_v53 = vor.u32 %v13094_v27, %v11197_v52 }
 0x19d   : > { %v1509_v28 = vrot.slane %v1490_v31, 4  ;;  %v1488_v43 = vpop.permute.xlu0 %1487  ;;  %v13062_v35 = vld [vmem:[#allocation4 + $0x414] sm:$0xf]  ;;  %v13093_v7 = vld [vmem:[#allocation4 + $0x50c] sm:$0xf]  ;;  %v11464_v3 = vor.u32 %v13159_v11, %v11461_v15  ;;  %1410 = vst [vmem:[#allocation4 + $0x728] sm:$0xff] %v14491_v2 }
 0x19e   : > { %v1508_v0 = vrot.slane %v1488_v43, 4  ;;  %11692 = vmatmul.msk.bf16.vlgmr.msrb.gmra.mxu0 %vm18302_vm3, %v14470_v40  ;;  %v13061_v23 = vld [vmem:[#allocation4 + $0x40c] sm:$0xf]  ;;  %1418 = vst [vmem:[#allocation4 + $0x7a8] sm:$0xff] %v14500_v37  ;;  %v13028_v50 = vld [vmem:[#allocation4 + $0x304] sm:$0xf] }
 0x19f   : > { %4464 = vmatpush.bf16.msra.mxu0 %v11456_v38  ;;  %v1541_v55 = vsel %vm18300_vm0, %v1509_v28, %v1510_v19  ;;  %11690 = vmatmul.msk.bf16.vlgmr.msra.gmra.mxu3 %vm18302_vm3, %v14470_v40  ;;  %v11061_v38 = vld [vmem:[#allocation4 + $0x488] sm:$0xf0]  ;;  %v1061_v19 = vld [vmem:[%s13705_s10 + $0x78] sm:$0xff]  ;;  %730 = vst [vmem:[#allocation4 + $0x130] sm:$0xff] %v14491_v2  ;;  %v12996_v15 = vld [vmem:[#allocation4 + $0x204] sm:$0xf] }
 0x1a0   : > { %4360 = vmatpush.bf16.msrb.mxu2 %v11440_v30  ;;  %4406 = vmatpush.bf16.msrb.mxu3 %v11572_v42  ;;  %v1542_v60 = vsel %vm18298_vm2, %v1490_v31, %v1541_v55  ;;  %v1537_v14 = vsel %vm18300_vm0, %v1507_v59, %v1508_v0  ;;  %v1539_v61 = vsel %vm18300_vm0, %v1508_v0, %v1509_v28  ;;  %v11069_v30 = vld [vmem:[#allocation4 + $0x490] sm:$0xf0]  ;;  %v11333_v28 = vld [vmem:[#allocation4 + $0x698] sm:$0xf0]  ;;  %v1054_v25 = vld [vmem:[%s13705_s10 + $0x30] sm:$0xff] }
 0x1a1   : > { %11689 = vmatmul.msk.bf16.vlgmr.msra.gmra.mxu2 %vm18302_vm3, %v14470_v40  ;;  %1574 = vst [vmem:[#allocation4 + $0x8b8] sm:$0xff] %v1542_v60  ;;  %v1538_v1 = vsel %vm18298_vm2, %v14391_v26, %v1537_v14  ;;  %v1540_v5 = vsel %vm18298_vm2, %v1488_v43, %v1539_v61  ;;  %v13206_v59 = vld [vmem:[#allocation4 + $0x88c] sm:$0xf0]  ;;  %v11581_v32 = vld [vmem:[#allocation4 + $0x890] sm:$0xf0]  ;;  %v11072_v63 = vor.u32 %v13062_v35, %v11069_v30  ;;  %v1652_v60 = vrot.slane %v14449_v9, 4 }
 0x1a2   : > { %1572 = vst [vmem:[#allocation4 + $0x8a8] sm:$0xff] %v1538_v1  ;;  %1967 = vrot.lane.b32.xlu2 %v1923_v16, %s13641_s11  ;;  %v11580_v54 = vor.u32 %v13206_v59, %v11579_v58  ;;  %v11584_v29 = vor.u32 %v13190_v4, %v11581_v32  ;;  %v13060_v26 = vld [vmem:[#allocation4 + $0x404] sm:$0xf]  ;;  %1965 = vrot.lane.b32.xlu1 %v14346_v10, %s13641_s11  ;;  %v13127_v55 = vld [vmem:[#allocation4 + $0x61c] sm:$0xf] }
 0x1a3   : > { %4465 = vmatpush.bf16.msra.mxu0 %v11328_v22  ;;  %1573 = vst [vmem:[#allocation4 + $0x8b0] sm:$0xff] %v1540_v5  ;;  %1963 = vrot.lane.b32.xlu0 %v14352_v62, %s13641_s11  ;;  %v1053_v10 = vld [vmem:[%s13705_s10 + $0x28] sm:$0xff]  ;;  %v11056_v34 = vor.u32 %v13060_v26, %v11053_v57  ;;  %v11064_v0 = vor.u32 %v13061_v23, %v11061_v38  ;;  %v13030_v16 = vld [vmem:[#allocation4 + $0x314] sm:$0xf]  ;;  %v11205_v61 = vld [vmem:[#allocation4 + $0x598] sm:$0xf0] }
 0x1a4   : > { %4412 = vmatpush.bf16.msra.mxu3 %v11448_v48  ;;  %4361 = vmatpush.bf16.msrb.mxu2 %v11312_v21  ;;  %v14502_v41 = vpop.permute.xlu2 %1633  ;;  %v1614_v8 = vpop.permute.xlu1 %1613  ;;  %v11192_v48 = vor.u32 %v13093_v7, %v11189_v13  ;;  %1069 = vst [vmem:[#allocation4 + $0x420] sm:$0xff] %v1053_v10  ;;  %v10941_v21 = vld [vmem:[#allocation4 + $0x390] sm:$0xf0]  ;;  %v11336_v22 = vor.u32 %v13127_v55, %v11333_v28  ;;  %v10797_v58 = vld [vmem:[#allocation4 + $0x280] sm:$0xf0]  ;;  %v1062_v59 = vld [vmem:[%s13705_s10 + $0x80] sm:$0xff] }
 0x1a5   : > { %4458 = vmatpush.bf16.msrb.mxu1 %v11580_v54  ;;  %v1648_v42 = vrot.slane %v1614_v8, 4  ;;  %v1612_v62 = vpop.permute.xlu0 %1611  ;;  %1077 = vst [vmem:[#allocation4 + $0x4a0] sm:$0xff] %v1061_v19  ;;  %v10813_v52 = vld [vmem:[#allocation4 + $0x290] sm:$0xf0]  ;;  %v10928_v14 = vor.u32 %v13028_v50, %v10925_v51  ;;  %v10944_v11 = vor.u32 %v13030_v16, %v10941_v21  ;;  %v13063_v5 = vld [vmem:[#allocation4 + $0x41c] sm:$0xf] }
 0x1a6   : > { %v1647_v31 = vrot.slane %v1612_v62, 4  ;;  %v12998_v1 = vld [vmem:[#allocation4 + $0x214] sm:$0xf]  ;;  %1070 = vst [vmem:[#allocation4 + $0x428] sm:$0xff] %v1054_v25  ;;  %v13029_v27 = vld [vmem:[#allocation4 + $0x30c] sm:$0xf] }
 0x1a7   : > { %4466 = vmatpush.bf16.msra.mxu0 %v11200_v53  ;;  %v1667_v49 = vsel %vm18300_vm0, %v1648_v42, %v1649_v12  ;;  %v13095_v32 = vld [vmem:[#allocation4 + $0x51c] sm:$0xf]  ;;  %1078 = vst [vmem:[#allocation4 + $0x4a8] sm:$0xff] %v1062_v59  ;;  %v10936_v2 = vor.u32 %v13029_v27, %v10933_v56  ;;  %v10669_v26 = vld [vmem:[#allocation4 + $0x180] sm:$0xf0]  ;;  %v10816_v35 = vor.u32 %v12998_v1, %v10813_v52 }
 0x1a8   : > { %4413 = vmatpush.bf16.msra.mxu3 %v11320_v17  ;;  %4362 = vmatpush.bf16.msrb.mxu2 %v11184_v47  ;;  %v1668_v43 = vsel %vm18299_vm1, %v1614_v8, %v1667_v49  ;;  %v1665_v6 = vsel %vm18300_vm0, %v1647_v31, %v1648_v42  ;;  %v11077_v17 = vld [vmem:[#allocation4 + $0x498] sm:$0xf0]  ;;  %v11208_v54 = vor.u32 %v13095_v32, %v11205_v61  ;;  %v10805_v30 = vld [vmem:[#allocation4 + $0x288] sm:$0xf0]  ;;  %v12966_v53 = vld [vmem:[#allocation4 + $0x114] sm:$0xf] }
 0x1a9   : > { %4484 = vmatpush.bf16.msra.mxu1 %v11584_v29  ;;  %1714 = vst [vmem:[#allocation4 + $0x48] sm:$0xff] %v1668_v43  ;;  %v1666_v39 = vsel %vm18299_vm1, %v1612_v62, %v1665_v6  ;;  %v12964_v29 = vld [vmem:[#allocation4 + $0x104] sm:$0xf]  ;;  %v10800_v47 = vor.u32 %v12996_v15, %v10797_v58  ;;  %v11080_v8 = vor.u32 %v13063_v5, %v11077_v17  ;;  %v10685_v7 = vld [vmem:[#allocation4 + $0x190] sm:$0xf0]  ;;  %v14540_v42 = vld [vmem:[%s14185_s15 + $0x10] sm:$0xff] }
 0x1aa   : > { %11693 = vmatmul.msk.bf16.vlgmr.msrb.gmra.mxu1 %vm18302_vm3, %v14470_v40  ;;  %1713 = vst [vmem:[#allocation4 + $0x40] sm:$0xff] %v1666_v39  ;;  %2291 = vrot.lane.b32.xlu2 %v14190_v45, %s13641_s11  ;;  %v12997_v62 = vld [vmem:[#allocation4 + $0x20c] sm:$0xf]  ;;  %v10672_v38 = vor.u32 %v12964_v29, %v10669_v26  ;;  %v1655_v49 = vrot.slane %v14472_v46, 4  ;;  %v13174_v28 = vld [vmem:[#allocation4 + $0x78c] sm:$0xf0] }
 0x1ab   : > { %4467 = vmatpush.bf16.msra.mxu0 %v11072_v63  ;;  %1971 = vrot.lane.b32.xlu1 %v14372_v20, %s13641_s11  ;;  %738 = vst [vmem:[#allocation4 + $0x1b0] sm:$0xff] %v14500_v37  ;;  %v12965_v19 = vld [vmem:[#allocation4 + $0x10c] sm:$0xf]  ;;  %v10949_v63 = vld [vmem:[#allocation4 + $0x398] sm:$0xf0]  ;;  %v1395_v5 = vld [vmem:[%s13705_s10 + $0x3c] sm:$0xff] }
 0x1ac   : > { %4414 = vmatpush.bf16.msra.mxu3 %v11192_v48  ;;  %4363 = vmatpush.bf16.msrb.mxu2 %v11056_v34  ;;  %v14525_v45 = vpop.permute.xlu2 %1639  ;;  %v1620_v4 = vpop.permute.xlu1 %1619  ;;  %v10677_v31 = vld [vmem:[#allocation4 + $0x188] sm:$0xf0]  ;;  %v10688_v48 = vor.u32 %v12966_v53, %v10685_v7  ;;  %v10541_v50 = vld [vmem:[#allocation4 + $0x80] sm:$0xf0]  ;;  %v12934_v51 = vld [vmem:[#allocation4 + $0x14] sm:$0xf] }
 0x1ad   : > { %4516 = vmatpush.bf16.msrb.mxu1 %v11464_v3  ;;  %1969 = vrot.lane.b32.xlu0 %v14377_v18, %s13641_s11  ;;  %v1651_v20 = vrot.slane %v1620_v4, 4  ;;  %v1618_v18 = vpop.permute.xlu0 %1617  ;;  %v10557_v39 = vld [vmem:[#allocation4 + $0x90] sm:$0xf0]  ;;  %v13031_v21 = vld [vmem:[#allocation4 + $0x31c] sm:$0xf]  ;;  %1411 = vst [vmem:[#allocation4 + $0x730] sm:$0xff] %v1395_v5 }
 0x1ae   : > { %v1650_v13 = vrot.slane %v1618_v18, 4  ;;  %v10952_v16 = vor.u32 %v13031_v21, %v10949_v63  ;;  %v13191_v58 = vld [vmem:[#allocation4 + $0x81c] sm:$0xf]  ;;  %v11459_v15 = vld [vmem:[#allocation4 + $0x718] sm:$0xf]  ;;  %v2101_v26 = vld [vmem:[%s14185_s15 + $0x8] sm:$0xff] }
 0x1af   : > { %4468 = vmatpush.bf16.msra.mxu0 %v10944_v11  ;;  %v1673_v57 = vsel %vm18300_vm0, %v1651_v20, %v1652_v60  ;;  %11691 = vmatmul.msk.bf16.vlgmr.msrb.gmra.mxu3 %vm18302_vm3, %v14470_v40  ;;  %v11589_v52 = vld [vmem:[#allocation4 + $0x898] sm:$0xf0]  ;;  %v12933_v11 = vld [vmem:[#allocation4 + $0xc] sm:$0xf]  ;;  %v13175_v1 = vld [vmem:[#allocation4 + $0x794] sm:$0xf0] }
 0x1b0   : > { %4415 = vmatpush.bf16.msra.mxu3 %v11064_v0  ;;  %4364 = vmatpush.bf16.msrb.mxu2 %v10928_v14  ;;  %v1674_v3 = vsel %vm18299_vm1, %v1620_v4, %v1673_v57  ;;  %v1669_v10 = vsel %vm18300_vm0, %v1649_v12, %v1650_v13  ;;  %v1671_v37 = vsel %vm18300_vm0, %v1650_v13, %v1651_v20  ;;  %v12932_v0 = vld [vmem:[#allocation4 + $0x4] sm:$0xf]  ;;  %v10821_v14 = vld [vmem:[#allocation4 + $0x298] sm:$0xf0]  ;;  %v1658_v53 = vrot.slane %v14502_v41, 4 }
 0x1b1   : > { %4517 = vmatpush.bf16.msrb.mxu1 %v11336_v22  ;;  %1717 = vst [vmem:[#allocation4 + $0x60] sm:$0xff] %v1674_v3  ;;  %v1670_v34 = vsel %vm18299_vm1, %v14435_v33, %v1669_v10  ;;  %v1672_v23 = vsel %vm18299_vm1, %v1618_v18, %v1671_v37  ;;  %v10808_v12 = vor.u32 %v12997_v62, %v10805_v30  ;;  %v11451_v33 = vld [vmem:[#allocation4 + $0x710] sm:$0xf]  ;;  %v12999_v27 = vld [vmem:[#allocation4 + $0x21c] sm:$0xf]  ;;  %v1403_v57 = vld [vmem:[%s13705_s10 + $0x8c] sm:$0xff] }
 0x1b2   : > { %1715 = vst [vmem:[#allocation4 + $0x50] sm:$0xff] %v1670_v34  ;;  %2311 = vrot.lane.b32.xlu2 %v14241_v36, %s13641_s11  ;;  %v10680_v36 = vor.u32 %v12965_v19, %v10677_v31  ;;  %v11452_v56 = vor.u32 %v13174_v28, %v11451_v33  ;;  %v10544_v25 = vor.u32 %v12932_v0, %v10541_v50  ;;  %v2110_v18 = vld [vmem:[%s14185_s15 + $0x58] sm:$0xff]  ;;  %v13160_v32 = vld [vmem:[#allocation4 + $0x724] sm:$0xf]  ;;  %v12967_v30 = vld [vmem:[#allocation4 + $0x11c] sm:$0xf] }
 0x1b3   : > { %4469 = vmatpush.bf16.msra.mxu0 %v10816_v35  ;;  %1716 = vst [vmem:[#allocation4 + $0x58] sm:$0xff] %v1672_v23  ;;  %2309 = vrot.lane.b32.xlu1 %v14244_v44, %s13641_s11  ;;  %v10549_v44 = vld [vmem:[#allocation4 + $0x88] sm:$0xf0]  ;;  %v10560_v4 = vor.u32 %v12934_v51, %v10557_v39  ;;  %v11469_v13 = vld [vmem:[#allocation4 + $0x7a0] sm:$0xf0]  ;;  %v11592_v29 = vor.u32 %v13191_v58, %v11589_v52  ;;  %v14589_v58 = vld [vmem:[%s14185_s15 + $0x18] sm:$0xff] }
 0x1b4   : > { %4416 = vmatpush.bf16.msra.mxu3 %v10936_v2  ;;  %4365 = vmatpush.bf16.msrb.mxu2 %v10800_v47  ;;  %v14552_v43 = vpop.permute.xlu2 %1645  ;;  %v1626_v6 = vpop.permute.xlu1 %1625  ;;  %v10552_v47 = vor.u32 %v12933_v11, %v10549_v44  ;;  %v11460_v35 = vor.u32 %v13175_v1, %v11459_v15  ;;  %v11472_v7 = vor.u32 %v13160_v32, %v11469_v13  ;;  %v11323_v37 = vld [vmem:[#allocation4 + $0x610] sm:$0xf]  ;;  %v13143_v19 = vld [vmem:[#allocation4 + $0x694] sm:$0xf0]  ;;  %v10565_v63 = vld [vmem:[#allocation4 + $0x98] sm:$0xf0] }
 0x1b5   : > { %4518 = vmatpush.bf16.msrb.mxu1 %v11208_v54  ;;  %2293 = vrot.lane.b32.xlu0 %v14540_v42, %s13641_s11  ;;  %v1654_v46 = vrot.slane %v1626_v6, 4  ;;  %v1624_v55 = vpop.permute.xlu0 %1623  ;;  %1419 = vst [vmem:[#allocation4 + $0x7b0] sm:$0xff] %v1403_v57  ;;  %v11331_v33 = vld [vmem:[#allocation4 + $0x618] sm:$0xf]  ;;  %v13128_v28 = vld [vmem:[#allocation4 + $0x624] sm:$0xf] }
 0x1b6   : > { %v1653_v22 = vrot.slane %v1624_v55, 4  ;;  %731 = vst [vmem:[#allocation4 + $0x138] sm:$0xff] %v1395_v5  ;;  %v11332_v51 = vor.u32 %v13143_v19, %v11331_v33  ;;  %v14583_v39 = vld [vmem:[%s14185_s15 + $0x68] sm:$0xff]  ;;  %v11067_v21 = vld [vmem:[#allocation4 + $0x410] sm:$0xf]  ;;  %v2111_v52 = vld [vmem:[%s14185_s15 + $0x60] sm:$0xff] }
 0x1b7   : > { %4470 = vmatpush.bf16.msra.mxu0 %v10688_v48  ;;  %v1679_v61 = vsel %vm18300_vm0, %v1654_v46, %v1655_v49  ;;  %v13110_v48 = vld [vmem:[#allocation4 + $0x58c] sm:$0xf0]  ;;  %739 = vst [vmem:[#allocation4 + $0x1b8] sm:$0xff] %v1403_v57  ;;  %v13161_v11 = vld [vmem:[#allocation4 + $0x72c] sm:$0xf]  ;;  %v1396_v1 = vld [vmem:[%s13705_s10 + $0x44] sm:$0xff] }
 0x1b8   : > { %4417 = vmatpush.bf16.msra.mxu3 %v10808_v12  ;;  %4366 = vmatpush.bf16.msrb.mxu2 %v10672_v38  ;;  %v1680_v17 = vsel %vm18299_vm1, %v1626_v6, %v1679_v61  ;;  %v1675_v59 = vsel %vm18300_vm0, %v1652_v60, %v1653_v22  ;;  %v1677_v20 = vsel %vm18300_vm0, %v1653_v22, %v1654_v46  ;;  %v13142_v60 = vld [vmem:[#allocation4 + $0x68c] sm:$0xf0]  ;;  %v13111_v6 = vld [vmem:[#allocation4 + $0x594] sm:$0xf0]  ;;  %v12935_v46 = vld [vmem:[#allocation4 + $0x1c] sm:$0xf] }
 0x1b9   : > { %4519 = vmatpush.bf16.msrb.mxu1 %v11080_v8  ;;  %1720 = vst [vmem:[#allocation4 + $0x78] sm:$0xff] %v1680_v17  ;;  %v1676_v2 = vsel %vm18299_vm1, %v14449_v9, %v1675_v59  ;;  %v1678_v54 = vsel %vm18299_vm1, %v1624_v55, %v1677_v20  ;;  %v10693_v8 = vld [vmem:[#allocation4 + $0x198] sm:$0xf0]  ;;  %v10824_v9 = vor.u32 %v12999_v27, %v10821_v14  ;;  %v11195_v12 = vld [vmem:[#allocation4 + $0x510] sm:$0xf]  ;;  %v1661_v5 = vrot.slane %v14525_v45, 4 }
 0x1ba   : > { %11694 = vmatmul.msk.bf16.vlgmr.msra.gmra.mxu1 %vm18302_vm3, %v14470_v40  ;;  %1718 = vst [vmem:[#allocation4 + $0x68] sm:$0xff] %v1676_v2  ;;  %2155 = vrot.lane.b32.xlu2 %v2110_v18, %s13642_s12  ;;  %v11324_v23 = vor.u32 %v13142_v60, %v11323_v37  ;;  %v10696_v38 = vor.u32 %v12967_v30, %v10693_v8  ;;  %v11213_v55 = vld [vmem:[#allocation4 + $0x5a0] sm:$0xf0]  ;;  %v13078_v44 = vld [vmem:[#allocation4 + $0x48c] sm:$0xf0] }
 0x1bb   : > { %4471 = vmatpush.bf16.msra.mxu0 %v10560_v4  ;;  %1719 = vst [vmem:[#allocation4 + $0x70] sm:$0xff] %v1678_v54  ;;  %2139 = vrot.lane.b32.xlu1 %v14540_v42, %s13642_s12  ;;  %v11341_v42 = vld [vmem:[#allocation4 + $0x6a0] sm:$0xf0]  ;;  %v11203_v14 = vld [vmem:[#allocation4 + $0x518] sm:$0xf]  ;;  %v10568_v17 = vor.u32 %v12935_v46, %v10565_v63  ;;  %v11068_v59 = vor.u32 %v13078_v44, %v11067_v21  ;;  %v1404_v18 = vld [vmem:[%s13705_s10 + $0x94] sm:$0xff] }
 0x1bc   : > { %4418 = vmatpush.bf16.msra.mxu3 %v10680_v36  ;;  %4367 = vmatpush.bf16.msrb.mxu2 %v10544_v25  ;;  %v14574_v3 = vpop.permute.xlu2 %1801  ;;  %v1632_v10 = vpop.permute.xlu1 %1631  ;;  %v11597_v36 = vld [vmem:[#allocation4 + $0x8a0] sm:$0xf0]  ;;  %v11075_v25 = vld [vmem:[#allocation4 + $0x418] sm:$0xf]  ;;  %v11477_v15 = vld [vmem:[#allocation4 + $0x7a8] sm:$0xf0]  ;;  %v11204_v2 = vor.u32 %v13111_v6, %v11203_v14 }
 0x1bd   : > { %4520 = vmatpush.bf16.msrb.mxu1 %v10952_v16  ;;  %2137 = vrot.lane.b32.xlu0 %v2101_v26, %s13642_s12  ;;  %v1657_v62 = vrot.slane %v1632_v10, 4  ;;  %v1630_v34 = vpop.permute.xlu0 %1629  ;;  %v11344_v16 = vor.u32 %v13128_v28, %v11341_v42  ;;  %v13192_v61 = vld [vmem:[#allocation4 + $0x824] sm:$0xf]  ;;  %v13079_v20 = vld [vmem:[#allocation4 + $0x494] sm:$0xf0]  ;;  %1412 = vst [vmem:[#allocation4 + $0x738] sm:$0xff] %v1396_v1  ;;  %v11480_v30 = vor.u32 %v13161_v11, %v11477_v15 }
 0x1be   : > { %4472 = vmatmul.bf16.vlgmr.msra.gmra.mxu0 %v14409_v24  ;;  %v1656_v31 = vrot.slane %v1630_v34, 4  ;;  %v13096_v4 = vld [vmem:[#allocation4 + $0x524] sm:$0xf]  ;;  %v1055_v27 = vld [vmem:[%s13705_s10 + $0x38] sm:$0xff]  ;;  %v11600_v54 = vor.u32 %v13192_v61, %v11597_v36  ;;  %1420 = vst [vmem:[#allocation4 + $0x7b8] sm:$0xff] %v1404_v18  ;;  %v1664_v36 = vrot.slane %v14552_v43, 4 }
 0x1bf   : > { %4536 = vmatpush.bf16.msrb.mxu0 %v11592_v29  ;;  %v1683_v49 = vsel %vm18300_vm0, %v1657_v62, %v1658_v53  ;;  %4368 = vmatmul.bf16.vlgmr.msrb.gmra.mxu2 %v14409_v24  ;;  %v13064_v29 = vld [vmem:[#allocation4 + $0x424] sm:$0xf]  ;;  %1071 = vst [vmem:[#allocation4 + $0x430] sm:$0xff] %v1055_v27  ;;  %v11349_v19 = vld [vmem:[#allocation4 + $0x6a8] sm:$0xf0] }
 0x1c0   : > { %4438 = vmatpush.bf16.msra.mxu2 %v11452_v56  ;;  %4419 = vmatpush.bf16.msra.mxu3 %v10552_v47  ;;  %v1684_v0 = vsel %vm18299_vm1, %v1632_v10, %v1683_v49  ;;  %v1681_v50 = vsel %vm18300_vm0, %v1656_v31, %v1657_v62  ;;  %v11196_v56 = vor.u32 %v13110_v48, %v11195_v12  ;;  %v11085_v26 = vld [vmem:[#allocation4 + $0x4a0] sm:$0xf0]  ;;  %v13047_v63 = vld [vmem:[#allocation4 + $0x394] sm:$0xf0]  ;;  %v13014_v49 = vld [vmem:[#allocation4 + $0x28c] sm:$0xf0] }
 0x1c1   : > { %4521 = vmatpush.bf16.msrb.mxu1 %v10824_v9  ;;  %1722 = vst [vmem:[#allocation4 + $0xc8] sm:$0xff] %v1684_v0  ;;  %v1682_v22 = vsel %vm18299_vm1, %v1630_v34, %v1681_v50  ;;  %v1063_v60 = vld [vmem:[%s13705_s10 + $0x88] sm:$0xff]  ;;  %v11216_v47 = vor.u32 %v13096_v4, %v11213_v55  ;;  %v11076_v9 = vor.u32 %v13079_v20, %v11075_v25  ;;  %v10811_v6 = vld [vmem:[#allocation4 + $0x210] sm:$0xf]  ;;  %v10947_v0 = vld [vmem:[#allocation4 + $0x318] sm:$0xf] }
 0x1c2   : > { %1721 = vst [vmem:[#allocation4 + $0xc0] sm:$0xff] %v1682_v22  ;;  %2313 = vrot.lane.b32.xlu2 %v14583_v39, %s13641_s11  ;;  %v11088_v37 = vor.u32 %v13064_v29, %v11085_v26  ;;  %v2441_v48 = vld [vmem:[%s14185_s15 + $0xc] sm:$0xff]  ;;  %v10948_v44 = vor.u32 %v13047_v63, %v10947_v0  ;;  %v11221_v22 = vld [vmem:[#allocation4 + $0x5a8] sm:$0xf0]  ;;  %v12982_v43 = vld [vmem:[#allocation4 + $0x18c] sm:$0xf0]  ;;  %v10812_v61 = vor.u32 %v13014_v49, %v10811_v6 }
 0x1c3   : > { %4568 = vmatpush.bf16.msra.mxu0 %v11472_v7  ;;  %4420 = vmatmul.bf16.vlgmr.msra.gmra.mxu3 %v14409_v24  ;;  %v13046_v7 = vld [vmem:[#allocation4 + $0x38c] sm:$0xf0]  ;;  %1079 = vst [vmem:[#allocation4 + $0x4b0] sm:$0xff] %v1063_v60  ;;  %v14617_v33 = vld [vmem:[#allocation4 + $0x2a0] sm:$0xf0] }
 0x1c4   : > { %4490 = vmatpush.bf16.msrb.mxu3 %v11460_v35  ;;  %4439 = vmatpush.bf16.msra.mxu2 %v11324_v23  ;;  %v14600_v32 = vpop.permute.xlu2 %1807  ;;  %v1638_v13 = vpop.permute.xlu1 %1637  ;;  %v10957_v28 = vld [vmem:[#allocation4 + $0x3a0] sm:$0xf0]  ;;  %v13097_v25 = vld [vmem:[#allocation4 + $0x52c] sm:$0xf]  ;;  %v10819_v4 = vld [vmem:[#allocation4 + $0x218] sm:$0xf] }
 0x1c5   : > { %4522 = vmatpush.bf16.msrb.mxu1 %v10696_v38  ;;  %2295 = vrot.lane.b32.xlu1 %v14589_v58, %s13641_s11  ;;  %v1660_v57 = vrot.slane %v1638_v13, 4  ;;  %v1636_v35 = vpop.permute.xlu0 %1635  ;;  %v10939_v38 = vld [vmem:[#allocation4 + $0x310] sm:$0xf]  ;;  %v13032_v50 = vld [vmem:[#allocation4 + $0x324] sm:$0xf]  ;;  %v11224_v20 = vor.u32 %v13097_v25, %v11221_v22 }
 0x1c6   : > { %2157 = vrot.lane.b32.xlu0 %v2111_v52, %s13642_s12  ;;  %v1659_v8 = vrot.slane %v1636_v35, 4  ;;  %v10940_v12 = vor.u32 %v13046_v7, %v10939_v38  ;;  %v13000_v46 = vld [vmem:[#allocation4 + $0x224] sm:$0xf]  ;;  %v10960_v52 = vor.u32 %v13032_v50, %v10957_v28  ;;  %v11093_v1 = vld [vmem:[#allocation4 + $0x4a8] sm:$0xf0] }
 0x1c7   : > { %4569 = vmatpush.bf16.msra.mxu0 %v11344_v16  ;;  %v1689_v10 = vsel %vm18300_vm0, %v1660_v57, %v1661_v5  ;;  %v10683_v16 = vld [vmem:[#allocation4 + $0x110] sm:$0xf]  ;;  %v10832_v15 = vor.u32 %v13000_v46, %v14617_v33  ;;  %v10691_v27 = vld [vmem:[#allocation4 + $0x118] sm:$0xf]  ;;  %v12968_v60 = vld [vmem:[#allocation4 + $0x124] sm:$0xf] }
 0x1c8   : > { %4491 = vmatpush.bf16.msrb.mxu3 %v11332_v51  ;;  %4440 = vmatpush.bf16.msra.mxu2 %v11196_v56  ;;  %v1690_v62 = vsel %vm18299_vm1, %v1638_v13, %v1689_v10  ;;  %v1685_v34 = vsel %vm18300_vm0, %v1658_v53, %v1659_v8  ;;  %v1687_v23 = vsel %vm18300_vm0, %v1659_v8, %v1660_v57  ;;  %v13129_v53 = vld [vmem:[#allocation4 + $0x62c] sm:$0xf]  ;;  %v13015_v51 = vld [vmem:[#allocation4 + $0x294] sm:$0xf0]  ;;  %v10701_v57 = vld [vmem:[#allocation4 + $0x1a0] sm:$0xf0] }
 0x1c9   : > { %4523 = vmatpush.bf16.msrb.mxu1 %v10568_v17  ;;  %1725 = vst [vmem:[#allocation4 + $0xe0] sm:$0xff] %v1690_v62  ;;  %v1686_v31 = vsel %vm18299_vm1, %v14502_v41, %v1685_v34  ;;  %v1688_v42 = vsel %vm18299_vm1, %v1636_v35, %v1687_v23  ;;  %v11352_v41 = vor.u32 %v13129_v53, %v11349_v19  ;;  %v1056_v17 = vld [vmem:[%s13705_s10 + $0x40] sm:$0xff]  ;;  %v12950_v10 = vld [vmem:[#allocation4 + $0x8c] sm:$0xf0]  ;;  %v10965_v19 = vld [vmem:[#allocation4 + $0x3a8] sm:$0xf0] }
 0x1ca   : > { %1723 = vst [vmem:[#allocation4 + $0xd0] sm:$0xff] %v1686_v31  ;;  %2477 = vrot.lane.b32.xlu2 %v2441_v48, %s13642_s12  ;;  %v10684_v18 = vor.u32 %v12982_v43, %v10683_v16  ;;  %v12983_v13 = vld [vmem:[#allocation4 + $0x194] sm:$0xf0]  ;;  %v10820_v26 = vor.u32 %v13015_v51, %v10819_v4  ;;  %v10704_v62 = vor.u32 %v12968_v60, %v10701_v57  ;;  %v10555_v34 = vld [vmem:[#allocation4 + $0x10] sm:$0xf] }
 0x1cb   : > { %4570 = vmatpush.bf16.msra.mxu0 %v11216_v47  ;;  %1724 = vst [vmem:[#allocation4 + $0xd8] sm:$0xff] %v1688_v42  ;;  %v2450_v8 = vld [vmem:[%s14185_s15 + $0x5c] sm:$0xff]  ;;  %v10692_v7 = vor.u32 %v12983_v13, %v10691_v27  ;;  %v11467_v31 = vld [vmem:[#allocation4 + $0x720] sm:$0xf]  ;;  %v10556_v63 = vor.u32 %v12950_v10, %v10555_v34  ;;  %v10573_v0 = vld [vmem:[#allocation4 + $0xa0] sm:$0xf0] }
 0x1cc   : > { %4492 = vmatpush.bf16.msrb.mxu3 %v11204_v2  ;;  %4441 = vmatpush.bf16.msra.mxu2 %v11068_v59  ;;  %v14623_v55 = vpop.permute.xlu2 %1813  ;;  %v1644_v21 = vpop.permute.xlu1 %1643  ;;  %v1064_v59 = vld [vmem:[%s13705_s10 + $0x90] sm:$0xff]  ;;  %1072 = vst [vmem:[#allocation4 + $0x438] sm:$0xff] %v1056_v17  ;;  %v13176_v42 = vld [vmem:[#allocation4 + $0x79c] sm:$0xf0]  ;;  %v11587_v49 = vld [vmem:[#allocation4 + $0x818] sm:$0xf] }
 0x1cd   : > { %4588 = vmatpush.bf16.msra.mxu1 %v11600_v54  ;;  %2159 = vrot.lane.b32.xlu1 %v14583_v39, %s13642_s12  ;;  %v1663_v56 = vrot.slane %v1644_v21, 4  ;;  %v1642_v14 = vpop.permute.xlu0 %1641  ;;  %v13065_v39 = vld [vmem:[#allocation4 + $0x42c] sm:$0xf]  ;;  %1080 = vst [vmem:[#allocation4 + $0x4b8] sm:$0xff] %v1064_v59  ;;  %v10563_v33 = vld [vmem:[#allocation4 + $0x18] sm:$0xf]  ;;  %v11468_v46 = vor.u32 %v13176_v42, %v11467_v31 }
 0x1ce   : > { %4524 = vmatmul.bf16.vlgmr.msrb.gmra.mxu1 %v14409_v24  ;;  %2141 = vrot.lane.b32.xlu0 %v14589_v58, %s13642_s12  ;;  %v1662_v11 = vrot.slane %v1642_v14, 4  ;;  %v12951_v53 = vld [vmem:[#allocation4 + $0x94] sm:$0xf0]  ;;  %v11605_v22 = vld [vmem:[#allocation4 + $0x8a8] sm:$0xf0] }
 0x1cf   : > { %4571 = vmatpush.bf16.msra.mxu0 %v11088_v37  ;;  %v1695_v58 = vsel %vm18300_vm0, %v1663_v56, %v1664_v36  ;;  %v1835_v37 = vrot.slane %v14574_v3, 4  ;;  %v13033_v36 = vld [vmem:[#allocation4 + $0x32c] sm:$0xf]  ;;  %v13177_v25 = vld [vmem:[#allocation4 + $0x7a4] sm:$0xf0] }
 0x1d0   : > { %4493 = vmatpush.bf16.msrb.mxu3 %v11076_v9  ;;  %4442 = vmatpush.bf16.msra.mxu2 %v10940_v12  ;;  %v1696_v2 = vsel %vm18299_vm1, %v1644_v21, %v1695_v58  ;;  %v1691_v54 = vsel %vm18300_vm0, %v1661_v5, %v1662_v11  ;;  %v1693_v29 = vsel %vm18300_vm0, %v1662_v11, %v1663_v56  ;;  %v2442_v5 = vld [vmem:[%s14185_s15 + $0x14] sm:$0xff]  ;;  %v11595_v21 = vld [vmem:[#allocation4 + $0x820] sm:$0xf]  ;;  %v13162_v11 = vld [vmem:[#allocation4 + $0x734] sm:$0xf] }
 0x1d1   : > { %4620 = vmatpush.bf16.msrb.mxu1 %v11480_v30  ;;  %11696 = vmatmul.msk.bf16.vlgmr.msrb.gmra.mxu0 %vm18302_vm3, %v14470_v40  ;;  %1728 = vst [vmem:[#allocation4 + $0xf8] sm:$0xff] %v1696_v2  ;;  %v1692_v47 = vsel %vm18299_vm1, %v14525_v45, %v1691_v54  ;;  %v1694_v35 = vsel %vm18299_vm1, %v1642_v14, %v1693_v29  ;;  %v14642_v30 = vld [vmem:[%s14185_s15 + $0x64] sm:$0xff]  ;;  %v13207_v45 = vld [vmem:[#allocation4 + $0x894] sm:$0xf0]  ;;  %v10837_v16 = vld [vmem:[#allocation4 + $0x2a8] sm:$0xf0] }
 0x1d2   : > { %v11096_v9 = vor.u32 %v13065_v39, %v11093_v1  ;;  %1726 = vst [vmem:[#allocation4 + $0xe8] sm:$0xff] %v1692_v47  ;;  %2497 = vrot.lane.b32.xlu2 %v14642_v30, %s13642_s12  ;;  %v11588_v6 = vor.u32 %v13207_v45, %v11587_v49  ;;  %v10968_v51 = vor.u32 %v13033_v36, %v10965_v19  ;;  %v13193_v14 = vld [vmem:[#allocation4 + $0x82c] sm:$0xf]  ;;  %v14666_v58 = vld [vmem:[%s14185_s15 + $0x20] sm:$0xff]  ;;  %v13144_v57 = vld [vmem:[#allocation4 + $0x69c] sm:$0xf0] }
 0x1d3   : > { %4572 = vmatpush.bf16.msra.mxu0 %v10960_v52  ;;  %1727 = vst [vmem:[#allocation4 + $0xf0] sm:$0xff] %v1694_v35  ;;  %v10564_v52 = vor.u32 %v12951_v53, %v10563_v33  ;;  %v11608_v17 = vor.u32 %v13193_v14, %v11605_v22  ;;  %v14663_v59 = vld [vmem:[%s14185_s15 + $0x70] sm:$0xff]  ;;  %v11357_v34 = vld [vmem:[#allocation4 + $0x6b0] sm:$0xf0]  ;;  %v13112_v45 = vld [vmem:[#allocation4 + $0x59c] sm:$0xf0] }
 0x1d4   : > { %4494 = vmatpush.bf16.msrb.mxu3 %v10948_v44  ;;  %4443 = vmatpush.bf16.msra.mxu2 %v10812_v61  ;;  %v14650_v23 = vpop.permute.xlu2 %1819  ;;  %v1800_v38 = vpop.permute.xlu1 %1799  ;;  %v13208_v44 = vld [vmem:[#allocation4 + $0x89c] sm:$0xf0]  ;;  %v11475_v61 = vld [vmem:[#allocation4 + $0x728] sm:$0xf]  ;;  %v12969_v27 = vld [vmem:[#allocation4 + $0x12c] sm:$0xf] }
 0x1d5   : > { %4621 = vmatpush.bf16.msrb.mxu1 %v11352_v41  ;;  %2495 = vrot.lane.b32.xlu1 %v2450_v8, %s13642_s12  ;;  %v1834_v12 = vrot.slane %v1800_v38, 4  ;;  %v1798_v48 = vpop.permute.xlu0 %1797  ;;  %v12936_v41 = vld [vmem:[#allocation4 + $0x24] sm:$0xf]  ;;  %v11596_v1 = vor.u32 %v13208_v44, %v11595_v21  ;;  %v10709_v13 = vld [vmem:[#allocation4 + $0x1a8] sm:$0xf0]  ;;  %v1841_v21 = vrot.slane %v14623_v55, 4 }
 0x1d6   : > { %2479 = vrot.lane.b32.xlu0 %v2442_v5, %s13642_s12  ;;  %v1833_v28 = vrot.slane %v1798_v48, 4  ;;  %v10576_v39 = vor.u32 %v12936_v41, %v10573_v0  ;;  %v10712_v5 = vor.u32 %v12969_v27, %v10709_v13  ;;  %v11347_v42 = vld [vmem:[#allocation4 + $0x628] sm:$0xf]  ;;  %v12937_v53 = vld [vmem:[#allocation4 + $0x2c] sm:$0xf] }
 0x1d7   : > { %4573 = vmatpush.bf16.msra.mxu0 %v10832_v15  ;;  %v1853_v50 = vsel %vm18300_vm0, %v1834_v12, %v1835_v37  ;;  %v11485_v15 = vld [vmem:[#allocation4 + $0x7b0] sm:$0xf0]  ;;  %v11083_v36 = vld [vmem:[#allocation4 + $0x420] sm:$0xf]  ;;  %v11091_v44 = vld [vmem:[#allocation4 + $0x428] sm:$0xf] }
 0x1d8   : > { %4495 = vmatpush.bf16.msrb.mxu3 %v10820_v26  ;;  %4444 = vmatpush.bf16.msra.mxu2 %v10684_v18  ;;  %v1854_v43 = vsel %vm18298_vm2, %v1800_v38, %v1853_v50  ;;  %v1851_v56 = vsel %vm18300_vm0, %v1833_v28, %v1834_v12  ;;  %v1838_v18 = vrot.slane %v14600_v32, 4  ;;  %v11476_v26 = vor.u32 %v13177_v25, %v11475_v61  ;;  %v10581_v38 = vld [vmem:[#allocation4 + $0xa8] sm:$0xf0]  ;;  %v13130_v12 = vld [vmem:[#allocation4 + $0x634] sm:$0xf] }
 0x1d9   : > { %4622 = vmatpush.bf16.msrb.mxu1 %v11224_v20  ;;  %1900 = vst [vmem:[#allocation4 + $0x248] sm:$0xff] %v1854_v43  ;;  %v1852_v4 = vsel %vm18298_vm2, %v1798_v48, %v1851_v56  ;;  %v13001_v20 = vld [vmem:[#allocation4 + $0x22c] sm:$0xf]  ;;  %v11488_v60 = vor.u32 %v13162_v11, %v11485_v15  ;;  %v11211_v48 = vld [vmem:[#allocation4 + $0x520] sm:$0xf]  ;;  %v11360_v0 = vor.u32 %v13130_v12, %v11357_v34  ;;  %v2443_v61 = vld [vmem:[%s14185_s15 + $0x1c] sm:$0xff] }
 0x1da   : > { %1899 = vst [vmem:[#allocation4 + $0x240] sm:$0xff] %v1852_v4  ;;  %v10840_v2 = vor.u32 %v13001_v20, %v10837_v16  ;;  %2315 = vrot.lane.b32.xlu2 %v14663_v59, %s13641_s11  ;;  %v13113_v28 = vld [vmem:[#allocation4 + $0x5a4] sm:$0xf0]  ;;  %v13080_v41 = vld [vmem:[#allocation4 + $0x49c] sm:$0xf0]  ;;  %v10584_v16 = vor.u32 %v12937_v53, %v10581_v38 }
 0x1db   : > { %4574 = vmatpush.bf16.msra.mxu0 %v10704_v62  ;;  %v13145_v62 = vld [vmem:[#allocation4 + $0x6a4] sm:$0xf0]  ;;  %v13194_v50 = vld [vmem:[#allocation4 + $0x834] sm:$0xf]  ;;  %v11084_v15 = vor.u32 %v13080_v41, %v11083_v36  ;;  %v10699_v36 = vld [vmem:[#allocation4 + $0x120] sm:$0xf] }
 0x1dc   : > { %4496 = vmatpush.bf16.msrb.mxu3 %v10692_v7  ;;  %4445 = vmatpush.bf16.msra.mxu2 %v10556_v63  ;;  %v14669_v54 = vpop.permute.xlu2 %1825  ;;  %v1806_v29 = vpop.permute.xlu1 %1805  ;;  %v11613_v63 = vld [vmem:[#allocation4 + $0x8b0] sm:$0xf0]  ;;  %v13081_v22 = vld [vmem:[#allocation4 + $0x4a4] sm:$0xf0]  ;;  %v12984_v41 = vld [vmem:[#allocation4 + $0x19c] sm:$0xf0] }
 0x1dd   : > { %4623 = vmatpush.bf16.msrb.mxu1 %v11096_v9  ;;  %2297 = vrot.lane.b32.xlu1 %v14666_v58, %s13641_s11  ;;  %v1837_v47 = vrot.slane %v1806_v29, 4  ;;  %v1804_v35 = vpop.permute.xlu0 %1803  ;;  %v11339_v9 = vld [vmem:[#allocation4 + $0x620] sm:$0xf]  ;;  %v11101_v14 = vld [vmem:[#allocation4 + $0x4b0] sm:$0xf0] }
 0x1de   : > { %11698 = vmatmul.msk.bf16.vlgmr.msra.gmra.mxu1 %vm18302_vm3, %v14470_v40  ;;  %1973 = vrot.lane.b32.xlu0 %v14642_v30, %s13641_s11  ;;  %v1836_v8 = vrot.slane %v1804_v35, 4  ;;  %v11340_v10 = vor.u32 %v13144_v57, %v11339_v9  ;;  %v11219_v4 = vld [vmem:[#allocation4 + $0x528] sm:$0xf]  ;;  %v13098_v55 = vld [vmem:[#allocation4 + $0x534] sm:$0xf] }
 0x1df   : > { %4446 = vmatmul.bf16.vlgmr.msra.gmra.mxu2 %v14409_v24  ;;  %4575 = vmatpush.bf16.msra.mxu0 %v10576_v39  ;;  %v1859_v7 = vsel %vm18300_vm0, %v1837_v47, %v1838_v18  ;;  %v11616_v39 = vor.u32 %v13194_v50, %v11613_v63  ;;  %v13049_v9 = vld [vmem:[#allocation4 + $0x3a4] sm:$0xf0]  ;;  %v13034_v12 = vld [vmem:[#allocation4 + $0x334] sm:$0xf]  ;;  %v11237_v63 = vld [vmem:[#allocation4 + $0x5b8] sm:$0xf0] }
 0x1e0   : > { %4510 = vmatpush.bf16.msrb.mxu2 %v11588_v6  ;;  %4497 = vmatpush.bf16.msrb.mxu3 %v10564_v52  ;;  %v1860_v19 = vsel %vm18298_vm2, %v1806_v29, %v1859_v7  ;;  %v1855_v30 = vsel %vm18300_vm0, %v1835_v37, %v1836_v8  ;;  %v1857_v31 = vsel %vm18300_vm0, %v1836_v8, %v1837_v47  ;;  %v11229_v6 = vld [vmem:[#allocation4 + $0x5b0] sm:$0xf0]  ;;  %v10955_v8 = vld [vmem:[#allocation4 + $0x320] sm:$0xf]  ;;  %v10963_v38 = vld [vmem:[#allocation4 + $0x328] sm:$0xf] }
 0x1e1   : > { %4624 = vmatpush.bf16.msrb.mxu1 %v10968_v51  ;;  %1903 = vst [vmem:[#allocation4 + $0x260] sm:$0xff] %v1860_v19  ;;  %v1856_v49 = vsel %vm18298_vm2, %v14574_v3, %v1855_v30  ;;  %v1858_v33 = vsel %vm18298_vm2, %v1804_v35, %v1857_v31  ;;  %v11348_v37 = vor.u32 %v13145_v62, %v11347_v42  ;;  %v13163_v51 = vld [vmem:[#allocation4 + $0x73c] sm:$0xf]  ;;  %v13066_v52 = vld [vmem:[#allocation4 + $0x434] sm:$0xf]  ;;  %v2259_v31 = vld [vmem:[%s14185_s15 + $0x28] sm:$0xff] }
 0x1e2   : > { %4576 = vmatmul.bf16.vlgmr.msra.gmra.mxu0 %v14409_v24  ;;  %1901 = vst [vmem:[#allocation4 + $0x250] sm:$0xff] %v1856_v49  ;;  %v11212_v3 = vor.u32 %v13112_v45, %v11211_v48  ;;  %v11104_v29 = vor.u32 %v13066_v52, %v11101_v14  ;;  %2481 = vrot.lane.b32.xlu2 %v2443_v61, %s13642_s12  ;;  %v11365_v35 = vld [vmem:[#allocation4 + $0x6b8] sm:$0xf0]  ;;  %v10827_v19 = vld [vmem:[#allocation4 + $0x220] sm:$0xf] }
 0x1e3   : > { %4640 = vmatpush.bf16.msrb.mxu0 %v11608_v17  ;;  %4498 = vmatmul.bf16.vlgmr.msrb.gmra.mxu3 %v14409_v24  ;;  %1902 = vst [vmem:[#allocation4 + $0x258] sm:$0xff] %v1858_v33  ;;  %v11232_v17 = vor.u32 %v13098_v55, %v11229_v6  ;;  %v13016_v30 = vld [vmem:[#allocation4 + $0x29c] sm:$0xf0]  ;;  %v13017_v49 = vld [vmem:[#allocation4 + $0x2a4] sm:$0xf0]  ;;  %v10964_v53 = vor.u32 %v13049_v9, %v10963_v38 }
 0x1e4   : > { %4542 = vmatpush.bf16.msra.mxu2 %v11468_v46  ;;  %4562 = vmatpush.bf16.msra.mxu3 %v11596_v1  ;;  %v11493_v46 = vld [vmem:[#allocation4 + $0x7b8] sm:$0xf0]  ;;  %v14691_v43 = vpop.permute.xlu2 %1831  ;;  %v1812_v56 = vpop.permute.xlu1 %1811  ;;  %v11220_v1 = vor.u32 %v13113_v28, %v11219_v4  ;;  %v10845_v33 = vld [vmem:[#allocation4 + $0x2b0] sm:$0xf0]  ;;  %v12985_v52 = vld [vmem:[#allocation4 + $0x1a4] sm:$0xf0]  ;;  %v10700_v61 = vor.u32 %v12984_v41, %v10699_v36 }
 0x1e5   : > { %4625 = vmatpush.bf16.msrb.mxu1 %v10840_v2  ;;  %2161 = vrot.lane.b32.xlu1 %v14663_v59, %s13642_s12  ;;  %v1840_v25 = vrot.slane %v1812_v56, 4  ;;  %v1810_v11 = vpop.permute.xlu0 %1809  ;;  %v11496_v27 = vor.u32 %v13163_v51, %v11493_v46  ;;  %v11092_v2 = vor.u32 %v13081_v22, %v11091_v44  ;;  %v13099_v50 = vld [vmem:[#allocation4 + $0x53c] sm:$0xf]  ;;  %v10835_v51 = vld [vmem:[#allocation4 + $0x228] sm:$0xf] }
 0x1e6   : > { %2143 = vrot.lane.b32.xlu0 %v14666_v58, %s13642_s12  ;;  %v1839_v20 = vrot.slane %v1810_v11, 4  ;;  %v13067_v46 = vld [vmem:[#allocation4 + $0x43c] sm:$0xf]  ;;  %v11240_v22 = vor.u32 %v13099_v50, %v11237_v63  ;;  %v10717_v4 = vld [vmem:[#allocation4 + $0x1b0] sm:$0xf0]  ;;  %v10836_v55 = vor.u32 %v13017_v49, %v10835_v51  ;;  %v2453_v51 = vld [vmem:[%s14185_s15 + $0x74] sm:$0xff] }
 0x1e7   : > { %4672 = vmatpush.bf16.msra.mxu0 %v11488_v60  ;;  %v1865_v13 = vsel %vm18300_vm0, %v1840_v25, %v1841_v21  ;;  %v13048_v60 = vld [vmem:[#allocation4 + $0x39c] sm:$0xf0]  ;;  %v11109_v21 = vld [vmem:[#allocation4 + $0x4b8] sm:$0xf0]  ;;  %v11611_v49 = vld [vmem:[#allocation4 + $0x830] sm:$0xf] }
 0x1e8   : > { %4594 = vmatpush.bf16.msrb.mxu3 %v11476_v26  ;;  %4543 = vmatpush.bf16.msra.mxu2 %v11340_v10  ;;  %v1866_v59 = vsel %vm18298_vm2, %v1812_v56, %v1865_v13  ;;  %v1861_v58 = vsel %vm18300_vm0, %v1838_v18, %v1839_v20  ;;  %v1863_v26 = vsel %vm18300_vm0, %v1839_v20, %v1840_v25  ;;  %v1927_v18 = vld [vmem:[%s14185_s15 + $0x6c] sm:$0xff]  ;;  %v10973_v10 = vld [vmem:[#allocation4 + $0x3b0] sm:$0xf0]  ;;  %v11491_v36 = vld [vmem:[#allocation4 + $0x738] sm:$0xf] }
 0x1e9   : > { %4626 = vmatpush.bf16.msrb.mxu1 %v10712_v5  ;;  %1906 = vst [vmem:[#allocation4 + $0x278] sm:$0xff] %v1866_v59  ;;  %v1862_v57 = vsel %vm18298_vm2, %v14600_v32, %v1861_v58  ;;  %v1864_v47 = vsel %vm18298_vm2, %v1810_v11, %v1863_v26  ;;  %v1844_v5 = vrot.slane %v14650_v23, 4  ;;  %v10956_v7 = vor.u32 %v13048_v60, %v10955_v8  ;;  %v13131_v32 = vld [vmem:[#allocation4 + $0x63c] sm:$0xf]  ;;  %v10707_v56 = vld [vmem:[#allocation4 + $0x128] sm:$0xf] }
 0x1ea   : > { %1904 = vst [vmem:[#allocation4 + $0x268] sm:$0xff] %v1862_v57  ;;  %v11368_v62 = vor.u32 %v13131_v32, %v11365_v35  ;;  %v10976_v28 = vor.u32 %v13034_v12, %v10973_v10  ;;  %2299 = vrot.lane.b32.xlu2 %v2259_v31, %s13641_s11  ;;  %v12970_v25 = vld [vmem:[#allocation4 + $0x134] sm:$0xf]  ;;  %v11112_v11 = vor.u32 %v13067_v46, %v11109_v21  ;;  %v10981_v59 = vld [vmem:[#allocation4 + $0x3b8] sm:$0xf0] }
 0x1eb   : > { %4673 = vmatpush.bf16.msra.mxu0 %v11360_v0  ;;  %1905 = vst [vmem:[#allocation4 + $0x270] sm:$0xff] %v1864_v47  ;;  %v10828_v0 = vor.u32 %v13016_v30, %v10827_v19  ;;  %v10720_v13 = vor.u32 %v12970_v25, %v10717_v4  ;;  %v10571_v60 = vld [vmem:[#allocation4 + $0x20] sm:$0xf]  ;;  %v12953_v57 = vld [vmem:[#allocation4 + $0xa4] sm:$0xf0] }
 0x1ec   : > { %4595 = vmatpush.bf16.msrb.mxu3 %v11348_v37  ;;  %4544 = vmatpush.bf16.msra.mxu2 %v11212_v3  ;;  %v14713_v34 = vpop.permute.xlu2 %1955  ;;  %v1818_v45 = vpop.permute.xlu1 %1817  ;;  %v11603_v35 = vld [vmem:[#allocation4 + $0x828] sm:$0xf]  ;;  %v13035_v8 = vld [vmem:[#allocation4 + $0x33c] sm:$0xf]  ;;  %v10589_v10 = vld [vmem:[#allocation4 + $0xb0] sm:$0xf0] }
 0x1ed   : > { %4627 = vmatpush.bf16.msrb.mxu1 %v10584_v16  ;;  %1975 = vrot.lane.b32.xlu1 %v1927_v18, %s13641_s11  ;;  %v1843_v42 = vrot.slane %v1818_v45, 4  ;;  %v1816_v48 = vpop.permute.xlu0 %1815  ;;  %v13002_v16 = vld [vmem:[#allocation4 + $0x234] sm:$0xf]  ;;  %v10984_v32 = vor.u32 %v13035_v8, %v10981_v59  ;;  %v13210_v12 = vld [vmem:[#allocation4 + $0x8ac] sm:$0xf0]  ;;  %v2444_v21 = vld [vmem:[%s14185_s15 + $0x24] sm:$0xff] }
 0x1ee   : > { %2499 = vrot.lane.b32.xlu0 %v1927_v18, %s13642_s12  ;;  %v1842_v6 = vrot.slane %v1816_v48, 4  ;;  %v13179_v41 = vld [vmem:[#allocation4 + $0x7b4] sm:$0xf0]  ;;  %v13195_v50 = vld [vmem:[#allocation4 + $0x83c] sm:$0xf] }
 0x1ef   : > { %4674 = vmatpush.bf16.msra.mxu0 %v11232_v17  ;;  %11695 = vmatmul.msk.bf16.vlgmr.msrb.gmra.mxu2 %vm18302_vm3, %v14470_v40  ;;  %v1869_v37 = vsel %vm18300_vm0, %v1843_v42, %v1844_v5  ;;  %v11355_v4 = vld [vmem:[#allocation4 + $0x630] sm:$0xf]  ;;  %v2269_v8 = vld [vmem:[%s14185_s15 + $0x80] sm:$0xff] }
 0x1f0   : > { %4596 = vmatpush.bf16.msrb.mxu3 %v11220_v1  ;;  %4545 = vmatpush.bf16.msra.mxu2 %v11084_v15  ;;  %v1870_v3 = vsel %vm18298_vm2, %v1818_v45, %v1869_v37  ;;  %v1867_v44 = vsel %vm18300_vm0, %v1842_v6, %v1843_v42  ;;  %v1847_v15 = vrot.slane %v14669_v54, 4  ;;  %v2268_v1 = vld [vmem:[%s14185_s15 + $0x78] sm:$0xff]  ;;  %v1850_v37 = vrot.slane %v14691_v43, 4 }
 0x1f1   : > { %4692 = vmatpush.bf16.msra.mxu1 %v11616_v39  ;;  %1908 = vst [vmem:[#allocation4 + $0x2c8] sm:$0xff] %v1870_v3  ;;  %v1868_v14 = vsel %vm18298_vm2, %v1816_v48, %v1867_v44  ;;  %v10848_v39 = vor.u32 %v13002_v16, %v10845_v33  ;;  %v13178_v45 = vld [vmem:[#allocation4 + $0x7ac] sm:$0xf0]  ;;  %v12938_v42 = vld [vmem:[#allocation4 + $0x34] sm:$0xf] }
 0x1f2   : > { %4628 = vmatmul.bf16.vlgmr.msrb.gmra.mxu1 %v14409_v24  ;;  %11700 = vmatmul.msk.bf16.vlgmr.msrb.gmra.mxu0 %vm18302_vm3, %v14470_v40  ;;  %1907 = vst [vmem:[#allocation4 + $0x2c0] sm:$0xff] %v1868_v14  ;;  %v11621_v33 = vld [vmem:[#allocation4 + $0x8b8] sm:$0xf0]  ;;  %v11492_v14 = vor.u32 %v13179_v41, %v11491_v36  ;;  %v13114_v59 = vld [vmem:[#allocation4 + $0x5ac] sm:$0xf0]  ;;  %v2417_v36 = vld [vmem:[%s14185_s15 + $0x5c] sm:$0xff] }
 0x1f3   : > { %4675 = vmatpush.bf16.msra.mxu0 %v11104_v29  ;;  %11697 = vmatmul.msk.bf16.vlgmr.msra.gmra.mxu3 %vm18302_vm3, %v14470_v40  ;;  %v13209_v29 = vld [vmem:[#allocation4 + $0x8a4] sm:$0xf0]  ;;  %v11624_v46 = vor.u32 %v13195_v50, %v11621_v33  ;;  %v10725_v16 = vld [vmem:[#allocation4 + $0x1b8] sm:$0xf0]  ;;  %2433 = vst [vmem:[#allocation4 + $0x7c0] sm:$0xff] %v2417_v36 }
 0x1f4   : > { %4597 = vmatpush.bf16.msrb.mxu3 %v11092_v2  ;;  %4546 = vmatpush.bf16.msra.mxu2 %v10956_v7  ;;  %v14731_v17 = vpop.permute.xlu2 %1961  ;;  %v1824_v20 = vpop.permute.xlu1 %1823  ;;  %v12952_v2 = vld [vmem:[#allocation4 + $0x9c] sm:$0xf0]  ;;  %v11604_v7 = vor.u32 %v13209_v29, %v11603_v35  ;;  %1754 = vst [vmem:[#allocation4 + $0x1c8] sm:$0xff] %v2417_v36 }
 0x1f5   : > { %4724 = vmatpush.bf16.msrb.mxu1 %v11496_v27  ;;  %v10708_v27 = vor.u32 %v12985_v52, %v10707_v56  ;;  %2145 = vrot.lane.b32.xlu1 %v2259_v31, %s13642_s12  ;;  %v1846_v58 = vrot.slane %v1824_v20, 4  ;;  %v1822_v26 = vpop.permute.xlu0 %1821  ;;  %v10572_v9 = vor.u32 %v12952_v2, %v10571_v60  ;;  %v10579_v31 = vld [vmem:[#allocation4 + $0x28] sm:$0xf]  ;;  %v13003_v56 = vld [vmem:[#allocation4 + $0x23c] sm:$0xf]  ;;  %v1989_v60 = vrot.slane %v14713_v34, 4 }
 0x1f6   : > { %2317 = vrot.lane.b32.xlu0 %v2268_v1, %s13641_s11  ;;  %v1845_v47 = vrot.slane %v1822_v26, 4  ;;  %2163 = vrot.lane.b32.xlu2 %v2268_v1, %s13642_s12  ;;  %v1992_v41 = vrot.slane %v14731_v17, 4 }
 0x1f7   : > { %4676 = vmatpush.bf16.msra.mxu0 %v10976_v28  ;;  %v1875_v18 = vsel %vm18300_vm0, %v1846_v58, %v1847_v15  ;;  %v10592_v28 = vor.u32 %v12938_v42, %v10589_v10  ;;  %v12939_v10 = vld [vmem:[#allocation4 + $0x3c] sm:$0xf]  ;;  %v11107_v42 = vld [vmem:[#allocation4 + $0x438] sm:$0xf] }
 0x1f8   : > { %4598 = vmatpush.bf16.msrb.mxu3 %v10964_v53  ;;  %4547 = vmatpush.bf16.msra.mxu2 %v10828_v0  ;;  %v1876_v38 = vsel %vm18298_vm2, %v1824_v20, %v1875_v18  ;;  %v1871_v19 = vsel %vm18300_vm0, %v1844_v5, %v1845_v47  ;;  %v1873_v30 = vsel %vm18300_vm0, %v1845_v47, %v1846_v58  ;;  %v10853_v53 = vld [vmem:[#allocation4 + $0x2b8] sm:$0xf0]  ;;  %v11099_v47 = vld [vmem:[#allocation4 + $0x430] sm:$0xf]  ;;  %v2260_v18 = vld [vmem:[%s14185_s15 + $0x30] sm:$0xff] }
 0x1f9   : > { %4725 = vmatpush.bf16.msrb.mxu1 %v11368_v62  ;;  %v11483_v62 = vld [vmem:[#allocation4 + $0x730] sm:$0xf]  ;;  %1911 = vst [vmem:[#allocation4 + $0x2e0] sm:$0xff] %v1876_v38  ;;  %v1872_v48 = vsel %vm18298_vm2, %v14650_v23, %v1871_v19  ;;  %v1874_v63 = vsel %vm18298_vm2, %v1822_v26, %v1873_v30  ;;  %v10580_v5 = vor.u32 %v12953_v57, %v10579_v31  ;;  %v10597_v58 = vld [vmem:[#allocation4 + $0xb8] sm:$0xf0] }
 0x1fa   : > { %1909 = vst [vmem:[#allocation4 + $0x2d0] sm:$0xff] %v1872_v48  ;;  %v11484_v6 = vor.u32 %v13178_v45, %v11483_v62  ;;  %v13146_v23 = vld [vmem:[#allocation4 + $0x6ac] sm:$0xf0]  ;;  %v11612_v0 = vor.u32 %v13210_v12, %v11611_v49  ;;  %v11363_v26 = vld [vmem:[#allocation4 + $0x638] sm:$0xf]  ;;  %v10600_v19 = vor.u32 %v12939_v10, %v10597_v58 }
 0x1fb   : > { %4677 = vmatpush.bf16.msra.mxu0 %v10848_v39  ;;  %1910 = vst [vmem:[#allocation4 + $0x2d8] sm:$0xff] %v1874_v63  ;;  %v11356_v39 = vor.u32 %v13146_v23, %v11355_v4  ;;  %v11235_v45 = vld [vmem:[#allocation4 + $0x538] sm:$0xf]  ;;  %v10971_v23 = vld [vmem:[#allocation4 + $0x330] sm:$0xf] }
 0x1fc   : > { %4599 = vmatpush.bf16.msrb.mxu3 %v10836_v55  ;;  %4548 = vmatpush.bf16.msra.mxu2 %v10700_v61  ;;  %v14752_v3 = vpop.permute.xlu2 %1967  ;;  %v1830_v44 = vpop.permute.xlu1 %1829  ;;  %v10856_v61 = vor.u32 %v13003_v56, %v10853_v53  ;;  %v13083_v12 = vld [vmem:[#allocation4 + $0x4b4] sm:$0xf0]  ;;  %v12986_v4 = vld [vmem:[#allocation4 + $0x1ac] sm:$0xf0] }
 0x1fd   : > { %4726 = vmatpush.bf16.msrb.mxu1 %v11240_v22  ;;  %v12971_v22 = vld [vmem:[#allocation4 + $0x13c] sm:$0xf]  ;;  %v1849_v52 = vrot.slane %v1830_v44, 4  ;;  %v1828_v43 = vpop.permute.xlu0 %1827  ;;  %2501 = vrot.lane.b32.xlu1 %v2453_v51, %s13642_s12  ;;  %v12987_v58 = vld [vmem:[#allocation4 + $0x1b4] sm:$0xf0] }
 0x1fe   : > { %v1848_v25 = vrot.slane %v1828_v43, 4  ;;  %2483 = vrot.lane.b32.xlu0 %v2444_v21, %s13642_s12  ;;  %1977 = vrot.lane.b32.xlu2 %v2453_v51, %s13641_s11 }
 0x1ff   : > { %4678 = vmatpush.bf16.msra.mxu0 %v10720_v13  ;;  %v1881_v55 = vsel %vm18300_vm0, %v1849_v52, %v1850_v37  ;;  %v13147_v13 = vld [vmem:[#allocation4 + $0x6b4] sm:$0xf0] }
 0x200   : > { %4600 = vmatpush.bf16.msrb.mxu3 %v10708_v27  ;;  %4549 = vmatpush.bf16.msra.mxu2 %v10572_v9  ;;  %v1882_v1 = vsel %vm18298_vm2, %v1830_v44, %v1881_v55  ;;  %v1877_v20 = vsel %vm18300_vm0, %v1847_v15, %v1848_v25  ;;  %v1879_v27 = vsel %vm18300_vm0, %v1848_v25, %v1849_v52  ;;  %v11227_v15 = vld [vmem:[#allocation4 + $0x530] sm:$0xf]  ;;  %v2454_v52 = vld [vmem:[%s14185_s15 + $0x7c] sm:$0xff] }
 0x201   : > { %4727 = vmatpush.bf16.msrb.mxu1 %v11112_v11  ;;  %v10728_v11 = vor.u32 %v12971_v22, %v10725_v16  ;;  %1914 = vst [vmem:[#allocation4 + $0x2f8] sm:$0xff] %v1882_v1  ;;  %v1878_v2 = vsel %vm18298_vm2, %v14669_v54, %v1877_v20  ;;  %v1880_v29 = vsel %vm18298_vm2, %v1828_v43, %v1879_v27  ;;  %v13082_v54 = vld [vmem:[#allocation4 + $0x4ac] sm:$0xf0]  ;;  %v10979_v16 = vld [vmem:[#allocation4 + $0x338] sm:$0xf] }
 0x202   : > { %11702 = vmatmul.msk.bf16.vlgmr.msra.gmra.mxu1 %vm18302_vm3, %v14470_v40  ;;  %1912 = vst [vmem:[#allocation4 + $0x2e8] sm:$0xff] %v1878_v2  ;;  %v11364_v57 = vor.u32 %v13147_v13, %v11363_v26  ;;  %v11228_v35 = vor.u32 %v13114_v59, %v11227_v15  ;;  %v11100_v31 = vor.u32 %v13082_v54, %v11099_v47  ;;  %v13018_v22 = vld [vmem:[#allocation4 + $0x2ac] sm:$0xf0]  ;;  %v13019_v20 = vld [vmem:[#allocation4 + $0x2b4] sm:$0xf0] }
 0x203   : > { %4679 = vmatpush.bf16.msra.mxu0 %v10592_v28  ;;  %4550 = vmatmul.bf16.vlgmr.msra.gmra.mxu2 %v14409_v24  ;;  %1913 = vst [vmem:[#allocation4 + $0x2f0] sm:$0xff] %v1880_v29  ;;  %v13050_v28 = vld [vmem:[#allocation4 + $0x3ac] sm:$0xf0]  ;;  %v10851_v2 = vld [vmem:[#allocation4 + $0x238] sm:$0xf] }
 0x204   : > { %4614 = vmatpush.bf16.msrb.mxu2 %v11604_v7  ;;  %4601 = vmatpush.bf16.msrb.mxu3 %v10580_v5  ;;  %v14772_v9 = vpop.permute.xlu2 %2291  ;;  %v1954_v7 = vpop.permute.xlu1 %1953  ;;  %v11108_v5 = vor.u32 %v13083_v12, %v11107_v42  ;;  %v10972_v37 = vor.u32 %v13050_v28, %v10971_v23  ;;  %v10715_v25 = vld [vmem:[#allocation4 + $0x130] sm:$0xf]  ;;  %v10723_v29 = vld [vmem:[#allocation4 + $0x138] sm:$0xf]  ;;  %v10852_v15 = vor.u32 %v13019_v20, %v10851_v2  ;;  %v2271_v2 = vld [vmem:[%s14185_s15 + $0x90] sm:$0xff] }
 0x205   : > { %4728 = vmatpush.bf16.msrb.mxu1 %v10984_v32  ;;  %v13115_v32 = vld [vmem:[#allocation4 + $0x5b4] sm:$0xf0]  ;;  %v1988_v62 = vrot.slane %v1954_v7, 4  ;;  %v1952_v38 = vpop.permute.xlu0 %1951  ;;  %2319 = vrot.lane.b32.xlu1 %v2269_v8, %s13641_s11  ;;  %v10716_v59 = vor.u32 %v12986_v4, %v10715_v25 }
 0x206   : > { %4680 = vmatmul.bf16.vlgmr.msra.gmra.mxu0 %v14409_v24  ;;  %v1987_v30 = vrot.slane %v1952_v38, 4  ;;  %2301 = vrot.lane.b32.xlu0 %v2260_v18, %s13641_s11  ;;  %v11236_v63 = vor.u32 %v13115_v32, %v11235_v45  ;;  %v11619_v45 = vld [vmem:[#allocation4 + $0x838] sm:$0xf] }
 0x207   : > { %4744 = vmatpush.bf16.msrb.mxu0 %v11624_v46  ;;  %4602 = vmatmul.bf16.vlgmr.msrb.gmra.mxu3 %v14409_v24  ;;  %v2007_v48 = vsel %vm18300_vm0, %v1988_v62, %v1989_v60  ;;  %v13051_v46 = vld [vmem:[#allocation4 + $0x3b4] sm:$0xf0] }
 0x208   : > { %4666 = vmatpush.bf16.msra.mxu3 %v11612_v0  ;;  %4646 = vmatpush.bf16.msra.mxu2 %v11484_v6  ;;  %v2008_v49 = vsel %vm18299_vm1, %v1954_v7, %v2007_v48  ;;  %v2005_v33 = vsel %vm18300_vm0, %v1987_v30, %v1988_v62  ;;  %v2409_v6 = vld [vmem:[%s14185_s15 + $0xc] sm:$0xff]  ;;  %v10980_v43 = vor.u32 %v13051_v46, %v10979_v16  ;;  %v13211_v7 = vld [vmem:[#allocation4 + $0x8b4] sm:$0xf0]  ;;  %v10587_v62 = vld [vmem:[#allocation4 + $0x30] sm:$0xf] }
 0x209   : > { %4729 = vmatpush.bf16.msrb.mxu1 %v10856_v61  ;;  %2054 = vst [vmem:[#allocation4 + $0x348] sm:$0xff] %v2008_v49  ;;  %v2006_v53 = vsel %vm18299_vm1, %v1952_v38, %v2005_v33  ;;  %2147 = vrot.lane.b32.xlu2 %v2260_v18, %s13642_s12  ;;  %v2445_v0 = vld [vmem:[%s14185_s15 + $0x2c] sm:$0xff]  ;;  %v10843_v61 = vld [vmem:[#allocation4 + $0x230] sm:$0xf]  ;;  %v13180_v30 = vld [vmem:[#allocation4 + $0x7bc] sm:$0xf0]  ;;  %v11620_v12 = vor.u32 %v13211_v7, %v11619_v45 }
 0x20a   : > { %2053 = vst [vmem:[#allocation4 + $0x340] sm:$0xff] %v2006_v53  ;;  %v10844_v1 = vor.u32 %v13018_v22, %v10843_v61  ;;  %v12954_v18 = vld [vmem:[#allocation4 + $0xac] sm:$0xf0]  ;;  %v2270_v38 = vld [vmem:[%s14185_s15 + $0x88] sm:$0xff]  ;;  %v12955_v48 = vld [vmem:[#allocation4 + $0xb4] sm:$0xf0] }
 0x20b   : > { %2425 = vst [vmem:[#allocation4 + $0x740] sm:$0xff] %v2409_v6  ;;  %v10588_v42 = vor.u32 %v12954_v18, %v10587_v62  ;;  %v10595_v28 = vld [vmem:[#allocation4 + $0x38] sm:$0xf]  ;;  %v2456_v45 = vld [vmem:[%s14185_s15 + $0x8c] sm:$0xff] }
 0x20c   : > { %4698 = vmatpush.bf16.msrb.mxu3 %v11492_v14  ;;  %4647 = vmatpush.bf16.msra.mxu2 %v11356_v39  ;;  %v14788_v50 = vpop.permute.xlu2 %2311  ;;  %v1960_v51 = vpop.permute.xlu1 %1959  ;;  %1746 = vst [vmem:[#allocation4 + $0x148] sm:$0xff] %v2409_v6  ;;  %v10596_v36 = vor.u32 %v12955_v48, %v10595_v28 }
 0x20d   : > { %4730 = vmatpush.bf16.msrb.mxu1 %v10728_v11  ;;  %v1991_v21 = vrot.slane %v1960_v51, 4  ;;  %v1958_v44 = vpop.permute.xlu0 %1957  ;;  %2485 = vrot.lane.b32.xlu1 %v2445_v0, %s13642_s12 }
 0x20e   : > { %v1990_v56 = vrot.slane %v1958_v44, 4  ;;  %2165 = vrot.lane.b32.xlu0 %v2269_v8, %s13642_s12  ;;  %v10724_v8 = vor.u32 %v12987_v58, %v10723_v29  ;;  %v1729_v58 = vld [vmem:[%s14185_s15 + $0x4] sm:$0xff] }
 0x20f   : > { %v2013_v14 = vsel %vm18300_vm0, %v1991_v21, %v1992_v41  ;;  %1745 = vst [vmem:[#allocation4 + $0x140] sm:$0xff] %v1729_v58 }
 0x210   : > { %4699 = vmatpush.bf16.msrb.mxu3 %v11364_v57  ;;  %4648 = vmatpush.bf16.msra.mxu2 %v11228_v35  ;;  %v2014_v55 = vsel %vm18299_vm1, %v1960_v51, %v2013_v14  ;;  %v2009_v39 = vsel %vm18300_vm0, %v1989_v60, %v1990_v56  ;;  %v2011_v11 = vsel %vm18300_vm0, %v1990_v56, %v1991_v21  ;;  %v11501_v60 = vld [vmem:[#allocation4 + $0x7c0] sm:$0xf0]  ;;  %v2261_v57 = vld [vmem:[%s14185_s15 + $0x38] sm:$0xff] }
 0x211   : > { %4731 = vmatpush.bf16.msrb.mxu1 %v10600_v19  ;;  %2057 = vst [vmem:[#allocation4 + $0x360] sm:$0xff] %v2014_v55  ;;  %v2010_v27 = vsel %vm18299_vm1, %v14713_v34, %v2009_v39  ;;  %v2012_v13 = vsel %vm18299_vm1, %v1958_v44, %v2011_v11  ;;  %2503 = vrot.lane.b32.xlu2 %v2454_v52, %s13642_s12  ;;  %v1995_v34 = vrot.slane %v14752_v3, 4  ;;  %v2446_v51 = vld [vmem:[%s14185_s15 + $0x34] sm:$0xff]  ;;  %v2262_v39 = vld [vmem:[%s14185_s15 + $0x40] sm:$0xff] }
 0x212   : > { %2055 = vst [vmem:[#allocation4 + $0x350] sm:$0xff] %v2010_v27  ;;  %v13164_v26 = vld [vmem:[#allocation4 + $0x744] sm:$0xf]  ;;  %v11499_v19 = vld [vmem:[#allocation4 + $0x740] sm:$0xf]  ;;  %v2077_v14 = vld [vmem:[%s14185_s15 + $0x58] sm:$0xff] }
 0x213   : > { %11699 = vmatmul.msk.bf16.vlgmr.msrb.gmra.mxu2 %vm18302_vm3, %v14470_v40  ;;  %2056 = vst [vmem:[#allocation4 + $0x358] sm:$0xff] %v2012_v13  ;;  %v11504_v47 = vor.u32 %v13164_v26, %v11501_v60  ;;  %v11500_v6 = vor.u32 %v13180_v30, %v11499_v19  ;;  %v1737_v26 = vld [vmem:[%s14185_s15 + $0x54] sm:$0xff] }
 0x214   : > { %4700 = vmatpush.bf16.msrb.mxu3 %v11236_v63  ;;  %4649 = vmatpush.bf16.msra.mxu2 %v11100_v31  ;;  %v14813_v54 = vpop.permute.xlu2 %2155  ;;  %v1966_v35 = vpop.permute.xlu1 %1965  ;;  %2093 = vst [vmem:[#allocation4 + $0x4c0] sm:$0xff] %v2077_v14 }
 0x215   : > { %4732 = vmatmul.bf16.vlgmr.msrb.gmra.mxu1 %v14409_v24  ;;  %v1994_v32 = vrot.slane %v1966_v35, 4  ;;  %v1964_v10 = vpop.permute.xlu0 %1963  ;;  %4776 = vmatpush.bf16.msra.mxu0 %v11504_v47  ;;  %1753 = vst [vmem:[#allocation4 + $0x1c0] sm:$0xff] %v1737_v26 }
 0x216   : > { %11704 = vmatmul.msk.bf16.vlgmr.msrb.gmra.mxu0 %vm18302_vm3, %v14470_v40  ;;  %2303 = vrot.lane.b32.xlu1 %v2261_v57, %s13641_s11  ;;  %v1993_v3 = vrot.slane %v1964_v10, 4 }
 0x217   : > { %11701 = vmatmul.msk.bf16.vlgmr.msra.gmra.mxu3 %vm18302_vm3, %v14470_v40  ;;  %1979 = vrot.lane.b32.xlu0 %v2454_v52, %s13641_s11  ;;  %v2019_v31 = vsel %vm18300_vm0, %v1994_v32, %v1995_v34  ;;  %v2069_v52 = vld [vmem:[%s14185_s15 + $0x8] sm:$0xff] }
 0x218   : > { %4701 = vmatpush.bf16.msrb.mxu3 %v11108_v5  ;;  %4650 = vmatpush.bf16.msra.mxu2 %v10972_v37  ;;  %v2020_v63 = vsel %vm18299_vm1, %v1966_v35, %v2019_v31  ;;  %v2015_v49 = vsel %vm18300_vm0, %v1992_v41, %v1993_v3  ;;  %v2017_v33 = vsel %vm18300_vm0, %v1993_v3, %v1994_v32  ;;  %v2337_v41 = vrot.slane %v14788_v50, 4 }
 0x219   : > { %2321 = vrot.lane.b32.xlu2 %v2270_v38, %s13641_s11  ;;  %2060 = vst [vmem:[#allocation4 + $0x378] sm:$0xff] %v2020_v63  ;;  %v2016_v53 = vsel %vm18299_vm1, %v14731_v17, %v2015_v49  ;;  %v2018_v5 = vsel %vm18299_vm1, %v1964_v10, %v2017_v33 }
 0x21a   : > { %2058 = vst [vmem:[#allocation4 + $0x368] sm:$0xff] %v2016_v53 }
 0x21b   : > { %2059 = vst [vmem:[#allocation4 + $0x370] sm:$0xff] %v2018_v5 }
 0x21c   : > { %4702 = vmatpush.bf16.msrb.mxu3 %v10980_v43  ;;  %4651 = vmatpush.bf16.msra.mxu2 %v10844_v1  ;;  %v14832_v37 = vpop.permute.xlu2 %2313  ;;  %v1930_v43 = vld [vmem:[%s14185_s15 + $0x84] sm:$0xff]  ;;  %2085 = vst [vmem:[#allocation4 + $0x440] sm:$0xff] %v2069_v52 }
 0x21d   : > { %v14829_v23 = vpop.permute.xlu1 %1971  ;;  %v2338_v46 = vrot.slane %v14832_v37, 4 }
 0x21e   : > { %v1997_v17 = vrot.slane %v14829_v23, 4  ;;  %2167 = vrot.lane.b32.xlu1 %v2270_v38, %s13642_s12  ;;  %v2447_v38 = vld [vmem:[%s14185_s15 + $0x3c] sm:$0xff] }
 0x21f   : > { %v1970_v0 = vpop.permute.xlu0 %1969  ;;  %2149 = vrot.lane.b32.xlu0 %v2261_v57, %s13642_s12  ;;  %v2363_v44 = vsel %vm18300_vm0, %v2337_v41, %v2338_v46  ;;  %v2418_v57 = vld [vmem:[%s14185_s15 + $0x64] sm:$0xff] }
 0x220   : > { %4703 = vmatpush.bf16.msrb.mxu3 %v10852_v15  ;;  %4652 = vmatpush.bf16.msra.mxu2 %v10716_v59  ;;  %v1996_v21 = vrot.slane %v1970_v0, 4  ;;  %v2364_v16 = vsel %vm18299_vm1, %v14788_v50, %v2363_v44  ;;  %v2327_v50 = vrot.slane %v14772_v9, 4  ;;  %2434 = vst [vmem:[#allocation4 + $0x7c8] sm:$0xff] %v2418_v57 }
 0x221   : > { %2487 = vrot.lane.b32.xlu2 %v2446_v51, %s13642_s12  ;;  %2402 = vst [vmem:[#allocation4 + $0x6c8] sm:$0xff] %v2364_v16  ;;  %v2109_v51 = vld [vmem:[%s14185_s15 + $0x48] sm:$0xf] }
 0x222   : > { %v2021_v22 = vsel %vm18300_vm0, %v1996_v21, %v1997_v17  ;;  %1755 = vst [vmem:[#allocation4 + $0x1d0] sm:$0xff] %v2418_v57  ;;  %v2457_v57 = vld [vmem:[%s14185_s15 + $0x94] sm:$0xff] }
 0x223   : > { %v2022_v56 = vsel %vm18299_vm1, %v1970_v0, %v2021_v22 }
 0x224   : > { %4704 = vmatpush.bf16.msrb.mxu3 %v10724_v8  ;;  %4653 = vmatpush.bf16.msra.mxu2 %v10588_v42  ;;  %2061 = vst [vmem:[#allocation4 + $0x3c0] sm:$0xff] %v2022_v56  ;;  %v14853_v25 = vpop.permute.xlu2 %2477  ;;  %v13643_v42 = vmov 0   ;;  %v4343_v56 = vpop.f32.mrf.mxu0 }
 0x225   : > { %v2310_v61 = vpop.permute.xlu1 %2309  ;;  %5302 = vst [vmem:[#allocation2 + $0x48] sm:$0xff] %v13643_v42  ;;  %13522 = vset.pattern.permute.xlu0 %v13643_v42  ;;  %13543 = vset.pattern.permute.xlu1 %v13643_v42 }
 0x226   : > { %v2336_v4 = vrot.slane %v2310_v61, 4  ;;  %1981 = vrot.lane.b32.xlu1 %v1930_v43, %s13641_s11  ;;  %5303 = vst [vmem:[#allocation2 + $0x98] sm:$0xff] %v13643_v42  ;;  %13544 = vset.pattern.permute.xlu2 %v13643_v42 }
 0x227   : > { %4654 = vmatmul.bf16.vlgmr.msra.gmra.mxu2 %v14409_v24  ;;  %v14855_v55 = vpop.permute.xlu0 %2293  ;;  %2505 = vrot.lane.b32.xlu0 %v1930_v43, %s13642_s12  ;;  %7760 = vst [vmem:[#allocation3 + $0x48] sm:$0xff] %v13643_v42  ;;  %v2118_v43 = vld [vmem:[%s14185_s15 + $0x98] sm:$0xf] }
 0x228   : > { %4718 = vmatpush.bf16.msrb.mxu2 %v11620_v12  ;;  %4705 = vmatpush.bf16.msrb.mxu3 %v10596_v36  ;;  %v2328_v11 = vrot.slane %v14855_v55, 4  ;;  %v2361_v1 = vsel %vm18300_vm0, %v2336_v4, %v2337_v41  ;;  %v2182_v12 = vrot.slane %v14813_v54, 4  ;;  %7761 = vst [vmem:[#allocation3 + $0x98] sm:$0xff] %v13643_v42  ;;  %v2272_v36 = vld [vmem:[%s14185_s15 + $0x98] sm:$0xf]  ;;  %v14941_v4 = vpop.f32.mrf.mxu1 }
 0x229   : > { %v2362_v20 = vsel %vm18299_vm1, %v2310_v61, %v2361_v1  ;;  %2305 = vrot.lane.b32.xlu2 %v2262_v39, %s13641_s11  ;;  %v2263_v41 = vld [vmem:[%s14185_s15 + $0x48] sm:$0xf]  ;;  %5300 = vst [vmem:[#allocation2] sm:$0xff] %v13643_v42  ;;  %v14939_v61 = vpop.f32.mrf.mxu3 }
 0x22a   : > { %v2345_v27 = vsel %vm18300_vm0, %v2327_v50, %v2328_v11  ;;  %2401 = vst [vmem:[#allocation4 + $0x6c0] sm:$0xff] %v2362_v20  ;;  %v11115_v1 = vld [vmem:[#allocation4 + $0x440] sm:$0xf]  ;;  %v13068_v20 = vld [vmem:[#allocation4 + $0x444] sm:$0xf] }
 0x22b   : > { %4706 = vmatmul.bf16.vlgmr.msrb.gmra.mxu3 %v14409_v24  ;;  %v2346_v13 = vsel %vm18299_vm1, %v14772_v9, %v2345_v27  ;;  %v2410_v9 = vld [vmem:[%s14185_s15 + $0x14] sm:$0xff]  ;;  %5301 = vst [vmem:[#allocation2 + $0x50] sm:$0xff] %v13643_v42  ;;  %v2448_v27 = vld [vmem:[%s14185_s15 + $0x44] sm:$0xff] }
 0x22c   : > { %4750 = vmatpush.bf16.msra.mxu2 %v11500_v6  ;;  %2393 = vst [vmem:[#allocation4 + $0x640] sm:$0xff] %v2346_v13  ;;  %v14871_v29 = vpop.permute.xlu2 %2497 }
 0x22d   : > { %v14873_v59 = vpop.permute.xlu1 %2139  ;;  %2426 = vst [vmem:[#allocation4 + $0x748] sm:$0xff] %v2410_v9  ;;  %v2523_v58 = vrot.slane %v14871_v29, 4 }
 0x22e   : > { %2151 = vrot.lane.b32.xlu1 %v2262_v39, %s13642_s12  ;;  %v2174_v15 = vrot.slane %v14873_v59, 4  ;;  %1747 = vst [vmem:[#allocation4 + $0x150] sm:$0xff] %v2410_v9  ;;  %v11117_v9 = vld [vmem:[#allocation4 + $0x4c0] sm:$0xf0] }
 0x22f   : > { %2323 = vrot.lane.b32.xlu0 %v2271_v2, %s13641_s11  ;;  %v2138_v60 = vpop.permute.xlu0 %2137  ;;  %7758 = vst [vmem:[#allocation3] sm:$0xff] %v13643_v42 }
 0x230   : > { %v2173_v34 = vrot.slane %v2138_v60, 4  ;;  %7759 = vst [vmem:[#allocation3 + $0x50] sm:$0xff] %v13643_v42 }
 0x231   : > { %2169 = vrot.lane.b32.xlu2 %v2271_v2, %s13642_s12  ;;  %v13148_v47 = vld [vmem:[#allocation4 + $0x6bc] sm:$0xf0]  ;;  %v11373_v35 = vld [vmem:[#allocation4 + $0x6c0] sm:$0xf0] }
 0x232   : > { %v2191_v8 = vsel %vm18300_vm0, %v2173_v34, %v2174_v15 }
 0x233   : > { %v11371_v18 = vld [vmem:[#allocation4 + $0x640] sm:$0xf]  ;;  %v13132_v7 = vld [vmem:[#allocation4 + $0x644] sm:$0xf]  ;;  %v2192_v32 = vsel %vm18298_vm2, %v2138_v60, %v2191_v8 }
 0x234   : > { %v11372_v10 = vor.u32 %v13148_v47, %v11371_v18  ;;  %v11376_v62 = vor.u32 %v13132_v7, %v11373_v35  ;;  %2239 = vst [vmem:[#allocation4 + $0x540] sm:$0xff] %v2192_v32  ;;  %v14893_v19 = vpop.permute.xlu2 %2315  ;;  %v13084_v60 = vld [vmem:[#allocation4 + $0x4bc] sm:$0xf0]  ;;  %v2411_v7 = vld [vmem:[%s14185_s15 + $0x1c] sm:$0xff]  ;;  %v2419_v32 = vld [vmem:[%s14185_s15 + $0x6c] sm:$0xff] }
 0x235   : > { %v2339_v48 = vrot.slane %v14893_v19, 4  ;;  %2427 = vst [vmem:[#allocation4 + $0x750] sm:$0xff] %v2411_v7 }
 0x236   : > { %4751 = vmatpush.bf16.msra.mxu2 %v11372_v10  ;;  %4777 = vmatpush.bf16.msra.mxu0 %v11376_v62  ;;  %v2513_v10 = vrot.slane %v14853_v25, 4  ;;  %2435 = vst [vmem:[#allocation4 + $0x7d0] sm:$0xff] %v2419_v32 }
 0x237   : > { %11703 = vmatmul.msk.bf16.vlgmr.msrb.gmra.mxu2 %vm18302_vm3, %v14470_v40  ;;  %v14889_v3 = vpop.permute.xlu1 %2295  ;;  %2507 = vrot.lane.b32.xlu1 %v2456_v45, %s13642_s12  ;;  %v2365_v33 = vsel %vm18300_vm0, %v2338_v46, %v2339_v48  ;;  %v4356_v46 = vpop.f32.mrf.mxu2  ;;  %1748 = vst [vmem:[#allocation4 + $0x158] sm:$0xff] %v2411_v7  ;;  %v13165_v7 = vld [vmem:[#allocation4 + $0x74c] sm:$0xf] }
 0x238   : > { %2489 = vrot.lane.b32.xlu0 %v2447_v38, %s13642_s12  ;;  %v2329_v30 = vrot.slane %v14889_v3, 4  ;;  %v2158_v31 = vpop.permute.xlu0 %2157  ;;  %v2366_v28 = vsel %vm18299_vm1, %v14832_v37, %v2365_v33  ;;  %v14950_v47 = vadd.f32 %v4356_v46, %v4343_v56  ;;  %v11120_v38 = vor.u32 %v13068_v20, %v11117_v9  ;;  %v1932_v46 = vld [vmem:[%s14185_s15 + $0x94] sm:$0xf]  ;;  %v10987_v56 = vld [vmem:[#allocation4 + $0x340] sm:$0xf]  ;;  %1756 = vst [vmem:[#allocation4 + $0x1d8] sm:$0xff] %v2419_v32 }
 0x239   : > { %v2183_v63 = vrot.slane %v2158_v31, 4  ;;  %1983 = vrot.lane.b32.xlu2 %v2456_v45, %s13641_s11  ;;  %2403 = vst [vmem:[#allocation4 + $0x6d0] sm:$0xff] %v2366_v28  ;;  %v11116_v45 = vor.u32 %v13084_v60, %v11115_v1  ;;  %v11507_v9 = vld [vmem:[#allocation4 + $0x748] sm:$0xf] }
 0x23a   : > { %v2347_v49 = vsel %vm18300_vm0, %v2328_v11, %v2329_v30 }
 0x23b   : > { %v2348_v53 = vsel %vm18299_vm1, %v14855_v55, %v2347_v49  ;;  %v2207_v5 = vsel %vm18300_vm0, %v2182_v12, %v2183_v63  ;;  %v2078_v55 = vld [vmem:[%s14185_s15 + $0x60] sm:$0xff]  ;;  %v11243_v50 = vld [vmem:[#allocation4 + $0x540] sm:$0xf]  ;;  %v13100_v11 = vld [vmem:[#allocation4 + $0x544] sm:$0xf]  ;;  %v4345_v12 = vpop.f32.mrf.mxu0 }
 0x23c   : > { %2394 = vst [vmem:[#allocation4 + $0x648] sm:$0xff] %v2348_v53  ;;  %v2208_v6 = vsel %vm18298_vm2, %v14813_v54, %v2207_v5  ;;  %v2070_v54 = vld [vmem:[%s14185_s15 + $0x10] sm:$0xff]  ;;  %v14930_v16 = vpop.permute.xlu2 %2481  ;;  %v4384_v53 = vpop.f32.mrf.mxu3 }
 0x23d   : > { %2247 = vst [vmem:[#allocation4 + $0x5c0] sm:$0xff] %v2208_v6  ;;  %v4397_v5 = vpop.f32.mrf.mxu1 }
 0x23e   : > { %2086 = vst [vmem:[#allocation4 + $0x448] sm:$0xff] %v2070_v54  ;;  %v13020_v54 = vld [vmem:[#allocation4 + $0x2bc] sm:$0xf0] }
 0x23f   : > { %v14916_v0 = vpop.permute.xlu1 %2159  ;;  %2325 = vrot.lane.b32.xlu1 %v2272_v36, %s13641_s11  ;;  %2094 = vst [vmem:[#allocation4 + $0x4c8] sm:$0xff] %v2078_v55  ;;  %v4358_v35 = vpop.f32.mrf.mxu2  ;;  %v13052_v36 = vld [vmem:[#allocation4 + $0x3bc] sm:$0xf0] }
 0x240   : > { %2307 = vrot.lane.b32.xlu0 %v2263_v41, %s13641_s11  ;;  %v2184_v37 = vrot.slane %v14916_v0, 4  ;;  %v14922_v21 = vpop.permute.xlu0 %2141  ;;  %v10989_v41 = vld [vmem:[#allocation4 + $0x3c0] sm:$0xf0] }
 0x241   : > { %v2175_v44 = vrot.slane %v14922_v21, 4  ;;  %2153 = vrot.lane.b32.xlu2 %v2109_v51, %s13642_s12  ;;  %v2449_v51 = vld [vmem:[%s14185_s15 + $0x4c] sm:$0xf] }
 0x242   : > { %v2209_v22 = vsel %vm18300_vm0, %v2183_v63, %v2184_v37 }
 0x243   : > { %v2210_v52 = vsel %vm18298_vm2, %v2158_v31, %v2209_v22  ;;  %v2193_v14 = vsel %vm18300_vm0, %v2174_v15, %v2175_v44  ;;  %v10861_v22 = vld [vmem:[#allocation4 + $0x2c0] sm:$0xf0] }
 0x244   : > { %2248 = vst [vmem:[#allocation4 + $0x5c8] sm:$0xff] %v2210_v52  ;;  %v2194_v39 = vsel %vm18298_vm2, %v14873_v59, %v2193_v14  ;;  %v13116_v13 = vld [vmem:[#allocation4 + $0x5bc] sm:$0xf0]  ;;  %v11245_v2 = vld [vmem:[#allocation4 + $0x5c0] sm:$0xf0]  ;;  %v2515_v59 = vrot.slane %v14930_v16, 4  ;;  %v14961_v42 = vpop.permute.xlu2 %2299  ;;  %v10988_v14 = vor.u32 %v13052_v36, %v10987_v56  ;;  %v4408_v12 = vpop.f32.mrf.mxu3 }
 0x245   : > { %2240 = vst [vmem:[#allocation4 + $0x548] sm:$0xff] %v2194_v39  ;;  %v11244_v26 = vor.u32 %v13116_v13, %v11243_v50  ;;  %v11248_v15 = vor.u32 %v13100_v11, %v11245_v2  ;;  %v13036_v52 = vld [vmem:[#allocation4 + $0x344] sm:$0xf]  ;;  %v2331_v55 = vrot.slane %v14961_v42, 4  ;;  %v14974_v50 = vld [vmem:[#allocation4 + $0x140] sm:$0xf] }
 0x246   : > { %v13004_v39 = vld [vmem:[#allocation4 + $0x244] sm:$0xf]  ;;  %v2458_v11 = vld [vmem:[%s14185_s15 + $0x9c] sm:$0xf] }
 0x247   : > { %v2496_v34 = vpop.permute.xlu1 %2495  ;;  %2491 = vrot.lane.b32.xlu1 %v2448_v27, %s13642_s12  ;;  %4752 = vmatpush.bf16.msra.mxu2 %v11244_v26  ;;  %v4369_v1 = vpop.f32.mrf.mxu2  ;;  %v12988_v27 = vld [vmem:[#allocation4 + $0x1bc] sm:$0xf0]  ;;  %v12972_v13 = vld [vmem:[#allocation4 + $0x144] sm:$0xf] }
 0x248   : > { %2171 = vrot.lane.b32.xlu0 %v2118_v43, %s13642_s12  ;;  %v2522_v8 = vrot.slane %v2496_v34, 4  ;;  %v2480_v18 = vpop.permute.xlu0 %2479  ;;  %4778 = vmatpush.bf16.msra.mxu0 %v11248_v15  ;;  %v10992_v43 = vor.u32 %v13036_v52, %v10989_v41  ;;  %v10733_v2 = vld [vmem:[#allocation4 + $0x1c0] sm:$0xf0]  ;;  %v14980_v26 = vadd.f32 %v14939_v61, %v4369_v1 }
 0x249   : > { %v2514_v62 = vrot.slane %v2480_v18, 4  ;;  %2509 = vrot.lane.b32.xlu2 %v2457_v57, %s13642_s12  ;;  %v2079_v56 = vld [vmem:[%s14185_s15 + $0x68] sm:$0xff] }
 0x24a   : > { %v2547_v31 = vsel %vm18300_vm0, %v2522_v8, %v2523_v58  ;;  %18318 = vst [vmem:[#allocation5_spill] sm:$0xff] %v14980_v26  ;;  %v10864_v8 = vor.u32 %v13004_v39, %v10861_v22  ;;  %v12956_v22 = vld [vmem:[#allocation4 + $0xbc] sm:$0xf0]  ;;  %v12940_v39 = vld [vmem:[#allocation4 + $0x44] sm:$0xf] }
 0x24b   : > { %v2548_v63 = vsel %vm18298_vm2, %v2496_v34, %v2547_v31  ;;  %v2531_v49 = vsel %vm18300_vm0, %v2513_v10, %v2514_v62  ;;  %v2533_v33 = vsel %vm18300_vm0, %v2514_v62, %v2515_v59  ;;  %4753 = vmatpush.bf16.msra.mxu2 %v11116_v45  ;;  %v13181_v34 = vld [vmem:[#allocation4 + $0x7c4] sm:$0xf0]  ;;  %v10732_v10 = vor.u32 %v12988_v27, %v14974_v50  ;;  %v11509_v31 = vld [vmem:[#allocation4 + $0x7c8] sm:$0xf0] }
 0x24c   : > { %2587 = vst [vmem:[#allocation4 + $0x8c0] sm:$0xff] %v2548_v63  ;;  %v2532_v28 = vsel %vm18298_vm2, %v14853_v25, %v2531_v49  ;;  %v2534_v6 = vsel %vm18298_vm2, %v2480_v18, %v2533_v33  ;;  %4779 = vmatpush.bf16.msra.mxu0 %v11120_v38  ;;  %v10859_v25 = vld [vmem:[#allocation4 + $0x240] sm:$0xf]  ;;  %v10736_v45 = vor.u32 %v12972_v13, %v10733_v2  ;;  %v14995_v63 = vpop.f32.mrf.mxu0  ;;  %v13133_v50 = vld [vmem:[#allocation4 + $0x64c] sm:$0xf] }
 0x24d   : > { %2579 = vst [vmem:[#allocation4 + $0x840] sm:$0xff] %v2532_v28  ;;  %v10860_v35 = vor.u32 %v13020_v54, %v10859_v25  ;;  %v11508_v28 = vor.u32 %v13181_v34, %v11507_v9  ;;  %v10603_v54 = vld [vmem:[#allocation4 + $0x40] sm:$0xf]  ;;  %v13149_v27 = vld [vmem:[#allocation4 + $0x6c4] sm:$0xf0]  ;;  %v15018_v13 = vadd.f32 %v4408_v12, %v14941_v4 }
 0x24e   : > { %2580 = vst [vmem:[#allocation4 + $0x848] sm:$0xff] %v2534_v6  ;;  %v15005_v6 = vpop.f32.mrf.mxu1  ;;  %v2412_v2 = vld [vmem:[%s14185_s15 + $0x24] sm:$0xff] }
 0x24f   : > { %2493 = vrot.lane.b32.xlu1 %v2449_v51, %s13642_s12  ;;  %v2298_v20 = vpop.permute.xlu1 %2297  ;;  %4754 = vmatpush.bf16.msra.mxu2 %v10988_v14  ;;  %v11379_v14 = vld [vmem:[#allocation4 + $0x648] sm:$0xf]  ;;  %2095 = vst [vmem:[#allocation4 + $0x4d0] sm:$0xff] %v2079_v56 }
 0x250   : > { %1985 = vrot.lane.b32.xlu0 %v1932_v46, %s13641_s11  ;;  %4780 = vmatpush.bf16.msra.mxu0 %v10992_v43  ;;  %v2330_v15 = vrot.slane %v2298_v20, 4  ;;  %v14982_v60 = vpop.permute.xlu0 %1973  ;;  %v14985_v18 = vpop.permute.xlu2 %2163  ;;  %v2071_v46 = vld [vmem:[%s14185_s15 + $0x18] sm:$0xff]  ;;  %2428 = vst [vmem:[#allocation4 + $0x758] sm:$0xff] %v2412_v2 }
 0x251   : > { %v1998_v57 = vrot.slane %v14982_v60, 4  ;;  %2511 = vrot.lane.b32.xlu2 %v2458_v11, %s13642_s12  ;;  %v2186_v52 = vrot.slane %v14985_v18, 4  ;;  %v4371_v43 = vpop.f32.mrf.mxu2  ;;  %2087 = vst [vmem:[#allocation4 + $0x450] sm:$0xff] %v2071_v46 }
 0x252   : > { %v2349_v61 = vsel %vm18300_vm0, %v2329_v30, %v2330_v15  ;;  %v2351_v32 = vsel %vm18300_vm0, %v2330_v15, %v2331_v55  ;;  %v2420_v15 = vld [vmem:[%s14185_s15 + $0x74] sm:$0xff]  ;;  %1749 = vst [vmem:[#allocation4 + $0x160] sm:$0xff] %v2412_v2 }
 0x253   : > { %v13212_v62 = vld [vmem:[#allocation4 + $0x8bc] sm:$0xf0]  ;;  %v11629_v38 = vld [vmem:[#allocation4 + $0x8c0] sm:$0xf0]  ;;  %v2350_v49 = vsel %vm18299_vm1, %v14889_v3, %v2349_v61  ;;  %v2352_v33 = vsel %vm18299_vm1, %v2298_v20, %v2351_v32  ;;  %v2023_v30 = vsel %vm18300_vm0, %v1997_v17, %v1998_v57  ;;  %4755 = vmatpush.bf16.msra.mxu2 %v10860_v35  ;;  %v5166_v3 = vld [vmem:[%s18278_s3] sm:$0xff]  ;;  %v11512_v17 = vor.u32 %v13165_v7, %v11509_v31 }
 0x254   : > { %v11627_v53 = vld [vmem:[#allocation4 + $0x840] sm:$0xf]  ;;  %v13196_v5 = vld [vmem:[#allocation4 + $0x844] sm:$0xf]  ;;  %2395 = vst [vmem:[#allocation4 + $0x650] sm:$0xff] %v2350_v49  ;;  %v2024_v36 = vsel %vm18299_vm1, %v14829_v23, %v2023_v30  ;;  %4781 = vmatpush.bf16.msra.mxu0 %v10864_v8  ;;  %v10604_v20 = vor.u32 %v12956_v22, %v10603_v54  ;;  %v11380_v35 = vor.u32 %v13149_v27, %v11379_v14 }
 0x255   : > { %v11628_v41 = vor.u32 %v13212_v62, %v11627_v53  ;;  %v11632_v51 = vor.u32 %v13196_v5, %v11629_v38  ;;  %2396 = vst [vmem:[#allocation4 + $0x658] sm:$0xff] %v2352_v33  ;;  %v10605_v23 = vld [vmem:[#allocation4 + $0xc0] sm:$0xf0]  ;;  %v11381_v8 = vld [vmem:[#allocation4 + $0x6c8] sm:$0xf0]  ;;  %v4410_v62 = vpop.f32.mrf.mxu3 }
 0x256   : > { %2062 = vst [vmem:[#allocation4 + $0x3c8] sm:$0xff] %v2024_v36  ;;  %v10608_v34 = vor.u32 %v12940_v39, %v10605_v23  ;;  %v11384_v61 = vor.u32 %v13133_v50, %v11381_v8  ;;  %v11251_v32 = vld [vmem:[#allocation4 + $0x548] sm:$0xf]  ;;  %v11253_v49 = vld [vmem:[#allocation4 + $0x5c8] sm:$0xf0]  ;;  %v4462_v30 = vpop.f32.mrf.mxu1  ;;  %v2072_v8 = vld [vmem:[%s14185_s15 + $0x20] sm:$0xff] }
 0x257   : > { %4770 = vmatpush.bf16.msra.mxu3 %v11628_v41  ;;  %4796 = vmatpush.bf16.msra.mxu1 %v11632_v51  ;;  %v2162_v25 = vpop.permute.xlu1 %2161  ;;  %2436 = vst [vmem:[#allocation4 + $0x7d8] sm:$0xff] %v2420_v15  ;;  %v11123_v33 = vld [vmem:[#allocation4 + $0x448] sm:$0xf]  ;;  %v13069_v36 = vld [vmem:[#allocation4 + $0x44c] sm:$0xf] }
 0x258   : > { %5169 = vperm.xlu0 %13522, %v5166_v3   ;;  %4756 = vmatpush.bf16.msra.mxu2 %v10732_v10  ;;  %v2185_v11 = vrot.slane %v2162_v25, 4  ;;  %v15015_v1 = vpop.permute.xlu0 %2143  ;;  %v13117_v10 = vld [vmem:[#allocation4 + $0x5c4] sm:$0xf0]  ;;  %v15041_v12 = vpop.permute.xlu2 %1977  ;;  %v11125_v3 = vld [vmem:[#allocation4 + $0x4c8] sm:$0xf0]  ;;  %1757 = vst [vmem:[#allocation4 + $0x1e0] sm:$0xff] %v2420_v15 }
 0x259   : > { %4782 = vmatpush.bf16.msra.mxu0 %v10736_v45  ;;  %v2176_v9 = vrot.slane %v15015_v1, 4  ;;  %v4436_v45 = vpop.f32.mrf.mxu0  ;;  %v13085_v5 = vld [vmem:[#allocation4 + $0x4c4] sm:$0xf0]  ;;  %v11128_v22 = vor.u32 %v13069_v36, %v11125_v3  ;;  %v10869_v62 = vld [vmem:[#allocation4 + $0x2c8] sm:$0xf0]  ;;  %2088 = vst [vmem:[#allocation4 + $0x458] sm:$0xff] %v2072_v8 }
 0x25a   : > { %11705 = vmatmul.msk.bf16.vlgmr.msra.gmra.mxu3 %vm18302_vm3, %v14470_v40  ;;  %v2211_v7 = vsel %vm18300_vm0, %v2184_v37, %v2185_v11  ;;  %v2213_v4 = vsel %vm18300_vm0, %v2185_v11, %v2186_v52  ;;  %11706 = vmatmul.msk.bf16.vlgmr.msra.gmra.mxu1 %vm18302_vm3, %v14470_v40  ;;  %v11124_v46 = vor.u32 %v13085_v5, %v11123_v33  ;;  %v12973_v5 = vld [vmem:[#allocation4 + $0x14c] sm:$0xf]  ;;  %v2413_v36 = vld [vmem:[%s14185_s15 + $0x2c] sm:$0xff] }
 0x25b   : > { %4802 = vmatpush.bf16.msrb.mxu3 %v11508_v28  ;;  %4828 = vmatpush.bf16.msrb.mxu1 %v11512_v17  ;;  %v2212_v38 = vsel %vm18298_vm2, %v14916_v0, %v2211_v7  ;;  %v2214_v31 = vsel %vm18298_vm2, %v2162_v25, %v2213_v4  ;;  %v2195_v37 = vsel %vm18300_vm0, %v2175_v44, %v2176_v9  ;;  %v13101_v0 = vld [vmem:[#allocation4 + $0x54c] sm:$0xf]  ;;  %v2000_v44 = vrot.slane %v15041_v12, 4  ;;  %v10867_v4 = vld [vmem:[#allocation4 + $0x248] sm:$0xf] }
 0x25c   : > { %2249 = vst [vmem:[#allocation4 + $0x5d0] sm:$0xff] %v2212_v38  ;;  %v2196_v53 = vsel %vm18298_vm2, %v14922_v21, %v2195_v37  ;;  %4757 = vmatpush.bf16.msra.mxu2 %v10604_v20  ;;  %v11252_v28 = vor.u32 %v13117_v10, %v11251_v32  ;;  %v11256_v51 = vor.u32 %v13101_v0, %v11253_v49  ;;  %v10995_v20 = vld [vmem:[#allocation4 + $0x348] sm:$0xf]  ;;  %v13037_v7 = vld [vmem:[#allocation4 + $0x34c] sm:$0xf] }
 0x25d   : > { %4783 = vmatpush.bf16.msra.mxu0 %v10608_v34  ;;  %2250 = vst [vmem:[#allocation4 + $0x5d8] sm:$0xff] %v2214_v31  ;;  %v13053_v14 = vld [vmem:[#allocation4 + $0x3c4] sm:$0xf0] }
 0x25e   : > { %2241 = vst [vmem:[#allocation4 + $0x550] sm:$0xff] %v2196_v53  ;;  %v10996_v15 = vor.u32 %v13053_v14, %v10995_v20  ;;  %v13021_v34 = vld [vmem:[#allocation4 + $0x2c4] sm:$0xf0]  ;;  %v11517_v14 = vld [vmem:[#allocation4 + $0x7d0] sm:$0xf0] }
 0x25f   : > { %4803 = vmatpush.bf16.msrb.mxu3 %v11380_v35  ;;  %4829 = vmatpush.bf16.msrb.mxu1 %v11384_v61  ;;  %v1976_v41 = vpop.permute.xlu1 %1975  ;;  %v4486_v35 = vpop.f32.mrf.mxu1  ;;  %v2080_v61 = vld [vmem:[%s14185_s15 + $0x70] sm:$0xff]  ;;  %v10868_v0 = vor.u32 %v13021_v34, %v10867_v4  ;;  %2429 = vst [vmem:[#allocation4 + $0x760] sm:$0xff] %v2413_v36  ;;  %v2421_v20 = vld [vmem:[%s14185_s15 + $0x7c] sm:$0xff] }
 0x260   : > { %4758 = vmatmul.bf16.vlgmr.msra.gmra.mxu2 %v14409_v24  ;;  %v1999_v21 = vrot.slane %v1976_v41, 4  ;;  %v15047_v17 = vpop.permute.xlu0 %2499  ;;  %4784 = vmatmul.bf16.vlgmr.msra.gmra.mxu0 %v14409_v24  ;;  %v10739_v31 = vld [vmem:[#allocation4 + $0x148] sm:$0xf]  ;;  %2096 = vst [vmem:[#allocation4 + $0x4d8] sm:$0xff] %v2080_v61  ;;  %v10613_v61 = vld [vmem:[#allocation4 + $0xc8] sm:$0xf0] }
 0x261   : > { %v2524_v54 = vrot.slane %v15047_v17, 4  ;;  %v4473_v2 = vpop.f32.mrf.mxu0  ;;  %v12989_v37 = vld [vmem:[#allocation4 + $0x1c4] sm:$0xf0]  ;;  %2437 = vst [vmem:[#allocation4 + $0x7e0] sm:$0xff] %v2421_v20 }
 0x262   : > { %v2025_v56 = vsel %vm18300_vm0, %v1998_v57, %v1999_v21  ;;  %v2027_v23 = vsel %vm18300_vm0, %v1999_v21, %v2000_v44  ;;  %v4421_v57 = vpop.f32.mrf.mxu3  ;;  %v4447_v27 = vpop.f32.mrf.mxu2  ;;  %v15080_v30 = vadd.f32 %v4486_v35, %v4473_v2  ;;  %v10611_v4 = vld [vmem:[#allocation4 + $0x48] sm:$0xf]  ;;  %1750 = vst [vmem:[#allocation4 + $0x168] sm:$0xff] %v2413_v36 }
 0x263   : > { %4804 = vmatpush.bf16.msrb.mxu3 %v11252_v28  ;;  %4830 = vmatpush.bf16.msrb.mxu1 %v11256_v51  ;;  %v2026_v43 = vsel %vm18299_vm1, %v14982_v60, %v2025_v56  ;;  %v2028_v25 = vsel %vm18299_vm1, %v1976_v41, %v2027_v23  ;;  %v2549_v39 = vsel %vm18300_vm0, %v2523_v58, %v2524_v54  ;;  %v15065_v50 = vpop.permute.xlu2 %2147  ;;  %v10997_v60 = vld [vmem:[#allocation4 + $0x3c8] sm:$0xf0]  ;;  %v11515_v41 = vld [vmem:[#allocation4 + $0x750] sm:$0xf]  ;;  %v13166_v23 = vld [vmem:[#allocation4 + $0x754] sm:$0xf] }
 0x264   : > { %2063 = vst [vmem:[#allocation4 + $0x3d0] sm:$0xff] %v2026_v43  ;;  %v2550_v11 = vsel %vm18298_vm2, %v14871_v29, %v2549_v39  ;;  %v2178_v58 = vrot.slane %v15065_v50, 4  ;;  %v11000_v10 = vor.u32 %v13037_v7, %v10997_v60  ;;  %v13005_v29 = vld [vmem:[#allocation4 + $0x24c] sm:$0xf]  ;;  %v15075_v49 = vadd.f32 %v14995_v63, %v4421_v57  ;;  %v13182_v51 = vld [vmem:[#allocation4 + $0x7cc] sm:$0xf0] }
 0x265   : > { %2064 = vst [vmem:[#allocation4 + $0x3d8] sm:$0xff] %v2028_v25  ;;  %v15078_v33 = vadd.f32 %v15005_v6, %v4447_v27  ;;  %v10741_v28 = vld [vmem:[#allocation4 + $0x1c8] sm:$0xf0]  ;;  %v10872_v6 = vor.u32 %v13005_v29, %v10869_v62  ;;  %v10740_v56 = vor.u32 %v12989_v37, %v10739_v31  ;;  %v11516_v2 = vor.u32 %v13182_v51, %v11515_v41  ;;  %v12957_v7 = vld [vmem:[#allocation4 + $0xc4] sm:$0xf0] }
 0x266   : > { %2588 = vst [vmem:[#allocation4 + $0x8c8] sm:$0xff] %v2550_v11  ;;  %v13197_v39 = vld [vmem:[#allocation4 + $0x84c] sm:$0xf]  ;;  %v10744_v27 = vor.u32 %v12973_v5, %v10741_v28  ;;  %v11520_v8 = vor.u32 %v13166_v23, %v11517_v14  ;;  %v10612_v62 = vor.u32 %v12957_v7, %v10611_v4  ;;  %v13150_v5 = vld [vmem:[#allocation4 + $0x6cc] sm:$0xf0] }
 0x267   : > { %4805 = vmatpush.bf16.msrb.mxu3 %v11124_v46  ;;  %4831 = vmatpush.bf16.msrb.mxu1 %v11128_v22  ;;  %v2146_v32 = vpop.permute.xlu1 %2145  ;;  %18319 = vst [vmem:[#allocation6_spill] sm:$0xff] %v15078_v33 }
 0x268   : > { %v2177_v45 = vrot.slane %v2146_v32, 4  ;;  %v15072_v38 = vpop.permute.xlu0 %2317  ;;  %18320 = vst [vmem:[#allocation7_spill] sm:$0xff] %v15080_v30 }
 0x269   : > { %v2340_v53 = vrot.slane %v15072_v38, 4  ;;  %v4475_v11 = vpop.f32.mrf.mxu0  ;;  %1758 = vst [vmem:[#allocation4 + $0x1e8] sm:$0xff] %v2421_v20  ;;  %v13070_v20 = vld [vmem:[#allocation4 + $0x454] sm:$0xf] }
 0x26a   : > { %v2197_v3 = vsel %vm18300_vm0, %v2176_v9, %v2177_v45  ;;  %v2199_v63 = vsel %vm18300_vm0, %v2177_v45, %v2178_v58  ;;  %v4423_v43 = vpop.f32.mrf.mxu3  ;;  %v4449_v57 = vpop.f32.mrf.mxu2  ;;  %v13134_v45 = vld [vmem:[#allocation4 + $0x654] sm:$0xf]  ;;  %v13086_v11 = vld [vmem:[#allocation4 + $0x4cc] sm:$0xf0] }
 0x26b   : > { %4806 = vmatpush.bf16.msrb.mxu3 %v10996_v15  ;;  %4832 = vmatpush.bf16.msrb.mxu1 %v11000_v10  ;;  %v2198_v46 = vsel %vm18298_vm2, %v15015_v1, %v2197_v3  ;;  %v2200_v21 = vsel %vm18298_vm2, %v2146_v32, %v2199_v63  ;;  %v2367_v9 = vsel %vm18300_vm0, %v2339_v48, %v2340_v53  ;;  %v15098_v22 = vpop.permute.xlu2 %2503  ;;  %v11635_v1 = vld [vmem:[#allocation4 + $0x848] sm:$0xf]  ;;  %v4488_v15 = vpop.f32.mrf.mxu1  ;;  %v11387_v32 = vld [vmem:[#allocation4 + $0x650] sm:$0xf]  ;;  %v11389_v63 = vld [vmem:[#allocation4 + $0x6d0] sm:$0xf0] }
 0x26c   : > { %2242 = vst [vmem:[#allocation4 + $0x558] sm:$0xff] %v2198_v46  ;;  %v2368_v25 = vsel %vm18299_vm1, %v14893_v19, %v2367_v9  ;;  %v2526_v19 = vrot.slane %v15098_v22, 4  ;;  %v11388_v3 = vor.u32 %v13150_v5, %v11387_v32  ;;  %v11259_v9 = vld [vmem:[#allocation4 + $0x550] sm:$0xf] }
 0x26d   : > { %2243 = vst [vmem:[#allocation4 + $0x560] sm:$0xff] %v2200_v21  ;;  %v13213_v60 = vld [vmem:[#allocation4 + $0x8c4] sm:$0xf0]  ;;  %v11637_v48 = vld [vmem:[#allocation4 + $0x8c8] sm:$0xf0]  ;;  %v11392_v21 = vor.u32 %v13134_v45, %v11389_v63 }
 0x26e   : > { %2404 = vst [vmem:[#allocation4 + $0x6d8] sm:$0xff] %v2368_v25  ;;  %v11636_v34 = vor.u32 %v13213_v60, %v11635_v1  ;;  %v11640_v35 = vor.u32 %v13197_v39, %v11637_v48  ;;  %v11261_v1 = vld [vmem:[#allocation4 + $0x5d0] sm:$0xf0]  ;;  %v11131_v57 = vld [vmem:[#allocation4 + $0x450] sm:$0xf]  ;;  %v2073_v48 = vld [vmem:[%s14185_s15 + $0x28] sm:$0xff] }
 0x26f   : > { %4807 = vmatpush.bf16.msrb.mxu3 %v10868_v0  ;;  %4833 = vmatpush.bf16.msrb.mxu1 %v10872_v6  ;;  %v2502_v10 = vpop.permute.xlu1 %2501  ;;  %v12941_v0 = vld [vmem:[#allocation4 + $0x4c] sm:$0xf]  ;;  %v11133_v60 = vld [vmem:[#allocation4 + $0x4d0] sm:$0xf0]  ;;  %v11132_v7 = vor.u32 %v13086_v11, %v11131_v57  ;;  %2089 = vst [vmem:[#allocation4 + $0x460] sm:$0xff] %v2073_v48 }
 0x270   : > { %4822 = vmatpush.bf16.msrb.mxu2 %v11636_v34  ;;  %4848 = vmatpush.bf16.msrb.mxu0 %v11640_v35  ;;  %v15104_v29 = vpop.permute.xlu0 %2483  ;;  %v2525_v31 = vrot.slane %v2502_v10, 4  ;;  %v10616_v28 = vor.u32 %v12941_v0, %v10613_v61  ;;  %v2081_v34 = vld [vmem:[%s14185_s15 + $0x78] sm:$0xff]  ;;  %v11136_v32 = vor.u32 %v13070_v20, %v11133_v60  ;;  %v13183_v63 = vld [vmem:[#allocation4 + $0x7d4] sm:$0xf0] }
 0x271   : > { %v2516_v37 = vrot.slane %v15104_v29, 4  ;;  %v4538_v14 = vpop.f32.mrf.mxu0  ;;  %2097 = vst [vmem:[#allocation4 + $0x4e0] sm:$0xff] %v2081_v34  ;;  %v12990_v48 = vld [vmem:[#allocation4 + $0x1cc] sm:$0xf0] }
 0x272   : > { %v4499_v6 = vpop.f32.mrf.mxu3  ;;  %v2551_v41 = vsel %vm18300_vm0, %v2524_v54, %v2525_v31  ;;  %v2553_v51 = vsel %vm18300_vm0, %v2525_v31, %v2526_v19  ;;  %v4512_v23 = vpop.f32.mrf.mxu2 }
 0x273   : > { %4808 = vmatpush.bf16.msrb.mxu3 %v10740_v56  ;;  %4834 = vmatpush.bf16.msrb.mxu1 %v10744_v27  ;;  %v15109_v36 = vpop.permute.xlu2 %2321  ;;  %v2535_v46 = vsel %vm18300_vm0, %v2515_v59, %v2516_v37  ;;  %v13118_v56 = vld [vmem:[#allocation4 + $0x5cc] sm:$0xf0]  ;;  %v2552_v54 = vsel %vm18298_vm2, %v15047_v17, %v2551_v41  ;;  %v2554_v43 = vsel %vm18298_vm2, %v2502_v10, %v2553_v51  ;;  %v13102_v59 = vld [vmem:[#allocation4 + $0x554] sm:$0xf]  ;;  %v4525_v39 = vpop.f32.mrf.mxu1 }
 0x274   : > { %4854 = vmatpush.bf16.msra.mxu2 %v11516_v2  ;;  %4880 = vmatpush.bf16.msra.mxu0 %v11520_v8  ;;  %v2536_v25 = vsel %vm18298_vm2, %v14930_v16, %v2535_v46  ;;  %2589 = vst [vmem:[#allocation4 + $0x8d0] sm:$0xff] %v2552_v54  ;;  %v11260_v17 = vor.u32 %v13118_v56, %v11259_v9  ;;  %v2342_v16 = vrot.slane %v15109_v36, 4  ;;  %v13038_v54 = vld [vmem:[#allocation4 + $0x354] sm:$0xf] }
 0x275   : > { %11707 = vmatmul.msk.bf16.vlgmr.msrb.gmra.mxu2 %vm18302_vm3, %v14470_v40  ;;  %11708 = vmatmul.msk.bf16.vlgmr.msrb.gmra.mxu0 %vm18302_vm3, %v14470_v40  ;;  %2590 = vst [vmem:[#allocation4 + $0x8d8] sm:$0xff] %v2554_v43  ;;  %v11264_v27 = vor.u32 %v13102_v59, %v11261_v1  ;;  %v15133_v2 = vadd.f32 %v4512_v23, %v4499_v6  ;;  %v13167_v6 = vld [vmem:[#allocation4 + $0x75c] sm:$0xf]  ;;  %v11005_v43 = vld [vmem:[#allocation4 + $0x3d0] sm:$0xf0] }
 0x276   : > { %2581 = vst [vmem:[#allocation4 + $0x850] sm:$0xff] %v2536_v25  ;;  %v15135_v15 = vadd.f32 %v4538_v14, %v4525_v39  ;;  %v11525_v23 = vld [vmem:[#allocation4 + $0x7d8] sm:$0xf0]  ;;  %v13022_v14 = vld [vmem:[#allocation4 + $0x2cc] sm:$0xf0]  ;;  %v11008_v34 = vor.u32 %v13038_v54, %v11005_v43 }
 0x277   : > { %4809 = vmatpush.bf16.msrb.mxu3 %v10612_v62  ;;  %4835 = vmatpush.bf16.msrb.mxu1 %v10616_v28  ;;  %v2320_v35 = vpop.permute.xlu1 %2319  ;;  %v11523_v62 = vld [vmem:[#allocation4 + $0x758] sm:$0xf]  ;;  %v11003_v28 = vld [vmem:[#allocation4 + $0x350] sm:$0xf]  ;;  %v10877_v25 = vld [vmem:[#allocation4 + $0x2d0] sm:$0xf0]  ;;  %v11528_v20 = vor.u32 %v13167_v6, %v11525_v23 }
 0x278   : > { %4855 = vmatpush.bf16.msra.mxu2 %v11388_v3  ;;  %4881 = vmatpush.bf16.msra.mxu0 %v11392_v21  ;;  %v15138_v8 = vpop.permute.xlu0 %2301  ;;  %v2341_v4 = vrot.slane %v2320_v35, 4  ;;  %v13054_v3 = vld [vmem:[#allocation4 + $0x3cc] sm:$0xf0]  ;;  %v11524_v57 = vor.u32 %v13183_v63, %v11523_v62  ;;  %v13151_v60 = vld [vmem:[#allocation4 + $0x6d4] sm:$0xf0] }
 0x279   : > { %v2332_v61 = vrot.slane %v15138_v8, 4  ;;  %v4540_v51 = vpop.f32.mrf.mxu0  ;;  %v15159_v59 = vld [vmem:[#allocation4 + $0x150] sm:$0xf]  ;;  %v11004_v39 = vor.u32 %v13054_v3, %v11003_v28  ;;  %v11397_v3 = vld [vmem:[#allocation4 + $0x6d8] sm:$0xf0] }
 0x27a   : > { %4810 = vmatmul.bf16.vlgmr.msrb.gmra.mxu3 %v14409_v24  ;;  %4836 = vmatmul.bf16.vlgmr.msrb.gmra.mxu1 %v14409_v24  ;;  %v4501_v45 = vpop.f32.mrf.mxu3  ;;  %v2369_v31 = vsel %vm18300_vm0, %v2340_v53, %v2341_v4  ;;  %v2371_v0 = vsel %vm18300_vm0, %v2341_v4, %v2342_v16  ;;  %v4514_v41 = vpop.f32.mrf.mxu2  ;;  %v2414_v4 = vld [vmem:[%s14185_s15 + $0x34] sm:$0xff]  ;;  %v10748_v6 = vor.u32 %v12990_v48, %v15159_v59  ;;  %v15170_v51 = vld [vmem:[%s14185_s15 + $0x84] sm:$0xff]  ;;  %v11267_v59 = vld [vmem:[#allocation4 + $0x558] sm:$0xf] }
 0x27b   : > { %v15141_v10 = vpop.permute.xlu2 %2487  ;;  %v2353_v5 = vsel %vm18300_vm0, %v2331_v55, %v2332_v61  ;;  %v2370_v46 = vsel %vm18299_vm1, %v15072_v38, %v2369_v31  ;;  %v2372_v53 = vsel %vm18299_vm1, %v2320_v35, %v2371_v0  ;;  %v13214_v9 = vld [vmem:[#allocation4 + $0x8cc] sm:$0xf0]  ;;  %v11645_v56 = vld [vmem:[#allocation4 + $0x8d0] sm:$0xf0]  ;;  %v4527_v55 = vpop.f32.mrf.mxu1  ;;  %v11395_v0 = vld [vmem:[#allocation4 + $0x658] sm:$0xf] }
 0x27c   : > { %4856 = vmatpush.bf16.msra.mxu2 %v11260_v17  ;;  %4882 = vmatpush.bf16.msra.mxu0 %v11264_v27  ;;  %v2354_v21 = vsel %vm18299_vm1, %v14961_v42, %v2353_v5  ;;  %2405 = vst [vmem:[#allocation4 + $0x6e0] sm:$0xff] %v2370_v46  ;;  %v2518_v17 = vrot.slane %v15141_v10, 4  ;;  %v13006_v31 = vld [vmem:[#allocation4 + $0x254] sm:$0xf]  ;;  %v11396_v28 = vor.u32 %v13151_v60, %v11395_v0  ;;  %v13135_v43 = vld [vmem:[#allocation4 + $0x65c] sm:$0xf] }
 0x27d   : > { %2406 = vst [vmem:[#allocation4 + $0x6e8] sm:$0xff] %v2372_v53  ;;  %v11643_v38 = vld [vmem:[#allocation4 + $0x850] sm:$0xf]  ;;  %v13198_v1 = vld [vmem:[#allocation4 + $0x854] sm:$0xf]  ;;  %v10880_v5 = vor.u32 %v13006_v31, %v10877_v25 }
 0x27e   : > { %2397 = vst [vmem:[#allocation4 + $0x660] sm:$0xff] %v2354_v21  ;;  %v11644_v42 = vor.u32 %v13214_v9, %v11643_v38  ;;  %v11648_v11 = vor.u32 %v13198_v1, %v11645_v56  ;;  %v12974_v9 = vld [vmem:[#allocation4 + $0x154] sm:$0xf]  ;;  %v13119_v38 = vld [vmem:[#allocation4 + $0x5d4] sm:$0xf0] }
 0x27f   : > { %v2486_v27 = vpop.permute.xlu1 %2485  ;;  %2430 = vst [vmem:[#allocation4 + $0x768] sm:$0xff] %v2414_v4  ;;  %v10749_v56 = vld [vmem:[#allocation4 + $0x1d0] sm:$0xf0]  ;;  %v12958_v1 = vld [vmem:[#allocation4 + $0xcc] sm:$0xf0] }
 0x280   : > { %4857 = vmatpush.bf16.msra.mxu2 %v11132_v7  ;;  %4883 = vmatpush.bf16.msra.mxu0 %v11136_v32  ;;  %v15162_v35 = vpop.permute.xlu0 %2165  ;;  %v10875_v7 = vld [vmem:[#allocation4 + $0x250] sm:$0xf]  ;;  %v2517_v32 = vrot.slane %v2486_v27, 4  ;;  %2438 = vst [vmem:[#allocation4 + $0x7e8] sm:$0xff] %v15170_v51 }
 0x281   : > { %4874 = vmatpush.bf16.msra.mxu3 %v11644_v42  ;;  %4900 = vmatpush.bf16.msra.mxu1 %v11648_v11  ;;  %v2187_v62 = vrot.slane %v15162_v35, 4  ;;  %v10876_v45 = vor.u32 %v13022_v14, %v10875_v7  ;;  %v4577_v14 = vpop.f32.mrf.mxu0  ;;  %1751 = vst [vmem:[#allocation4 + $0x170] sm:$0xff] %v2414_v4  ;;  %v13087_v11 = vld [vmem:[#allocation4 + $0x4d4] sm:$0xf0]  ;;  %v10619_v4 = vld [vmem:[#allocation4 + $0x50] sm:$0xf] }
 0x282   : > { %v4564_v41 = vpop.f32.mrf.mxu3  ;;  %v2537_v46 = vsel %vm18300_vm0, %v2516_v37, %v2517_v32  ;;  %v2539_v53 = vsel %vm18300_vm0, %v2517_v32, %v2518_v17  ;;  %1759 = vst [vmem:[#allocation4 + $0x1f0] sm:$0xff] %v15170_v51  ;;  %v11011_v51 = vld [vmem:[#allocation4 + $0x358] sm:$0xf] }
 0x283   : > { %v15166_v63 = vpop.permute.xlu2 %2305  ;;  %v2215_v21 = vsel %vm18300_vm0, %v2186_v52, %v2187_v62  ;;  %v2538_v37 = vsel %vm18298_vm2, %v15104_v29, %v2537_v46  ;;  %v2540_v55 = vsel %vm18298_vm2, %v2486_v27, %v2539_v53  ;;  %v4590_v25 = vpop.f32.mrf.mxu1  ;;  %v11400_v52 = vor.u32 %v13135_v43, %v11397_v3  ;;  %v11531_v53 = vld [vmem:[#allocation4 + $0x760] sm:$0xf] }
 0x284   : > { %4858 = vmatpush.bf16.msra.mxu2 %v11004_v39  ;;  %4884 = vmatpush.bf16.msra.mxu0 %v11008_v34  ;;  %v2216_v54 = vsel %vm18298_vm2, %v14985_v18, %v2215_v21  ;;  %2582 = vst [vmem:[#allocation4 + $0x858] sm:$0xff] %v2538_v37  ;;  %v15189_v39 = vld [vmem:[#allocation4 + $0x458] sm:$0xf]  ;;  %v10752_v29 = vor.u32 %v12974_v9, %v10749_v56  ;;  %v15193_v18 = vld [vmem:[#allocation4 + $0x45c] sm:$0xf]  ;;  %v2334_v42 = vrot.slane %v15166_v63, 4 }
 0x285   : > { %4906 = vmatpush.bf16.msrb.mxu3 %v11524_v57  ;;  %4932 = vmatpush.bf16.msrb.mxu1 %v11528_v20  ;;  %2583 = vst [vmem:[#allocation4 + $0x860] sm:$0xff] %v2540_v55  ;;  %v13103_v57 = vld [vmem:[#allocation4 + $0x55c] sm:$0xf]  ;;  %v11268_v27 = vor.u32 %v13119_v38, %v11267_v59  ;;  %v15202_v32 = vadd.f32 %v4590_v25, %v4577_v14  ;;  %v13184_v21 = vld [vmem:[#allocation4 + $0x7dc] sm:$0xf0] }
 0x286   : > { %v4551_v23 = vpop.f32.mrf.mxu2  ;;  %2251 = vst [vmem:[#allocation4 + $0x5e0] sm:$0xff] %v2216_v54  ;;  %v11141_v20 = vld [vmem:[#allocation4 + $0x4d8] sm:$0xf0]  ;;  %v10620_v3 = vor.u32 %v12958_v1, %v10619_v4  ;;  %v13168_v9 = vld [vmem:[#allocation4 + $0x764] sm:$0xf] }
 0x287   : > { %v15196_v60 = vadd.f32 %v4564_v41, %v4551_v23  ;;  %v11269_v34 = vld [vmem:[#allocation4 + $0x5d8] sm:$0xf0]  ;;  %18322 = vst [vmem:[#allocation9_spill] sm:$0xff] %v15202_v32  ;;  %v11144_v41 = vor.u32 %v15193_v18, %v11141_v20  ;;  %v13215_v55 = vld [vmem:[#allocation4 + $0x8d4] sm:$0xf0]  ;;  %v11532_v20 = vor.u32 %v13184_v21, %v11531_v53 }
 0x288   : > { %4859 = vmatpush.bf16.msra.mxu2 %v10876_v45  ;;  %4885 = vmatpush.bf16.msra.mxu0 %v10880_v5  ;;  %v2304_v48 = vpop.permute.xlu1 %2303  ;;  %v11272_v31 = vor.u32 %v13103_v57, %v11269_v34  ;;  %v12942_v5 = vld [vmem:[#allocation4 + $0x54] sm:$0xf]  ;;  %v11533_v54 = vld [vmem:[#allocation4 + $0x7e0] sm:$0xf0]  ;;  %v2082_v4 = vld [vmem:[%s14185_s15 + $0x80] sm:$0xff] }
 0x289   : > { %4907 = vmatpush.bf16.msrb.mxu3 %v11396_v28  ;;  %4933 = vmatpush.bf16.msrb.mxu1 %v11400_v52  ;;  %18321 = vst [vmem:[#allocation8_spill] sm:$0xff] %v15196_v60  ;;  %v15198_v7 = vpop.permute.xlu0 %1979  ;;  %v2333_v45 = vrot.slane %v2304_v48, 4  ;;  %v10621_v28 = vld [vmem:[#allocation4 + $0xd0] sm:$0xf0]  ;;  %v4579_v25 = vpop.f32.mrf.mxu0  ;;  %v11536_v34 = vor.u32 %v13168_v9, %v11533_v54  ;;  %v11405_v21 = vld [vmem:[#allocation4 + $0x6e0] sm:$0xf0] }
 0x28a   : > { %11709 = vmatmul.msk.bf16.vlgmr.msra.gmra.mxu3 %vm18302_vm3, %v14470_v40  ;;  %11710 = vmatmul.msk.bf16.vlgmr.msra.gmra.mxu1 %vm18302_vm3, %v14470_v40  ;;  %v2001_v0 = vrot.slane %v15198_v7, 4  ;;  %v4566_v56 = vpop.f32.mrf.mxu3  ;;  %v10624_v38 = vor.u32 %v12942_v5, %v10621_v28  ;;  %v11403_v5 = vld [vmem:[#allocation4 + $0x660] sm:$0xf]  ;;  %v2415_v9 = vld [vmem:[%s14185_s15 + $0x3c] sm:$0xff]  ;;  %2098 = vst [vmem:[#allocation4 + $0x4e8] sm:$0xff] %v2082_v4 }
 0x28b   : > { %v15207_v46 = vpop.permute.xlu2 %2169  ;;  %v2355_v23 = vsel %vm18300_vm0, %v2332_v61, %v2333_v45  ;;  %v2357_v14 = vsel %vm18300_vm0, %v2333_v45, %v2334_v42  ;;  %v11651_v1 = vld [vmem:[#allocation4 + $0x858] sm:$0xf]  ;;  %v13152_v28 = vld [vmem:[#allocation4 + $0x6dc] sm:$0xf0]  ;;  %v2423_v56 = vld [vmem:[%s14185_s15 + $0x8c] sm:$0xff]  ;;  %2431 = vst [vmem:[#allocation4 + $0x770] sm:$0xff] %v2415_v9 }
 0x28c   : > { %4860 = vmatpush.bf16.msra.mxu2 %v10748_v6  ;;  %4886 = vmatpush.bf16.msra.mxu0 %v10752_v29  ;;  %v11140_v6 = vor.u32 %v13087_v11, %v15189_v39  ;;  %v2029_v37 = vsel %vm18300_vm0, %v2000_v44, %v2001_v0  ;;  %v2356_v61 = vsel %vm18299_vm1, %v15138_v8, %v2355_v23  ;;  %v13199_v39 = vld [vmem:[#allocation4 + $0x85c] sm:$0xf]  ;;  %v4592_v29 = vpop.f32.mrf.mxu1  ;;  %v13055_v11 = vld [vmem:[#allocation4 + $0x3d4] sm:$0xf0]  ;;  %v18285_v45 = vrot.slane %v15207_v46, 4 }
 0x28d   : > { %4908 = vmatpush.bf16.msrb.mxu3 %v11268_v27  ;;  %4934 = vmatpush.bf16.msrb.mxu1 %v11272_v31  ;;  %v2358_v52 = vsel %vm18299_vm1, %v2304_v48, %v2357_v14  ;;  %v2030_v59 = vsel %vm18299_vm1, %v15041_v12, %v2029_v37  ;;  %v11653_v44 = vld [vmem:[#allocation4 + $0x8d8] sm:$0xf0]  ;;  %2398 = vst [vmem:[#allocation4 + $0x668] sm:$0xff] %v2356_v61  ;;  %v15226_v8 = vld [vmem:[#allocation4 + $0x2d4] sm:$0xf0]  ;;  %v2074_v27 = vld [vmem:[%s14185_s15 + $0x30] sm:$0xff] }
 0x28e   : > { %v4553_v43 = vpop.f32.mrf.mxu2  ;;  %v11652_v57 = vor.u32 %v13215_v55, %v11651_v1  ;;  %v11656_v18 = vor.u32 %v13199_v39, %v11653_v44  ;;  %2399 = vst [vmem:[#allocation4 + $0x670] sm:$0xff] %v2358_v52  ;;  %v13039_v12 = vld [vmem:[#allocation4 + $0x35c] sm:$0xf]  ;;  %v10883_v31 = vld [vmem:[#allocation4 + $0x258] sm:$0xf]  ;;  %v11012_v53 = vor.u32 %v13055_v11, %v11011_v51  ;;  %v11404_v25 = vor.u32 %v13152_v28, %v11403_v5 }
 0x28f   : > { %v11013_v48 = vld [vmem:[#allocation4 + $0x3d8] sm:$0xf0]  ;;  %2065 = vst [vmem:[#allocation4 + $0x3e0] sm:$0xff] %v2030_v59  ;;  %v13136_v37 = vld [vmem:[#allocation4 + $0x664] sm:$0xf]  ;;  %v10884_v55 = vor.u32 %v15226_v8, %v10883_v31 }
 0x290   : > { %4861 = vmatpush.bf16.msra.mxu2 %v10620_v3  ;;  %4887 = vmatpush.bf16.msra.mxu0 %v10624_v38  ;;  %v2168_v3 = vpop.permute.xlu1 %2167  ;;  %2090 = vst [vmem:[#allocation4 + $0x468] sm:$0xff] %v2074_v27  ;;  %v13007_v54 = vld [vmem:[#allocation4 + $0x25c] sm:$0xf]  ;;  %v10755_v52 = vld [vmem:[#allocation4 + $0x158] sm:$0xf] }
 0x291   : > { %4909 = vmatpush.bf16.msrb.mxu3 %v11140_v6  ;;  %4935 = vmatpush.bf16.msrb.mxu1 %v11144_v41  ;;  %v15232_v6 = vpop.permute.xlu0 %2149  ;;  %v2188_v23 = vrot.slane %v2168_v3, 4  ;;  %v11016_v41 = vor.u32 %v13039_v12, %v11013_v48  ;;  %v10885_v43 = vld [vmem:[#allocation4 + $0x2d8] sm:$0xf0]  ;;  %v12991_v44 = vld [vmem:[#allocation4 + $0x1d4] sm:$0xf0]  ;;  %2439 = vst [vmem:[#allocation4 + $0x7f0] sm:$0xff] %v2423_v56 }
 0x292   : > { %v2179_v14 = vrot.slane %v15232_v6, 4  ;;  %v4603_v59 = vpop.f32.mrf.mxu3  ;;  %v12975_v29 = vld [vmem:[#allocation4 + $0x15c] sm:$0xf]  ;;  %v11275_v27 = vld [vmem:[#allocation4 + $0x560] sm:$0xf]  ;;  %1752 = vst [vmem:[#allocation4 + $0x178] sm:$0xff] %v2415_v9 }
 0x293   : > { %4862 = vmatmul.bf16.vlgmr.msra.gmra.mxu2 %v14409_v24  ;;  %4888 = vmatmul.bf16.vlgmr.msra.gmra.mxu0 %v14409_v24  ;;  %v15239_v61 = vpop.permute.xlu2 %1983  ;;  %v2217_v38 = vsel %vm18300_vm0, %v2187_v62, %v2188_v23  ;;  %v2219_v1 = vsel %vm18300_vm0, %v2188_v23, %v18285_v45  ;;  %v10757_v8 = vld [vmem:[#allocation4 + $0x1d8] sm:$0xf0]  ;;  %v13120_v12 = vld [vmem:[#allocation4 + $0x5dc] sm:$0xf0]  ;;  %v11277_v4 = vld [vmem:[#allocation4 + $0x5e0] sm:$0xf0] }
 0x294   : > { %4926 = vmatpush.bf16.msrb.mxu2 %v11652_v57  ;;  %4952 = vmatpush.bf16.msrb.mxu0 %v11656_v18  ;;  %v2201_v39 = vsel %vm18300_vm0, %v2178_v58, %v2179_v14  ;;  %v4642_v18 = vpop.f32.mrf.mxu0  ;;  %v2218_v51 = vsel %vm18298_vm2, %v15162_v35, %v2217_v38  ;;  %v2220_v62 = vsel %vm18298_vm2, %v2168_v3, %v2219_v1  ;;  %v4629_v48 = vpop.f32.mrf.mxu1  ;;  %v11147_v31 = vld [vmem:[#allocation4 + $0x460] sm:$0xf]  ;;  %v18284_v3 = vrot.slane %v15239_v61, 4  ;;  %v13072_v9 = vld [vmem:[#allocation4 + $0x464] sm:$0xf] }
 0x295   : > { %4910 = vmatpush.bf16.msrb.mxu3 %v11012_v53  ;;  %4936 = vmatpush.bf16.msrb.mxu1 %v11016_v41  ;;  %v2202_v11 = vsel %vm18298_vm2, %v15065_v50, %v2201_v39  ;;  %2252 = vst [vmem:[#allocation4 + $0x5e8] sm:$0xff] %v2218_v51  ;;  %v10888_v58 = vor.u32 %v13007_v54, %v10885_v43  ;;  %v13088_v5 = vld [vmem:[#allocation4 + $0x4dc] sm:$0xf0]  ;;  %v11149_v23 = vld [vmem:[#allocation4 + $0x4e0] sm:$0xf0]  ;;  %v13629_v41 = vld [vmem:[#allocation2 + $0x48] sm:$0xff] }
 0x296   : > { %v4616_v57 = vpop.f32.mrf.mxu2  ;;  %2253 = vst [vmem:[#allocation4 + $0x5f0] sm:$0xff] %v2220_v62  ;;  %v10756_v35 = vor.u32 %v12991_v44, %v10755_v52  ;;  %v15259_v50 = vadd.f32 %v4642_v18, %v4629_v48  ;;  %v10760_v53 = vor.u32 %v12975_v29, %v10757_v8  ;;  %v11148_v38 = vor.u32 %v13088_v5, %v11147_v31  ;;  %v10629_v1 = vld [vmem:[#allocation4 + $0xd8] sm:$0xf0]  ;;  %v10627_v51 = vld [vmem:[#allocation4 + $0x58] sm:$0xf] }
 0x297   : > { %v15257_v28 = vadd.f32 %v4616_v57, %v4603_v59  ;;  %2244 = vst [vmem:[#allocation4 + $0x568] sm:$0xff] %v2202_v11  ;;  %v12959_v59 = vld [vmem:[#allocation4 + $0xd4] sm:$0xf0]  ;;  %v11152_v39 = vor.u32 %v13072_v9, %v11149_v23  ;;  %v13056_v48 = vld [vmem:[#allocation4 + $0x3dc] sm:$0xf0] }
 0x298   : > { %4958 = vmatpush.bf16.msra.mxu2 %v11532_v20  ;;  %4984 = vmatpush.bf16.msra.mxu0 %v11536_v34  ;;  %v11408_v20 = vor.u32 %v13136_v37, %v11405_v21  ;;  %v13104_v34 = vld [vmem:[#allocation4 + $0x564] sm:$0xf]  ;;  %18324 = vst [vmem:[#allocation11_spill] sm:$0xff] %v15259_v50  ;;  %v11276_v21 = vor.u32 %v13120_v12, %v11275_v27  ;;  %v1982_v54 = vpop.permute.xlu1 %1981  ;;  %v12943_v12 = vld [vmem:[#allocation4 + $0x5c] sm:$0xf] }
 0x299   : > { %4911 = vmatpush.bf16.msrb.mxu3 %v10884_v55  ;;  %18323 = vst [vmem:[#allocation10_spill] sm:$0xff] %v15257_v28  ;;  %4937 = vmatpush.bf16.msrb.mxu1 %v10888_v58  ;;  %v13523_v37 = vpack.i.bf16 %v13629_v41, %v13629_v41  ;;  %v11280_v55 = vor.u32 %v13104_v34, %v11277_v4  ;;  %v15262_v43 = vpop.permute.xlu0 %2505  ;;  %v11019_v4 = vld [vmem:[#allocation4 + $0x360] sm:$0xf]  ;;  %v13040_v5 = vld [vmem:[#allocation4 + $0x364] sm:$0xf] }
 0x29a   : > { %1760 = vst [vmem:[#allocation4 + $0x1f8] sm:$0xff] %v2423_v56  ;;  %v2527_v52 = vrot.slane %v15262_v43, 4  ;;  %v4605_v29 = vpop.f32.mrf.mxu3  ;;  %v10628_v27 = vor.u32 %v12959_v59, %v10627_v51  ;;  %v10632_v34 = vor.u32 %v12943_v12, %v10629_v1  ;;  %v11020_v31 = vor.u32 %v13056_v48, %v11019_v4  ;;  %v10891_v41 = vld [vmem:[#allocation4 + $0x260] sm:$0xf]  ;;  %v15417_v45 = vld [vmem:[#allocation4 + $0x1e8] sm:$0xf0] }
 0x29b   : > { %13524 = vrot.lane.b32.xlu1 %v13523_v37, %s13641_s11  ;;  %v2154_v44 = vpop.permute.xlu2 %2153  ;;  %v10893_v37 = vld [vmem:[#allocation4 + $0x2e0] sm:$0xf0]  ;;  %v10763_v59 = vld [vmem:[#allocation4 + $0x160] sm:$0xf] }
 0x29c   : > { %4959 = vmatpush.bf16.msra.mxu2 %v11404_v25  ;;  %4985 = vmatpush.bf16.msra.mxu0 %v11408_v20  ;;  %v2002_v25 = vrot.slane %v1982_v54, 4  ;;  %v2555_v18 = vsel %vm18300_vm0, %v2526_v19, %v2527_v52  ;;  %v4644_v11 = vpop.f32.mrf.mxu0  ;;  %v4631_v58 = vpop.f32.mrf.mxu1  ;;  %v11021_v19 = vld [vmem:[#allocation4 + $0x3e0] sm:$0xf0]  ;;  %v2416_v1 = vld [vmem:[%s14185_s15 + $0x44] sm:$0xff] }
 0x29d   : > { %4912 = vmatpush.bf16.msrb.mxu3 %v10756_v35  ;;  %4938 = vmatpush.bf16.msrb.mxu1 %v10760_v53  ;;  %v2556_v8 = vsel %vm18298_vm2, %v15098_v22, %v2555_v18  ;;  %v2075_v35 = vld [vmem:[%s14185_s15 + $0x38] sm:$0xff]  ;;  %v2181_v22 = vrot.slane %v2154_v44, 4  ;;  %v2083_v53 = vld [vmem:[%s14185_s15 + $0x88] sm:$0xff]  ;;  %v11024_v9 = vor.u32 %v13040_v5, %v11021_v19  ;;  %2432 = vst [vmem:[#allocation4 + $0x778] sm:$0xff] %v2416_v1 }
 0x29e   : > { %v2031_v57 = vsel %vm18300_vm0, %v2001_v0, %v2002_v25  ;;  %v2033_v56 = vsel %vm18300_vm0, %v2002_v25, %v18284_v3  ;;  %v4618_v62 = vpop.f32.mrf.mxu2  ;;  %2591 = vst [vmem:[#allocation4 + $0x8e0] sm:$0xff] %v2556_v8  ;;  %v13008_v25 = vld [vmem:[#allocation4 + $0x264] sm:$0xf]  ;;  %v2424_v18 = vld [vmem:[%s14185_s15 + $0x94] sm:$0xff]  ;;  %v11659_v4 = vld [vmem:[#allocation4 + $0x860] sm:$0xf] }
 0x29f   : > { %v2032_v20 = vsel %vm18299_vm1, %v15198_v7, %v2031_v57  ;;  %v2034_v0 = vsel %vm18299_vm1, %v1982_v54, %v2033_v56  ;;  %v13024_v7 = vld [vmem:[#allocation4 + $0x2dc] sm:$0xf0]  ;;  %2091 = vst [vmem:[#allocation4 + $0x470] sm:$0xff] %v2075_v35  ;;  %v12976_v29 = vld [vmem:[#allocation4 + $0x164] sm:$0xf]  ;;  %v10896_v58 = vor.u32 %v13008_v25, %v10893_v37 }
 0x2a0   : > { %4960 = vmatpush.bf16.msra.mxu2 %v11276_v21  ;;  %4986 = vmatpush.bf16.msra.mxu0 %v11280_v55  ;;  %2066 = vst [vmem:[#allocation4 + $0x3e8] sm:$0xff] %v2032_v20  ;;  %v2152_v21 = vpop.permute.xlu1 %2151  ;;  %v10765_v57 = vld [vmem:[#allocation4 + $0x1e0] sm:$0xf0]  ;;  %v11539_v20 = vld [vmem:[#allocation4 + $0x768] sm:$0xf] }
 0x2a1   : > { %2067 = vst [vmem:[#allocation4 + $0x3f0] sm:$0xff] %v2034_v0  ;;  %4913 = vmatpush.bf16.msrb.mxu3 %v10628_v27  ;;  %4939 = vmatpush.bf16.msrb.mxu1 %v10632_v34  ;;  %v15286_v23 = vpop.permute.xlu0 %2323  ;;  %v2180_v54 = vrot.slane %v2152_v21, 4  ;;  %v13185_v0 = vld [vmem:[#allocation4 + $0x7e4] sm:$0xf0]  ;;  %v11541_v34 = vld [vmem:[#allocation4 + $0x7e8] sm:$0xf0] }
 0x2a2   : > { %v2343_v55 = vrot.slane %v15286_v23, 4  ;;  %v15294_v56 = vpop.f32.mrf.mxu3  ;;  %2099 = vst [vmem:[#allocation4 + $0x4f0] sm:$0xff] %v2083_v53  ;;  %v11540_v5 = vor.u32 %v13185_v0, %v11539_v20  ;;  %v12944_v0 = vld [vmem:[#allocation4 + $0x64] sm:$0xf]  ;;  %v13122_v32 = vld [vmem:[#allocation4 + $0x5ec] sm:$0xf0] }
 0x2a3   : > { %11711 = vmatmul.msk.bf16.vlgmr.msrb.gmra.mxu2 %vm18302_vm3, %v14470_v40  ;;  %v15292_v44 = vpop.permute.xlu2 %2509  ;;  %v2203_v51 = vsel %vm18300_vm0, %v2179_v14, %v2180_v54  ;;  %v2205_v62 = vsel %vm18300_vm0, %v2180_v54, %v2181_v22  ;;  %11712 = vmatmul.msk.bf16.vlgmr.msrb.gmra.mxu0 %vm18302_vm3, %v14470_v40  ;;  %2440 = vst [vmem:[#allocation4 + $0x7f8] sm:$0xff] %v2424_v18  ;;  %v10637_v18 = vld [vmem:[#allocation4 + $0xe0] sm:$0xf0]  ;;  %v11293_v60 = vld [vmem:[#allocation4 + $0x5f0] sm:$0xf0] }
 0x2a4   : > { %4961 = vmatpush.bf16.msra.mxu2 %v11148_v38  ;;  %4987 = vmatpush.bf16.msra.mxu0 %v11152_v39  ;;  %v12992_v38 = vld [vmem:[#allocation4 + $0x1dc] sm:$0xf0]  ;;  %v10892_v39 = vor.u32 %v13024_v7, %v10891_v41  ;;  %v2373_v11 = vsel %vm18300_vm0, %v2342_v16, %v2343_v55  ;;  %v15310_v27 = vpop.f32.mrf.mxu0  ;;  %v2204_v14 = vsel %vm18298_vm2, %v15232_v6, %v2203_v51  ;;  %v13169_v16 = vld [vmem:[#allocation4 + $0x76c] sm:$0xf]  ;;  %v15317_v19 = vpop.f32.mrf.mxu1  ;;  %v13200_v7 = vld [vmem:[#allocation4 + $0x864] sm:$0xf] }
 0x2a5   : > { %4914 = vmatmul.bf16.vlgmr.msrb.gmra.mxu3 %v14409_v24  ;;  %4940 = vmatmul.bf16.vlgmr.msrb.gmra.mxu1 %v14409_v24  ;;  %v2206_v12 = vsel %vm18298_vm2, %v2152_v21, %v2205_v62  ;;  %v2374_v48 = vsel %vm18299_vm1, %v15109_v36, %v2373_v11  ;;  %2245 = vst [vmem:[#allocation4 + $0x570] sm:$0xff] %v2204_v14  ;;  %v13216_v35 = vld [vmem:[#allocation4 + $0x8dc] sm:$0xf0]  ;;  %v11661_v22 = vld [vmem:[#allocation4 + $0x8e0] sm:$0xf0]  ;;  %v2529_v21 = vrot.slane %v15292_v44, 4 }
 0x2a6   : > { %2246 = vst [vmem:[#allocation4 + $0x578] sm:$0xff] %v2206_v12  ;;  %v10764_v6 = vor.u32 %v12992_v38, %v10763_v59  ;;  %v11660_v53 = vor.u32 %v13216_v35, %v11659_v4  ;;  %v11664_v36 = vor.u32 %v13200_v7, %v11661_v22  ;;  %v12960_v41 = vld [vmem:[#allocation4 + $0xdc] sm:$0xf0]  ;;  %v11411_v38 = vld [vmem:[#allocation4 + $0x668] sm:$0xf] }
 0x2a7   : > { %2407 = vst [vmem:[#allocation4 + $0x6f0] sm:$0xff] %v2374_v48  ;;  %v13153_v4 = vld [vmem:[#allocation4 + $0x6e4] sm:$0xf0]  ;;  %v11413_v7 = vld [vmem:[#allocation4 + $0x6e8] sm:$0xf0] }
 0x2a8   : > { %4962 = vmatpush.bf16.msra.mxu2 %v11020_v31  ;;  %4988 = vmatpush.bf16.msra.mxu0 %v11024_v9  ;;  %v10768_v31 = vor.u32 %v12976_v29, %v10765_v57  ;;  %v11544_v9 = vor.u32 %v13169_v16, %v11541_v34  ;;  %v13137_v29 = vld [vmem:[#allocation4 + $0x66c] sm:$0xf]  ;;  %v10640_v34 = vor.u32 %v12944_v0, %v10637_v18  ;;  %v15354_v18 = vld [vmem:[#allocation4 + $0xf0] sm:$0xf0]  ;;  %v15440_v50 = vld [vmem:[#allocation4 + $0x3ec] sm:$0xf0] }
 0x2a9   : > { %v2508_v37 = vpop.permute.xlu1 %2507  ;;  %4978 = vmatpush.bf16.msra.mxu3 %v11660_v53  ;;  %5004 = vmatpush.bf16.msra.mxu1 %v11664_v36  ;;  %v11412_v22 = vor.u32 %v13153_v4, %v11411_v38  ;;  %v15338_v53 = vld [vmem:[#allocation4 + $0xe4] sm:$0xf0]  ;;  %v15340_v36 = vld [vmem:[#allocation4 + $0xe8] sm:$0xf0]  ;;  %18326 = vst [vmem:[#allocation13_spill] sm:$0xff] %v15354_v18 }
 0x2aa   : > { %v15308_v8 = vpop.f32.mrf.mxu2  ;;  %v15320_v54 = vpop.permute.xlu0 %2489  ;;  %v2528_v25 = vrot.slane %v2508_v37, 4  ;;  %v2084_v0 = vld [vmem:[%s14185_s15 + $0x90] sm:$0xff]  ;;  %v15379_v4 = vld [vmem:[#allocation4 + $0x7f0] sm:$0xf0] }
 0x2ab   : > { %v18286_v1 = vrot.slane %v15320_v54, 4  ;;  %v2512_v57 = vpop.permute.xlu2 %2511  ;;  %v4670_v51 = vpop.f32.mrf.mxu3  ;;  %2100 = vst [vmem:[#allocation4 + $0x4f8] sm:$0xff] %v2084_v0  ;;  %v15442_v28 = vld [vmem:[#allocation4 + $0x3f0] sm:$0xf0] }
 0x2ac   : > { %4963 = vmatpush.bf16.msra.mxu2 %v10892_v39  ;;  %4989 = vmatpush.bf16.msra.mxu0 %v10896_v58  ;;  %v10635_v39 = vld [vmem:[#allocation4 + $0x60] sm:$0xf]  ;;  %v2557_v62 = vsel %vm18300_vm0, %v2527_v52, %v2528_v25  ;;  %v2559_v11 = vsel %vm18300_vm0, %v2528_v25, %v2529_v21  ;;  %v2530_v14 = vrot.slane %v2512_v57, 4  ;;  %v4683_v48 = vpop.f32.mrf.mxu0  ;;  %v4696_v35 = vpop.f32.mrf.mxu1  ;;  %v15350_v25 = vld [vmem:[#allocation4 + $0x6c] sm:$0xf]  ;;  %18333 = vst [vmem:[#allocation20_spill] sm:$0xff] %v15442_v28 }
 0x2ad   : > { %v10636_v59 = vor.u32 %v12960_v41, %v10635_v39  ;;  %5010 = vmatpush.bf16.msrb.mxu3 %v11540_v5  ;;  %5036 = vmatpush.bf16.msrb.mxu1 %v11544_v9  ;;  %v2541_v20 = vsel %vm18300_vm0, %v2518_v17, %v18286_v1  ;;  %v2558_v58 = vsel %vm18298_vm2, %v15262_v43, %v2557_v62  ;;  %v13121_v17 = vld [vmem:[#allocation4 + $0x5e4] sm:$0xf0]  ;;  %v13105_v43 = vld [vmem:[#allocation4 + $0x56c] sm:$0xf]  ;;  %v15352_v39 = vld [vmem:[#allocation4 + $0xec] sm:$0xf0] }
 0x2ae   : > { %v2560_v16 = vsel %vm18298_vm2, %v2508_v37, %v2559_v11  ;;  %v2542_v52 = vsel %vm18298_vm2, %v15141_v10, %v2541_v20  ;;  %2592 = vst [vmem:[#allocation4 + $0x8e8] sm:$0xff] %v2558_v58  ;;  %v2561_v5 = vsel %vm18300_vm0, %v2529_v21, %v2530_v14  ;;  %v11283_v10 = vld [vmem:[#allocation4 + $0x568] sm:$0xf]  ;;  %v15359_v57 = vld [vmem:[#allocation4 + $0x4e8] sm:$0xf0] }
 0x2af   : > { %2593 = vst [vmem:[#allocation4 + $0x8f0] sm:$0xff] %v2560_v16  ;;  %v2562_v9 = vsel %vm18298_vm2, %v15292_v44, %v2561_v5  ;;  %v15344_v41 = vld [vmem:[#allocation4 + $0x468] sm:$0xf]  ;;  %v15357_v44 = vld [vmem:[#allocation4 + $0x46c] sm:$0xf] }
 0x2b0   : > { %4964 = vmatpush.bf16.msra.mxu2 %v10764_v6  ;;  %4990 = vmatpush.bf16.msra.mxu0 %v10768_v31  ;;  %v11416_v6 = vor.u32 %v13137_v29, %v11413_v7  ;;  %v11285_v31 = vld [vmem:[#allocation4 + $0x5e8] sm:$0xf0]  ;;  %2584 = vst [vmem:[#allocation4 + $0x868] sm:$0xff] %v2542_v52  ;;  %v15346_v21 = vld [vmem:[#allocation4 + $0x4e4] sm:$0xf0] }
 0x2b1   : > { %5011 = vmatpush.bf16.msrb.mxu3 %v11412_v22  ;;  %v15348_v37 = vld [vmem:[#allocation4 + $0x68] sm:$0xf]  ;;  %18325 = vst [vmem:[#allocation12_spill] sm:$0xff] %v15352_v39  ;;  %v2326_v38 = vpop.permute.xlu1 %2325  ;;  %v15363_v62 = vld [vmem:[#allocation4 + $0x2e8] sm:$0xf0]  ;;  %v11288_v48 = vor.u32 %v13105_v43, %v11285_v31  ;;  %v11160_v43 = vor.u32 %v15357_v44, %v15359_v57 }
 0x2b2   : > { %v4657_v12 = vpop.f32.mrf.mxu2  ;;  %5037 = vmatpush.bf16.msrb.mxu1 %v11416_v6  ;;  %v2308_v29 = vpop.permute.xlu0 %2307  ;;  %2594 = vst [vmem:[#allocation4 + $0x8f8] sm:$0xff] %v2562_v9  ;;  %v15361_v51 = vld [vmem:[#allocation4 + $0x2e4] sm:$0xf0]  ;;  %v15365_v11 = vld [vmem:[#allocation4 + $0x2ec] sm:$0xf0]  ;;  %v2344_v14 = vrot.slane %v2326_v38, 4  ;;  %v11156_v6 = vor.u32 %v15346_v21, %v15344_v41  ;;  %v327_v21 = vlaneseq }
 0x2b3   : > { %18327 = vst [vmem:[#allocation14_spill] sm:$0xff] %v15365_v11  ;;  %v15367_v20 = vld [vmem:[#allocation4 + $0x2f0] sm:$0xf0]  ;;  %v11284_v12 = vor.u32 %v13121_v17, %v11283_v10  ;;  %v2335_v58 = vrot.slane %v2308_v29, 4  ;;  %v15373_v16 = vld [vmem:[#allocation4 + $0x770] sm:$0xf]  ;;  %v15419_v1 = vpop.f32.mrf.mxu3 }
 0x2b4   : > { %4965 = vmatpush.bf16.msra.mxu2 %v10636_v59  ;;  %4991 = vmatpush.bf16.msra.mxu0 %v10640_v34  ;;  %v2076_v59 = vld [vmem:[%s14185_s15 + $0x40] sm:$0xff]  ;;  %18328 = vst [vmem:[#allocation15_spill] sm:$0xff] %v15367_v20  ;;  %v15375_v52 = vld [vmem:[#allocation4 + $0x7ec] sm:$0xf0]  ;;  %v15377_v34 = vld [vmem:[#allocation4 + $0x774] sm:$0xf]  ;;  %v2375_v29 = vsel %vm18300_vm0, %v2343_v55, %v2344_v14  ;;  %v15428_v57 = vpop.f32.mrf.mxu1 }
 0x2b5   : > { %11713 = vmatmul.msk.bf16.vlgmr.msra.gmra.mxu3 %vm18302_vm3, %v14470_v40  ;;  %v15381_v7 = vld [vmem:[#allocation4 + $0x168] sm:$0xf]  ;;  %v15383_v35 = vld [vmem:[#allocation4 + $0x70] sm:$0xf]  ;;  %v15385_v22 = vld [vmem:[#allocation4 + $0x74] sm:$0xf]  ;;  %11714 = vmatmul.msk.bf16.vlgmr.msra.gmra.mxu1 %vm18302_vm3, %v14470_v40  ;;  %v2359_v3 = vsel %vm18300_vm0, %v2334_v42, %v2335_v58  ;;  %v2376_v55 = vsel %vm18299_vm1, %v15286_v23, %v2375_v29  ;;  %v11548_v18 = vor.u32 %v15375_v52, %v15373_v16 }
 0x2b6   : > { %18329 = vst [vmem:[#allocation16_spill] sm:$0xff] %v15383_v35  ;;  %v15391_v17 = vld [vmem:[#allocation4 + $0x268] sm:$0xf]  ;;  %v15393_v31 = vld [vmem:[#allocation4 + $0x26c] sm:$0xf]  ;;  %5012 = vmatpush.bf16.msrb.mxu3 %v11284_v12  ;;  %5038 = vmatpush.bf16.msrb.mxu1 %v11288_v48  ;;  %v2360_v14 = vsel %vm18299_vm1, %v15166_v63, %v2359_v3  ;;  %v15430_v48 = vpop.f32.mrf.mxu0  ;;  %v11552_v63 = vor.u32 %v15377_v34, %v15379_v4  ;;  %v15456_v35 = vand.u32 127, %v327_v21 }
 0x2b7   : > { %4966 = vmatmul.bf16.vlgmr.msra.gmra.mxu2 %v14409_v24  ;;  %18330 = vst [vmem:[#allocation17_spill] sm:$0xff] %v15385_v22  ;;  %v15395_v5 = vld [vmem:[#allocation4 + $0x1e4] sm:$0xf0]  ;;  %v15397_v10 = vld [vmem:[#allocation4 + $0x16c] sm:$0xf]  ;;  %4992 = vmatmul.bf16.vlgmr.msra.gmra.mxu0 %v14409_v24  ;;  %v15467_v21 = vadd.f32 %v15294_v56, %v15308_v8 }
 0x2b8   : > { %v15403_v38 = vld [vmem:[#allocation4 + $0x270] sm:$0xf]  ;;  %v15405_v41 = vld [vmem:[#allocation4 + $0x274] sm:$0xf]  ;;  %2092 = vst [vmem:[#allocation4 + $0x478] sm:$0xff] %v2076_v59  ;;  %v15512_v20 = vadd.s32 896, %v15456_v35 }
 0x2b9   : > { %18331 = vst [vmem:[#allocation18_spill] sm:$0xff] %v15403_v38  ;;  %v15415_v9 = vld [vmem:[#allocation4 + $0x3e4] sm:$0xf0]  ;;  %v11669_v12 = vld [vmem:[#allocation4 + $0x8e8] sm:$0xf0]  ;;  %v15462_v52 = vpop.permute.xlu1 %2491  ;;  %vm18301_vm10 = vcmp.lt.s32.totalorder %v15456_v35, 16 }
 0x2ba   : > { %18332 = vst [vmem:[#allocation19_spill] sm:$0xff] %v15405_v41  ;;  %v15421_v59 = vpop.f32.mrf.mxu2  ;;  %v13217_v42 = vld [vmem:[#allocation4 + $0x8e4] sm:$0xf0]  ;;  %v11029_v44 = vld [vmem:[#allocation4 + $0x3e8] sm:$0xf0]  ;;  %5013 = vmatpush.bf16.msrb.mxu3 %v11156_v6  ;;  %5039 = vmatpush.bf16.msrb.mxu1 %v11160_v43  ;;  %v2172_v3 = vpop.permute.xlu0 %2171  ;;  %v15471_v6 = vadd.f32 %v15317_v19, %v15310_v27  ;;  %v15499_v27 = vadd.s32 768, %v15456_v35 }
 0x2bb   : > { %2408 = vst [vmem:[#allocation4 + $0x6f8] sm:$0xff] %v2376_v55  ;;  %v11027_v23 = vld [vmem:[#allocation4 + $0x368] sm:$0xf]  ;;  %v13041_v29 = vld [vmem:[#allocation4 + $0x36c] sm:$0xf]  ;;  %v2190_v56 = vrot.slane %v2172_v3, 4  ;;  %v4709_v38 = vpop.f32.mrf.mxu3 }
 0x2bc   : > { %2400 = vst [vmem:[#allocation4 + $0x678] sm:$0xff] %v2360_v14  ;;  %v11667_v55 = vld [vmem:[#allocation4 + $0x868] sm:$0xf]  ;;  %v13201_v0 = vld [vmem:[#allocation4 + $0x86c] sm:$0xf]  ;;  %v11028_v34 = vor.u32 %v15415_v9, %v11027_v23  ;;  %v11032_v4 = vor.u32 %v13041_v29, %v11029_v44  ;;  %v18295_v9 = vrot.slane %v15462_v52, 4 }
 0x2bd   : > { %v15454_v22 = vld [vmem:[#allocation4 + $0x370] sm:$0xf]  ;;  %v11668_v30 = vor.u32 %v13217_v42, %v11667_v55  ;;  %v11672_v58 = vor.u32 %v13201_v0, %v11669_v12  ;;  %v15460_v16 = vld [vmem:[#allocation4 + $0x374] sm:$0xf]  ;;  %18334 = vst [vmem:[#allocation21_spill] sm:$0xff] %v15467_v21  ;;  %v15496_v3 = vadd.s32 1920, %v15456_v35  ;;  %v4735_v21 = vpop.f32.mrf.mxu1 }
 0x2be   : > { %v11419_v14 = vld [vmem:[#allocation4 + $0x670] sm:$0xf]  ;;  %18335 = vst [vmem:[#allocation22_spill] sm:$0xff] %v15471_v6  ;;  %v15477_v12 = vld [vmem:[#allocation4 + $0x474] sm:$0xf]  ;;  %v18336_v19 = vrot.slane %v15320_v54, 4  ;;  %5014 = vmatpush.bf16.msrb.mxu3 %v11028_v34  ;;  %5040 = vmatpush.bf16.msrb.mxu1 %v11032_v4  ;;  %v4748_v26 = vpop.f32.mrf.mxu0 }
 0x2bf   : > { %v13154_v39 = vld [vmem:[#allocation4 + $0x6ec] sm:$0xf0]  ;;  %v15479_v0 = vld [vmem:[#allocation4 + $0x4f0] sm:$0xf0]  ;;  %v15481_v55 = vld [vmem:[#allocation4 + $0x778] sm:$0xf]  ;;  %5030 = vmatpush.bf16.msrb.mxu2 %v11668_v30  ;;  %5056 = vmatpush.bf16.msrb.mxu0 %v11672_v58 }
 0x2c0   : > { %v15473_v43 = vld [vmem:[#allocation4 + $0x470] sm:$0xf]  ;;  %v13138_v8 = vld [vmem:[#allocation4 + $0x674] sm:$0xf]  ;;  %v15488_v23 = vld [vmem:[#allocation4 + $0x7f4] sm:$0xf0]  ;;  %v11420_v29 = vor.u32 %v13154_v39, %v11419_v14 }
 0x2c1   : > { %v15475_v42 = vld [vmem:[#allocation4 + $0x4ec] sm:$0xf0]  ;;  %v11421_v44 = vld [vmem:[#allocation4 + $0x6f0] sm:$0xf0]  ;;  %v15490_v30 = vld [vmem:[#allocation4 + $0x77c] sm:$0xf] }
 0x2c2   : > { %v11291_v33 = vld [vmem:[#allocation4 + $0x570] sm:$0xf]  ;;  %v15493_v58 = vadd.s32 1792, %v15456_v35  ;;  %v18337_v39 = vrot.slane %v15207_v46, 4  ;;  %v13106_v14 = vld [vmem:[#allocation4 + $0x574] sm:$0xf]  ;;  %v4722_v11 = vpop.f32.mrf.mxu2 }
 0x2c3   : > { %5062 = vmatpush.bf16.msra.mxu2 %v11548_v18  ;;  %5088 = vmatpush.bf16.msra.mxu0 %v11552_v63  ;;  %v2543_v18 = vsel %vm18300_vm0, %v18336_v19, %v18295_v9  ;;  %v15509_v6 = vld [vmem:[#allocation4 + $0x7f8] sm:$0xf0]  ;;  %v15515_v41 = vadd.s32 256, %v15456_v35  ;;  %v11424_v19 = vor.u32 %v13138_v8, %v11421_v44  ;;  %v15526_v9 = vadd.s32 384, %v15456_v35  ;;  %v15534_v38 = vld [vmem:[#allocation4 + $0x174] sm:$0xf] }
 0x2c4   : > { %v2221_v63 = vsel %vm18300_vm0, %v18337_v39, %v2190_v56  ;;  %v2544_v34 = vsel %vm18298_vm2, %v15320_v54, %v2543_v18  ;;  %v15521_v56 = vld [vmem:[#allocation4 + $0x170] sm:$0xf]  ;;  %v11292_v28 = vor.u32 %v13122_v32, %v11291_v33  ;;  %v15536_v8 = vld [vmem:[#allocation4 + $0x1f0] sm:$0xf0]  ;;  %v11296_v21 = vor.u32 %v13106_v14, %v11293_v60  ;;  %v1986_v14 = vpop.permute.xlu0 %1985  ;;  %v15608_v54 = vld [vmem:[#allocation4 + $0x678] sm:$0xf] }
 0x2c5   : > { %v2222_v4 = vsel %vm18298_vm2, %v15207_v46, %v2221_v63  ;;  %v15523_v39 = vld [vmem:[#allocation4 + $0x1ec] sm:$0xf0]  ;;  %2585 = vst [vmem:[#allocation4 + $0x870] sm:$0xff] %v2544_v34  ;;  %v446_v26 = vand.u32 127, %v15493_v58  ;;  %v453_v33 = vand.u32 127, %v15496_v3  ;;  %v15541_v32 = vadd.s32 128, %v15456_v35  ;;  %v2494_v63 = vpop.permute.xlu1 %2493 }
 0x2c6   : > { %18338 = vst [vmem:[#allocation23_spill] sm:$0xff] %v15536_v8  ;;  %v18339_v44 = vor.u32 %v15361_v51, %v15391_v17  ;;  %v18340_v18 = vor.u32 %v15393_v31, %v15363_v62  ;;  %v390_v60 = vand.u32 127, %v15499_v27  ;;  %v397_v58 = vand.u32 127, %v15512_v20  ;;  %v15558_v17 = vld [vmem:[#allocation4 + $0x478] sm:$0xf] }
 0x2c7   : > { %2254 = vst [vmem:[#allocation4 + $0x5f8] sm:$0xff] %v2222_v4  ;;  %5063 = vmatpush.bf16.msra.mxu2 %v11420_v29  ;;  %5089 = vmatpush.bf16.msra.mxu0 %v11424_v19  ;;  %v362_v3 = vand.u32 127, %v15515_v41  ;;  %v15560_v62 = vld [vmem:[#allocation4 + $0x4f4] sm:$0xf0]  ;;  %v369_v31 = vand.u32 127, %v15526_v9  ;;  %v15564_v27 = vadd.s32 1536, %v15456_v35  ;;  %v15570_v4 = vadd.f32 %v15421_v59, %v15419_v1 }
 0x2c8   : > { %5015 = vmatpush.bf16.msrb.mxu3 %v18339_v44  ;;  %5041 = vmatpush.bf16.msrb.mxu1 %v18340_v18  ;;  %v2521_v20 = vrot.slane %v2494_v63, 4  ;;  %v2004_v41 = vrot.slane %v1986_v14, 4  ;;  %v15574_v19 = vadd.f32 %v15430_v48, %v15428_v57  ;;  %v15576_v44 = vld [vmem:[#allocation4 + $0x47c] sm:$0xf]  ;;  %v13218_v9 = vld [vmem:[#allocation4 + $0x8ec] sm:$0xf0]  ;;  %v11172_v8 = vor.u32 %v15560_v62, %v15558_v17 }
 0x2c9   : > { %11715 = vmatmul.msk.bf16.vlgmr.msrb.gmra.mxu2 %vm18302_vm3, %v14470_v40  ;;  %v15578_v18 = vld [vmem:[#allocation4 + $0x4f8] sm:$0xf0]  ;;  %v11677_v51 = vld [vmem:[#allocation4 + $0x8f0] sm:$0xf0]  ;;  %v15580_v34 = vld [vmem:[#allocation4 + $0x6f4] sm:$0xf0]  ;;  %11716 = vmatmul.msk.bf16.vlgmr.msrb.gmra.mxu0 %vm18302_vm3, %v14470_v40 }
 0x2ca   : > { %v15582_v63 = vld [vmem:[#allocation4 + $0x6f8] sm:$0xf0]  ;;  %vm15584_vm4 = vcmp.lt.s32.totalorder %v446_v26, 16  ;;  %v18341_v14 = vmov 0  ;;  %vm15588_vm5 = vcmp.lt.s32.totalorder %v453_v33, 16  ;;  %v355_v59 = vand.u32 127, %v15541_v32 }
 0x2cb   : > { %5064 = vmatpush.bf16.msra.mxu2 %v11292_v28  ;;  %5090 = vmatpush.bf16.msra.mxu0 %v11296_v21  ;;  %v18342_v14 = vsel %vm15584_vm4, 4294967295, %v18341_v14  ;;  %v341_v57 = vadd.s32 1664, %v15456_v35  ;;  %v336_v28 = vadd.s32 1024, %v15456_v35  ;;  %v337_v48 = vadd.s32 1152, %v15456_v35  ;;  %v15610_v11 = vld [vmem:[#allocation4 + $0x67c] sm:$0xf] }
 0x2cc   : > { %v18345_v21 = vrot.slane %v15462_v52, 4  ;;  %v18346_v26 = vor.u32 %v15395_v5, %v15381_v7  ;;  %v18347_v33 = vor.u32 %v15397_v10, %v15417_v45  ;;  %v18348_v32 = vrot.slane %v15239_v61, 4  ;;  %v11675_v10 = vld [vmem:[#allocation4 + $0x870] sm:$0xf] }
 0x2cd   : > { %vm15614_vm6 = vcmp.lt.s32.totalorder %v390_v60, 16  ;;  %v332_v7 = vadd.s32 512, %v15456_v35  ;;  %vm15625_vm7 = vcmp.lt.s32.totalorder %v397_v58, 16  ;;  %vm15629_vm8 = vcmp.lt.s32.totalorder %v362_v3, 16 }
 0x2ce   : > { %v2545_v29 = vsel %vm18300_vm0, %v18345_v21, %v2521_v20  ;;  %5016 = vmatpush.bf16.msrb.mxu3 %v18346_v26  ;;  %5042 = vmatpush.bf16.msrb.mxu1 %v18347_v33  ;;  %v2035_v46 = vsel %vm18300_vm0, %v18348_v32, %v2004_v41  ;;  %v18349_v20 = vmov 0  ;;  %v13202_v41 = vld [vmem:[#allocation4 + $0x874] sm:$0xf]  ;;  %v18351_v21 = vmov 0  ;;  %v15637_v33 = vld [vmem:[#allocation4 + $0x5f8] sm:$0xf0] }
 0x2cf   : > { %v18350_v20 = vsel %vm15614_vm6, 4294967295, %v18349_v20  ;;  %v2546_v45 = vsel %vm18298_vm2, %v15462_v52, %v2545_v29  ;;  %v2036_v5 = vsel %vm18299_vm1, %v15239_v61, %v2035_v46  ;;  %v18352_v21 = vsel %vm15625_vm7, 4294967295, %v18351_v21  ;;  %v15635_v46 = vld [vmem:[#allocation4 + $0x5f4] sm:$0xf0] }
 0x2d0   : > { %v432_v26 = vand.u32 127, %v15564_v27  ;;  %v333_v52 = vadd.s32 640, %v15456_v35  ;;  %2586 = vst [vmem:[#allocation4 + $0x878] sm:$0xff] %v2546_v45  ;;  %v11676_v29 = vor.u32 %v13218_v9, %v11675_v10  ;;  %v11680_v61 = vor.u32 %v13202_v41, %v11677_v51 }
 0x2d1   : > { %v11176_v58 = vor.u32 %v15576_v44, %v15578_v18  ;;  %vm15641_vm9 = vcmp.lt.s32.totalorder %v369_v31, 16  ;;  %2068 = vst [vmem:[#allocation4 + $0x3f8] sm:$0xff] %v2036_v5  ;;  %v18357_v3 = vor.u32 %v15475_v42, %v15473_v43  ;;  %v18358_v27 = vor.u32 %v15477_v12, %v15479_v0  ;;  %v15662_v12 = vld [vmem:[#allocation4 + $0x578] sm:$0xf]  ;;  %v15664_v0 = vld [vmem:[#allocation4 + $0x57c] sm:$0xf] }
 0x2d2   : > { %v439_v51 = vand.u32 127, %v341_v57  ;;  %v404_v9 = vand.u32 127, %v336_v28  ;;  %v411_v45 = vand.u32 127, %v337_v48  ;;  %v18359_v31 = vor.u32 %v15338_v53, %v15348_v37  ;;  %v15670_v37 = vpop.permute.xlu0 %5169  ;;  %v13027_v44 = vld [vmem:[#allocation4 + $0x2f4] sm:$0xf0] }
 0x2d3   : > { %5065 = vmatpush.bf16.msra.mxu2 %v18357_v3  ;;  %5091 = vmatpush.bf16.msra.mxu0 %v18358_v27  ;;  %v18360_v5 = vor.u32 %v15350_v25, %v15340_v36  ;;  %v11428_v43 = vor.u32 %v15580_v34, %v15608_v54  ;;  %v11432_v42 = vor.u32 %v15610_v11, %v15582_v63  ;;  %vm15666_vm11 = vcmp.lt.s32.totalorder %v355_v59, 16 }
 0x2d4   : > { %5017 = vmatpush.bf16.msrb.mxu3 %v18359_v31  ;;  %v18361_v57 = vmov 0  ;;  %v376_v53 = vand.u32 127, %v332_v7  ;;  %v11300_v36 = vor.u32 %v15635_v46, %v15662_v12  ;;  %v11304_v25 = vor.u32 %v15664_v0, %v15637_v33  ;;  %v18398_v0 = vld [vmem:[#allocation10_spill] sm:$0xff] }
 0x2d5   : > { %5043 = vmatpush.bf16.msrb.mxu1 %v18360_v5  ;;  %v18362_v57 = vsel %vm15666_vm11, 4294967295, %v18361_v57  ;;  %vm15676_vm12 = vcmp.lt.s32.totalorder %v432_v26, 16  ;;  %v383_v54 = vand.u32 127, %v333_v52  ;;  %v5186_v34 = vadd.f32 %v15670_v37, %v15570_v4 }
 0x2d6   : > { %v5187_v63 = vadd.f32 %v15670_v37, %v15574_v19  ;;  %v5178_v59 = vadd.f32 %v15670_v37, %v15133_v2  ;;  %v5179_v28 = vadd.f32 %v15670_v37, %v15135_v15  ;;  %v5174_v48 = vadd.f32 %v15670_v37, %v15018_v13 }
 0x2d7   : > { %5018 = vmatmul.bf16.vlgmr.msrb.gmra.mxu3 %v14409_v24  ;;  %v5175_v7 = vadd.f32 %v15670_v37, %v15075_v49  ;;  %v5172_v4 = vadd.f32 %v15670_v37, %v14950_v47  ;;  %vm15696_vm13 = vcmp.lt.s32.totalorder %v439_v51, 16  ;;  %vm15700_vm14 = vcmp.lt.s32.totalorder %v404_v9, 16  ;;  %v18372_v47 = vld [vmem:[#allocation20_spill] sm:$0xff]  ;;  %v18378_v51 = vld [vmem:[#allocation5_spill] sm:$0xff] }
 0x2d8   : > { %5082 = vmatpush.bf16.msra.mxu3 %v11676_v29  ;;  %5044 = vmatmul.bf16.vlgmr.msrb.gmra.mxu1 %v14409_v24  ;;  %v18367_v2 = vmov 0  ;;  %vm15704_vm15 = vcmp.lt.s32.totalorder %v411_v45, 16  ;;  %v18369_v15 = vmov 0  ;;  %v338_v13 = vadd.s32 1280, %v15456_v35  ;;  %v18379_v45 = vld [vmem:[#allocation21_spill] sm:$0xff] }
 0x2d9   : > { %5108 = vmatpush.bf16.msra.mxu1 %v11680_v61  ;;  %v18368_v2 = vsel %vm15700_vm14, 4294967295, %v18367_v2  ;;  %v18370_v15 = vsel %vm15704_vm15, 4294967295, %v18369_v15  ;;  %v18371_v49 = vor.u32 %v15440_v50, %v15454_v22  ;;  %v18373_v10 = vor.u32 %v15460_v16, %v18372_v47  ;;  %v15725_v22 = vld [vmem:[#allocation4 + $0x878] sm:$0xf] }
 0x2da   : > { %v5202_v41 = vmax.f32 %v5186_v34, 0.0  ;;  %v5203_v26 = vmax.f32 %v5187_v63, 0.0  ;;  %v5194_v52 = vmax.f32 %v5178_v59, 0.0  ;;  %v5195_v29 = vmax.f32 %v5179_v28, 0.0  ;;  %v18382_v28 = vld [vmem:[#allocation14_spill] sm:$0xff] }
 0x2db   : > { %5066 = vmatpush.bf16.msra.mxu2 %v18371_v49  ;;  %5092 = vmatpush.bf16.msra.mxu0 %v18373_v10  ;;  %vm15715_vm2 = vcmp.lt.s32.totalorder %v376_v53, 16  ;;  %v18376_v3 = vor.u32 %v15488_v23, %v15481_v55  ;;  %v18377_v50 = vor.u32 %v15490_v30, %v15509_v6  ;;  %v5190_v16 = vmax.f32 %v5174_v48, 0.0  ;;  %v15735_v23 = vld [vmem:[#allocation4 + $0x8f4] sm:$0xf0]  ;;  %v18383_v48 = vld [vmem:[#allocation18_spill] sm:$0xff]  ;;  %v18385_v49 = vld [vmem:[#allocation19_spill] sm:$0xff] }
 0x2dc   : > { %v5191_v27 = vmax.f32 %v5175_v7, 0.0  ;;  %v5173_v9 = vadd.f32 %v15670_v37, %v18378_v51  ;;  %v5184_v31 = vadd.f32 %v15670_v37, %v18379_v45  ;;  %v5250_v5 = vsel %vm15584_vm4, %v5202_v41, 0.0  ;;  %v18388_v45 = vld [vmem:[#allocation22_spill] sm:$0xff] }
 0x2dd   : > { %5114 = vmatpush.bf16.msrb.mxu3 %v18376_v3  ;;  %5140 = vmatpush.bf16.msrb.mxu1 %v18377_v50  ;;  %v5251_v55 = vsel %vm15588_vm5, %v5203_v26, 0.0  ;;  %vm15737_vm1 = vcmp.lt.s32.totalorder %v383_v54, 16  ;;  %v15742_v30 = vadd.s32 1408, %v15456_v35  ;;  %v11684_v34 = vor.u32 %v15735_v23, %v15725_v22  ;;  %v18386_v54 = vld [vmem:[#allocation15_spill] sm:$0xff]  ;;  %v13011_v22 = vld [vmem:[#allocation4 + $0x27c] sm:$0xf] }
 0x2de   : > { %v5311_v53 = vpack.c.bf16 %v5251_v55, %v5250_v5  ;;  %v5242_v63 = vsel %vm15614_vm6, %v5194_v52, 0.0  ;;  %v418_v59 = vand.u32 127, %v338_v13  ;;  %v18384_v7 = vor.u32 %v18382_v28, %v18383_v48  ;;  %v18389_v5 = vld [vmem:[#allocation8_spill] sm:$0xff]  ;;  %v18394_v48 = vld [vmem:[#allocation23_spill] sm:$0xff] }
 0x2df   : > { %v18387_v47 = vor.u32 %v18385_v49, %v18386_v54  ;;  %v5243_v10 = vsel %vm15625_vm7, %v5195_v29, 0.0  ;;  %v5238_v41 = vsel %vm15629_vm8, %v5190_v16, 0.0  ;;  %v5239_v26 = vsel %vm15641_vm9, %v5191_v27, 0.0  ;;  %v10917_v23 = vld [vmem:[#allocation4 + $0x2f8] sm:$0xf0] }
 0x2e0   : > { %5067 = vmatpush.bf16.msra.mxu2 %v18384_v7  ;;  %v5188_v3 = vmax.f32 %v5172_v4, 0.0  ;;  %5327 = vst [vmem:[#allocation2 + $0x40] sm:$0xff] %v5311_v53  ;;  %v15760_v13 = vpack.c.bf16 %v5243_v10, %v5242_v63  ;;  %v15762_v52 = vpack.c.bf16 %v5239_v26, %v5238_v41  ;;  %v5189_v50 = vmax.f32 %v5173_v9, 0.0  ;;  %v18390_v4 = vld [vmem:[#allocation9_spill] sm:$0xff] }
 0x2e1   : > { %5093 = vmatpush.bf16.msra.mxu0 %v18387_v47  ;;  %5115 = vmatpush.bf16.msrb.mxu3 %v11428_v43  ;;  %v5200_v51 = vmax.f32 %v5184_v31, 0.0  ;;  %5853 = vst [vmem:[#allocation4 + $0x438] sm:$0xff] %v5311_v53  ;;  %v5185_v16 = vadd.f32 %v15670_v37, %v18388_v45  ;;  %v5180_v27 = vadd.f32 %v15670_v37, %v18389_v5  ;;  %v18391_v31 = vld [vmem:[#allocation6_spill] sm:$0xff]  ;;  %v18392_v53 = vld [vmem:[#allocation7_spill] sm:$0xff]  ;;  %vm15801_vm0 = vcmp.lt.s32.totalorder %v418_v59, 16  ;;  %v18399_v45 = vld [vmem:[#allocation12_spill] sm:$0xff] }
 0x2e2   : > { %5141 = vmatpush.bf16.msrb.mxu1 %v11432_v42  ;;  %v5236_v29 = vsel %vm18301_vm10, %v5188_v3, 0.0  ;;  %v5181_v43 = vadd.f32 %v15670_v37, %v18390_v4  ;;  %5323 = vst [vmem:[#allocation2 + $0x20] sm:$0xff] %v15760_v13  ;;  %5380 = vrot.lane.b32.xlu0 %v15760_v13, %s13641_s11  ;;  %v5237_v42 = vsel %vm15666_vm11, %v5189_v50, 0.0  ;;  %v5176_v55 = vadd.f32 %v15670_v37, %v18391_v31  ;;  %v18403_v4 = vld [vmem:[#allocation13_spill] sm:$0xff]  ;;  %v11045_v31 = vld [vmem:[#allocation4 + $0x3f8] sm:$0xf0] }
 0x2e3   : > { %5376 = vrot.lane.b32.xlu1 %v15762_v52, %s13641_s11  ;;  %v5248_v9 = vsel %vm15676_vm12, %v5200_v51, 0.0  ;;  %v5177_v63 = vadd.f32 %v15670_v37, %v18392_v53  ;;  %v18393_v28 = vor.u32 %v15523_v39, %v15521_v56  ;;  %v18395_v7 = vor.u32 %v15534_v38, %v18394_v48  ;;  %5321 = vst [vmem:[#allocation2 + $0x10] sm:$0xff] %v15762_v52  ;;  %v13203_v56 = vld [vmem:[#allocation4 + $0x87c] sm:$0xf]  ;;  %v4798_v51 = vpop.f32.mrf.mxu1  ;;  %v18405_v53 = vld [vmem:[#allocation11_spill] sm:$0xff] }
 0x2e4   : > { %v15792_v49 = vpack.c.bf16 %v5237_v42, %v5236_v29  ;;  %v5201_v54 = vmax.f32 %v5185_v16, 0.0  ;;  %v5196_v47 = vmax.f32 %v5180_v27, 0.0  ;;  %v5197_v10 = vmax.f32 %v5181_v43, 0.0  ;;  %v18400_v16 = vld [vmem:[#allocation16_spill] sm:$0xff]  ;;  %v18402_v27 = vld [vmem:[#allocation17_spill] sm:$0xff] }
 0x2e5   : > { %5068 = vmatpush.bf16.msra.mxu2 %v18393_v28  ;;  %5094 = vmatpush.bf16.msra.mxu0 %v18395_v7  ;;  %v5192_v39 = vmax.f32 %v5176_v55, 0.0  ;;  %v5193_v41 = vmax.f32 %v5177_v63, 0.0  ;;  %v425_v38 = vand.u32 127, %v15742_v30  ;;  %v18401_v5 = vor.u32 %v18399_v45, %v18400_v16  ;;  %v11043_v48 = vld [vmem:[#allocation4 + $0x378] sm:$0xf] }
 0x2e6   : > { %5116 = vmatpush.bf16.msrb.mxu3 %v11300_v36  ;;  %5142 = vmatpush.bf16.msrb.mxu1 %v11304_v25  ;;  %5320 = vst [vmem:[#allocation2 + $0x8] sm:$0xff] %v15792_v49  ;;  %v5249_v46 = vsel %vm15696_vm13, %v5201_v54, 0.0  ;;  %v5244_v33 = vsel %vm15700_vm14, %v5196_v47, 0.0  ;;  %v5245_v12 = vsel %vm15704_vm15, %v5197_v10, 0.0  ;;  %v5182_v36 = vadd.f32 %v15670_v37, %v18398_v0  ;;  %v11685_v25 = vld [vmem:[#allocation4 + $0x8f8] sm:$0xf0]  ;;  %v4772_v10 = vpop.f32.mrf.mxu3 }
 0x2e7   : > { %5374 = vrot.lane.b32.xlu2 %v15792_v49, %s13641_s11  ;;  %v5310_v30 = vpack.c.bf16 %v5249_v46, %v5248_v9  ;;  %v15816_v59 = vpack.c.bf16 %v5245_v12, %v5244_v33  ;;  %v5240_v3 = vsel %vm15715_vm2, %v5192_v39, 0.0  ;;  %v5241_v50 = vsel %vm15737_vm1, %v5193_v41, 0.0  ;;  %v6177_v29 = vld [vmem:[#allocation2 + $0x44] sm:$0xff]  ;;  %v13059_v9 = vld [vmem:[#allocation4 + $0x3f4] sm:$0xf0]  ;;  %11717 = vmatmul.msk.bf16.vlgmr.msra.gmra.mxu3 %vm18302_vm3, %v14470_v40  ;;  %v4785_v41 = vpop.f32.mrf.mxu0 }
 0x2e8   : > { %v18404_v43 = vor.u32 %v18402_v27, %v18403_v4  ;;  %v11688_v42 = vor.u32 %v13203_v56, %v11685_v25  ;;  %v15828_v55 = vpack.c.bf16 %v5241_v50, %v5240_v3  ;;  %v5183_v63 = vadd.f32 %v15670_v37, %v18405_v53  ;;  %6193 = vst [vmem:[#allocation4 + $0x738] sm:$0xff] %v6177_v29  ;;  %v13043_v54 = vld [vmem:[#allocation4 + $0x37c] sm:$0xf]  ;;  %v12995_v39 = vld [vmem:[#allocation4 + $0x1f4] sm:$0xf0] }
 0x2e9   : > { %5069 = vmatpush.bf16.msra.mxu2 %v18401_v5  ;;  %v5198_v28 = vmax.f32 %v5182_v36, 0.0  ;;  %vm15838_vm10 = vcmp.lt.s32.totalorder %v425_v38, 16  ;;  %5326 = vst [vmem:[#allocation2 + $0x38] sm:$0xff] %v5310_v30  ;;  %v11044_v17 = vor.u32 %v13059_v9, %v11043_v48  ;;  %v11048_v62 = vor.u32 %v13043_v54, %v11045_v31  ;;  %11718 = vmatmul.msk.bf16.vlgmr.msra.gmra.mxu1 %vm18302_vm3, %v14470_v40  ;;  %v12979_v12 = vld [vmem:[#allocation4 + $0x17c] sm:$0xf]  ;;  %v4759_v5 = vpop.f32.mrf.mxu2 }
 0x2ea   : > { %5095 = vmatpush.bf16.msra.mxu0 %v18404_v43  ;;  %5117 = vmatpush.bf16.msrb.mxu3 %v11172_v8  ;;  %v5199_v47 = vmax.f32 %v5183_v63, 0.0  ;;  %5324 = vst [vmem:[#allocation2 + $0x28] sm:$0xff] %v15816_v59  ;;  %v5831_v18 = vld [vmem:[#allocation2 + $0x10] sm:$0xff]  ;;  %v10789_v0 = vld [vmem:[#allocation4 + $0x1f8] sm:$0xf0]  ;;  %v4799_v36 = vadd.f32 %v4798_v51, %v4785_v41  ;;  %v10920_v50 = vor.u32 %v13011_v22, %v10917_v23  ;;  %vm18408_vm3 = vcmp.lt.s32.totalorder %v15456_v35, 16 }
 0x2eb   : > { %5143 = vmatpush.bf16.msrb.mxu1 %v11176_v58  ;;  %v5246_v8 = vsel %vm15801_vm0, %v5198_v28, 0.0  ;;  %v10915_v58 = vld [vmem:[#allocation4 + $0x278] sm:$0xf]  ;;  %5322 = vst [vmem:[#allocation2 + $0x18] sm:$0xff] %v15828_v55  ;;  %5386 = vrot.lane.b32.xlu0 %v5310_v30, %s13641_s11  ;;  %v4800_v29 = vpop.f32.mrf.mxu1  ;;  %v10792_v51 = vor.u32 %v12979_v12, %v10789_v0  ;;  %v5344_v27 = vld [vmem:[#allocation2 + $0x40] sm:$0xf]  ;;  %v4773_v43 = vadd.f32 %v4772_v10, %v4759_v5 }
 0x2ec   : > { %5070 = vmatmul.bf16.vlgmr.msra.gmra.mxu2 %v14409_v24  ;;  %v5247_v56 = vsel %vm15838_vm10, %v5199_v47, 0.0  ;;  %5847 = vst [vmem:[#allocation4 + $0x408] sm:$0xff] %v5831_v18  ;;  %5382 = vrot.lane.b32.xlu1 %v15816_v59, %s13641_s11  ;;  %v10916_v3 = vor.u32 %v13027_v44, %v10915_v58  ;;  %v5253_v16 = vadd.f32 %v15670_v37, %v4799_v36  ;;  %v12963_v63 = vld [vmem:[#allocation4 + $0xf4] sm:$0xf0]  ;;  %v10661_v28 = vld [vmem:[#allocation4 + $0xf8] sm:$0xf0] }
 0x2ed   : > { %5134 = vmatpush.bf16.msrb.mxu2 %v11684_v34  ;;  %5096 = vmatmul.bf16.vlgmr.msra.gmra.mxu0 %v14409_v24  ;;  %v10787_v34 = vld [vmem:[#allocation4 + $0x178] sm:$0xf]  ;;  %v15857_v38 = vpack.c.bf16 %v5247_v56, %v5246_v8  ;;  %v15859_v46 = vld [vmem:[#allocation2 + $0xc] sm:$0xff]  ;;  %v15865_v25 = vld [vmem:[#allocation2 + $0x4] sm:$0xff]  ;;  %v5252_v54 = vadd.f32 %v15670_v37, %v4773_v43 }
 0x2ee   : > { %5160 = vmatpush.bf16.msrb.mxu0 %v11688_v42  ;;  %5118 = vmatpush.bf16.msrb.mxu3 %v11044_v17  ;;  %v5830_v33 = vld [vmem:[#allocation2 + $0x8] sm:$0xff]  ;;  %6186 = vst [vmem:[#allocation4 + $0x700] sm:$0xff] %v15859_v46  ;;  %v10788_v30 = vor.u32 %v12995_v39, %v10787_v34  ;;  %v5269_v42 = vmax.f32 %v5253_v16, 0.0  ;;  %v4774_v48 = vpop.f32.mrf.mxu3  ;;  %v5833_v17 = vld [vmem:[#allocation2 + $0x20] sm:$0xff]  ;;  %v12947_v44 = vld [vmem:[#allocation4 + $0x7c] sm:$0xf] }
 0x2ef   : > { %5144 = vmatpush.bf16.msrb.mxu1 %v11048_v62  ;;  %5378 = vrot.lane.b32.xlu2 %v15828_v55, %s13641_s11  ;;  %5325 = vst [vmem:[#allocation2 + $0x30] sm:$0xff] %v15857_v38  ;;  %v5491_v45 = vld [vmem:[#allocation2 + $0xc] sm:$0xff]  ;;  %v4787_v47 = vpop.f32.mrf.mxu0  ;;  %v10659_v62 = vld [vmem:[#allocation4 + $0x78] sm:$0xf]  ;;  %v5268_v58 = vmax.f32 %v5252_v54, 0.0  ;;  %v10664_v34 = vor.u32 %v12947_v44, %v10661_v28 }
 0x2f0   : > { %5846 = vst [vmem:[#allocation4 + $0x400] sm:$0xff] %v5830_v33  ;;  %v5285_v22 = vsel %vm15666_vm11, %v5269_v42, 0.0  ;;  %v10660_v23 = vor.u32 %v12963_v63, %v10659_v62  ;;  %vm18409_vm11 = vcmask 130048   ;;  %v6176_v0 = vld [vmem:[#allocation2 + $0x3c] sm:$0xff] }
 0x2f1   : > { %5506 = vst [vmem:[#allocation4 + $0x100] sm:$0xff] %v15865_v25  ;;  %v6173_v4 = vld [vmem:[#allocation2 + $0x24] sm:$0xff]  ;;  %v5284_v39 = vsel %vm18408_vm3, %v5268_v58, 0.0  ;;  %v4761_v33 = vpop.f32.mrf.mxu2  ;;  %vm18410_vm3 = vmmov %vm18409_vm11  ;;  %v5836_v29 = vld [vmem:[#allocation2 + $0x38] sm:$0xff] }
 0x2f2   : > { %5119 = vmatpush.bf16.msrb.mxu3 %v10916_v3  ;;  %5507 = vst [vmem:[#allocation4 + $0x108] sm:$0xff] %v5491_v45  ;;  %v15872_v9 = vld [vmem:[#allocation2 + $0x14] sm:$0xff]  ;;  %v15874_v31 = vld [vmem:[#allocation2 + $0x1c] sm:$0xff]  ;;  %v5834_v56 = vld [vmem:[#allocation2 + $0x28] sm:$0xff]  ;;  %v15886_v41 = vpack.c.bf16 %v5285_v22, %v5284_v39 }
 0x2f3   : > { %5145 = vmatpush.bf16.msrb.mxu1 %v10920_v50  ;;  %6189 = vst [vmem:[#allocation4 + $0x718] sm:$0xff] %v6173_v4  ;;  %v5832_v53 = vld [vmem:[#allocation2 + $0x18] sm:$0xff] }
 0x2f4   : > { %6187 = vst [vmem:[#allocation4 + $0x708] sm:$0xff] %v15872_v9  ;;  %v5492_v8 = vld [vmem:[#allocation2 + $0x14] sm:$0xff]  ;;  %5388 = vrot.lane.b32.xlu1 %v5344_v27, %s13641_s11  ;;  %v5493_v18 = vld [vmem:[#allocation2 + $0x1c] sm:$0xff] }
 0x2f5   : > { %6188 = vst [vmem:[#allocation4 + $0x710] sm:$0xff] %v15874_v31 }
 0x2f6   : > { %5120 = vmatpush.bf16.msrb.mxu3 %v10788_v30  ;;  %5848 = vst [vmem:[#allocation4 + $0x410] sm:$0xff] %v5832_v53  ;;  %v6174_v10 = vld [vmem:[#allocation2 + $0x2c] sm:$0xff]  ;;  %v6175_v12 = vld [vmem:[#allocation2 + $0x34] sm:$0xff] }
 0x2f7   : > { %5146 = vmatpush.bf16.msrb.mxu1 %v10792_v51  ;;  %5384 = vrot.lane.b32.xlu2 %v15857_v38, %s13641_s11  ;;  %5508 = vst [vmem:[#allocation4 + $0x110] sm:$0xff] %v5492_v8  ;;  %v5835_v36 = vld [vmem:[#allocation2 + $0x30] sm:$0xff]  ;;  %v4850_v3 = vpop.f32.mrf.mxu0 }
 0x2f8   : > { %5849 = vst [vmem:[#allocation4 + $0x418] sm:$0xff] %v5833_v17 }
 0x2f9   : > { %5509 = vst [vmem:[#allocation4 + $0x118] sm:$0xff] %v5493_v18  ;;  %v4824_v45 = vpop.f32.mrf.mxu2 }
 0x2fa   : > { %5121 = vmatpush.bf16.msrb.mxu3 %v10660_v23  ;;  %6190 = vst [vmem:[#allocation4 + $0x720] sm:$0xff] %v6174_v10  ;;  %v12179_v23 = vld [vmem:[#allocation4 + $0x700] sm:$0xf] }
 0x2fb   : > { %5147 = vmatpush.bf16.msrb.mxu1 %v10664_v34  ;;  %5850 = vst [vmem:[#allocation4 + $0x420] sm:$0xff] %v5834_v56  ;;  %v13334_v56 = vld [vmem:[#allocation4 + $0x704] sm:$0xf] }
 0x2fc   : > { %11719 = vmatmul.msk.bf16.vlgmr.msrb.gmra.mxu2 %vm18409_vm11, %v14470_v40  ;;  %5328 = vst [vmem:[#allocation2 + $0x58] sm:$0xff] %v15886_v41  ;;  %vm18411_vm11 = vcmask 1043456  }
 0x2fd   : > { %5122 = vmatmul.bf16.vlgmr.msrb.gmra.mxu3 %v14409_v24  ;;  %5854 = vst [vmem:[#allocation4 + $0x480] sm:$0xff] %v15886_v41  ;;  %11720 = vmatmul.msk.bf16.vlgmr.msrb.gmra.mxu0 %vm18410_vm3, %v14470_v40  ;;  %v4811_v30 = vpop.f32.mrf.mxu3  ;;  %vm18412_vm3 = vcmask 7168  }
 0x2fe   : > { %5148 = vmatmul.bf16.vlgmr.msrb.gmra.mxu1 %v14409_v24  ;;  %5510 = vst [vmem:[#allocation4 + $0x120] sm:$0xff] %v6173_v4  ;;  %v4837_v24 = vpop.f32.mrf.mxu1  ;;  %v4825_v5 = vadd.f32 %v4824_v45, %v4811_v30 }
 0x2ff   : > { %5392 = vrot.lane.b32.xlu2 %v15886_v41, %s13641_s11  ;;  %6191 = vst [vmem:[#allocation4 + $0x728] sm:$0xff] %v6175_v12  ;;  %v4851_v40 = vadd.f32 %v4850_v3, %v4837_v24  ;;  %v4852_v51 = vpop.f32.mrf.mxu0 }
 0x300   : > { %6192 = vst [vmem:[#allocation4 + $0x730] sm:$0xff] %v6176_v0  ;;  %v5254_v4 = vadd.f32 %v15670_v37, %v4825_v5 }
 0x301   : > { %5851 = vst [vmem:[#allocation4 + $0x428] sm:$0xff] %v5835_v36  ;;  %v5255_v16 = vadd.f32 %v15670_v37, %v4851_v40  ;;  %v4826_v63 = vpop.f32.mrf.mxu2 }
 0x302   : > { %5511 = vst [vmem:[#allocation4 + $0x128] sm:$0xff] %v6174_v10  ;;  %v5270_v42 = vmax.f32 %v5254_v4, 0.0 }
 0x303   : > { %v15898_v50 = vld [vmem:[#allocation2 + $0x54] sm:$0xff]  ;;  %5852 = vst [vmem:[#allocation4 + $0x430] sm:$0xff] %v5836_v29  ;;  %v5271_v27 = vmax.f32 %v5255_v16, 0.0 }
 0x304   : > { %5514 = vst [vmem:[#allocation4 + $0x180] sm:$0xff] %v15898_v50  ;;  %v5286_v28 = vsel %vm15629_vm8, %v5270_v42, 0.0 }
 0x305   : > { %5512 = vst [vmem:[#allocation4 + $0x130] sm:$0xff] %v6175_v12  ;;  %v5287_v53 = vsel %vm15641_vm9, %v5271_v27, 0.0  ;;  %v4813_v54 = vpop.f32.mrf.mxu3 }
 0x306   : > { %5513 = vst [vmem:[#allocation4 + $0x138] sm:$0xff] %v6176_v0  ;;  %v4839_v43 = vpop.f32.mrf.mxu1  ;;  %v15907_v48 = vpack.c.bf16 %v5287_v53, %v5286_v28 }
 0x308   : > { %5329 = vst [vmem:[#allocation2 + $0x60] sm:$0xff] %v15907_v48  ;;  %5394 = vrot.lane.b32.xlu0 %v15907_v48, %s13641_s11 }
 0x309   : > { %5855 = vst [vmem:[#allocation4 + $0x488] sm:$0xff] %v15907_v48 }
 0x30d   : > { %v4876_v8 = vpop.f32.mrf.mxu3 }
 0x30e   : > { %v4902_v47 = vpop.f32.mrf.mxu1 }
 0x30f   : > { %v15913_v17 = vld [vmem:[#allocation2 + $0x5c] sm:$0xff] }
 0x310   : > { %5515 = vst [vmem:[#allocation4 + $0x188] sm:$0xff] %v15913_v17  ;;  %v4889_v44 = vpop.f32.mrf.mxu0 }
 0x311   : > { %6194 = vst [vmem:[#allocation4 + $0x780] sm:$0xff] %v15913_v17  ;;  %v4903_v18 = vadd.f32 %v4902_v47, %v4889_v44 }
 0x313   : > { %v5257_v22 = vadd.f32 %v15670_v37, %v4903_v18 }
 0x315   : > { %v4878_v58 = vpop.f32.mrf.mxu3  ;;  %v5273_v12 = vmax.f32 %v5257_v22, 0.0 }
 0x316   : > { %v4904_v62 = vpop.f32.mrf.mxu1  ;;  %v4863_v34 = vpop.f32.mrf.mxu2 }
 0x317   : > { %v4877_v33 = vadd.f32 %v4876_v8, %v4863_v34  ;;  %v5289_v45 = vsel %vm15737_vm1, %v5273_v12, 0.0  ;;  %v15935_v8 = vpop.permute.xlu1 %13524 }
 0x318   : > { %v13342_v10 = vld [vmem:[#allocation4 + $0x77c] sm:$0xf0]  ;;  %v12181_v39 = vld [vmem:[#allocation4 + $0x780] sm:$0xf0]  ;;  %v4891_v29 = vpop.f32.mrf.mxu0  ;;  %v13526_v22 = vunpack.i.l.bf16 %v15935_v8 }
 0x319   : > { %v12180_v0 = vor.u32 %v13342_v10, %v12179_v23  ;;  %v12184_v36 = vor.u32 %v13334_v56, %v12181_v39  ;;  %v5256_v3 = vadd.f32 %v15670_v37, %v4877_v33 }
 0x31a   : > { %v5408_v56 = vrot.slane %v13526_v22, 4 }
 0x31b   : > { %7246 = vmatpush.bf16.msra.mxu2 %v12180_v0  ;;  %7274 = vmatpush.bf16.msra.mxu0 %v12184_v36  ;;  %v5272_v24 = vmax.f32 %v5256_v3, 0.0 }
 0x31d   : > { %v5288_v40 = vsel %vm15715_vm2, %v5272_v24, 0.0 }
 0x31e   : > { %v15923_v16 = vpack.c.bf16 %v5289_v45, %v5288_v40  ;;  %v4865_v30 = vpop.f32.mrf.mxu2 }
 0x320   : > { %5330 = vst [vmem:[#allocation2 + $0x68] sm:$0xff] %v15923_v16  ;;  %5396 = vrot.lane.b32.xlu1 %v15923_v16, %s13641_s11  ;;  %v4954_v5 = vpop.f32.mrf.mxu0 }
 0x321   : > { %5856 = vst [vmem:[#allocation4 + $0x490] sm:$0xff] %v15923_v16 }
 0x322   : > { %v4941_v51 = vpop.f32.mrf.mxu1 }
 0x323   : > { %v4955_v27 = vadd.f32 %v4954_v5, %v4941_v51 }
 0x325   : > { %v5259_v42 = vadd.f32 %v15670_v37, %v4955_v27 }
 0x326   : > { %v4928_v4 = vpop.f32.mrf.mxu2 }
 0x327   : > { %v15929_v43 = vld [vmem:[#allocation2 + $0x64] sm:$0xff]  ;;  %v5275_v28 = vmax.f32 %v5259_v42, 0.0 }
 0x328   : > { %5516 = vst [vmem:[#allocation4 + $0x190] sm:$0xff] %v15929_v43  ;;  %v4915_v53 = vpop.f32.mrf.mxu3  ;;  %v4956_v62 = vpop.f32.mrf.mxu0 }
 0x329   : > { %6195 = vst [vmem:[#allocation4 + $0x788] sm:$0xff] %v15929_v43  ;;  %v4929_v63 = vadd.f32 %v4928_v4, %v4915_v53  ;;  %v5291_v18 = vsel %vm15625_vm7, %v5275_v28, 0.0  ;;  %vm18416_vm7 = vmmov %vm18412_vm3 }
 0x32a   : > { %v4943_v47 = vpop.f32.mrf.mxu1 }
 0x32b   : > { %v5258_v54 = vadd.f32 %v15670_v37, %v4929_v63 }
 0x32d   : > { %v5274_v44 = vmax.f32 %v5258_v54, 0.0 }
 0x32e   : > { %v4930_v58 = vpop.f32.mrf.mxu2 }
 0x32f   : > { %v5290_v23 = vsel %vm15614_vm6, %v5274_v44, 0.0  ;;  %vm18415_vm6 = vmmov %vm18412_vm3 }
 0x330   : > { %v15942_v34 = vpack.c.bf16 %v5291_v18, %v5290_v23  ;;  %v4917_v10 = vpop.f32.mrf.mxu3 }
 0x332   : > { %5331 = vst [vmem:[#allocation2 + $0x70] sm:$0xff] %v15942_v34  ;;  %5398 = vrot.lane.b32.xlu2 %v15942_v34, %s13641_s11  ;;  %v5006_v39 = vpop.f32.mrf.mxu1 }
 0x333   : > { %5857 = vst [vmem:[#allocation4 + $0x498] sm:$0xff] %v15942_v34 }
 0x334   : > { %v4993_v0 = vpop.f32.mrf.mxu0 }
 0x335   : > { %v5007_v36 = vadd.f32 %v5006_v39, %v4993_v0 }
 0x337   : > { %v5261_v40 = vadd.f32 %v15670_v37, %v5007_v36 }
 0x338   : > { %v4980_v45 = vpop.f32.mrf.mxu3 }
 0x339   : > { %v15951_v30 = vld [vmem:[#allocation2 + $0x6c] sm:$0xff]  ;;  %v5277_v5 = vmax.f32 %v5261_v40, 0.0 }
 0x33a   : > { %v4967_v24 = vpop.f32.mrf.mxu2  ;;  %5517 = vst [vmem:[#allocation4 + $0x198] sm:$0xff] %v15951_v30  ;;  %v5008_v4 = vpop.f32.mrf.mxu1 }
 0x33b   : > { %v4981_v51 = vadd.f32 %v4980_v45, %v4967_v24  ;;  %6196 = vst [vmem:[#allocation4 + $0x790] sm:$0xff] %v15951_v30  ;;  %v5293_v63 = vsel %vm15704_vm15, %v5277_v5, 0.0  ;;  %vm18414_vm15 = vmmov %vm18411_vm11 }
 0x33c   : > { %v4995_v28 = vpop.f32.mrf.mxu0 }
 0x33d   : > { %v5260_v27 = vadd.f32 %v15670_v37, %v4981_v51 }
 0x33f   : > { %v5276_v53 = vmax.f32 %v5260_v27, 0.0 }
 0x340   : > { %v4982_v44 = vpop.f32.mrf.mxu3 }
 0x341   : > { %v5375_v33 = vpop.permute.xlu2 %5374  ;;  %v5292_v54 = vsel %vm15700_vm14, %v5276_v53, 0.0  ;;  %vm18413_vm14 = vmmov %vm18411_vm11 }
 0x342   : > { %v5409_v12 = vrot.slane %v5375_v33, 4  ;;  %v15960_v47 = vpack.c.bf16 %v5293_v63, %v5292_v54  ;;  %v4969_v62 = vpop.f32.mrf.mxu2 }
 0x344   : > { %v5426_v3 = vsel %vm18411_vm11, %v5408_v56, %v5409_v12  ;;  %5332 = vst [vmem:[#allocation2 + $0x78] sm:$0xff] %v15960_v47  ;;  %5400 = vrot.lane.b32.xlu0 %v15960_v47, %s13641_s11 }
 0x345   : > { %v5427_v29 = vsel %vm18412_vm3, %v13526_v22, %v5426_v3  ;;  %5858 = vst [vmem:[#allocation4 + $0x4a0] sm:$0xff] %v15960_v47  ;;  %v13527_v22 = vunpack.i.h.bf16 %v15935_v8 }
 0x346   : > { %5474 = vst [vmem:[#allocation4] sm:$0xff] %v5427_v29  ;;  %v5058_v58 = vpop.f32.mrf.mxu0 }
 0x347   : > { %v5417_v29 = vrot.slane %v13527_v22, 4 }
 0x349   : > { %v5379_v42 = vpop.permute.xlu2 %5378 }
 0x34a   : > { %v5411_v39 = vrot.slane %v5379_v42, 4 }
 0x34b   : > { %v15967_v56 = vld [vmem:[#allocation2 + $0x74] sm:$0xff] }
 0x34c   : > { %v5032_v23 = vpop.f32.mrf.mxu2  ;;  %5518 = vst [vmem:[#allocation4 + $0x1a0] sm:$0xff] %v15967_v56 }
 0x34d   : > { %6197 = vst [vmem:[#allocation4 + $0x798] sm:$0xff] %v15967_v56 }
 0x34e   : > { %v5060_v4 = vpop.f32.mrf.mxu0 }
 0x351   : > { %v5385_v18 = vpop.permute.xlu2 %5384 }
 0x354   : > { %v5381_v10 = vpop.permute.xlu0 %5380 }
 0x355   : > { %v5412_v0 = vrot.slane %v5381_v10, 4  ;;  %v5377_v36 = vpop.permute.xlu1 %5376  ;;  %v5045_v24 = vpop.f32.mrf.mxu1 }
 0x356   : > { %v5410_v3 = vrot.slane %v5377_v36, 4  ;;  %v5059_v40 = vadd.f32 %v5058_v58, %v5045_v24 }
 0x357   : > { %v5432_v45 = vsel %vm18411_vm11, %v5411_v39, %v5412_v0 }
 0x358   : > { %v5433_v51 = vsel %vm18412_vm3, %v5379_v42, %v5432_v45  ;;  %v5428_v8 = vsel %vm18413_vm14, %v5409_v12, %v5410_v3  ;;  %v5430_v5 = vsel %vm18414_vm15, %v5410_v3, %v5411_v39  ;;  %v5263_v54 = vadd.f32 %v15670_v37, %v5059_v40  ;;  %v5034_v42 = vpop.f32.mrf.mxu2  ;;  %vm18417_vm14 = vmmov %vm18412_vm3 }
 0x359   : > { %v15975_v27 = vpop.permute.xlu2 %5392  ;;  %5477 = vst [vmem:[#allocation4 + $0x18] sm:$0xff] %v5433_v51  ;;  %v5429_v53 = vsel %vm18415_vm6, %v5375_v33, %v5428_v8  ;;  %v5431_v63 = vsel %vm18416_vm7, %v5377_v36, %v5430_v5  ;;  %v5414_v36 = vrot.slane %v5385_v18, 4  ;;  %vm18418_vm6 = vmmov %vm18411_vm11 }
 0x35a   : > { %v5418_v28 = vrot.slane %v15975_v27, 4  ;;  %5475 = vst [vmem:[#allocation4 + $0x8] sm:$0xff] %v5429_v53  ;;  %v5019_v44 = vpop.f32.mrf.mxu3  ;;  %v5279_v58 = vmax.f32 %v5263_v54, 0.0  ;;  %vm18419_vm7 = vmmov %vm18412_vm3 }
 0x35b   : > { %5476 = vst [vmem:[#allocation4 + $0x10] sm:$0xff] %v5431_v63  ;;  %v5033_v39 = vadd.f32 %v5032_v23, %v5019_v44  ;;  %vm18420_vm15 = vmmov %vm18418_vm6 }
 0x35c   : > { %v5442_v12 = vsel %vm18411_vm11, %v5417_v29, %v5418_v28  ;;  %v5295_v8 = vsel %vm15838_vm10, %v5279_v58, 0.0  ;;  %vm18421_vm3 = vmmov %vm18418_vm6 }
 0x35d   : > { %v5443_v62 = vsel %vm18417_vm14, %v13527_v22, %v5442_v12  ;;  %v5047_v33 = vpop.f32.mrf.mxu1  ;;  %v5387_v3 = vpop.permute.xlu0 %5386  ;;  %v5262_v24 = vadd.f32 %v15670_v37, %v5033_v39  ;;  %vm18422_vm11 = vmmov %vm18419_vm7 }
 0x35e   : > { %5482 = vst [vmem:[#allocation4 + $0x80] sm:$0xff] %v5443_v62  ;;  %v5415_v45 = vrot.slane %v5387_v3, 4  ;;  %v5383_v40 = vpop.permute.xlu1 %5382  ;;  %vm18423_vm14 = vmmov %vm18419_vm7 }
 0x35f   : > { %v5413_v51 = vrot.slane %v5383_v40, 4  ;;  %v5278_v5 = vmax.f32 %v5262_v24, 0.0 }
 0x360   : > { %v5438_v29 = vsel %vm18418_vm6, %v5414_v36, %v5415_v45  ;;  %vm18424_vm6 = vmmov %vm18421_vm3 }
 0x361   : > { %v5439_v22 = vsel %vm18419_vm7, %v5385_v18, %v5438_v29  ;;  %v5434_v4 = vsel %vm18420_vm15, %v5412_v0, %v5413_v51  ;;  %v5436_v23 = vsel %vm18421_vm3, %v5413_v51, %v5414_v36  ;;  %v5294_v53 = vsel %vm15801_vm0, %v5278_v5, 0.0  ;;  %vm18425_vm15 = vmmov %vm18421_vm3 }
 0x362   : > { %5480 = vst [vmem:[#allocation4 + $0x30] sm:$0xff] %v5439_v22  ;;  %v5435_v63 = vsel %vm18422_vm11, %v5381_v10, %v5434_v4  ;;  %v5437_v54 = vsel %vm18423_vm14, %v5383_v40, %v5436_v23  ;;  %v15996_v12 = vpack.c.bf16 %v5295_v8, %v5294_v53  ;;  %v5021_v42 = vpop.f32.mrf.mxu3  ;;  %vm18426_vm3 = vmmov %vm18419_vm7 }
 0x363   : > { %5478 = vst [vmem:[#allocation4 + $0x20] sm:$0xff] %v5435_v63  ;;  %vm18427_vm11 = vmmov %vm18424_vm6 }
 0x364   : > { %5479 = vst [vmem:[#allocation4 + $0x28] sm:$0xff] %v5437_v54  ;;  %5402 = vrot.lane.b32.xlu1 %v15996_v12, %s13641_s11  ;;  %vm18428_vm14 = vmmov %vm18424_vm6 }
 0x365   : > { %5333 = vst [vmem:[#allocation2 + $0x80] sm:$0xff] %v15996_v12 }
 0x366   : > { %5859 = vst [vmem:[#allocation4 + $0x4a8] sm:$0xff] %v15996_v12  ;;  %v5110_v0 = vpop.f32.mrf.mxu1  ;;  %v5389_v44 = vpop.permute.xlu1 %5388 }
 0x367   : > { %v5416_v58 = vrot.slane %v5389_v44, 4 }
 0x369   : > { %v5440_v39 = vsel %vm18424_vm6, %v5415_v45, %v5416_v58  ;;  %vm18429_vm6 = vmmov %vm18426_vm3 }
 0x36a   : > { %v5097_v18 = vpop.f32.mrf.mxu0  ;;  %v5084_v36 = vpop.f32.mrf.mxu3  ;;  %v5441_v24 = vsel %vm18419_vm7, %v5387_v3, %v5440_v39  ;;  %vm18430_vm7 = vmmov %vm18426_vm3 }
 0x36b   : > { %v5111_v62 = vadd.f32 %v5110_v0, %v5097_v18  ;;  %5481 = vst [vmem:[#allocation4 + $0x38] sm:$0xff] %v5441_v24 }
 0x36c   : > { %v16005_v40 = vld [vmem:[#allocation2 + $0x7c] sm:$0xff]  ;;  %5558 = vrot.lane.b32.xlu1 %v15865_v25, %s13642_s12 }
 0x36d   : > { %v5265_v10 = vadd.f32 %v15670_v37, %v5111_v62  ;;  %5519 = vst [vmem:[#allocation4 + $0x1a8] sm:$0xff] %v16005_v40 }
 0x36e   : > { %6198 = vst [vmem:[#allocation4 + $0x7a0] sm:$0xff] %v16005_v40  ;;  %v5112_v45 = vpop.f32.mrf.mxu1 }
 0x36f   : > { %v5071_v33 = vpop.f32.mrf.mxu2  ;;  %v5281_v8 = vmax.f32 %v5265_v10, 0.0 }
 0x370   : > { %v5085_v51 = vadd.f32 %v5084_v36, %v5071_v33 }
 0x371   : > { %v5297_v3 = vsel %vm15696_vm13, %v5281_v8, 0.0 }
 0x372   : > { %v5264_v5 = vadd.f32 %v15670_v37, %v5085_v51  ;;  %v5099_v29 = vpop.f32.mrf.mxu0  ;;  %v5086_v63 = vpop.f32.mrf.mxu3 }
 0x374   : > { %v5280_v22 = vmax.f32 %v5264_v5, 0.0  ;;  %6070 = vrot.lane.b32.xlu1 %v15886_v41, %s13641_s11 }
 0x376   : > { %v5296_v4 = vsel %vm15676_vm12, %v5280_v22, 0.0 }
 0x377   : > { %v16016_v23 = vpack.c.bf16 %v5297_v3, %v5296_v4  ;;  %v5073_v53 = vpop.f32.mrf.mxu2 }
 0x379   : > { %5334 = vst [vmem:[#allocation2 + $0x88] sm:$0xff] %v16016_v23  ;;  %5404 = vrot.lane.b32.xlu2 %v16016_v23, %s13641_s11 }
 0x37a   : > { %5860 = vst [vmem:[#allocation4 + $0x4b0] sm:$0xff] %v16016_v23  ;;  %v5162_v42 = vpop.f32.mrf.mxu0  ;;  %v5395_v8 = vpop.permute.xlu0 %5394 }
 0x37b   : > { %v5149_v54 = vpop.f32.mrf.mxu1  ;;  %v5419_v22 = vrot.slane %v5395_v8, 4 }
 0x37c   : > { %v5163_v18 = vadd.f32 %v5162_v42, %v5149_v54  ;;  %5900 = vrot.lane.b32.xlu1 %v15762_v52, %s13642_s12 }
 0x37e   : > { %v5267_v0 = vadd.f32 %v15670_v37, %v5163_v18 }
 0x37f   : > { %v5136_v62 = vpop.f32.mrf.mxu2 }
 0x380   : > { %v16025_v44 = vld [vmem:[#allocation2 + $0x84] sm:$0xff]  ;;  %v5123_v58 = vpop.f32.mrf.mxu3  ;;  %v5283_v33 = vmax.f32 %v5267_v0, 0.0 }
 0x381   : > { %5520 = vst [vmem:[#allocation4 + $0x1b0] sm:$0xff] %v16025_v44  ;;  %v5137_v10 = vadd.f32 %v5136_v62, %v5123_v58  ;;  %6052 = vrot.lane.b32.xlu2 %v15792_v49, %s13641_s11 }
 0x382   : > { %6199 = vst [vmem:[#allocation4 + $0x7a8] sm:$0xff] %v16025_v44  ;;  %v5164_v24 = vpop.f32.mrf.mxu0  ;;  %v5299_v5 = vsel %vm15588_vm5, %v5283_v33, 0.0 }
 0x383   : > { %v5151_v39 = vpop.f32.mrf.mxu1  ;;  %v5266_v36 = vadd.f32 %v15670_v37, %v5137_v10  ;;  %v5444_v37 = vsel %vm18425_vm15, %v5418_v28, %v5419_v22  ;;  %vm18431_vm15 = vmmov %vm18427_vm11 }
 0x384   : > { %5712 = vrot.lane.b32.xlu1 %v15865_v25, %s13641_s11  ;;  %v5445_v53 = vsel %vm18426_vm3, %v15975_v27, %v5444_v37 }
 0x385   : > { %v5282_v51 = vmax.f32 %v5266_v36, 0.0  ;;  %5483 = vst [vmem:[#allocation4 + $0x88] sm:$0xff] %v5445_v53  ;;  %v6205_v36 = vld [vmem:[#allocation2 + $0x24] sm:$0xff] }
 0x387   : > { %v5298_v29 = vsel %vm15584_vm4, %v5282_v51, 0.0  ;;  %v5138_v45 = vpop.f32.mrf.mxu2 }
 0x388   : > { %v16038_v3 = vpack.c.bf16 %v5299_v5, %v5298_v29  ;;  %v5125_v4 = vpop.f32.mrf.mxu3 }
 0x389   : > { %6072 = vrot.lane.b32.xlu2 %v15907_v48, %s13641_s11 }
 0x38a   : > { %5335 = vst [vmem:[#allocation2 + $0x90] sm:$0xff] %v16038_v3 }
 0x38b   : > { %5861 = vst [vmem:[#allocation4 + $0x4b8] sm:$0xff] %v16038_v3 }
 0x38c   : > { %5732 = vrot.lane.b32.xlu1 %v15913_v17, %s13641_s11  ;;  %v5399_v27 = vpop.permute.xlu2 %5398 }
 0x38d   : > { %v5421_v28 = vrot.slane %v5399_v27, 4 }
 0x391   : > { %v16051_v63 = vld [vmem:[#allocation2 + $0x8c] sm:$0xff]  ;;  %v16053_v54 = vld [vmem:[#allocation2 + $0x94] sm:$0xff]  ;;  %5916 = vrot.lane.b32.xlu2 %v15886_v41, %s13642_s12 }
 0x392   : > { %v5353_v25 = vld [vmem:[#allocation2 + $0x90] sm:$0xf]  ;;  %5521 = vst [vmem:[#allocation4 + $0x1b8] sm:$0xff] %v16051_v63  ;;  %v5397_v41 = vpop.permute.xlu1 %5396 }
 0x393   : > { %5406 = vrot.lane.b32.xlu0 %v5353_v25, %s13641_s11  ;;  %6200 = vst [vmem:[#allocation4 + $0x7b0] sm:$0xff] %v16051_v63  ;;  %v5420_v42 = vrot.slane %v5397_v41, 4 }
 0x394   : > { %6201 = vst [vmem:[#allocation4 + $0x7b8] sm:$0xff] %v16053_v54  ;;  %5578 = vrot.lane.b32.xlu1 %v15913_v17, %s13642_s12 }
 0x395   : > { %v5446_v18 = vsel %vm18427_vm11, %v5419_v22, %v5420_v42  ;;  %v5448_v0 = vsel %vm18428_vm14, %v5420_v42, %v5421_v28  ;;  %vm18432_vm14 = vmmov %vm18427_vm11 }
 0x396   : > { %v5447_v62 = vsel %vm18429_vm6, %v5395_v8, %v5446_v18  ;;  %vm18433_vm6 = vmmov %vm18426_vm3  ;;  %v16174_v18 = vld [vmem:[#allocation2 + $0x2c] sm:$0xff] }
 0x397   : > { %5484 = vst [vmem:[#allocation4 + $0x90] sm:$0xff] %v5447_v62 }
 0x399   : > { %5714 = vrot.lane.b32.xlu2 %v15859_v46, %s13641_s11 }
 0x39b   : > { %6054 = vrot.lane.b32.xlu0 %v15762_v52, %s13641_s11  ;;  %v5449_v52 = vsel %vm18430_vm7, %v5397_v41, %v5448_v0  ;;  %vm18434_vm7 = vmmov %vm18426_vm3 }
 0x39c   : > { %5902 = vrot.lane.b32.xlu1 %v15828_v55, %s13642_s12  ;;  %5485 = vst [vmem:[#allocation4 + $0x98] sm:$0xff] %v5449_v52 }
 0x3a1   : > { %5560 = vrot.lane.b32.xlu2 %v15859_v46, %s13642_s12 }
 0x3a3   : > { %5898 = vrot.lane.b32.xlu0 %v15792_v49, %s13642_s12 }
 0x3a4   : > { %6240 = vrot.lane.b32.xlu1 %v15872_v9, %s13642_s12 }
 0x3a9   : > { %6056 = vrot.lane.b32.xlu2 %v15828_v55, %s13641_s11 }
 0x3ab   : > { %5918 = vrot.lane.b32.xlu0 %v15907_v48, %s13642_s12 }
 0x3ac   : > { %5716 = vrot.lane.b32.xlu1 %v15872_v9, %s13641_s11 }
 0x3b1   : > { %5920 = vrot.lane.b32.xlu2 %v15923_v16, %s13642_s12 }
 0x3b3   : > { %5730 = vrot.lane.b32.xlu0 %v15898_v50, %s13641_s11 }
 0x3b4   : > { %6076 = vrot.lane.b32.xlu1 %v15942_v34, %s13641_s11 }
 0x3b6   : > { %v5401_v49 = vpop.permute.xlu0 %5400 }
 0x3b7   : > { %v5422_v55 = vrot.slane %v5401_v49, 4 }
 0x3b9   : > { %6256 = vrot.lane.b32.xlu2 %v15913_v17, %s13642_s12  ;;  %v5450_v48 = vsel %vm18431_vm15, %v5421_v28, %v5422_v55  ;;  %vm18435_vm15 = vmmov %vm18427_vm11 }
 0x3ba   : > { %v5451_v58 = vsel %vm18426_vm3, %v5399_v27, %v5450_v48 }
 0x3bb   : > { %5576 = vrot.lane.b32.xlu0 %v15898_v50, %s13642_s12  ;;  %5486 = vst [vmem:[#allocation4 + $0xa0] sm:$0xff] %v5451_v58 }
 0x3bc   : > { %5904 = vrot.lane.b32.xlu1 %v15760_v13, %s13642_s12 }
 0x3c1   : > { %5734 = vrot.lane.b32.xlu2 %v15929_v43, %s13641_s11 }
 0x3c3   : > { %6074 = vrot.lane.b32.xlu0 %v15923_v16, %s13641_s11 }
 0x3c4   : > { %6260 = vrot.lane.b32.xlu1 %v15951_v30, %s13642_s12 }
 0x3c9   : > { %5562 = vrot.lane.b32.xlu2 %v15872_v9, %s13642_s12 }
 0x3cb   : > { %6238 = vrot.lane.b32.xlu0 %v15859_v46, %s13642_s12 }
 0x3cc   : > { %5564 = vrot.lane.b32.xlu1 %v15874_v31, %s13642_s12 }
 0x3d1   : > { %5922 = vrot.lane.b32.xlu2 %v15942_v34, %s13642_s12 }
 0x3d3   : > { %6258 = vrot.lane.b32.xlu0 %v15929_v43, %s13642_s12  ;;  %v5405_v50 = vpop.permute.xlu2 %5404 }
 0x3d4   : > { %6078 = vrot.lane.b32.xlu1 %v15960_v47, %s13641_s11  ;;  %v5424_v17 = vrot.slane %v5405_v50, 4 }
 0x3d6   : > { %v5403_v46 = vpop.permute.xlu1 %5402 }
 0x3d7   : > { %v5423_v16 = vrot.slane %v5403_v46, 4 }
 0x3d9   : > { %5718 = vrot.lane.b32.xlu2 %v15874_v31, %s13641_s11  ;;  %v5452_v34 = vsel %vm18427_vm11, %v5422_v55, %v5423_v16  ;;  %v5454_v10 = vsel %vm18432_vm14, %v5423_v16, %v5424_v17  ;;  %vm18436_vm14 = vmmov %vm18427_vm11 }
 0x3da   : > { %v5453_v39 = vsel %vm18433_vm6, %v5401_v49, %v5452_v34  ;;  %v5455_v33 = vsel %vm18434_vm7, %v5403_v46, %v5454_v10  ;;  %vm18437_vm6 = vmmov %vm18426_vm3  ;;  %vm18438_vm7 = vcmask 1039360  }
 0x3db   : > { %6058 = vrot.lane.b32.xlu0 %v15760_v13, %s13641_s11  ;;  %v16123_v9 = vpop.permute.xlu2 %6052  ;;  %5487 = vst [vmem:[#allocation4 + $0xa8] sm:$0xff] %v5453_v39 }
 0x3dc   : > { %5488 = vst [vmem:[#allocation4 + $0xb0] sm:$0xff] %v5455_v33  ;;  %6244 = vrot.lane.b32.xlu1 %v6205_v36, %s13642_s12  ;;  %v6088_v46 = vrot.slane %v16123_v9, 4  ;;  %v5868_v33 = vld [vmem:[#allocation2 + $0x38] sm:$0xff] }
 0x3de   : > { %v5559_v13 = vpop.permute.xlu1 %5558 }
 0x3df   : > { %v5594_v53 = vrot.slane %v5559_v13, 4 }
 0x3e1   : > { %5582 = vrot.lane.b32.xlu2 %v15951_v30, %s13642_s12 }
 0x3e3   : > { %5580 = vrot.lane.b32.xlu0 %v15929_v43, %s13642_s12  ;;  %v16134_v24 = vpop.permute.xlu2 %6072 }
 0x3e4   : > { %5738 = vrot.lane.b32.xlu1 %v15967_v56, %s13641_s11  ;;  %v6098_v5 = vrot.slane %v16134_v24, 4 }
 0x3e6   : > { %v6071_v51 = vpop.permute.xlu1 %6070 }
 0x3e7   : > { %v6097_v29 = vrot.slane %v6071_v51, 4 }
 0x3e9   : > { %5906 = vrot.lane.b32.xlu2 %v15816_v59, %s13642_s12  ;;  %v6122_v43 = vsel %vm18435_vm15, %v6097_v29, %v6098_v5  ;;  %vm18439_vm15 = vmmov %vm18427_vm11 }
 0x3ea   : > { %v6123_v45 = vsel %vm18426_vm3, %v6071_v51, %v6122_v43 }
 0x3eb   : > { %6242 = vrot.lane.b32.xlu0 %v15874_v31, %s13642_s12  ;;  %v16142_v8 = vpop.permute.xlu2 %5916  ;;  %6162 = vst [vmem:[#allocation4 + $0x680] sm:$0xff] %v6123_v45 }
 0x3ec   : > { %5566 = vrot.lane.b32.xlu1 %v6205_v36, %s13642_s12 }
 0x3ee   : > { %v5901_v31 = vpop.permute.xlu1 %5900 }
 0x3ef   : > { %v5935_v51 = vrot.slane %v5901_v31, 4 }
 0x3f1   : > { %6262 = vrot.lane.b32.xlu2 %v15967_v56, %s13642_s12 }
 0x3f3   : > { %5736 = vrot.lane.b32.xlu0 %v15951_v30, %s13641_s11  ;;  %v16154_v22 = vpop.permute.xlu2 %5714 }
 0x3f4   : > { %5926 = vrot.lane.b32.xlu1 %v15996_v12, %s13642_s12  ;;  %v5749_v25 = vrot.slane %v16154_v22, 4 }
 0x3f6   : > { %v5713_v4 = vpop.permute.xlu1 %5712 }
 0x3f7   : > { %v5748_v27 = vrot.slane %v5713_v4, 4 }
 0x3f9   : > { %6062 = vrot.lane.b32.xlu2 %v15857_v38, %s13641_s11  ;;  %v5766_v28 = vsel %vm18427_vm11, %v5748_v27, %v5749_v25  ;;  %v12117_v27 = vld [vmem:[#allocation4 + $0x680] sm:$0xf0] }
 0x3fa   : > { %v5767_v42 = vsel %vm18437_vm6, %v5713_v4, %v5766_v28  ;;  %vm18441_vm6 = vmmov %vm18426_vm3 }
 0x3fb   : > { %6060 = vrot.lane.b32.xlu0 %v15816_v59, %s13641_s11  ;;  %v16162_v37 = vpop.permute.xlu2 %5560  ;;  %5814 = vst [vmem:[#allocation4 + $0x300] sm:$0xff] %v5767_v42 }
 0x3fc   : > { %v5595_v30 = vrot.slane %v16162_v37, 4  ;;  %5722 = vrot.lane.b32.xlu1 %v16174_v18, %s13641_s11 }
 0x3fe   : > { %v5612_v41 = vsel %vm18436_vm14, %v5594_v53, %v5595_v30  ;;  %v16182_v0 = vpop.permute.xlu1 %5732  ;;  %vm18440_vm14 = vmmov %vm18427_vm11  ;;  %v13326_v53 = vld [vmem:[#allocation4 + $0x67c] sm:$0xf0] }
 0x3ff   : > { %v5613_v59 = vsel %vm18438_vm7, %v5559_v13, %v5612_v41  ;;  %vm18442_vm7 = vmmov %vm18426_vm3 }
 0x400   : > { %5660 = vst [vmem:[#allocation4 + $0x200] sm:$0xff] %v5613_v59 }
 0x401   : > { %5584 = vrot.lane.b32.xlu2 %v15967_v56, %s13642_s12 }
 0x403   : > { %5924 = vrot.lane.b32.xlu0 %v15960_v47, %s13642_s12  ;;  %v16184_v62 = vpop.permute.xlu2 %6056 }
 0x404   : > { %5586 = vrot.lane.b32.xlu1 %v16005_v40, %s13642_s12 }
 0x405   : > { %v5407_v52 = vpop.permute.xlu0 %5406 }
 0x406   : > { %v5425_v49 = vrot.slane %v5407_v52, 4  ;;  %v16193_v47 = vpop.permute.xlu1 %5578 }
 0x408   : > { %v5456_v55 = vsel %vm18439_vm15, %v5424_v17, %v5425_v49  ;;  %v6090_v17 = vrot.slane %v16184_v62, 4  ;;  %vm18443_vm15 = vmmov %vm18427_vm11 }
 0x409   : > { %v5457_v48 = vsel %vm18426_vm3, %v5405_v50, %v5456_v55  ;;  %6246 = vrot.lane.b32.xlu2 %v16174_v18, %s13642_s12  ;;  %vm18444_vm3 = vmmov %vm18427_vm11  ;;  %v5758_v55 = vrot.slane %v16182_v0, 4 }
 0x40a   : > { %5489 = vst [vmem:[#allocation4 + $0xb8] sm:$0xff] %v5457_v48 }
 0x40b   : > { %5720 = vrot.lane.b32.xlu0 %v6205_v36, %s13641_s11  ;;  %v16195_v56 = vpop.permute.xlu2 %5920 }
 0x40c   : > { %5910 = vrot.lane.b32.xlu1 %v5868_v33, %s13642_s12 }
 0x40d   : > { %v6055_v58 = vpop.permute.xlu0 %6054 }
 0x40e   : > { %v6089_v16 = vrot.slane %v6055_v58, 4  ;;  %v16211_v36 = vpop.permute.xlu1 %5902 }
 0x410   : > { %v6106_v50 = vsel %vm18427_vm11, %v6088_v46, %v6089_v16  ;;  %v6108_v34 = vsel %vm18440_vm14, %v6089_v16, %v6090_v17  ;;  %vm18445_vm11 = vcmask 1039360   ;;  %v5943_v46 = vrot.slane %v16142_v8, 4 }
 0x411   : > { %v6107_v10 = vsel %vm18441_vm6, %v16123_v9, %v6106_v50  ;;  %v6109_v39 = vsel %vm18442_vm7, %v6055_v58, %v6108_v34  ;;  %5740 = vrot.lane.b32.xlu2 %v16005_v40, %s13641_s11  ;;  %v5936_v9 = vrot.slane %v16211_v36, 4  ;;  %vm18446_vm14 = vmmov %vm18445_vm11  ;;  %v5945_v16 = vrot.slane %v16195_v56, 4 }
 0x412   : > { %6154 = vst [vmem:[#allocation4 + $0x600] sm:$0xff] %v6107_v10  ;;  %vm18447_vm6 = vmmov %vm18444_vm3 }
 0x413   : > { %6155 = vst [vmem:[#allocation4 + $0x608] sm:$0xff] %v6109_v39  ;;  %6080 = vrot.lane.b32.xlu0 %v15996_v12, %s13641_s11  ;;  %v16213_v13 = vpop.permute.xlu2 %6256  ;;  %v5954_v45 = vsel %vm18443_vm15, %v5935_v51, %v5936_v9  ;;  %vm18448_vm7 = vmmov %vm18444_vm3 }
 0x414   : > { %v5955_v28 = vsel %vm18445_vm11, %v5901_v31, %v5954_v45  ;;  %6266 = vrot.lane.b32.xlu1 %v16025_v44, %s13642_s12  ;;  %vm18449_vm15 = vmmov %vm18444_vm3 }
 0x415   : > { %v5899_v29 = vpop.permute.xlu0 %5898  ;;  %6001 = vst [vmem:[#allocation4 + $0x508] sm:$0xff] %v5955_v28 }
 0x416   : > { %v5934_v43 = vrot.slane %v5899_v29, 4  ;;  %v16227_v49 = vpop.permute.xlu1 %6240 }
 0x418   : > { %v5952_v4 = vsel %vm18444_vm3, %v5934_v43, %v5935_v51  ;;  %vm18450_vm3 = vcmask 7168  }
 0x419   : > { %v5953_v12 = vsel %vm18446_vm14, %v5899_v29, %v5952_v4  ;;  %v12115_v41 = vld [vmem:[#allocation4 + $0x600] sm:$0xf]  ;;  %v13318_v42 = vld [vmem:[#allocation4 + $0x604] sm:$0xf]  ;;  %6064 = vrot.lane.b32.xlu2 %v5868_v33, %s13641_s11  ;;  %vm18451_vm14 = vmmov %vm18445_vm11 }
 0x41a   : > { %6000 = vst [vmem:[#allocation4 + $0x500] sm:$0xff] %v5953_v12  ;;  %v12116_v59 = vor.u32 %v13326_v53, %v12115_v41  ;;  %v12120_v52 = vor.u32 %v13318_v42, %v12117_v27  ;;  %v16245_v29 = vld [vmem:[#allocation2 + $0x40] sm:$0xff] }
 0x41b   : > { %5908 = vrot.lane.b32.xlu0 %v15857_v38, %s13642_s12  ;;  %v16229_v31 = vpop.permute.xlu2 %5734 }
 0x41c   : > { %7247 = vmatpush.bf16.msra.mxu2 %v12116_v59  ;;  %7275 = vmatpush.bf16.msra.mxu0 %v12120_v52  ;;  %v5759_v58 = vrot.slane %v16229_v31, 4 }
 0x41d   : > { %v5919_v48 = vpop.permute.xlu0 %5918  ;;  %6066 = vrot.lane.b32.xlu1 %v16245_v29, %s13641_s11 }
 0x41e   : > { %v5944_v50 = vrot.slane %v5919_v48, 4  ;;  %v5784_v38 = vsel %vm18447_vm6, %v5758_v55, %v5759_v58 }
 0x41f   : > { %v5785_v39 = vsel %vm18450_vm3, %v16182_v0, %v5784_v38  ;;  %v16253_v0 = vpop.permute.xlu1 %5716 }
 0x420   : > { %v5968_v34 = vsel %vm18448_vm7, %v5943_v46, %v5944_v50  ;;  %v5970_v10 = vsel %vm18449_vm15, %v5944_v50, %v5945_v16  ;;  %5823 = vst [vmem:[#allocation4 + $0x388] sm:$0xff] %v5785_v39  ;;  %v5750_v45 = vrot.slane %v16253_v0, 4  ;;  %vm18452_vm7 = vmmov %vm18447_vm6  ;;  %v16275_v46 = vld [vmem:[#allocation2 + $0x34] sm:$0xff]  ;;  %v13286_v39 = vld [vmem:[#allocation4 + $0x404] sm:$0xf] }
 0x421   : > { %v5969_v33 = vsel %vm18445_vm11, %v16142_v8, %v5968_v34  ;;  %v5971_v51 = vsel %vm18451_vm14, %v5919_v48, %v5970_v10  ;;  %5928 = vrot.lane.b32.xlu2 %v16016_v23, %s13642_s12  ;;  %vm18453_vm15 = vmmov %vm18447_vm6  ;;  %v12051_v12 = vld [vmem:[#allocation4 + $0x500] sm:$0xf]  ;;  %v13302_v41 = vld [vmem:[#allocation4 + $0x504] sm:$0xf] }
 0x422   : > { %6008 = vst [vmem:[#allocation4 + $0x580] sm:$0xff] %v5969_v33  ;;  %v5768_v27 = vsel %vm18447_vm6, %v5749_v25, %v5750_v45  ;;  %vm18454_vm14 = vmmov %vm18450_vm3  ;;  %v11987_v10 = vld [vmem:[#allocation4 + $0x400] sm:$0xf] }
 0x423   : > { %6009 = vst [vmem:[#allocation4 + $0x588] sm:$0xff] %v5971_v51  ;;  %6264 = vrot.lane.b32.xlu0 %v16005_v40, %s13642_s12  ;;  %v16255_v43 = vpop.permute.xlu2 %5562  ;;  %v5769_v42 = vsel %vm18450_vm3, %v16154_v22, %v5768_v27  ;;  %v13294_v22 = vld [vmem:[#allocation4 + $0x47c] sm:$0xf0]  ;;  %v5604_v51 = vrot.slane %v16193_v47, 4  ;;  %vm18457_vm3 = vmmov %vm18445_vm11 }
 0x424   : > { %v5596_v4 = vrot.slane %v16255_v43, 4  ;;  %5815 = vst [vmem:[#allocation4 + $0x308] sm:$0xff] %v5769_v42 }
 0x425   : > { %v5731_v8 = vpop.permute.xlu0 %5730  ;;  %5588 = vrot.lane.b32.xlu1 %v16025_v44, %s13642_s12 }
 0x426   : > { %v5757_v53 = vrot.slane %v5731_v8, 4  ;;  %v5614_v40 = vsel %vm18452_vm7, %v5595_v30, %v5596_v4  ;;  %vm18455_vm7 = vmmov %vm18447_vm6 }
 0x427   : > { %v5615_v59 = vsel %vm18445_vm11, %v16162_v37, %v5614_v40  ;;  %v11989_v37 = vld [vmem:[#allocation4 + $0x480] sm:$0xf0] }
 0x428   : > { %v5782_v28 = vsel %vm18453_vm15, %v5757_v53, %v5758_v55  ;;  %5661 = vst [vmem:[#allocation4 + $0x208] sm:$0xff] %v5615_v59  ;;  %v16283_v55 = vpop.permute.xlu1 %6076  ;;  %v11988_v53 = vor.u32 %v13294_v22, %v11987_v10  ;;  %v11992_v27 = vor.u32 %v13286_v39, %v11989_v37  ;;  %vm18456_vm15 = vmmov %vm18445_vm11 }
 0x429   : > { %v5783_v52 = vsel %vm18454_vm14, %v5731_v8, %v5782_v28  ;;  %v13310_v48 = vld [vmem:[#allocation4 + $0x57c] sm:$0xf0]  ;;  %v12053_v25 = vld [vmem:[#allocation4 + $0x580] sm:$0xf0]  ;;  %5724 = vrot.lane.b32.xlu2 %v16275_v46, %s13641_s11  ;;  %v6100_v10 = vrot.slane %v16283_v55, 4  ;;  %vm18458_vm11 = vmmov %vm18447_vm6 }
 0x42a   : > { %5822 = vst [vmem:[#allocation4 + $0x380] sm:$0xff] %v5783_v52  ;;  %v12052_v50 = vor.u32 %v13310_v48, %v12051_v12  ;;  %v12056_v30 = vor.u32 %v13302_v41, %v12053_v25  ;;  %v11923_v28 = vld [vmem:[#allocation4 + $0x300] sm:$0xf]  ;;  %v13270_v12 = vld [vmem:[#allocation4 + $0x304] sm:$0xf]  ;;  %vm18459_vm14 = vmmov %vm18447_vm6 }
 0x42b   : > { %5568 = vrot.lane.b32.xlu0 %v16174_v18, %s13642_s12  ;;  %v16285_v38 = vpop.permute.xlu2 %5922  ;;  %v16298_v48 = vld [vmem:[#allocation2 + $0x3c] sm:$0xff] }
 0x42c   : > { %7248 = vmatpush.bf16.msra.mxu2 %v12052_v50  ;;  %7276 = vmatpush.bf16.msra.mxu0 %v12056_v30  ;;  %v5946_v33 = vrot.slane %v16285_v38, 4 }
 0x42d   : > { %v5577_v34 = vpop.permute.xlu0 %5576  ;;  %6250 = vrot.lane.b32.xlu1 %v16298_v48, %s13642_s12 }
 0x42e   : > { %v5603_v8 = vrot.slane %v5577_v34, 4  ;;  %v5972_v18 = vsel %vm18447_vm6, %v5945_v16, %v5946_v33 }
 0x42f   : > { %v5973_v41 = vsel %vm18456_vm15, %v16195_v56, %v5972_v18  ;;  %v13254_v18 = vld [vmem:[#allocation4 + $0x204] sm:$0xf]  ;;  %vm18461_vm15 = vmmov %vm18457_vm3 }
 0x430   : > { %v5628_v40 = vsel %vm18455_vm7, %v5603_v8, %v5604_v51  ;;  %7249 = vmatpush.bf16.msra.mxu2 %v11988_v53  ;;  %7277 = vmatpush.bf16.msra.mxu0 %v11992_v27  ;;  %6010 = vst [vmem:[#allocation4 + $0x590] sm:$0xff] %v5973_v41  ;;  %v16306_v56 = vpop.permute.xlu1 %5904  ;;  %vm18460_vm7 = vmmov %vm18447_vm6  ;;  %v11859_v27 = vld [vmem:[#allocation4 + $0x200] sm:$0xf] }
 0x431   : > { %v5629_v42 = vsel %vm18457_vm3, %v5577_v34, %v5628_v40  ;;  %v13278_v59 = vld [vmem:[#allocation4 + $0x37c] sm:$0xf0]  ;;  %v11925_v52 = vld [vmem:[#allocation4 + $0x380] sm:$0xf0]  ;;  %6084 = vrot.lane.b32.xlu2 %v16038_v3, %s13641_s11  ;;  %v5937_v22 = vrot.slane %v16306_v56, 4  ;;  %vm18462_vm3 = vcmask 7168  }
 0x432   : > { %5668 = vst [vmem:[#allocation4 + $0x280] sm:$0xff] %v5629_v42  ;;  %v11924_v16 = vor.u32 %v13278_v59, %v11923_v28  ;;  %v11928_v25 = vor.u32 %v13270_v12, %v11925_v52  ;;  %v13246_v59 = vld [vmem:[#allocation4 + $0x17c] sm:$0xf0]  ;;  %v11797_v52 = vld [vmem:[#allocation4 + $0x180] sm:$0xf0] }
 0x433   : > { %6082 = vrot.lane.b32.xlu0 %v16016_v23, %s13641_s11  ;;  %v16308_v50 = vpop.permute.xlu2 %5718  ;;  %v5956_v23 = vsel %vm18458_vm11, %v5936_v9, %v5937_v22  ;;  %vm18463_vm11 = vmmov %vm18462_vm3 }
 0x434   : > { %7250 = vmatpush.bf16.msra.mxu2 %v11924_v16  ;;  %7278 = vmatpush.bf16.msra.mxu0 %v11928_v25  ;;  %v5751_v37 = vrot.slane %v16308_v50, 4  ;;  %v5957_v40 = vsel %vm18461_vm15, %v16211_v36, %v5956_v23  ;;  %v6033_v36 = vld [vmem:[#allocation2 + $0x98] sm:$0xf]  ;;  %v13238_v23 = vld [vmem:[#allocation4 + $0x104] sm:$0xf] }
 0x435   : > { %v6075_v30 = vpop.permute.xlu0 %6074  ;;  %6002 = vst [vmem:[#allocation4 + $0x510] sm:$0xff] %v5957_v40  ;;  %5744 = vrot.lane.b32.xlu1 %v16051_v63, %s13641_s11 }
 0x436   : > { %v6099_v34 = vrot.slane %v6075_v30, 4  ;;  %v5770_v39 = vsel %vm18459_vm14, %v5750_v45, %v5751_v37  ;;  %vm18464_vm14 = vmmov %vm18462_vm3 }
 0x438   : > { %v6124_v8 = vsel %vm18447_vm6, %v6098_v5, %v6099_v34  ;;  %v6126_v53 = vsel %vm18460_vm7, %v6099_v34, %v6100_v10  ;;  %v5771_v5 = vsel %vm18464_vm14, %v16253_v0, %v5770_v39  ;;  %v11795_v0 = vld [vmem:[#allocation4 + $0x100] sm:$0xf]  ;;  %v16342_v16 = vpop.permute.xlu1 %6260  ;;  %v6275_v39 = vrot.slane %v16227_v49, 4  ;;  %vm18465_vm7 = vmmov %vm18461_vm15 }
 0x439   : > { %v6125_v9 = vsel %vm18462_vm3, %v16134_v24, %v6124_v8  ;;  %v6127_v28 = vsel %vm18463_vm11, %v6075_v30, %v6126_v53  ;;  %v13262_v12 = vld [vmem:[#allocation4 + $0x27c] sm:$0xf0]  ;;  %v11861_v45 = vld [vmem:[#allocation4 + $0x280] sm:$0xf0]  ;;  %5912 = vrot.lane.b32.xlu2 %v16245_v29, %s13642_s12  ;;  %v6024_v24 = vld [vmem:[#allocation2 + $0x48] sm:$0xf]  ;;  %v11796_v34 = vor.u32 %v13246_v59, %v11795_v0  ;;  %v11800_v8 = vor.u32 %v13238_v23, %v11797_v52 }
 0x43a   : > { %6163 = vst [vmem:[#allocation4 + $0x688] sm:$0xff] %v6125_v9  ;;  %v11860_v41 = vor.u32 %v13262_v12, %v11859_v27  ;;  %v11864_v42 = vor.u32 %v13254_v18, %v11861_v45  ;;  %v13528_v53 = vpack.i.bf16 %v6033_v36, %v6024_v24  ;;  %v13230_v27 = vld [vmem:[#allocation4 + $0x7c] sm:$0xf0]  ;;  %v11733_v18 = vld [vmem:[#allocation4 + $0x80] sm:$0xf0]  ;;  %vm18466_vm15 = vmmov %vm18447_vm6 }
 0x43b   : > { %6164 = vst [vmem:[#allocation4 + $0x690] sm:$0xff] %v6127_v28  ;;  %6248 = vrot.lane.b32.xlu0 %v16275_v46, %s13642_s12  ;;  %v16344_v25 = vpop.permute.xlu2 %5582  ;;  %v11723_v9 = vld [vmem:[%s18279_s4] sm:$0xf]  ;;  %v13221_v28 = vld [vmem:[%s18279_s4 + $0x4] sm:$0xf0]  ;;  %vm18467_vm3 = vmmov %vm18447_vm6 }
 0x43c   : > { %7251 = vmatpush.bf16.msra.mxu2 %v11860_v41  ;;  %7279 = vmatpush.bf16.msra.mxu0 %v11864_v42  ;;  %5816 = vst [vmem:[#allocation4 + $0x310] sm:$0xff] %v5771_v5  ;;  %v11731_v45 = vld [vmem:[#allocation4] sm:$0xf]  ;;  %v13222_v5 = vld [vmem:[#allocation4 + $0x4] sm:$0xf]  ;;  %v16362_v59 = vor.u32 %v13221_v28, %v11723_v9  ;;  %vm18468_vm11 = vmmov %vm18467_vm3 }
 0x43d   : > { %v6239_v30 = vpop.permute.xlu0 %6238  ;;  %v11732_v41 = vor.u32 %v13230_v27, %v11731_v45  ;;  %v11736_v42 = vor.u32 %v13222_v5, %v11733_v18  ;;  %13529 = vrot.lane.b32.xlu1 %v13528_v53, %s13641_s11  ;;  %vm18469_vm14 = vmmov %vm18467_vm3  ;;  %v5879_v9 = vld [vmem:[#allocation2 + $0x98] sm:$0xf] }
 0x43e   : > { %v6274_v29 = vrot.slane %v6239_v30, 4 }
 0x440   : > { %v6292_v40 = vsel %vm18447_vm6, %v6274_v29, %v6275_v39  ;;  %7252 = vmatpush.bf16.msra.mxu2 %v11796_v34  ;;  %7280 = vmatpush.bf16.msra.mxu0 %v11800_v8  ;;  %v16364_v52 = vpop.permute.xlu1 %5564  ;;  %v6283_v34 = vrot.slane %v16213_v13, 4  ;;  %v6285_v29 = vrot.slane %v16342_v16, 4  ;;  %vm18470_vm6 = vmmov %vm18465_vm7 }
 0x441   : > { %v6293_v12 = vsel %vm18465_vm7, %v6239_v30, %v6292_v40  ;;  %6268 = vrot.lane.b32.xlu2 %v16051_v63, %s13642_s12  ;;  %v5597_v0 = vrot.slane %v16364_v52, 4  ;;  %vm18471_vm7 = vmmov %vm18470_vm6 }
 0x442   : > { %6340 = vst [vmem:[#allocation4 + $0x800] sm:$0xff] %v6293_v12  ;;  %vm18473_vm4 = vmmov %vm18470_vm6 }
 0x443   : > { %5742 = vrot.lane.b32.xlu0 %v16025_v44, %s13641_s11  ;;  %v16366_v24 = vpop.permute.xlu2 %5906  ;;  %v5616_v44 = vsel %vm18466_vm15, %v5596_v4, %v5597_v0  ;;  %vm18472_vm15 = vmmov %vm18470_vm6 }
 0x444   : > { %7253 = vmatpush.bf16.msra.mxu2 %v11732_v41  ;;  %7281 = vmatpush.bf16.msra.mxu0 %v11736_v42  ;;  %v5938_v30 = vrot.slane %v16366_v24, 4  ;;  %v5617_v18 = vsel %vm18470_vm6, %v16255_v43, %v5616_v44  ;;  %v5870_v43 = vld [vmem:[#allocation2 + $0x48] sm:$0xf]  ;;  %v12189_v42 = vld [vmem:[#allocation4 + $0x788] sm:$0xf0] }
 0x445   : > { %v6259_v36 = vpop.permute.xlu0 %6258  ;;  %5662 = vst [vmem:[#allocation4 + $0x210] sm:$0xff] %v5617_v18  ;;  %6270 = vrot.lane.b32.xlu1 %v16053_v54, %s13642_s12  ;;  %v13533_v5 = vpack.i.bf16 %v5879_v9, %v5870_v43  ;;  %v13343_v41 = vld [vmem:[#allocation4 + $0x784] sm:$0xf0]  ;;  %v13335_v9 = vld [vmem:[#allocation4 + $0x70c] sm:$0xf] }
 0x446   : > { %v6284_v23 = vrot.slane %v6259_v36, 4  ;;  %v5958_v8 = vsel %vm18467_vm3, %v5937_v22, %v5938_v30  ;;  %v12187_v43 = vld [vmem:[#allocation4 + $0x708] sm:$0xf] }
 0x447   : > { %7254 = vmatmul.bf16.vlgmr.msra.gmra.mxu2 %v16362_v59  ;;  %7282 = vmatmul.bf16.vlgmr.msra.gmra.mxu0 %v16362_v59  ;;  %v5959_v22 = vsel %vm18473_vm4, %v16306_v56, %v5958_v8  ;;  %vm18474_vm4 = vmmov %vm18467_vm3 }
 0x448   : > { %v6308_v53 = vsel %vm18468_vm11, %v6283_v34, %v6284_v23  ;;  %v6310_v27 = vsel %vm18469_vm14, %v6284_v23, %v6285_v29  ;;  %6003 = vst [vmem:[#allocation4 + $0x518] sm:$0xff] %v5959_v22  ;;  %v5530_v34 = vld [vmem:[#allocation2 + $0x44] sm:$0xf]  ;;  %v13220_v23 = vld [vmem:[%s18279_s4 + $0x4] sm:$0xf]  ;;  %vm18475_vm11 = vmmov %vm18467_vm3  ;;  %vm18476_vm14 = vcmask 7168  }
 0x449   : > { %v6309_v4 = vsel %vm18471_vm7, %v16213_v13, %v6308_v53  ;;  %v6311_v40 = vsel %vm18472_vm15, %v6259_v36, %v6310_v27  ;;  %5572 = vrot.lane.b32.xlu2 %v16298_v48, %s13642_s12  ;;  %v16399_v13 = vpop.permute.xlu1 %6078  ;;  %v12243_v8 = vld [vmem:[#allocation4 + $0x800] sm:$0xf]  ;;  %v13350_v53 = vld [vmem:[#allocation4 + $0x804] sm:$0xf]  ;;  %vm18477_vm7 = vmmov %vm18476_vm14  ;;  %vm18478_vm15 = vcmask 130048  }
 0x44a   : > { %6348 = vst [vmem:[#allocation4 + $0x880] sm:$0xff] %v6309_v4  ;;  %v6101_v56 = vrot.slane %v16399_v13, 4 }
 0x44b   : > { %6349 = vst [vmem:[#allocation4 + $0x888] sm:$0xff] %v6311_v40  ;;  %5570 = vrot.lane.b32.xlu0 %v16275_v46, %s13642_s12  ;;  %v16401_v28 = vpop.permute.xlu2 %6262 }
 0x44c   : > { %v6286_v54 = vrot.slane %v16401_v28, 4  ;;  %v6128_v46 = vsel %vm18474_vm4, %v6100_v10, %v6101_v56  ;;  %vm18479_vm4 = vmmov %vm18478_vm15 }
 0x44d   : > { %v16403_v12 = vpop.permute.xlu0 %6058  ;;  %v6129_v10 = vsel %vm18476_vm14, %v16283_v55, %v6128_v46  ;;  %5574 = vrot.lane.b32.xlu1 %v5530_v34, %s13642_s12  ;;  %v12188_v55 = vor.u32 %v13343_v41, %v12187_v43  ;;  %v13319_v41 = vld [vmem:[#allocation4 + $0x60c] sm:$0xf]  ;;  %vm18481_vm14 = vmmov %vm18470_vm6  ;;  %v12059_v43 = vld [vmem:[#allocation4 + $0x508] sm:$0xf] }
 0x44e   : > { %v6091_v45 = vrot.slane %v16403_v12, 4  ;;  %v6312_v36 = vsel %vm18467_vm3, %v6285_v29, %v6286_v54  ;;  %v11725_v29 = vld [vmem:[%s18279_s4 + $0x8] sm:$0xf0]  ;;  %6165 = vst [vmem:[#allocation4 + $0x698] sm:$0xff] %v6129_v10 }
 0x44f   : > { %v6313_v27 = vsel %vm18470_vm6, %v16342_v16, %v6312_v36  ;;  %v12192_v16 = vor.u32 %v13335_v9, %v12189_v42  ;;  %v16437_v46 = vor.u32 %v13220_v23, %v11725_v29  ;;  %v12125_v36 = vld [vmem:[#allocation4 + $0x688] sm:$0xf0]  ;;  %v6502_v23 = vld [vmem:[%s18280_s5] sm:$0xff] }
 0x450   : > { %v6110_v44 = vsel %vm18475_vm11, %v6090_v17, %v6091_v45  ;;  %6350 = vst [vmem:[#allocation4 + $0x890] sm:$0xff] %v6313_v27  ;;  %v12128_v10 = vor.u32 %v13319_v41, %v12125_v36  ;;  %vm18480_vm11 = vmmov %vm18467_vm3  ;;  %v13303_v9 = vld [vmem:[#allocation4 + $0x50c] sm:$0xf] }
 0x451   : > { %v6111_v18 = vsel %vm18477_vm7, %v16184_v62, %v6110_v44  ;;  %v13358_v4 = vld [vmem:[#allocation4 + $0x87c] sm:$0xf0]  ;;  %v12245_v40 = vld [vmem:[#allocation4 + $0x880] sm:$0xf0]  ;;  %13534 = vrot.lane.b32.xlu2 %v13533_v5, %s13642_s12  ;;  %v13327_v62 = vld [vmem:[#allocation4 + $0x684] sm:$0xf0]  ;;  %v16439_v44 = vpop.permute.xlu1 %6244 }
 0x452   : > { %6156 = vst [vmem:[#allocation4 + $0x610] sm:$0xff] %v6111_v18  ;;  %v12244_v17 = vor.u32 %v13358_v4, %v12243_v8  ;;  %v12248_v22 = vor.u32 %v13350_v53, %v12245_v40  ;;  %v5606_v5 = vrot.slane %v16344_v25, 4  ;;  %v13311_v18 = vld [vmem:[#allocation4 + $0x584] sm:$0xf0]  ;;  %v12061_v4 = vld [vmem:[#allocation4 + $0x588] sm:$0xf0]  ;;  %vm18482_vm7 = vmmov %vm18467_vm3 }
 0x453   : > { %5930 = vrot.lane.b32.xlu0 %v16038_v3, %s13642_s12  ;;  %v16441_v8 = vpop.permute.xlu2 %6062  ;;  %v12123_v3 = vld [vmem:[#allocation4 + $0x608] sm:$0xf]  ;;  %v6277_v41 = vrot.slane %v16439_v44, 4 }
 0x454   : > { %7267 = vmatpush.bf16.msra.mxu3 %v12244_v17  ;;  %7295 = vmatpush.bf16.msra.mxu1 %v12248_v22  ;;  %v12124_v42 = vor.u32 %v13327_v62, %v12123_v3  ;;  %v5684_v22 = vld [vmem:[#allocation2 + $0x44] sm:$0xf]  ;;  %v11997_v62 = vld [vmem:[#allocation4 + $0x488] sm:$0xf0] }
 0x455   : > { %v5581_v53 = vpop.permute.xlu0 %5580  ;;  %6506 = vperm.xlu1 %13543, %v6502_v23  }
 0x456   : > { %v5605_v34 = vrot.slane %v5581_v53, 4 }
 0x457   : > { %12305 = vmatmul.msk.bf16.vlgmr.msra.gmra.mxu3 %vm18478_vm15, %v16437_v46  ;;  %12306 = vmatmul.msk.bf16.vlgmr.msra.gmra.mxu1 %vm18479_vm4, %v16437_v46  ;;  %vm18483_vm15 = vmmov %vm18467_vm3 }
 0x458   : > { %7302 = vmatpush.bf16.msrb.mxu3 %v12188_v55  ;;  %7330 = vmatpush.bf16.msrb.mxu1 %v12192_v16  ;;  %v5630_v27 = vsel %vm18467_vm3, %v5604_v51, %v5605_v34  ;;  %v5632_v29 = vsel %vm18480_vm11, %v5605_v34, %v5606_v5  ;;  %v12060_v51 = vor.u32 %v13311_v18, %v12059_v43  ;;  %v13295_v16 = vld [vmem:[#allocation4 + $0x484] sm:$0xf0]  ;;  %vm18484_vm4 = vmmov %vm18467_vm3 }
 0x459   : > { %v5631_v40 = vsel %vm18481_vm14, %v16193_v47, %v5630_v27  ;;  %v5633_v17 = vsel %vm18470_vm6, %v5581_v53, %v5632_v29  ;;  %5728 = vrot.lane.b32.xlu2 %v5684_v22, %s13641_s11  ;;  %v12064_v55 = vor.u32 %v13303_v9, %v12061_v4  ;;  %v16461_v47 = vpop.permute.xlu1 %5738  ;;  %v11931_v4 = vld [vmem:[#allocation4 + $0x308] sm:$0xf]  ;;  %vm18485_vm3 = vmmov %vm18470_vm6 }
 0x45a   : > { %5669 = vst [vmem:[#allocation4 + $0x288] sm:$0xff] %v5631_v40  ;;  %v13271_v40 = vld [vmem:[#allocation4 + $0x30c] sm:$0xf]  ;;  %vm18486_vm11 = vmmov %vm18485_vm3  ;;  %v13279_v9 = vld [vmem:[#allocation4 + $0x384] sm:$0xf0] }
 0x45b   : > { %5670 = vst [vmem:[#allocation4 + $0x290] sm:$0xff] %v5633_v17  ;;  %5726 = vrot.lane.b32.xlu0 %v16298_v48, %s13641_s11  ;;  %v16463_v36 = vpop.permute.xlu2 %5584  ;;  %vm18487_vm14 = vmmov %vm18485_vm3 }
 0x45c   : > { %7303 = vmatpush.bf16.msrb.mxu3 %v12124_v42  ;;  %7331 = vmatpush.bf16.msrb.mxu1 %v12128_v10  ;;  %v5607_v34 = vrot.slane %v16463_v36, 4  ;;  %v11995_v42 = vld [vmem:[#allocation4 + $0x408] sm:$0xf]  ;;  %v13287_v10 = vld [vmem:[#allocation4 + $0x40c] sm:$0xf]  ;;  %vm18488_vm6 = vmmov %vm18484_vm4 }
 0x45d   : > { %v6243_v53 = vpop.permute.xlu0 %6242  ;;  %v11996_v23 = vor.u32 %v13295_v16, %v11995_v42  ;;  %v12000_v48 = vor.u32 %v13287_v10, %v11997_v62 }
 0x45e   : > { %v6276_v3 = vrot.slane %v6243_v53, 4  ;;  %v5634_v27 = vsel %vm18482_vm7, %v5606_v5, %v5607_v34  ;;  %v5539_v5 = vld [vmem:[#allocation2 + $0x94] sm:$0xf]  ;;  %vm18489_vm7 = vmmov %vm18484_vm4 }
 0x45f   : > { %v5635_v17 = vsel %vm18485_vm3, %v16344_v25, %v5634_v27 }
 0x460   : > { %7304 = vmatpush.bf16.msrb.mxu3 %v12060_v51  ;;  %7332 = vmatpush.bf16.msrb.mxu1 %v12064_v55  ;;  %v6294_v29 = vsel %vm18483_vm15, %v6275_v39, %v6276_v3  ;;  %v6296_v18 = vsel %vm18484_vm4, %v6276_v3, %v6277_v41  ;;  %5671 = vst [vmem:[#allocation4 + $0x298] sm:$0xff] %v5635_v17  ;;  %v11933_v51 = vld [vmem:[#allocation4 + $0x388] sm:$0xf0]  ;;  %v13344_v17 = vld [vmem:[#allocation4 + $0x78c] sm:$0xf0]  ;;  %vm18490_vm15 = vmmov %vm18484_vm4 }
 0x461   : > { %v6295_v22 = vsel %vm18486_vm11, %v16227_v49, %v6294_v29  ;;  %v6297_v43 = vsel %vm18487_vm14, %v6243_v53, %v6296_v18  ;;  %5592 = vrot.lane.b32.xlu2 %v5539_v5, %s13642_s12  ;;  %v11932_v39 = vor.u32 %v13279_v9, %v11931_v4  ;;  %v11936_v25 = vor.u32 %v13271_v40, %v11933_v51  ;;  %v13263_v55 = vld [vmem:[#allocation4 + $0x284] sm:$0xf0]  ;;  %v11869_v16 = vld [vmem:[#allocation4 + $0x288] sm:$0xf0]  ;;  %v16482_v49 = vpop.permute.xlu1 %5566 }
 0x462   : > { %6341 = vst [vmem:[#allocation4 + $0x808] sm:$0xff] %v6295_v22  ;;  %v18316_v3 = vrot.slane %v16482_v49, 4  ;;  %v13247_v4 = vld [vmem:[#allocation4 + $0x184] sm:$0xf0]  ;;  %v11805_v40 = vld [vmem:[#allocation4 + $0x188] sm:$0xf0] }
 0x463   : > { %6342 = vst [vmem:[#allocation4 + $0x810] sm:$0xff] %v6297_v43  ;;  %5590 = vrot.lane.b32.xlu0 %v16051_v63, %s13642_s12  ;;  %v16484_v62 = vpop.permute.xlu2 %6246  ;;  %v13255_v63 = vld [vmem:[#allocation4 + $0x20c] sm:$0xf]  ;;  %v13359_v9 = vld [vmem:[#allocation4 + $0x884] sm:$0xf0]  ;;  %vm18491_vm11 = vcmask 7168  }
 0x464   : > { %7305 = vmatpush.bf16.msrb.mxu3 %v11996_v23  ;;  %7333 = vmatpush.bf16.msrb.mxu1 %v12000_v48  ;;  %v18315_v42 = vrot.slane %v16484_v62, 4  ;;  %v5761_v23 = vrot.slane %v16461_v47, 4  ;;  %v11867_v48 = vld [vmem:[#allocation4 + $0x208] sm:$0xf]  ;;  %v11872_v29 = vor.u32 %v13255_v63, %v11869_v16  ;;  %v5618_v18 = vsel %vm18488_vm6, %v5597_v0, %v18316_v3  ;;  %v12253_v51 = vld [vmem:[#allocation4 + $0x888] sm:$0xf0]  ;;  %vm18492_vm14 = vmmov %vm18491_vm11 }
 0x465   : > { %v5737_v53 = vpop.permute.xlu0 %5736  ;;  %v11868_v27 = vor.u32 %v13263_v55, %v11867_v48  ;;  %v5619_v0 = vsel %vm18485_vm3, %v16364_v52, %v5618_v18  ;;  %v12197_v55 = vld [vmem:[#allocation4 + $0x790] sm:$0xf0]  ;;  %vm18493_vm6 = vmmov %vm18485_vm3  ;;  %v12195_v18 = vld [vmem:[#allocation4 + $0x710] sm:$0xf] }
 0x466   : > { %v5760_v10 = vrot.slane %v5737_v53, 4  ;;  %v6298_v22 = vsel %vm18489_vm7, %v6277_v41, %v18315_v42  ;;  %5663 = vst [vmem:[#allocation4 + $0x218] sm:$0xff] %v5619_v0  ;;  %v13336_v3 = vld [vmem:[#allocation4 + $0x714] sm:$0xf]  ;;  %v11741_v0 = vld [vmem:[#allocation4 + $0x88] sm:$0xf0]  ;;  %vm18496_vm3 = vmmov %vm18484_vm4 }
 0x467   : > { %vm18494_vm7 = vcmask 130048  }
 0x468   : > { %7306 = vmatpush.bf16.msrb.mxu3 %v11932_v39  ;;  %7334 = vmatpush.bf16.msrb.mxu1 %v11936_v25  ;;  %v5786_v43 = vsel %vm18490_vm15, %v5759_v58, %v5760_v10  ;;  %v5788_v5 = vsel %vm18484_vm4, %v5760_v10, %v5761_v23  ;;  %v11803_v39 = vld [vmem:[#allocation4 + $0x108] sm:$0xf]  ;;  %v13239_v25 = vld [vmem:[#allocation4 + $0x10c] sm:$0xf]  ;;  %v6299_v10 = vsel %vm18493_vm6, %v16439_v44, %v6298_v22  ;;  %vm18495_vm15 = vmmov %vm18494_vm7 }
 0x469   : > { %v5787_v16 = vsel %vm18491_vm11, %v16229_v31, %v5786_v43  ;;  %v5789_v41 = vsel %vm18492_vm14, %v5737_v53, %v5788_v5  ;;  %v6209_v58 = vld [vmem:[#allocation2 + $0x44] sm:$0xff]  ;;  %v13351_v63 = vld [vmem:[#allocation4 + $0x80c] sm:$0xf]  ;;  %v11804_v53 = vor.u32 %v13247_v4, %v11803_v39  ;;  %v12196_v44 = vor.u32 %v13344_v17, %v12195_v18  ;;  %6343 = vst [vmem:[#allocation4 + $0x818] sm:$0xff] %v6299_v10  ;;  %v13328_v4 = vld [vmem:[#allocation4 + $0x68c] sm:$0xf0] }
 0x46a   : > { %v12251_v48 = vld [vmem:[#allocation4 + $0x808] sm:$0xf]  ;;  %5824 = vst [vmem:[#allocation4 + $0x390] sm:$0xff] %v5787_v16  ;;  %v12256_v52 = vor.u32 %v13351_v63, %v12253_v51  ;;  %v6503_v31 = vld [vmem:[%s18280_s5 + $0x8] sm:$0xff]  ;;  %v13223_v5 = vld [vmem:[#allocation4 + $0xc] sm:$0xf]  ;;  %v12200_v22 = vor.u32 %v13336_v3, %v12197_v55  ;;  %v16514_v16 = vpop.permute.xlu1 %5926 }
 0x46b   : > { %v12252_v42 = vor.u32 %v13359_v9, %v12251_v48  ;;  %5825 = vst [vmem:[#allocation4 + $0x398] sm:$0xff] %v5789_v41  ;;  %6252 = vrot.lane.b32.xlu0 %v6209_v58, %s13642_s12  ;;  %v13231_v43 = vld [vmem:[#allocation4 + $0x84] sm:$0xf0]  ;;  %6511 = vperm.xlu2 %13544, %v6503_v31   ;;  %v12131_v9 = vld [vmem:[#allocation4 + $0x610] sm:$0xf]  ;;  %v16516_v48 = vpop.permute.xlu2 %5740  ;;  %v11744_v17 = vor.u32 %v13223_v5, %v11741_v0  ;;  %vm18497_vm11 = vmmov %vm18496_vm3 }
 0x46c   : > { %7307 = vmatpush.bf16.msrb.mxu3 %v11868_v27  ;;  %7335 = vmatpush.bf16.msrb.mxu1 %v11872_v29  ;;  %v11808_v27 = vor.u32 %v13239_v25, %v11805_v40  ;;  %v11739_v29 = vld [vmem:[#allocation4 + $0x8] sm:$0xf]  ;;  %v13320_v51 = vld [vmem:[#allocation4 + $0x614] sm:$0xf]  ;;  %v12259_v40 = vld [vmem:[#allocation4 + $0x810] sm:$0xf]  ;;  %v12132_v63 = vor.u32 %v13328_v4, %v12131_v9 }
 0x46d   : > { %7323 = vmatpush.bf16.msrb.mxu2 %v12252_v42  ;;  %7351 = vmatpush.bf16.msrb.mxu0 %v12256_v52  ;;  %v6061_v41 = vpop.permute.xlu0 %6060  ;;  %v5762_v39 = vrot.slane %v16516_v48, 4  ;;  %v6093_v25 = vrot.slane %v16441_v8, 4  ;;  %v11740_v3 = vor.u32 %v13231_v43, %v11739_v29  ;;  %v12133_v55 = vld [vmem:[#allocation4 + $0x690] sm:$0xf0]  ;;  %v13360_v52 = vld [vmem:[#allocation4 + $0x88c] sm:$0xf0]  ;;  %vm18498_vm6 = vmmov %vm18492_vm14 }
 0x46e   : > { %v6092_v42 = vrot.slane %v6061_v41, 4  ;;  %v13352_v58 = vld [vmem:[#allocation4 + $0x814] sm:$0xf]  ;;  %v12136_v10 = vor.u32 %v13320_v51, %v12133_v55  ;;  %v12203_v43 = vld [vmem:[#allocation4 + $0x718] sm:$0xf] }
 0x46f   : > { %v5790_v18 = vsel %vm18484_vm4, %v5761_v23, %v5762_v39  ;;  %v12261_v29 = vld [vmem:[#allocation4 + $0x890] sm:$0xf0]  ;;  %v13345_v5 = vld [vmem:[#allocation4 + $0x794] sm:$0xf0]  ;;  %v12205_v4 = vld [vmem:[#allocation4 + $0x798] sm:$0xf0] }
 0x470   : > { %7308 = vmatpush.bf16.msrb.mxu3 %v11804_v53  ;;  %7336 = vmatpush.bf16.msrb.mxu1 %v11808_v27  ;;  %v6112_v31 = vsel %vm18496_vm3, %v6091_v45, %v6092_v42  ;;  %v6114_v53 = vsel %vm18497_vm11, %v6092_v42, %v6093_v25  ;;  %v12260_v27 = vor.u32 %v13360_v52, %v12259_v40  ;;  %v12067_v45 = vld [vmem:[#allocation4 + $0x510] sm:$0xf]  ;;  %v13304_v9 = vld [vmem:[#allocation4 + $0x514] sm:$0xf]  ;;  %vm18501_vm4 = vmmov %vm18496_vm3 }
 0x471   : > { %7358 = vmatpush.bf16.msra.mxu2 %v12196_v44  ;;  %7386 = vmatpush.bf16.msra.mxu0 %v12200_v22  ;;  %v5791_v0 = vsel %vm18492_vm14, %v16461_v47, %v5790_v18  ;;  %v6113_v44 = vsel %vm18498_vm6, %v16403_v12, %v6112_v31  ;;  %v12264_v22 = vor.u32 %v13352_v58, %v12261_v29  ;;  %v5693_v51 = vld [vmem:[#allocation2 + $0x94] sm:$0xf]  ;;  %v13312_v47 = vld [vmem:[#allocation4 + $0x58c] sm:$0xf0]  ;;  %v6210_v18 = vld [vmem:[#allocation2 + $0x4c] sm:$0xf] }
 0x472   : > { %12307 = vmatmul.msk.bf16.vlgmr.msrb.gmra.mxu2 %vm18494_vm7, %v16437_v46  ;;  %12308 = vmatmul.msk.bf16.vlgmr.msrb.gmra.mxu0 %vm18495_vm15, %v16437_v46  ;;  %vm18499_vm7 = vmmov %vm18498_vm6  ;;  %5826 = vst [vmem:[#allocation4 + $0x3a0] sm:$0xff] %v5791_v0  ;;  %v12069_v40 = vld [vmem:[#allocation4 + $0x590] sm:$0xf0]  ;;  %v12204_v42 = vor.u32 %v13345_v5, %v12203_v43  ;;  %v12068_v12 = vor.u32 %v13312_v47, %v12067_v45  ;;  %v16542_v58 = vpop.permute.xlu1 %5722  ;;  %v6219_v31 = vld [vmem:[#allocation2 + $0x9c] sm:$0xf]  ;;  %v5948_v29 = vrot.slane %v16514_v16, 4 }
 0x473   : > { %v6115_v23 = vsel %vm18499_vm7, %v6061_v41, %v6114_v53  ;;  %6157 = vst [vmem:[#allocation4 + $0x618] sm:$0xff] %v6113_v44  ;;  %5746 = vrot.lane.b32.xlu0 %v5693_v51, %s13641_s11  ;;  %v12072_v41 = vor.u32 %v13304_v9, %v12069_v40  ;;  %v12005_v55 = vld [vmem:[#allocation4 + $0x490] sm:$0xf0]  ;;  %v12003_v43 = vld [vmem:[#allocation4 + $0x410] sm:$0xf]  ;;  %vm18500_vm15 = vmmov %vm18496_vm3  ;;  %v13538_v51 = vpack.i.bf16 %v6219_v31, %v6210_v18  ;;  %vm18503_vm14 = vcmask 1039360  }
 0x474   : > { %7309 = vmatpush.bf16.msrb.mxu3 %v11740_v3  ;;  %7337 = vmatpush.bf16.msrb.mxu1 %v11744_v17  ;;  %6158 = vst [vmem:[#allocation4 + $0x620] sm:$0xff] %v6115_v23  ;;  %v13337_v3 = vld [vmem:[#allocation4 + $0x71c] sm:$0xf]  ;;  %v13296_v17 = vld [vmem:[#allocation4 + $0x48c] sm:$0xf0]  ;;  %vm18502_vm11 = vmmov %vm18498_vm6 }
 0x475   : > { %7359 = vmatpush.bf16.msra.mxu2 %v12132_v63  ;;  %7387 = vmatpush.bf16.msra.mxu0 %v12136_v10  ;;  %v16544_v63 = vpop.permute.xlu2 %6064  ;;  %v5925_v10 = vpop.permute.xlu0 %5924  ;;  %v12208_v52 = vor.u32 %v13337_v3, %v12205_v4  ;;  %v13288_v5 = vld [vmem:[#allocation4 + $0x414] sm:$0xf]  ;;  %v12004_v0 = vor.u32 %v13296_v17, %v12003_v43  ;;  %v13329_v23 = vld [vmem:[#allocation4 + $0x694] sm:$0xf0]  ;;  %v12141_v4 = vld [vmem:[#allocation4 + $0x698] sm:$0xf0] }
 0x476   : > { %v6094_v53 = vrot.slane %v16544_v63, 4  ;;  %v12008_v44 = vor.u32 %v13288_v5, %v12005_v55  ;;  %v13280_v47 = vld [vmem:[#allocation4 + $0x38c] sm:$0xf0]  ;;  %v11941_v40 = vld [vmem:[#allocation4 + $0x390] sm:$0xf0]  ;;  %vm18504_vm6 = vmmov %vm18503_vm14 }
 0x477   : > { %7310 = vmatmul.bf16.vlgmr.msrb.gmra.mxu3 %v16362_v59  ;;  %7338 = vmatmul.bf16.vlgmr.msrb.gmra.mxu1 %v16362_v59  ;;  %v11939_v55 = vld [vmem:[#allocation4 + $0x310] sm:$0xf]  ;;  %v11877_v43 = vld [vmem:[#allocation4 + $0x290] sm:$0xf0]  ;;  %vm18505_vm7 = vmmov %vm18496_vm3 }
 0x478   : > { %7379 = vmatpush.bf16.msra.mxu3 %v12260_v27  ;;  %7407 = vmatpush.bf16.msra.mxu1 %v12264_v22  ;;  %v5947_v27 = vrot.slane %v5925_v10, 4  ;;  %v6116_v22 = vsel %vm18500_vm15, %v6093_v25, %v6094_v53  ;;  %v13264_v31 = vld [vmem:[#allocation4 + $0x28c] sm:$0xf0]  ;;  %vm18506_vm15 = vmmov %vm18496_vm3 }
 0x479   : > { %7360 = vmatpush.bf16.msra.mxu2 %v12068_v12  ;;  %7388 = vmatpush.bf16.msra.mxu0 %v12072_v41 }
 0x47a   : > { %v5974_v45 = vsel %vm18501_vm4, %v5946_v33, %v5947_v27  ;;  %v5976_v9 = vsel %vm18496_vm3, %v5947_v27, %v5948_v29  ;;  %v12139_v3 = vld [vmem:[#allocation4 + $0x618] sm:$0xf]  ;;  %v13321_v25 = vld [vmem:[#allocation4 + $0x61c] sm:$0xf]  ;;  %vm18507_vm4 = vmmov %vm18496_vm3 }
 0x47b   : > { %v5975_v12 = vsel %vm18503_vm14, %v16285_v38, %v5974_v45  ;;  %v5977_v41 = vsel %vm18504_vm6, %v5925_v10, %v5976_v9  ;;  %v12140_v33 = vor.u32 %v13329_v23, %v12139_v3  ;;  %v12144_v17 = vor.u32 %v13321_v25, %v12141_v4  ;;  %13539 = vrot.lane.b32.xlu0 %v13538_v51, %s13642_s12  ;;  %v16564_v38 = vpop.permute.xlu1 %5586  ;;  %v13256_v9 = vld [vmem:[#allocation4 + $0x214] sm:$0xf]  ;;  %v13248_v4 = vld [vmem:[#allocation4 + $0x18c] sm:$0xf0]  ;;  %v13305_v3 = vld [vmem:[#allocation4 + $0x51c] sm:$0xf] }
 0x47c   : > { %7414 = vmatpush.bf16.msrb.mxu3 %v12204_v42  ;;  %7442 = vmatpush.bf16.msrb.mxu1 %v12208_v52  ;;  %v6117_v42 = vsel %vm18502_vm11, %v16441_v8, %v6116_v22  ;;  %6011 = vst [vmem:[#allocation4 + $0x598] sm:$0xff] %v5975_v12  ;;  %v13272_v52 = vld [vmem:[#allocation4 + $0x314] sm:$0xf]  ;;  %v11940_v8 = vor.u32 %v13280_v47, %v11939_v55  ;;  %v5608_v5 = vrot.slane %v16564_v38, 4  ;;  %v5753_v23 = vrot.slane %v16542_v58, 4  ;;  %vm18508_vm11 = vmmov %vm18504_vm6 }
 0x47d   : > { %6159 = vst [vmem:[#allocation4 + $0x628] sm:$0xff] %v6117_v42  ;;  %7361 = vmatpush.bf16.msra.mxu2 %v12004_v0  ;;  %7389 = vmatpush.bf16.msra.mxu0 %v12008_v44  ;;  %v11944_v18 = vor.u32 %v13272_v52, %v11941_v40  ;;  %v16566_v10 = vpop.permute.xlu2 %5928  ;;  %v5721_v27 = vpop.permute.xlu0 %5720  ;;  %v11875_v22 = vld [vmem:[#allocation4 + $0x210] sm:$0xf]  ;;  %v11880_v12 = vor.u32 %v13256_v9, %v11877_v43  ;;  %vm18509_vm14 = vcmask 7168   ;;  %v12013_v43 = vld [vmem:[#allocation4 + $0x498] sm:$0xf0] }
 0x47e   : > { %6012 = vst [vmem:[#allocation4 + $0x5a0] sm:$0xff] %v5977_v41  ;;  %v5949_v0 = vrot.slane %v16566_v10, 4  ;;  %v5752_v44 = vrot.slane %v5721_v27, 4  ;;  %v11876_v45 = vor.u32 %v13264_v31, %v11875_v22  ;;  %v5636_v51 = vsel %vm18505_vm7, %v5607_v34, %v5608_v5  ;;  %v12075_v41 = vld [vmem:[#allocation4 + $0x518] sm:$0xf]  ;;  %vm18510_vm6 = vmmov %vm18509_vm14 }
 0x47f   : > { %v5637_v25 = vsel %vm18508_vm11, %v16463_v36, %v5636_v51  ;;  %vm18511_vm7 = vmmov %vm18508_vm11  ;;  %v13240_v31 = vld [vmem:[#allocation4 + $0x114] sm:$0xf]  ;;  %v13297_v36 = vld [vmem:[#allocation4 + $0x494] sm:$0xf0] }
 0x480   : > { %7415 = vmatpush.bf16.msrb.mxu3 %v12140_v33  ;;  %7443 = vmatpush.bf16.msrb.mxu1 %v12144_v17  ;;  %v5978_v47 = vsel %vm18506_vm15, %v5948_v29, %v5949_v0  ;;  %v5772_v40 = vsel %vm18507_vm4, %v5751_v37, %v5752_v44  ;;  %v5774_v42 = vsel %vm18496_vm3, %v5752_v44, %v5753_v23  ;;  %v11813_v33 = vld [vmem:[#allocation4 + $0x190] sm:$0xf0]  ;;  %v12011_v44 = vld [vmem:[#allocation4 + $0x418] sm:$0xf]  ;;  %v13232_v22 = vld [vmem:[#allocation4 + $0x8c] sm:$0xf0] }
 0x481   : > { %7362 = vmatpush.bf16.msra.mxu2 %v11940_v8  ;;  %7390 = vmatpush.bf16.msra.mxu0 %v11944_v18  ;;  %v5773_v34 = vsel %vm18509_vm14, %v16308_v50, %v5772_v40  ;;  %v5775_v17 = vsel %vm18510_vm6, %v5721_v27, %v5774_v42  ;;  %5672 = vst [vmem:[#allocation4 + $0x2a0] sm:$0xff] %v5637_v25  ;;  %v11811_v18 = vld [vmem:[#allocation4 + $0x110] sm:$0xf]  ;;  %vm18512_vm15 = vcmask 130048   ;;  %v13289_v51 = vld [vmem:[#allocation4 + $0x41c] sm:$0xf]  ;;  %vm18514_vm11 = vmmov %vm18496_vm3 }
 0x482   : > { %v5979_v37 = vsel %vm18511_vm7, %v16514_v16, %v5978_v47  ;;  %5817 = vst [vmem:[#allocation4 + $0x318] sm:$0xff] %v5773_v34  ;;  %v11812_v50 = vor.u32 %v13248_v4, %v11811_v18  ;;  %v11816_v27 = vor.u32 %v13240_v31, %v11813_v33  ;;  %v11749_v47 = vld [vmem:[#allocation4 + $0x90] sm:$0xf0]  ;;  %vm18513_vm4 = vmmov %vm18512_vm15  ;;  %v12012_v42 = vor.u32 %v13297_v36, %v12011_v44  ;;  %v13257_v36 = vld [vmem:[#allocation4 + $0x21c] sm:$0xf] }
 0x483   : > { %v13313_v55 = vld [vmem:[#allocation4 + $0x594] sm:$0xf0]  ;;  %v12077_v29 = vld [vmem:[#allocation4 + $0x598] sm:$0xf0]  ;;  %5818 = vst [vmem:[#allocation4 + $0x320] sm:$0xff] %v5775_v17  ;;  %v16590_v9 = vpop.permute.xlu1 %5910  ;;  %vm18515_vm14 = vmmov %vm18510_vm6 }
 0x484   : > { %v12076_v52 = vor.u32 %v13313_v55, %v12075_v41  ;;  %v12080_v8 = vor.u32 %v13305_v3, %v12077_v29  ;;  %6013 = vst [vmem:[#allocation4 + $0x5a8] sm:$0xff] %v5979_v37  ;;  %v11747_v41 = vld [vmem:[#allocation4 + $0x10] sm:$0xf]  ;;  %v13224_v25 = vld [vmem:[#allocation4 + $0x14] sm:$0xf]  ;;  %vm18516_vm7 = vmmov %vm18496_vm3 }
 0x485   : > { %7363 = vmatpush.bf16.msra.mxu2 %v11876_v45  ;;  %7391 = vmatpush.bf16.msra.mxu0 %v11880_v12  ;;  %v16592_v16 = vpop.permute.xlu2 %5724  ;;  %v16594_v45 = vpop.permute.xlu0 %6080  ;;  %v12016_v12 = vor.u32 %v13289_v51, %v12013_v43  ;;  %v11748_v3 = vor.u32 %v13232_v22, %v11747_v41  ;;  %v11752_v17 = vor.u32 %v13224_v25, %v11749_v47  ;;  %v13281_v55 = vld [vmem:[#allocation4 + $0x394] sm:$0xf0]  ;;  %v11949_v29 = vld [vmem:[#allocation4 + $0x398] sm:$0xf0]  ;;  %v5940_v22 = vrot.slane %v16590_v9, 4 }
 0x486   : > { %7416 = vmatpush.bf16.msrb.mxu3 %v12076_v52  ;;  %7444 = vmatpush.bf16.msrb.mxu1 %v12080_v8  ;;  %v5754_v4 = vrot.slane %v16592_v16, 4  ;;  %v6102_v40 = vrot.slane %v16594_v45, 4 }
 0x487   : > { %12309 = vmatmul.msk.bf16.vlgmr.msra.gmra.mxu3 %vm18512_vm15, %v16437_v46  ;;  %12310 = vmatmul.msk.bf16.vlgmr.msra.gmra.mxu1 %vm18513_vm4, %v16437_v46  ;;  %vm18517_vm15 = vmmov %vm18496_vm3  ;;  %vm18518_vm4 = vcmask 1039360  }
 0x488   : > { %v5776_v33 = vsel %vm18496_vm3, %v5753_v23, %v5754_v4  ;;  %v6130_v34 = vsel %vm18514_vm11, %v6101_v56, %v6102_v40  ;;  %v11883_v56 = vld [vmem:[#allocation4 + $0x218] sm:$0xf]  ;;  %vm18519_vm3 = vmmov %vm18518_vm4 }
 0x489   : > { %7364 = vmatpush.bf16.msra.mxu2 %v11812_v50  ;;  %7392 = vmatpush.bf16.msra.mxu0 %v11816_v27  ;;  %v5777_v37 = vsel %vm18515_vm14, %v16542_v58, %v5776_v33  ;;  %v6131_v52 = vsel %vm18510_vm6, %v16399_v13, %v6130_v34  ;;  %v11947_v8 = vld [vmem:[#allocation4 + $0x318] sm:$0xf]  ;;  %v13273_v18 = vld [vmem:[#allocation4 + $0x31c] sm:$0xf]  ;;  %vm18520_vm11 = vmmov %vm18516_vm7 }
 0x48a   : > { %7417 = vmatpush.bf16.msrb.mxu3 %v12012_v42  ;;  %7445 = vmatpush.bf16.msrb.mxu1 %v12016_v12  ;;  %5819 = vst [vmem:[#allocation4 + $0x328] sm:$0xff] %v5777_v37  ;;  %v11948_v23 = vor.u32 %v13281_v55, %v11947_v8  ;;  %v11952_v31 = vor.u32 %v13273_v18, %v11949_v29  ;;  %v13265_v58 = vld [vmem:[#allocation4 + $0x294] sm:$0xf0]  ;;  %v11885_v27 = vld [vmem:[#allocation4 + $0x298] sm:$0xf0]  ;;  %vm18521_vm14 = vmmov %vm18516_vm7 }
 0x48b   : > { %6166 = vst [vmem:[#allocation4 + $0x6a0] sm:$0xff] %v6131_v52  ;;  %v16614_v43 = vpop.permute.xlu1 %6266  ;;  %v11884_v51 = vor.u32 %v13265_v58, %v11883_v56  ;;  %v11888_v47 = vor.u32 %v13257_v36, %v11885_v27  ;;  %v13249_v42 = vld [vmem:[#allocation4 + $0x194] sm:$0xf0]  ;;  %v11821_v12 = vld [vmem:[#allocation4 + $0x198] sm:$0xf0]  ;;  %vm18522_vm6 = vmmov %vm18516_vm7 }
 0x48c   : > { %v11819_v34 = vld [vmem:[#allocation4 + $0x118] sm:$0xf]  ;;  %v11757_v52 = vld [vmem:[#allocation4 + $0x98] sm:$0xf0] }
 0x48d   : > { %7365 = vmatpush.bf16.msra.mxu2 %v11748_v3  ;;  %7393 = vmatpush.bf16.msra.mxu0 %v11752_v17  ;;  %v16616_v50 = vpop.permute.xlu2 %6084  ;;  %v5909_v13 = vpop.permute.xlu0 %5908  ;;  %v13241_v17 = vld [vmem:[#allocation4 + $0x11c] sm:$0xf]  ;;  %v11820_v55 = vor.u32 %v13249_v42, %v11819_v34  ;;  %v13233_v37 = vld [vmem:[#allocation4 + $0x94] sm:$0xf0]  ;;  %v13346_v34 = vld [vmem:[#allocation4 + $0x79c] sm:$0xf0] }
 0x48e   : > { %7418 = vmatpush.bf16.msrb.mxu3 %v11948_v23  ;;  %7446 = vmatpush.bf16.msrb.mxu1 %v11952_v31  ;;  %v5939_v44 = vrot.slane %v5909_v13, 4  ;;  %v11824_v29 = vor.u32 %v13241_v17, %v11821_v12  ;;  %v11755_v23 = vld [vmem:[#allocation4 + $0x18] sm:$0xf]  ;;  %v13225_v31 = vld [vmem:[#allocation4 + $0x1c] sm:$0xf] }
 0x48f   : > { %v11756_v58 = vor.u32 %v13233_v37, %v11755_v23  ;;  %v11760_v27 = vor.u32 %v13225_v31, %v11757_v52  ;;  %v12267_v37 = vld [vmem:[#allocation4 + $0x818] sm:$0xf]  ;;  %v13353_v52 = vld [vmem:[#allocation4 + $0x81c] sm:$0xf]  ;;  %v12213_v23 = vld [vmem:[#allocation4 + $0x7a0] sm:$0xf0] }
 0x490   : > { %7366 = vmatmul.bf16.vlgmr.msra.gmra.mxu2 %v16362_v59  ;;  %7394 = vmatmul.bf16.vlgmr.msra.gmra.mxu0 %v16362_v59  ;;  %v5960_v41 = vsel %vm18516_vm7, %v5938_v30, %v5939_v44  ;;  %v5962_v3 = vsel %vm18517_vm15, %v5939_v44, %v5940_v22  ;;  %vm18523_vm7 = vmmov %vm18522_vm6  ;;  %vm18524_vm15 = vcmask 7168  }
 0x491   : > { %v5961_v25 = vsel %vm18518_vm4, %v16366_v24, %v5960_v41  ;;  %v5963_v33 = vsel %vm18519_vm3, %v5909_v13, %v5962_v3  ;;  %v6288_v13 = vrot.slane %v16614_v43, 4  ;;  %vm18525_vm4 = vmmov %vm18519_vm3 }
 0x492   : > { %7419 = vmatpush.bf16.msrb.mxu3 %v11884_v51  ;;  %7447 = vmatpush.bf16.msrb.mxu1 %v11888_v47  ;;  %6004 = vst [vmem:[#allocation4 + $0x520] sm:$0xff] %v5961_v25 }
 0x493   : > { %6005 = vst [vmem:[#allocation4 + $0x528] sm:$0xff] %v5963_v33  ;;  %v16628_v30 = vpop.permute.xlu1 %6066 }
 0x494   : > { %v6095_v24 = vrot.slane %v16628_v30, 4 }
 0x495   : > { %v16630_v8 = vpop.permute.xlu2 %5912  ;;  %v6265_v18 = vpop.permute.xlu0 %6264 }
 0x496   : > { %7420 = vmatpush.bf16.msrb.mxu3 %v11820_v55  ;;  %7448 = vmatpush.bf16.msrb.mxu1 %v11824_v29  ;;  %v5941_v56 = vrot.slane %v16630_v8, 4  ;;  %v6287_v36 = vrot.slane %v6265_v18, 4  ;;  %v6118_v44 = vsel %vm18520_vm11, %v6094_v53, %v6095_v24  ;;  %vm18526_vm11 = vmmov %vm18519_vm3  ;;  %v18528_v55 = vrot.slane %v16482_v49, 4 }
 0x497   : > { %v6119_v12 = vsel %vm18524_vm15, %v16544_v63, %v6118_v44  ;;  %vm18530_vm15 = vmmov %vm18519_vm3  ;;  %v12211_v44 = vld [vmem:[#allocation4 + $0x720] sm:$0xf] }
 0x498   : > { %v5964_v51 = vsel %vm18521_vm14, %v5940_v22, %v5941_v56  ;;  %v6314_v47 = vsel %vm18522_vm6, %v6286_v54, %v6287_v36  ;;  %v6316_v42 = vsel %vm18523_vm7, %v6287_v36, %v6288_v13  ;;  %6160 = vst [vmem:[#allocation4 + $0x630] sm:$0xff] %v6119_v12  ;;  %vm18527_vm14 = vmmov %vm18522_vm6  ;;  %v12149_v12 = vld [vmem:[#allocation4 + $0x6a0] sm:$0xf0] }
 0x499   : > { %v6315_v41 = vsel %vm18525_vm4, %v16401_v28, %v6314_v47  ;;  %v6317_v53 = vsel %vm18519_vm3, %v6265_v18, %v6316_v42  ;;  %v5965_v22 = vsel %vm18526_vm11, %v16590_v9, %v5964_v51  ;;  %vm18529_vm7 = vmmov %vm18522_vm6  ;;  %v13338_v51 = vld [vmem:[#allocation4 + $0x724] sm:$0xf]  ;;  %v12212_v47 = vor.u32 %v13346_v34, %v12211_v44 }
 0x49a   : > { %7421 = vmatpush.bf16.msrb.mxu3 %v11756_v58  ;;  %7449 = vmatpush.bf16.msrb.mxu1 %v11760_v27  ;;  %6351 = vst [vmem:[#allocation4 + $0x898] sm:$0xff] %v6315_v41  ;;  %vm18531_vm4 = vmmov %vm18519_vm3  ;;  %v12216_v42 = vor.u32 %v13338_v51, %v12213_v23  ;;  %vm18532_vm11 = vcmask 130048  }
 0x49b   : > { %6352 = vst [vmem:[#allocation4 + $0x8a0] sm:$0xff] %v6317_v53  ;;  %v16656_v54 = vpop.permute.xlu1 %5588  ;;  %v6104_v53 = vrot.slane %v16616_v50, 4 }
 0x49c   : > { %6006 = vst [vmem:[#allocation4 + $0x530] sm:$0xff] %v5965_v22  ;;  %v5609_v28 = vrot.slane %v16656_v54, 4 }
 0x49d   : > { %7422 = vmatmul.bf16.vlgmr.msrb.gmra.mxu3 %v16362_v59  ;;  %7450 = vmatmul.bf16.vlgmr.msrb.gmra.mxu1 %v16362_v59  ;;  %v16658_v3 = vpop.permute.xlu2 %6268  ;;  %v16660_v63 = vpop.permute.xlu0 %5568 }
 0x49e   : > { %v6289_v25 = vrot.slane %v16658_v3, 4  ;;  %v5599_v33 = vrot.slane %v16660_v63, 4  ;;  %v5638_v9 = vsel %vm18527_vm14, %v5608_v5, %v5609_v28  ;;  %vm18533_vm14 = vmmov %vm18532_vm11 }
 0x49f   : > { %v5639_v18 = vsel %vm18530_vm15, %v16564_v38, %v5638_v9  ;;  %v13330_v38 = vld [vmem:[#allocation4 + $0x69c] sm:$0xf0]  ;;  %vm18535_vm15 = vcmask 7168  }
 0x4a0   : > { %v6318_v17 = vsel %vm18522_vm6, %v6288_v13, %v6289_v25  ;;  %v5620_v29 = vsel %vm18529_vm7, %v18528_v55, %v5599_v33  ;;  %5673 = vst [vmem:[#allocation4 + $0x2a8] sm:$0xff] %v5639_v18  ;;  %v12147_v9 = vld [vmem:[#allocation4 + $0x620] sm:$0xf]  ;;  %vm18534_vm7 = vmmov %vm18522_vm6  ;;  %v13306_v18 = vld [vmem:[#allocation4 + $0x524] sm:$0xf] }
 0x4a1   : > { %v6319_v5 = vsel %vm18531_vm4, %v16614_v43, %v6318_v17  ;;  %v5621_v31 = vsel %vm18519_vm3, %v16482_v49, %v5620_v29  ;;  %v13361_v36 = vld [vmem:[#allocation4 + $0x894] sm:$0xf0]  ;;  %v12269_v13 = vld [vmem:[#allocation4 + $0x898] sm:$0xf0]  ;;  %v13322_v17 = vld [vmem:[#allocation4 + $0x624] sm:$0xf]  ;;  %v12148_v34 = vor.u32 %v13330_v38, %v12147_v9 }
 0x4a2   : > { %5664 = vst [vmem:[#allocation4 + $0x220] sm:$0xff] %v5621_v31  ;;  %v12268_v58 = vor.u32 %v13361_v36, %v12267_v37  ;;  %v12272_v27 = vor.u32 %v13353_v52, %v12269_v13  ;;  %v12152_v55 = vor.u32 %v13322_v17, %v12149_v12  ;;  %v12083_v52 = vld [vmem:[#allocation4 + $0x520] sm:$0xf]  ;;  %vm18536_vm4 = vmmov %vm18535_vm15  ;;  %v12085_v36 = vld [vmem:[#allocation4 + $0x5a0] sm:$0xf0] }
 0x4a3   : > { %6353 = vst [vmem:[#allocation4 + $0x8a8] sm:$0xff] %v6319_v5  ;;  %v16684_v41 = vpop.permute.xlu1 %6250  ;;  %v13314_v31 = vld [vmem:[#allocation4 + $0x59c] sm:$0xf0]  ;;  %vm18538_vm3 = vmmov %vm18522_vm6 }
 0x4a4   : > { %7435 = vmatpush.bf16.msrb.mxu2 %v12268_v58  ;;  %7463 = vmatpush.bf16.msrb.mxu0 %v12272_v27  ;;  %v12084_v13 = vor.u32 %v13314_v31, %v12083_v52  ;;  %v12088_v58 = vor.u32 %v13306_v18, %v12085_v36  ;;  %v12021_v27 = vld [vmem:[#allocation4 + $0x4a0] sm:$0xf0]  ;;  %v6280_v38 = vrot.slane %v16684_v41, 4  ;;  %v12019_v12 = vld [vmem:[#allocation4 + $0x420] sm:$0xf] }
 0x4a5   : > { %v16686_v43 = vpop.permute.xlu2 %5572  ;;  %v6083_v49 = vpop.permute.xlu0 %6082  ;;  %v13274_v52 = vld [vmem:[#allocation4 + $0x324] sm:$0xf]  ;;  %v13282_v31 = vld [vmem:[#allocation4 + $0x39c] sm:$0xf0] }
 0x4a6   : > { %v6103_v22 = vrot.slane %v6083_v49, 4  ;;  %v11957_v36 = vld [vmem:[#allocation4 + $0x3a0] sm:$0xf0] }
 0x4a7   : > { %12311 = vmatmul.msk.bf16.vlgmr.msrb.gmra.mxu2 %vm18532_vm11, %v16437_v46  ;;  %12312 = vmatmul.msk.bf16.vlgmr.msrb.gmra.mxu0 %vm18533_vm14, %v16437_v46  ;;  %vm18539_vm11 = vmmov %vm18538_vm3  ;;  %vm18540_vm14 = vcmask 1039360  }
 0x4a8   : > { %7470 = vmatpush.bf16.msra.mxu2 %v12212_v47  ;;  %7498 = vmatpush.bf16.msra.mxu0 %v12216_v42  ;;  %v6132_v29 = vsel %vm18522_vm6, %v6102_v40, %v6103_v22  ;;  %v6134_v37 = vsel %vm18534_vm7, %v6103_v22, %v6104_v53  ;;  %v13298_v40 = vld [vmem:[#allocation4 + $0x49c] sm:$0xf0]  ;;  %vm18541_vm6 = vmmov %vm18540_vm14 }
 0x4a9   : > { %v6133_v23 = vsel %vm18535_vm15, %v16594_v45, %v6132_v29  ;;  %v6135_v5 = vsel %vm18536_vm4, %v6083_v49, %v6134_v37  ;;  %v13290_v49 = vld [vmem:[#allocation4 + $0x424] sm:$0xf]  ;;  %v12020_v22 = vor.u32 %v13298_v40, %v12019_v12  ;;  %v11955_v37 = vld [vmem:[#allocation4 + $0x320] sm:$0xf]  ;;  %vm18542_vm7 = vmmov %vm18538_vm3  ;;  %v11960_v40 = vor.u32 %v13274_v52, %v11957_v36 }
 0x4aa   : > { %6167 = vst [vmem:[#allocation4 + $0x6a8] sm:$0xff] %v6133_v23  ;;  %v12024_v9 = vor.u32 %v13290_v49, %v12021_v27  ;;  %vm18543_vm15 = vmmov %vm18541_vm6  ;;  %v11891_v27 = vld [vmem:[#allocation4 + $0x220] sm:$0xf]  ;;  %v13347_v36 = vld [vmem:[#allocation4 + $0x7a4] sm:$0xf0] }
 0x4ab   : > { %6168 = vst [vmem:[#allocation4 + $0x6b0] sm:$0xff] %v6135_v5  ;;  %v16702_v44 = vpop.permute.xlu1 %5744  ;;  %vm18544_vm4 = vmmov %vm18538_vm3 }
 0x4ac   : > { %7471 = vmatpush.bf16.msra.mxu2 %v12148_v34  ;;  %7499 = vmatpush.bf16.msra.mxu0 %v12152_v55  ;;  %v18537_v34 = vrot.slane %v16484_v62, 4 }
 0x4ad   : > { %v16704_v51 = vpop.permute.xlu2 %13534  ;;  %v6249_v47 = vpop.permute.xlu0 %6248 }
 0x4ae   : > { %v13536_v45 = vunpack.i.l.bf16 %v16704_v51  ;;  %v6279_v42 = vrot.slane %v6249_v47, 4 }
 0x4b0   : > { %7472 = vmatpush.bf16.msra.mxu2 %v12084_v13  ;;  %7500 = vmatpush.bf16.msra.mxu0 %v12088_v58  ;;  %v5942_v17 = vrot.slane %v13536_v45, 4  ;;  %v6300_v55 = vsel %vm18538_vm3, %v18537_v34, %v6279_v42  ;;  %v6302_v29 = vsel %vm18539_vm11, %v6279_v42, %v6280_v38  ;;  %v11956_v58 = vor.u32 %v13282_v31, %v11955_v37  ;;  %v11829_v37 = vld [vmem:[#allocation4 + $0x1a0] sm:$0xf0] }
 0x4b1   : > { %v6301_v18 = vsel %vm18540_vm14, %v16484_v62, %v6300_v55  ;;  %v6303_v23 = vsel %vm18541_vm6, %v6249_v47, %v6302_v29  ;;  %v13258_v62 = vld [vmem:[#allocation4 + $0x224] sm:$0xf]  ;;  %v13250_v29 = vld [vmem:[#allocation4 + $0x19c] sm:$0xf0]  ;;  %vm18545_vm11 = vcmask 7168   ;;  %vm18547_vm6 = vmmov %vm18538_vm3 }
 0x4b2   : > { %v5966_v5 = vsel %vm18542_vm7, %v5941_v56, %v5942_v17  ;;  %6344 = vst [vmem:[#allocation4 + $0x820] sm:$0xff] %v6301_v18  ;;  %v5764_v56 = vrot.slane %v16702_v44, 4  ;;  %v13242_v31 = vld [vmem:[#allocation4 + $0x124] sm:$0xf]  ;;  %vm18546_vm14 = vmmov %vm18545_vm11 }
 0x4b3   : > { %v5967_v13 = vsel %vm18543_vm15, %v16630_v8, %v5966_v5  ;;  %6345 = vst [vmem:[#allocation4 + $0x828] sm:$0xff] %v6303_v23  ;;  %v13530_v45 = vpop.permute.xlu1 %13529  ;;  %v13362_v23 = vld [vmem:[#allocation4 + $0x89c] sm:$0xf0]  ;;  %vm18548_vm7 = vmmov %vm18545_vm11 }
 0x4b4   : > { %7473 = vmatpush.bf16.msra.mxu2 %v12020_v22  ;;  %7501 = vmatpush.bf16.msra.mxu0 %v12024_v9  ;;  %6007 = vst [vmem:[#allocation4 + $0x538] sm:$0xff] %v5967_v13  ;;  %v13532_v42 = vunpack.i.h.bf16 %v13530_v45  ;;  %v13531_v12 = vunpack.i.l.bf16 %v13530_v45  ;;  %v13266_v22 = vld [vmem:[#allocation4 + $0x29c] sm:$0xf0]  ;;  %v11893_v9 = vld [vmem:[#allocation4 + $0x2a0] sm:$0xf0]  ;;  %vm18549_vm15 = vmmov %vm18538_vm3 }
 0x4b5   : > { %v5743_v47 = vpop.permute.xlu0 %5742  ;;  %v11892_v17 = vor.u32 %v13266_v22, %v11891_v27  ;;  %v11896_v34 = vor.u32 %v13258_v62, %v11893_v9  ;;  %v11827_v5 = vld [vmem:[#allocation4 + $0x120] sm:$0xf]  ;;  %v12221_v13 = vld [vmem:[#allocation4 + $0x7a8] sm:$0xf0]  ;;  %v12277_v45 = vld [vmem:[#allocation4 + $0x8a0] sm:$0xf0] }
 0x4b6   : > { %v5763_v49 = vrot.slane %v5743_v47, 4  ;;  %v6105_v8 = vrot.slane %v13532_v42, 4  ;;  %v6096_v55 = vrot.slane %v13531_v12, 4  ;;  %v13339_v22 = vld [vmem:[#allocation4 + $0x72c] sm:$0xf] }
 0x4b8   : > { %7474 = vmatpush.bf16.msra.mxu2 %v11956_v58  ;;  %7502 = vmatpush.bf16.msra.mxu0 %v11960_v40  ;;  %v5792_v52 = vsel %vm18544_vm4, %v5762_v39, %v5763_v49  ;;  %v5794_v18 = vsel %vm18538_vm3, %v5763_v49, %v5764_v56  ;;  %v6120_v39 = vsel %vm18547_vm6, %v6095_v24, %v6096_v55  ;;  %vm18550_vm4 = vmmov %vm18548_vm7  ;;  %v13234_v24 = vld [vmem:[#allocation4 + $0x9c] sm:$0xf0]  ;;  %v13226_v55 = vld [vmem:[#allocation4 + $0x24] sm:$0xf] }
 0x4b9   : > { %v5793_v58 = vsel %vm18545_vm11, %v16516_v48, %v5792_v52  ;;  %v5795_v40 = vsel %vm18546_vm14, %v5743_v47, %v5794_v18  ;;  %v12275_v27 = vld [vmem:[#allocation4 + $0x820] sm:$0xf]  ;;  %v13354_v62 = vld [vmem:[#allocation4 + $0x824] sm:$0xf]  ;;  %v6121_v49 = vsel %vm18548_vm7, %v16628_v30, %v6120_v39  ;;  %v6136_v48 = vsel %vm18549_vm15, %v6104_v53, %v6105_v8  ;;  %v12219_v47 = vld [vmem:[#allocation4 + $0x728] sm:$0xf] }
 0x4ba   : > { %5827 = vst [vmem:[#allocation4 + $0x3a8] sm:$0xff] %v5793_v58  ;;  %v12276_v42 = vor.u32 %v13362_v23, %v12275_v27  ;;  %v12280_v12 = vor.u32 %v13354_v62, %v12277_v45  ;;  %v6137_v9 = vsel %vm18550_vm4, %v16616_v50, %v6136_v48  ;;  %v11763_v52 = vld [vmem:[#allocation4 + $0x20] sm:$0xf]  ;;  %v11765_v18 = vld [vmem:[#allocation4 + $0xa0] sm:$0xf0]  ;;  %v12220_v30 = vor.u32 %v13347_v36, %v12219_v47  ;;  %vm18553_vm6 = vmmov %vm18538_vm3 }
 0x4bb   : > { %5828 = vst [vmem:[#allocation4 + $0x3b0] sm:$0xff] %v5795_v40  ;;  %v12224_v23 = vor.u32 %v13339_v22, %v12221_v13  ;;  %v13331_v58 = vld [vmem:[#allocation4 + $0x6a4] sm:$0xf0]  ;;  %v12157_v27 = vld [vmem:[#allocation4 + $0x6a8] sm:$0xf0]  ;;  %v16742_v53 = vpop.permute.xlu1 %6270  ;;  %v11764_v40 = vor.u32 %v13234_v24, %v11763_v52  ;;  %v11768_v36 = vor.u32 %v13226_v55, %v11765_v18  ;;  %v13537_v45 = vunpack.i.h.bf16 %v16704_v51  ;;  %vm18554_vm7 = vmmov %vm18538_vm3 }
 0x4bc   : > { %7475 = vmatpush.bf16.msra.mxu2 %v11892_v17  ;;  %7503 = vmatpush.bf16.msra.mxu0 %v11896_v34  ;;  %v11828_v17 = vor.u32 %v13250_v29, %v11827_v5  ;;  %v11832_v34 = vor.u32 %v13242_v31, %v11829_v37  ;;  %6161 = vst [vmem:[#allocation4 + $0x638] sm:$0xff] %v6121_v49  ;;  %v12155_v50 = vld [vmem:[#allocation4 + $0x628] sm:$0xf]  ;;  %v6290_v37 = vrot.slane %v16742_v53, 4  ;;  %v5601_v5 = vrot.slane %v16686_v43, 4 }
 0x4bd   : > { %7491 = vmatpush.bf16.msra.mxu3 %v12276_v42  ;;  %7519 = vmatpush.bf16.msra.mxu1 %v12280_v12  ;;  %v5571_v8 = vpop.permute.xlu0 %5570  ;;  %6169 = vst [vmem:[#allocation4 + $0x6b8] sm:$0xff] %v6137_v9  ;;  %v12283_v29 = vld [vmem:[#allocation4 + $0x828] sm:$0xf]  ;;  %v13323_v13 = vld [vmem:[#allocation4 + $0x62c] sm:$0xf]  ;;  %v12156_v39 = vor.u32 %v13331_v58, %v12155_v50  ;;  %vm18551_vm11 = vcmask 130048  }
 0x4be   : > { %v5600_v31 = vrot.slane %v5571_v8, 4  ;;  %v13355_v62 = vld [vmem:[#allocation4 + $0x82c] sm:$0xf]  ;;  %v12160_v42 = vor.u32 %v13323_v13, %v12157_v27  ;;  %v13363_v12 = vld [vmem:[#allocation4 + $0x8a4] sm:$0xf0]  ;;  %v6320_v49 = vsel %vm18538_vm3, %v6289_v25, %v6290_v37  ;;  %vm18552_vm14 = vmmov %vm18551_vm11  ;;  %vm18555_vm15 = vcmask 1039360  }
 0x4bf   : > { %v12284_v47 = vor.u32 %v13363_v12, %v12283_v29  ;;  %v12285_v22 = vld [vmem:[#allocation4 + $0x8a8] sm:$0xf0]  ;;  %v6321_v9 = vsel %vm18555_vm15, %v16658_v3, %v6320_v49  ;;  %v12227_v25 = vld [vmem:[#allocation4 + $0x730] sm:$0xf]  ;;  %vm18556_vm4 = vmmov %vm18555_vm15  ;;  %v5951_v50 = vrot.slane %v13537_v45, 4 }
 0x4c0   : > { %7476 = vmatpush.bf16.msra.mxu2 %v11828_v17  ;;  %7504 = vmatpush.bf16.msra.mxu0 %v11832_v34  ;;  %v5622_v48 = vsel %vm18553_vm6, %v5599_v33, %v5600_v31  ;;  %v5624_v51 = vsel %vm18554_vm7, %v5600_v31, %v5601_v5  ;;  %v13348_v17 = vld [vmem:[#allocation4 + $0x7ac] sm:$0xf0]  ;;  %v12229_v34 = vld [vmem:[#allocation4 + $0x7b0] sm:$0xf0]  ;;  %vm18557_vm3 = vmmov %vm18556_vm4  ;;  %v12288_v33 = vor.u32 %v13355_v62, %v12285_v22 }
 0x4c1   : > { %7526 = vmatpush.bf16.msrb.mxu3 %v12220_v30  ;;  %7554 = vmatpush.bf16.msrb.mxu1 %v12224_v23  ;;  %v5623_v52 = vsel %vm18556_vm4, %v16660_v63, %v5622_v48  ;;  %v5625_v24 = vsel %vm18557_vm3, %v5571_v8, %v5624_v51  ;;  %6354 = vst [vmem:[#allocation4 + $0x8b0] sm:$0xff] %v6321_v9  ;;  %v12091_v55 = vld [vmem:[#allocation4 + $0x528] sm:$0xf]  ;;  %v13307_v18 = vld [vmem:[#allocation4 + $0x52c] sm:$0xf]  ;;  %v5729_v8 = vpop.permute.xlu2 %5728  ;;  %vm18560_vm7 = vmmov %vm18557_vm3 }
 0x4c2   : > { %12313 = vmatmul.msk.bf16.vlgmr.msra.gmra.mxu3 %vm18551_vm11, %v16437_v46  ;;  %12314 = vmatmul.msk.bf16.vlgmr.msra.gmra.mxu1 %vm18552_vm14, %v16437_v46  ;;  %5665 = vst [vmem:[#allocation4 + $0x228] sm:$0xff] %v5623_v52  ;;  %v13340_v30 = vld [vmem:[#allocation4 + $0x734] sm:$0xf]  ;;  %v13299_v23 = vld [vmem:[#allocation4 + $0x4a4] sm:$0xf0]  ;;  %v12228_v27 = vor.u32 %v13348_v17, %v12227_v25  ;;  %vm18558_vm11 = vmmov %vm18553_vm6 }
 0x4c3   : > { %5666 = vst [vmem:[#allocation4 + $0x230] sm:$0xff] %v5625_v24  ;;  %v13315_v3 = vld [vmem:[#allocation4 + $0x5a4] sm:$0xf0]  ;;  %v12093_v58 = vld [vmem:[#allocation4 + $0x5a8] sm:$0xf0]  ;;  %v12232_v63 = vor.u32 %v13340_v30, %v12229_v34  ;;  %v5575_v13 = vpop.permute.xlu1 %5574  ;;  %vm18559_vm14 = vmmov %vm18553_vm6 }
 0x4c4   : > { %7477 = vmatpush.bf16.msra.mxu2 %v11764_v40  ;;  %7505 = vmatpush.bf16.msra.mxu0 %v11768_v36  ;;  %v12092_v29 = vor.u32 %v13315_v3, %v12091_v55  ;;  %v12096_v31 = vor.u32 %v13307_v18, %v12093_v58  ;;  %v13332_v40 = vld [vmem:[#allocation4 + $0x6ac] sm:$0xf0]  ;;  %v12165_v36 = vld [vmem:[#allocation4 + $0x6b0] sm:$0xf0]  ;;  %v5602_v12 = vrot.slane %v5575_v13, 4  ;;  %vm18561_vm15 = vmmov %vm18557_vm3  ;;  %v7283_v58 = vpop.f32.mrf.mxu0 }
 0x4c5   : > { %7527 = vmatpush.bf16.msrb.mxu3 %v12156_v39  ;;  %7555 = vmatpush.bf16.msrb.mxu1 %v12160_v42  ;;  %v5931_v62 = vpop.permute.xlu0 %5930  ;;  %v12027_v39 = vld [vmem:[#allocation4 + $0x428] sm:$0xf]  ;;  %v12029_v42 = vld [vmem:[#allocation4 + $0x4a8] sm:$0xf0]  ;;  %v12163_v45 = vld [vmem:[#allocation4 + $0x630] sm:$0xf] }
 0x4c6   : > { %v5950_v49 = vrot.slane %v5931_v62, 4  ;;  %v13324_v48 = vld [vmem:[#allocation4 + $0x634] sm:$0xf]  ;;  %v12028_v51 = vor.u32 %v13299_v23, %v12027_v39  ;;  %v12164_v22 = vor.u32 %v13332_v40, %v12163_v45  ;;  %v5626_v25 = vsel %vm18558_vm11, %v5601_v5, %v5602_v12  ;;  %vm18562_vm4 = vmmov %vm18557_vm3  ;;  %v13283_v18 = vld [vmem:[#allocation4 + $0x3a4] sm:$0xf0] }
 0x4c7   : > { %7478 = vmatmul.bf16.vlgmr.msra.gmra.mxu2 %v16362_v59  ;;  %7506 = vmatmul.bf16.vlgmr.msra.gmra.mxu0 %v16362_v59  ;;  %v12168_v9 = vor.u32 %v13324_v48, %v12165_v36  ;;  %v5627_v24 = vsel %vm18560_vm7, %v16686_v43, %v5626_v25  ;;  %v11965_v5 = vld [vmem:[#allocation4 + $0x3a8] sm:$0xf0]  ;;  %vm18563_vm3 = vmmov %vm18553_vm6  ;;  %v13251_v12 = vld [vmem:[#allocation4 + $0x1a4] sm:$0xf0]  ;;  %vm18567_vm7 = vcmask 130048  }
 0x4c8   : > { %7547 = vmatpush.bf16.msrb.mxu2 %v12284_v47  ;;  %7575 = vmatpush.bf16.msrb.mxu0 %v12288_v33  ;;  %v13291_v47 = vld [vmem:[#allocation4 + $0x42c] sm:$0xf]  ;;  %v5980_v17 = vsel %vm18559_vm14, %v5949_v0, %v5950_v49  ;;  %v5982_v34 = vsel %vm18553_vm6, %v5950_v49, %v5951_v50  ;;  %5667 = vst [vmem:[#allocation4 + $0x238] sm:$0xff] %v5627_v24  ;;  %v11963_v0 = vld [vmem:[#allocation4 + $0x328] sm:$0xf]  ;;  %vm18564_vm11 = vmmov %vm18563_vm3  ;;  %vm18565_vm14 = vcmask 7168  }
 0x4c9   : > { %7528 = vmatpush.bf16.msrb.mxu3 %v12092_v29  ;;  %7556 = vmatpush.bf16.msrb.mxu1 %v12096_v31  ;;  %v12032_v52 = vor.u32 %v13291_v47, %v12029_v42  ;;  %v5981_v33 = vsel %vm18561_vm15, %v16566_v10, %v5980_v17  ;;  %v5983_v55 = vsel %vm18562_vm4, %v5931_v62, %v5982_v34  ;;  %v13275_v30 = vld [vmem:[#allocation4 + $0x32c] sm:$0xf]  ;;  %v5756_v10 = vrot.slane %v5729_v8, 4  ;;  %v5593_v50 = vpop.permute.xlu2 %5592  ;;  %v13267_v31 = vld [vmem:[#allocation4 + $0x2a4] sm:$0xf0]  ;;  %vm18566_vm6 = vmmov %vm18565_vm14 }
 0x4ca   : > { %6014 = vst [vmem:[#allocation4 + $0x5b0] sm:$0xff] %v5981_v33  ;;  %v11964_v23 = vor.u32 %v13283_v18, %v11963_v0  ;;  %v11968_v3 = vor.u32 %v13275_v30, %v11965_v5  ;;  %v11901_v40 = vld [vmem:[#allocation4 + $0x2a8] sm:$0xf0]  ;;  %v12099_v42 = vld [vmem:[#allocation4 + $0x530] sm:$0xf]  ;;  %v7255_v17 = vpop.f32.mrf.mxu2  ;;  %vm18568_vm15 = vmmov %vm18567_vm7 }
 0x4cb   : > { %6015 = vst [vmem:[#allocation4 + $0x5b8] sm:$0xff] %v5983_v55  ;;  %v11837_v49 = vld [vmem:[#allocation4 + $0x1a8] sm:$0xf0]  ;;  %v13300_v25 = vld [vmem:[#allocation4 + $0x4ac] sm:$0xf0]  ;;  %v16788_v24 = vpop.permute.xlu1 %6506  ;;  %vm18569_vm4 = vmmov %vm18563_vm3 }
 0x4cc   : > { %7582 = vmatpush.bf16.msra.mxu2 %v12228_v27  ;;  %7610 = vmatpush.bf16.msra.mxu0 %v12232_v63  ;;  %v11899_v27 = vld [vmem:[#allocation4 + $0x228] sm:$0xf]  ;;  %v13259_v63 = vld [vmem:[#allocation4 + $0x22c] sm:$0xf]  ;;  %v12035_v55 = vld [vmem:[#allocation4 + $0x430] sm:$0xf] }
 0x4cd   : > { %7529 = vmatpush.bf16.msrb.mxu3 %v12028_v51  ;;  %7557 = vmatpush.bf16.msrb.mxu1 %v12032_v52  ;;  %v5727_v43 = vpop.permute.xlu0 %5726  ;;  %v11900_v62 = vor.u32 %v13267_v31, %v11899_v27  ;;  %v11904_v39 = vor.u32 %v13259_v63, %v11901_v40  ;;  %v13308_v51 = vld [vmem:[#allocation4 + $0x534] sm:$0xf]  ;;  %v13243_v34 = vld [vmem:[#allocation4 + $0x12c] sm:$0xf]  ;;  %v13235_v18 = vld [vmem:[#allocation4 + $0xa4] sm:$0xf0]  ;;  %v7285_v31 = vpop.f32.mrf.mxu0 }
 0x4ce   : > { %v5755_v29 = vrot.slane %v5727_v43, 4  ;;  %v12037_v52 = vld [vmem:[#allocation4 + $0x4b0] sm:$0xf0]  ;;  %v11840_v33 = vor.u32 %v13243_v34, %v11837_v49  ;;  %v11773_v5 = vld [vmem:[#allocation4 + $0xa8] sm:$0xf0] }
 0x4d0   : > { %7583 = vmatpush.bf16.msra.mxu2 %v12164_v22  ;;  %7611 = vmatpush.bf16.msra.mxu0 %v12168_v9  ;;  %v5778_v36 = vsel %vm18563_vm3, %v5754_v4, %v5755_v29  ;;  %v5780_v13 = vsel %vm18564_vm11, %v5755_v29, %v5756_v10  ;;  %v11835_v9 = vld [vmem:[#allocation4 + $0x128] sm:$0xf]  ;;  %v13227_v29 = vld [vmem:[#allocation4 + $0x2c] sm:$0xf]  ;;  %vm18570_vm11 = vcmask 1039360  }
 0x4d1   : > { %7530 = vmatpush.bf16.msrb.mxu3 %v11964_v23  ;;  %7558 = vmatpush.bf16.msrb.mxu1 %v11968_v3  ;;  %v5779_v8 = vsel %vm18565_vm14, %v16592_v16, %v5778_v36  ;;  %v5781_v45 = vsel %vm18566_vm6, %v5727_v43, %v5780_v13  ;;  %v13316_v48 = vld [vmem:[#allocation4 + $0x5ac] sm:$0xf0]  ;;  %v12101_v47 = vld [vmem:[#allocation4 + $0x5b0] sm:$0xf0]  ;;  %v11836_v16 = vor.u32 %v13251_v12, %v11835_v9  ;;  %v5611_v43 = vrot.slane %v5593_v50, 4  ;;  %v16794_v40 = vpop.permute.xlu2 %6511  ;;  %vm18571_vm14 = vmmov %vm18570_vm11 }
 0x4d2   : > { %5820 = vst [vmem:[#allocation4 + $0x330] sm:$0xff] %v5779_v8  ;;  %v12100_v22 = vor.u32 %v13316_v48, %v12099_v42  ;;  %v12104_v4 = vor.u32 %v13308_v51, %v12101_v47  ;;  %v12036_v23 = vor.u32 %v13300_v25, %v12035_v55  ;;  %v13292_v3 = vld [vmem:[#allocation4 + $0x434] sm:$0xf]  ;;  %v11771_v10 = vld [vmem:[#allocation4 + $0x28] sm:$0xf]  ;;  %v7284_v36 = vadd.f32 %v7283_v58, %v16788_v24 }
 0x4d3   : > { %5821 = vst [vmem:[#allocation4 + $0x338] sm:$0xff] %v5781_v45  ;;  %v12040_v63 = vor.u32 %v13292_v3, %v12037_v52  ;;  %v11772_v13 = vor.u32 %v13235_v18, %v11771_v10  ;;  %v13284_v12 = vld [vmem:[#allocation4 + $0x3ac] sm:$0xf0]  ;;  %v11973_v51 = vld [vmem:[#allocation4 + $0x3b0] sm:$0xf0]  ;;  %v7286_v47 = vadd.f32 %v7285_v31, %v16794_v40  ;;  %vm18572_vm6 = vnez %v18362_v57 }
 0x4d4   : > { %7584 = vmatpush.bf16.msra.mxu2 %v12100_v22  ;;  %7612 = vmatpush.bf16.msra.mxu0 %v12104_v4  ;;  %v7297_v0 = vpop.f32.mrf.mxu1  ;;  %v12237_v57 = vld [vmem:[#allocation4 + $0x7b8] sm:$0xf0] }
 0x4d5   : > { %7531 = vmatpush.bf16.msrb.mxu3 %v11900_v62  ;;  %7559 = vmatpush.bf16.msrb.mxu1 %v11904_v39  ;;  %v5591_v30 = vpop.permute.xlu0 %5590  ;;  %v11776_v62 = vor.u32 %v13227_v29, %v11773_v5  ;;  %v7256_v39 = vadd.f32 %v7255_v17, %v16788_v24  ;;  %v7298_v49 = vadd.f32 %v7297_v0, %v7284_v36  ;;  %v7257_v17 = vpop.f32.mrf.mxu2 }
 0x4d6   : > { %v5610_v27 = vrot.slane %v5591_v30, 4  ;;  %v7258_v18 = vadd.f32 %v7257_v17, %v16794_v40 }
 0x4d7   : > { %12315 = vmatmul.msk.bf16.vlgmr.msrb.gmra.mxu2 %vm18567_vm7, %v16437_v46  ;;  %12316 = vmatmul.msk.bf16.vlgmr.msrb.gmra.mxu0 %vm18568_vm15, %v16437_v46  ;;  %v7695_v9 = vmax.f32 %v7298_v49, 0.0  ;;  %vm18573_vm7 = vcmp.lt.s32.totalorder %v15456_v35, 16  ;;  %vm18574_vm15 = vmmov %vm18563_vm3 }
 0x4d8   : > { %v5640_v42 = vsel %vm18569_vm4, %v5609_v28, %v5610_v27  ;;  %v5642_v50 = vsel %vm18563_vm3, %v5610_v27, %v5611_v43  ;;  %7585 = vmatpush.bf16.msra.mxu2 %v12036_v23  ;;  %7613 = vmatpush.bf16.msra.mxu0 %v12040_v63  ;;  %v13260_v23 = vld [vmem:[#allocation4 + $0x234] sm:$0xf]  ;;  %vm18575_vm4 = vmmov %vm18570_vm11 }
 0x4d9   : > { %7532 = vmatpush.bf16.msrb.mxu3 %v11836_v16  ;;  %7560 = vmatpush.bf16.msrb.mxu1 %v11840_v33  ;;  %v5641_v8 = vsel %vm18570_vm11, %v16656_v54, %v5640_v42  ;;  %v5643_v45 = vsel %vm18571_vm14, %v5591_v30, %v5642_v50  ;;  %v11971_v58 = vld [vmem:[#allocation4 + $0x330] sm:$0xf]  ;;  %v13276_v48 = vld [vmem:[#allocation4 + $0x334] sm:$0xf]  ;;  %v7727_v33 = vsel %vm18572_vm6, %v7695_v9, 0.0  ;;  %vm18576_vm3 = vmmov %vm18573_vm7  ;;  %vm18578_vm14 = vcmask 7168  }
 0x4da   : > { %5674 = vst [vmem:[#allocation4 + $0x2b0] sm:$0xff] %v5641_v8  ;;  %v11972_v28 = vor.u32 %v13284_v12, %v11971_v58  ;;  %v11976_v22 = vor.u32 %v13276_v48, %v11973_v51  ;;  %v7269_v4 = vpop.f32.mrf.mxu3  ;;  %v11907_v30 = vld [vmem:[#allocation4 + $0x230] sm:$0xf]  ;;  %v13244_v50 = vld [vmem:[#allocation4 + $0x134] sm:$0xf]  ;;  %vm18577_vm11 = vmmov %vm18574_vm15 }
 0x4db   : > { %5675 = vst [vmem:[#allocation4 + $0x2b8] sm:$0xff] %v5643_v45  ;;  %v7270_v25 = vadd.f32 %v7269_v4, %v7256_v39  ;;  %v11843_v42 = vld [vmem:[#allocation4 + $0x130] sm:$0xf]  ;;  %v11781_v4 = vld [vmem:[#allocation4 + $0xb0] sm:$0xf0] }
 0x4dc   : > { %7586 = vmatpush.bf16.msra.mxu2 %v11972_v28  ;;  %7614 = vmatpush.bf16.msra.mxu0 %v11976_v22  ;;  %v7299_v54 = vpop.f32.mrf.mxu1  ;;  %v13236_v45 = vld [vmem:[#allocation4 + $0xac] sm:$0xf0] }
 0x4dd   : > { %7533 = vmatpush.bf16.msrb.mxu3 %v11772_v13  ;;  %7561 = vmatpush.bf16.msrb.mxu1 %v11776_v62  ;;  %v16808_v34 = vpop.permute.xlu0 %6252  ;;  %v7300_v52 = vadd.f32 %v7299_v54, %v7286_v47  ;;  %v7694_v16 = vmax.f32 %v7270_v25, 0.0  ;;  %v13252_v62 = vld [vmem:[#allocation4 + $0x1ac] sm:$0xf0]  ;;  %v13349_v47 = vld [vmem:[#allocation4 + $0x7b4] sm:$0xf0] }
 0x4de   : > { %v6281_v55 = vrot.slane %v16808_v34, 4  ;;  %v11844_v49 = vor.u32 %v13252_v62, %v11843_v42  ;;  %v11779_v51 = vld [vmem:[#allocation4 + $0x30] sm:$0xf] }
 0x4df   : > { %v7726_v5 = vsel %vm18573_vm7, %v7694_v16, 0.0  ;;  %v7711_v10 = vmax.f32 %v7300_v52, 0.0  ;;  %v13364_v22 = vld [vmem:[#allocation4 + $0x8ac] sm:$0xf0]  ;;  %v11780_v25 = vor.u32 %v13236_v45, %v11779_v51  ;;  %v12293_v52 = vld [vmem:[#allocation4 + $0x8b0] sm:$0xf0] }
 0x4e0   : > { %7534 = vmatmul.bf16.vlgmr.msrb.gmra.mxu3 %v16362_v59  ;;  %7562 = vmatmul.bf16.vlgmr.msrb.gmra.mxu1 %v16362_v59  ;;  %v6304_v0 = vsel %vm18574_vm15, %v6280_v38, %v6281_v55  ;;  %v16821_v3 = vpack.c.bf16 %v7727_v33, %v7726_v5  ;;  %v11845_v38 = vld [vmem:[#allocation4 + $0x1b0] sm:$0xf0]  ;;  %vm18581_vm15 = vmmov %vm18577_vm11  ;;  %v12107_v51 = vld [vmem:[#allocation4 + $0x538] sm:$0xf] }
 0x4e1   : > { %v6305_v43 = vsel %vm18575_vm4, %v16684_v41, %v6304_v0  ;;  %v13268_v27 = vld [vmem:[#allocation4 + $0x2ac] sm:$0xf0]  ;;  %v11909_v63 = vld [vmem:[#allocation4 + $0x2b0] sm:$0xf0]  ;;  %v7743_v41 = vsel %vm18572_vm6, %v7711_v10, 0.0  ;;  %v11848_v8 = vor.u32 %v13244_v50, %v11845_v38  ;;  %vm18579_vm6 = vcmask 130048   ;;  %vm18582_vm4 = vmmov %vm18577_vm11 }
 0x4e2   : > { %6346 = vst [vmem:[#allocation4 + $0x830] sm:$0xff] %v6305_v43  ;;  %v11908_v29 = vor.u32 %v13268_v27, %v11907_v30  ;;  %v11912_v31 = vor.u32 %v13260_v23, %v11909_v63  ;;  %v7271_v36 = vpop.f32.mrf.mxu3  ;;  %8510 = vrot.lane.b32.xlu0 %v16821_v3, %s13641_s11  ;;  %v13228_v33 = vld [vmem:[#allocation4 + $0x34] sm:$0xf]  ;;  %v12235_v30 = vld [vmem:[#allocation4 + $0x738] sm:$0xf]  ;;  %vm18580_vm7 = vmmov %vm18579_vm6 }
 0x4e3   : > { %v7272_v13 = vadd.f32 %v7271_v36, %v7258_v18  ;;  %7778 = vst [vmem:[#allocation3 + $0x8] sm:$0xff] %v16821_v3  ;;  %v11784_v0 = vor.u32 %v13228_v33, %v11781_v4  ;;  %v12236_v23 = vor.u32 %v13349_v47, %v12235_v30  ;;  %v13325_v27 = vld [vmem:[#allocation4 + $0x63c] sm:$0xf]  ;;  %v13333_v63 = vld [vmem:[#allocation4 + $0x6b4] sm:$0xf0] }
 0x4e4   : > { %7587 = vmatpush.bf16.msra.mxu2 %v11908_v29  ;;  %7615 = vmatpush.bf16.msra.mxu0 %v11912_v31  ;;  %v12173_v10 = vld [vmem:[#allocation4 + $0x6b8] sm:$0xf0] }
 0x4e5   : > { %v7710_v39 = vmax.f32 %v7272_v13, 0.0  ;;  %v5747_v12 = vpop.permute.xlu0 %5746  ;;  %v12176_v38 = vor.u32 %v13325_v27, %v12173_v10  ;;  %v12109_v50 = vld [vmem:[#allocation4 + $0x5b8] sm:$0xf0] }
 0x4e6   : > { %v5765_v58 = vrot.slane %v5747_v12, 4  ;;  %v13309_v47 = vld [vmem:[#allocation4 + $0x53c] sm:$0xf] }
 0x4e7   : > { %v7742_v48 = vsel %vm18576_vm3, %v7710_v39, 0.0  ;;  %v13317_v39 = vld [vmem:[#allocation4 + $0x5b4] sm:$0xf0]  ;;  %vm18583_vm3 = vcmask 1039360  }
 0x4e8   : > { %v16832_v28 = vpack.c.bf16 %v7743_v41, %v7742_v48  ;;  %7588 = vmatpush.bf16.msra.mxu2 %v11844_v49  ;;  %7616 = vmatpush.bf16.msra.mxu0 %v11848_v8  ;;  %v5796_v9 = vsel %vm18577_vm11, %v5764_v56, %v5765_v58  ;;  %v13341_v56 = vld [vmem:[#allocation4 + $0x73c] sm:$0xf]  ;;  %vm18584_vm11 = vmmov %vm18583_vm3 }
 0x4e9   : > { %v12291_v17 = vld [vmem:[#allocation4 + $0x830] sm:$0xf]  ;;  %v13356_v54 = vld [vmem:[#allocation4 + $0x834] sm:$0xf]  ;;  %v5797_v35 = vsel %vm18578_vm14, %v16702_v44, %v5796_v9  ;;  %v12240_v43 = vor.u32 %v13341_v56, %v12237_v57  ;;  %v12171_v44 = vld [vmem:[#allocation4 + $0x638] sm:$0xf]  ;;  %v12108_v57 = vor.u32 %v13317_v39, %v12107_v51  ;;  %v12112_v9 = vor.u32 %v13309_v47, %v12109_v50 }
 0x4ea   : > { %7786 = vst [vmem:[#allocation3 + $0x58] sm:$0xff] %v16832_v28  ;;  %v12292_v16 = vor.u32 %v13364_v22, %v12291_v17  ;;  %v12296_v18 = vor.u32 %v13356_v54, %v12293_v52  ;;  %8528 = vrot.lane.b32.xlu2 %v16832_v28, %s13641_s11  ;;  %v8288_v5 = vld [vmem:[#allocation3 + $0x8] sm:$0xff]  ;;  %v12172_v62 = vor.u32 %v13333_v63, %v12171_v44  ;;  %v12045_v17 = vld [vmem:[#allocation4 + $0x4b8] sm:$0xf0]  ;;  %v12043_v52 = vld [vmem:[#allocation4 + $0x438] sm:$0xf] }
 0x4eb   : > { %5829 = vst [vmem:[#allocation4 + $0x3b8] sm:$0xff] %v5797_v35  ;;  %v16843_v31 = vld [vmem:[#allocation3 + $0x4] sm:$0xff]  ;;  %v13293_v35 = vld [vmem:[#allocation4 + $0x43c] sm:$0xf]  ;;  %v13269_v44 = vld [vmem:[#allocation4 + $0x2b4] sm:$0xf0] }
 0x4ec   : > { %8312 = vst [vmem:[#allocation4 + $0x480] sm:$0xff] %v16832_v28  ;;  %7589 = vmatpush.bf16.msra.mxu2 %v11780_v25  ;;  %7603 = vmatpush.bf16.msra.mxu3 %v12292_v16  ;;  %v13261_v51 = vld [vmem:[#allocation4 + $0x23c] sm:$0xf]  ;;  %vm18585_vm14 = vmmov %vm18579_vm6 }
 0x4ed   : > { %7617 = vmatpush.bf16.msra.mxu0 %v11784_v0  ;;  %7631 = vmatpush.bf16.msra.mxu1 %v12296_v18  ;;  %8304 = vst [vmem:[#allocation4 + $0x400] sm:$0xff] %v8288_v5  ;;  %v13540_v29 = vpop.permute.xlu0 %13539  ;;  %v12048_v18 = vor.u32 %v13293_v35, %v12045_v17 }
 0x4ee   : > { %v13542_v36 = vunpack.i.h.bf16 %v13540_v29  ;;  %v13541_v13 = vunpack.i.l.bf16 %v13540_v29  ;;  %7964 = vst [vmem:[#allocation4 + $0x100] sm:$0xff] %v16843_v31 }
 0x4ef   : > { %7590 = vmatmul.bf16.vlgmr.msra.gmra.mxu2 %v16362_v59  ;;  %v7353_v48 = vpop.f32.mrf.mxu0 }
 0x4f0   : > { %7638 = vmatpush.bf16.msrb.mxu3 %v12236_v23  ;;  %7618 = vmatmul.bf16.vlgmr.msra.gmra.mxu0 %v16362_v59  ;;  %v6291_v41 = vrot.slane %v13542_v36, 4  ;;  %v6282_v42 = vrot.slane %v13541_v13, 4  ;;  %v11979_v23 = vld [vmem:[#allocation4 + $0x338] sm:$0xf] }
 0x4f1   : > { %7666 = vmatpush.bf16.msrb.mxu1 %v12240_v43  ;;  %12317 = vmatmul.msk.bf16.vlgmr.msra.gmra.mxu3 %vm18579_vm6, %v16437_v46  ;;  %v16852_v12 = vld [vmem:[#allocation3 + $0x54] sm:$0xff]  ;;  %v13277_v43 = vld [vmem:[#allocation4 + $0x33c] sm:$0xf] }
 0x4f2   : > { %12318 = vmatmul.msk.bf16.vlgmr.msra.gmra.mxu1 %vm18580_vm7, %v16437_v46  ;;  %7972 = vst [vmem:[#allocation4 + $0x180] sm:$0xff] %v16852_v12  ;;  %v6306_v8 = vsel %vm18581_vm15, %v6281_v55, %v6282_v42  ;;  %v6322_v45 = vsel %vm18582_vm4, %v6290_v37, %v6291_v41  ;;  %v13301_v55 = vld [vmem:[#allocation4 + $0x4b4] sm:$0xf0]  ;;  %v11917_v41 = vld [vmem:[#allocation4 + $0x2b8] sm:$0xf0] }
 0x4f3   : > { %v6307_v22 = vsel %vm18583_vm3, %v16808_v34, %v6306_v8  ;;  %v6323_v4 = vsel %vm18584_vm11, %v16742_v53, %v6322_v45  ;;  %v12044_v34 = vor.u32 %v13301_v55, %v12043_v52  ;;  %v13285_v5 = vld [vmem:[#allocation4 + $0x3b4] sm:$0xf0]  ;;  %v11981_v53 = vld [vmem:[#allocation4 + $0x3b8] sm:$0xf0] }
 0x4f4   : > { %v7339_v49 = vpop.f32.mrf.mxu1  ;;  %7639 = vmatpush.bf16.msrb.mxu3 %v12172_v62  ;;  %6347 = vst [vmem:[#allocation4 + $0x838] sm:$0xff] %v6307_v22  ;;  %v11980_v10 = vor.u32 %v13285_v5, %v11979_v23  ;;  %v11984_v29 = vor.u32 %v13277_v43, %v11981_v53 }
 0x4f5   : > { %7667 = vmatpush.bf16.msrb.mxu1 %v12176_v38  ;;  %v7340_v58 = vadd.f32 %v7339_v49, %v16788_v24  ;;  %6355 = vst [vmem:[#allocation4 + $0x8b8] sm:$0xff] %v6323_v4  ;;  %v7325_v37 = vpop.f32.mrf.mxu2  ;;  %v11920_v4 = vor.u32 %v13261_v51, %v11917_v41 }
 0x4f7   : > { %v7354_v25 = vadd.f32 %v7353_v48, %v7340_v58  ;;  %v7355_v62 = vpop.f32.mrf.mxu0  ;;  %v11915_v48 = vld [vmem:[#allocation4 + $0x238] sm:$0xf] }
 0x4f8   : > { %7640 = vmatpush.bf16.msrb.mxu3 %v12108_v57  ;;  %v11916_v22 = vor.u32 %v13269_v44, %v11915_v48 }
 0x4f9   : > { %7668 = vmatpush.bf16.msrb.mxu1 %v12112_v9  ;;  %v7697_v16 = vmax.f32 %v7354_v25, 0.0  ;;  %v13253_v9 = vld [vmem:[#allocation4 + $0x1b4] sm:$0xf0]  ;;  %v11853_v25 = vld [vmem:[#allocation4 + $0x1b8] sm:$0xf0] }
 0x4fa   : > { %v7311_v54 = vpop.f32.mrf.mxu3 }
 0x4fb   : > { %v7312_v33 = vadd.f32 %v7311_v54, %v16788_v24  ;;  %v7729_v27 = vsel %vm15641_vm9, %v7697_v16, 0.0  ;;  %v12299_v36 = vld [vmem:[#allocation4 + $0x838] sm:$0xf]  ;;  %v13357_v13 = vld [vmem:[#allocation4 + $0x83c] sm:$0xf] }
 0x4fc   : > { %v7341_v30 = vpop.f32.mrf.mxu1  ;;  %7641 = vmatpush.bf16.msrb.mxu3 %v12044_v34  ;;  %v13365_v38 = vld [vmem:[#allocation4 + $0x8b4] sm:$0xf0]  ;;  %v12301_v39 = vld [vmem:[#allocation4 + $0x8b8] sm:$0xf0] }
 0x4fd   : > { %v7326_v0 = vadd.f32 %v7325_v37, %v7312_v33  ;;  %7669 = vmatpush.bf16.msrb.mxu1 %v12048_v18  ;;  %v7342_v56 = vadd.f32 %v7341_v30, %v16794_v40  ;;  %v12300_v49 = vor.u32 %v13365_v38, %v12299_v36  ;;  %v12304_v8 = vor.u32 %v13357_v13, %v12301_v39  ;;  %v7327_v57 = vpop.f32.mrf.mxu2  ;;  %v11851_v37 = vld [vmem:[#allocation4 + $0x138] sm:$0xf]  ;;  %v13245_v54 = vld [vmem:[#allocation4 + $0x13c] sm:$0xf] }
 0x4fe   : > { %v11852_v35 = vor.u32 %v13253_v9, %v11851_v37  ;;  %v11856_v16 = vor.u32 %v13245_v54, %v11853_v25  ;;  %v13237_v33 = vld [vmem:[#allocation4 + $0xb4] sm:$0xf0]  ;;  %v11789_v34 = vld [vmem:[#allocation4 + $0xb8] sm:$0xf0] }
 0x4ff   : > { %v7696_v63 = vmax.f32 %v7326_v0, 0.0  ;;  %v7356_v50 = vadd.f32 %v7355_v62, %v7342_v56  ;;  %7659 = vmatpush.bf16.msrb.mxu2 %v12300_v49  ;;  %7687 = vmatpush.bf16.msrb.mxu0 %v12304_v8  ;;  %v11787_v0 = vld [vmem:[#allocation4 + $0x38] sm:$0xf]  ;;  %v13229_v30 = vld [vmem:[#allocation4 + $0x3c] sm:$0xf] }
 0x500   : > { %7642 = vmatpush.bf16.msrb.mxu3 %v11980_v10  ;;  %v11792_v23 = vor.u32 %v13229_v30, %v11789_v34 }
 0x501   : > { %v7728_v42 = vsel %vm15629_vm8, %v7696_v63, 0.0  ;;  %7670 = vmatpush.bf16.msrb.mxu1 %v11984_v29  ;;  %v7713_v55 = vmax.f32 %v7356_v50, 0.0 }
 0x502   : > { %v16872_v45 = vpack.c.bf16 %v7729_v27, %v7728_v42  ;;  %v7313_v58 = vpop.f32.mrf.mxu3  ;;  %12319 = vmatmul.msk.bf16.vlgmr.msrb.gmra.mxu2 %vm18585_vm14, %v16437_v46  ;;  %12320 = vmatmul.msk.bf16.vlgmr.msrb.gmra.mxu0 %vm18579_vm6, %v16437_v46  ;;  %v11788_v46 = vor.u32 %v13237_v33, %v11787_v0 }
 0x503   : > { %v7314_v47 = vadd.f32 %v7313_v58, %v16794_v40  ;;  %v7745_v18 = vsel %vm15641_vm9, %v7713_v55, 0.0  ;;  %vm18589_vm9 = vnez %v18368_v2 }
 0x504   : > { %7779 = vst [vmem:[#allocation3 + $0x10] sm:$0xff] %v16872_v45  ;;  %8512 = vrot.lane.b32.xlu1 %v16872_v45, %s13641_s11  ;;  %8358 = vrot.lane.b32.xlu2 %v16872_v45, %s13642_s12  ;;  %v7409_v43 = vpop.f32.mrf.mxu1 }
 0x505   : > { %8305 = vst [vmem:[#allocation4 + $0x408] sm:$0xff] %v16872_v45  ;;  %v7328_v17 = vadd.f32 %v7327_v57, %v7314_v47  ;;  %7643 = vmatpush.bf16.msrb.mxu3 %v11916_v22  ;;  %7671 = vmatpush.bf16.msrb.mxu1 %v11920_v4 }
 0x507   : > { %v7712_v52 = vmax.f32 %v7328_v17, 0.0 }
 0x509   : > { %v7744_v5 = vsel %vm15629_vm8, %v7712_v52, 0.0  ;;  %7644 = vmatpush.bf16.msrb.mxu3 %v11852_v35  ;;  %7672 = vmatpush.bf16.msrb.mxu1 %v11856_v16  ;;  %vm18588_vm8 = vnez %v18370_v15 }
 0x50a   : > { %v16889_v53 = vpack.c.bf16 %v7745_v18, %v7744_v5  ;;  %v7381_v27 = vpop.f32.mrf.mxu3 }
 0x50b   : > { %v16891_v56 = vld [vmem:[#allocation3 + $0xc] sm:$0xff] }
 0x50c   : > { %7965 = vst [vmem:[#allocation4 + $0x108] sm:$0xff] %v16891_v56  ;;  %8356 = vrot.lane.b32.xlu1 %v16821_v3, %s13642_s12  ;;  %8530 = vrot.lane.b32.xlu0 %v16889_v53, %s13641_s11  ;;  %v7411_v39 = vpop.f32.mrf.mxu1 }
 0x50d   : > { %8644 = vst [vmem:[#allocation4 + $0x700] sm:$0xff] %v16891_v56  ;;  %v7395_v60 = vpop.f32.mrf.mxu0  ;;  %7645 = vmatpush.bf16.msrb.mxu3 %v11788_v46  ;;  %7673 = vmatpush.bf16.msrb.mxu1 %v11792_v23 }
 0x50e   : > { %7787 = vst [vmem:[#allocation3 + $0x60] sm:$0xff] %v16889_v53  ;;  %v7396_v32 = vadd.f32 %v7395_v60, %v16788_v24  ;;  %8170 = vrot.lane.b32.xlu2 %v16843_v31, %s13641_s11 }
 0x50f   : > { %8313 = vst [vmem:[#allocation4 + $0x488] sm:$0xff] %v16889_v53 }
 0x510   : > { %7646 = vmatmul.bf16.vlgmr.msrb.gmra.mxu3 %v16362_v59  ;;  %7674 = vmatmul.bf16.vlgmr.msrb.gmra.mxu1 %v16362_v59  ;;  %v7410_v44 = vadd.f32 %v7409_v43, %v7396_v32 }
 0x512   : > { %v7699_v13 = vmax.f32 %v7410_v44, 0.0  ;;  %v7383_v48 = vpop.f32.mrf.mxu3 }
 0x513   : > { %v7367_v63 = vpop.f32.mrf.mxu2 }
 0x514   : > { %v7368_v10 = vadd.f32 %v7367_v63, %v16788_v24  ;;  %8376 = vrot.lane.b32.xlu1 %v16889_v53, %s13642_s12  ;;  %8374 = vrot.lane.b32.xlu0 %v16832_v28, %s13642_s12  ;;  %v7731_v41 = vsel %vm15737_vm1, %v7699_v13, 0.0  ;;  %v12771_v51 = vld [vmem:[#allocation4 + $0x700] sm:$0xf]  ;;  %v13478_v47 = vld [vmem:[#allocation4 + $0x704] sm:$0xf] }
 0x515   : > { %v16911_v29 = vld [vmem:[#allocation3 + $0x5c] sm:$0xff]  ;;  %v7397_v36 = vpop.f32.mrf.mxu0 }
 0x516   : > { %7973 = vst [vmem:[#allocation4 + $0x188] sm:$0xff] %v16911_v29  ;;  %v7382_v62 = vadd.f32 %v7381_v27, %v7368_v10  ;;  %v7398_v59 = vadd.f32 %v7397_v36, %v16794_v40  ;;  %8190 = vrot.lane.b32.xlu2 %v16911_v29, %s13641_s11 }
 0x517   : > { %8652 = vst [vmem:[#allocation4 + $0x780] sm:$0xff] %v16911_v29 }
 0x518   : > { %v7698_v38 = vmax.f32 %v7382_v62, 0.0  ;;  %v7412_v50 = vadd.f32 %v7411_v39, %v7398_v59 }
 0x51a   : > { %v7730_v42 = vsel %vm15715_vm2, %v7698_v38, 0.0  ;;  %v7715_v22 = vmax.f32 %v7412_v50, 0.0  ;;  %v7451_v35 = vpop.f32.mrf.mxu1 }
 0x51b   : > { %v16922_v49 = vpack.c.bf16 %v7731_v41, %v7730_v42  ;;  %v7369_v8 = vpop.f32.mrf.mxu2 }
 0x51c   : > { %v7370_v58 = vadd.f32 %v7369_v8, %v16794_v40  ;;  %8172 = vrot.lane.b32.xlu0 %v16891_v56, %s13641_s11  ;;  %8188 = vrot.lane.b32.xlu1 %v16852_v12, %s13641_s11  ;;  %v7747_v37 = vsel %vm15737_vm1, %v7715_v22, 0.0  ;;  %vm18586_vm1 = vnez %v18352_v21 }
 0x51d   : > { %7780 = vst [vmem:[#allocation3 + $0x18] sm:$0xff] %v16922_v49 }
 0x51e   : > { %8306 = vst [vmem:[#allocation4 + $0x410] sm:$0xff] %v16922_v49  ;;  %v7384_v4 = vadd.f32 %v7383_v48, %v7370_v58  ;;  %v13486_v57 = vld [vmem:[#allocation4 + $0x77c] sm:$0xf0]  ;;  %v12773_v9 = vld [vmem:[#allocation4 + $0x780] sm:$0xf0]  ;;  %8016 = vrot.lane.b32.xlu2 %v16843_v31, %s13642_s12  ;;  %v7452_v31 = vadd.f32 %v7451_v35, %v16788_v24 }
 0x51f   : > { %v12772_v25 = vor.u32 %v13486_v57, %v12771_v51  ;;  %v12776_v55 = vor.u32 %v13478_v47, %v12773_v9 }
 0x520   : > { %v7714_v17 = vmax.f32 %v7384_v4, 0.0  ;;  %v7423_v61 = vpop.f32.mrf.mxu3 }
 0x521   : > { %9692 = vmatpush.bf16.msra.mxu2 %v12772_v25  ;;  %9718 = vmatpush.bf16.msra.mxu0 %v12776_v55  ;;  %v7424_v34 = vadd.f32 %v7423_v61, %v16788_v24 }
 0x522   : > { %v7746_v54 = vsel %vm15715_vm2, %v7714_v17, 0.0  ;;  %v7453_v18 = vpop.f32.mrf.mxu1  ;;  %vm18587_vm2 = vnez %v18350_v20  ;;  %v13630_v20 = vld [vmem:[#allocation2 + $0x48] sm:$0xff] }
 0x523   : > { %v16937_v52 = vpack.c.bf16 %v7747_v37, %v7746_v54  ;;  %v7454_v60 = vadd.f32 %v7453_v18, %v16794_v40  ;;  %v13545_v21 = vpack.i.bf16 %v13630_v20, %v13630_v20 }
 0x524   : > { %v16939_v16 = vld [vmem:[#allocation3 + $0x14] sm:$0xff]  ;;  %8514 = vrot.lane.b32.xlu0 %v16922_v49, %s13641_s11  ;;  %v7465_v6 = vpop.f32.mrf.mxu0 }
 0x525   : > { %7966 = vst [vmem:[#allocation4 + $0x110] sm:$0xff] %v16939_v16  ;;  %8532 = vrot.lane.b32.xlu1 %v16937_v52, %s13641_s11  ;;  %v7466_v33 = vadd.f32 %v7465_v6, %v7452_v31 }
 0x526   : > { %8645 = vst [vmem:[#allocation4 + $0x708] sm:$0xff] %v16939_v16  ;;  %8036 = vrot.lane.b32.xlu2 %v16911_v29, %s13642_s12 }
 0x527   : > { %7788 = vst [vmem:[#allocation3 + $0x68] sm:$0xff] %v16937_v52  ;;  %v7701_v30 = vmax.f32 %v7466_v33, 0.0 }
 0x528   : > { %8314 = vst [vmem:[#allocation4 + $0x490] sm:$0xff] %v16937_v52  ;;  %v7425_v43 = vpop.f32.mrf.mxu3 }
 0x529   : > { %v7733_v44 = vsel %vm18586_vm1, %v7701_v30, 0.0 }
 0x52a   : > { %v7437_v5 = vpop.f32.mrf.mxu2 }
 0x52b   : > { %v7438_v46 = vadd.f32 %v7437_v5, %v7424_v34 }
 0x52c   : > { %8018 = vrot.lane.b32.xlu0 %v16891_v56, %s13642_s12  ;;  %v7467_v23 = vpop.f32.mrf.mxu0 }
 0x52d   : > { %8034 = vrot.lane.b32.xlu1 %v16852_v12, %s13642_s12  ;;  %v7700_v32 = vmax.f32 %v7438_v46, 0.0  ;;  %v7468_v27 = vadd.f32 %v7467_v23, %v7454_v60 }
 0x52e   : > { %v16957_v0 = vld [vmem:[#allocation3 + $0x64] sm:$0xff]  ;;  %8696 = vrot.lane.b32.xlu2 %v16891_v56, %s13642_s12  ;;  %v7426_v56 = vadd.f32 %v7425_v43, %v16794_v40 }
 0x52f   : > { %7974 = vst [vmem:[#allocation4 + $0x190] sm:$0xff] %v16957_v0  ;;  %v7732_v12 = vsel %vm18587_vm2, %v7700_v32, 0.0  ;;  %v7717_v36 = vmax.f32 %v7468_v27, 0.0 }
 0x530   : > { %8653 = vst [vmem:[#allocation4 + $0x788] sm:$0xff] %v16957_v0  ;;  %v16968_v63 = vpack.c.bf16 %v7733_v44, %v7732_v12 }
 0x531   : > { %v7749_v59 = vsel %vm18586_vm1, %v7717_v36, 0.0 }
 0x532   : > { %7781 = vst [vmem:[#allocation3 + $0x20] sm:$0xff] %v16968_v63  ;;  %v7439_v10 = vpop.f32.mrf.mxu2 }
 0x533   : > { %8307 = vst [vmem:[#allocation4 + $0x418] sm:$0xff] %v16968_v63  ;;  %v7440_v13 = vadd.f32 %v7439_v10, %v7426_v56 }
 0x534   : > { %8360 = vrot.lane.b32.xlu0 %v16922_v49, %s13642_s12 }
 0x535   : > { %8378 = vrot.lane.b32.xlu1 %v16937_v52, %s13642_s12  ;;  %v7716_v62 = vmax.f32 %v7440_v13, 0.0 }
 0x536   : > { %8716 = vrot.lane.b32.xlu2 %v16957_v0, %s13642_s12 }
 0x537   : > { %v7748_v38 = vsel %vm18587_vm2, %v7716_v62, 0.0 }
 0x538   : > { %v16983_v39 = vpack.c.bf16 %v7749_v59, %v7748_v38 }
 0x539   : > { %v16985_v41 = vld [vmem:[#allocation3 + $0x1c] sm:$0xff] }
 0x53a   : > { %7967 = vst [vmem:[#allocation4 + $0x118] sm:$0xff] %v16985_v41 }
 0x53b   : > { %8646 = vst [vmem:[#allocation4 + $0x710] sm:$0xff] %v16985_v41 }
 0x53c   : > { %8698 = vrot.lane.b32.xlu0 %v16939_v16, %s13642_s12  ;;  %7789 = vst [vmem:[#allocation3 + $0x70] sm:$0xff] %v16983_v39 }
 0x53d   : > { %8714 = vrot.lane.b32.xlu1 %v16911_v29, %s13642_s12  ;;  %8315 = vst [vmem:[#allocation4 + $0x498] sm:$0xff] %v16983_v39 }
 0x53e   : > { %7850 = vrot.lane.b32.xlu2 %v16832_v28, %s13641_s11 }
 0x53f   : > { %v7521_v50 = vpop.f32.mrf.mxu1 }
 0x543   : > { %v17001_v29 = vld [vmem:[#allocation3 + $0x6c] sm:$0xff] }
 0x544   : > { %v7507_v42 = vpop.f32.mrf.mxu0  ;;  %13546 = vrot.lane.b32.xlu0 %v13545_v21, %s13641_s11  ;;  %7975 = vst [vmem:[#allocation4 + $0x198] sm:$0xff] %v17001_v29  ;;  %v17028_v31 = vpop.permute.xlu2 %8528 }
 0x545   : > { %v7508_v8 = vadd.f32 %v7507_v42, %v16788_v24  ;;  %7832 = vrot.lane.b32.xlu1 %v16821_v3, %s13641_s11  ;;  %8654 = vst [vmem:[#allocation4 + $0x790] sm:$0xff] %v17001_v29  ;;  %v7493_v28 = vpop.f32.mrf.mxu3 }
 0x546   : > { %8020 = vrot.lane.b32.xlu2 %v16939_v16, %s13642_s12 }
 0x547   : > { %v7522_v58 = vadd.f32 %v7521_v50, %v7508_v8  ;;  %v7523_v57 = vpop.f32.mrf.mxu1 }
 0x549   : > { %v7703_v22 = vmax.f32 %v7522_v58, 0.0 }
 0x54a   : > { %v7479_v48 = vpop.f32.mrf.mxu2 }
 0x54b   : > { %v7480_v51 = vadd.f32 %v7479_v48, %v16788_v24  ;;  %v7735_v25 = vsel %vm18588_vm8, %v7703_v22, 0.0 }
 0x54c   : > { %v7509_v47 = vpop.f32.mrf.mxu0  ;;  %8174 = vrot.lane.b32.xlu0 %v16939_v16, %s13641_s11 }
 0x54d   : > { %v7494_v3 = vadd.f32 %v7493_v28, %v7480_v51  ;;  %v7510_v4 = vadd.f32 %v7509_v47, %v16794_v40  ;;  %8192 = vrot.lane.b32.xlu1 %v16957_v0, %s13641_s11  ;;  %v7495_v35 = vpop.f32.mrf.mxu3 }
 0x54e   : > { %8534 = vrot.lane.b32.xlu2 %v16983_v39, %s13641_s11 }
 0x54f   : > { %v7702_v9 = vmax.f32 %v7494_v3, 0.0  ;;  %v7524_v17 = vadd.f32 %v7523_v57, %v7510_v4 }
 0x551   : > { %v7734_v55 = vsel %vm18589_vm9, %v7702_v9, 0.0  ;;  %v7719_v61 = vmax.f32 %v7524_v17, 0.0 }
 0x552   : > { %v17019_v37 = vpack.c.bf16 %v7735_v25, %v7734_v55  ;;  %v7481_v54 = vpop.f32.mrf.mxu2 }
 0x553   : > { %v7482_v16 = vadd.f32 %v7481_v54, %v16794_v40  ;;  %v7751_v34 = vsel %vm18588_vm8, %v7719_v61, 0.0  ;;  %vm18603_vm8 = vnez %v18342_v14 }
 0x554   : > { %7782 = vst [vmem:[#allocation3 + $0x28] sm:$0xff] %v17019_v37  ;;  %8038 = vrot.lane.b32.xlu0 %v16957_v0, %s13642_s12  ;;  %v7577_v30 = vpop.f32.mrf.mxu0  ;;  %v8511_v9 = vpop.permute.xlu0 %8510 }
 0x555   : > { %8308 = vst [vmem:[#allocation4 + $0x420] sm:$0xff] %v17019_v37  ;;  %v7496_v6 = vadd.f32 %v7495_v35, %v7482_v16  ;;  %8516 = vrot.lane.b32.xlu1 %v16968_v63, %s13641_s11  ;;  %v8546_v17 = vrot.slane %v8511_v9, 4 }
 0x556   : > { %7834 = vrot.lane.b32.xlu2 %v16872_v45, %s13641_s11 }
 0x557   : > { %v7718_v33 = vmax.f32 %v7496_v6, 0.0 }
 0x559   : > { %v7750_v18 = vsel %vm18589_vm9, %v7718_v33, 0.0 }
 0x55a   : > { %v17036_v5 = vpack.c.bf16 %v7751_v34, %v7750_v18  ;;  %v7549_v46 = vpop.f32.mrf.mxu2 }
 0x55b   : > { %v17038_v0 = vld [vmem:[#allocation3 + $0x24] sm:$0xff] }
 0x55c   : > { %7968 = vst [vmem:[#allocation4 + $0x120] sm:$0xff] %v17038_v0  ;;  %8362 = vrot.lane.b32.xlu0 %v16968_v63, %s13642_s12  ;;  %v7579_v10 = vpop.f32.mrf.mxu0 }
 0x55d   : > { %8647 = vst [vmem:[#allocation4 + $0x718] sm:$0xff] %v17038_v0  ;;  %v7563_v45 = vpop.f32.mrf.mxu1  ;;  %8380 = vrot.lane.b32.xlu1 %v16983_v39, %s13642_s12 }
 0x55e   : > { %7790 = vst [vmem:[#allocation3 + $0x78] sm:$0xff] %v17036_v5  ;;  %v7564_v2 = vadd.f32 %v7563_v45, %v16788_v24  ;;  %8718 = vrot.lane.b32.xlu2 %v17001_v29, %s13642_s12  ;;  %v17050_v15 = vpop.permute.xlu2 %8358 }
 0x55f   : > { %8316 = vst [vmem:[#allocation4 + $0x4a0] sm:$0xff] %v17036_v5 }
 0x560   : > { %v7578_v23 = vadd.f32 %v7577_v30, %v7564_v2 }
 0x562   : > { %v7705_v12 = vmax.f32 %v7578_v23, 0.0  ;;  %v7551_v21 = vpop.f32.mrf.mxu2 }
 0x563   : > { %v7535_v60 = vpop.f32.mrf.mxu3 }
 0x564   : > { %v7536_v32 = vadd.f32 %v7535_v60, %v16788_v24  ;;  %7852 = vrot.lane.b32.xlu0 %v16889_v53, %s13641_s11  ;;  %v7737_v13 = vsel %vm15838_vm10, %v7705_v12, 0.0 }
 0x565   : > { %v17056_v43 = vld [vmem:[#allocation3 + $0x74] sm:$0xff]  ;;  %v7565_v44 = vpop.f32.mrf.mxu1  ;;  %8700 = vrot.lane.b32.xlu1 %v16985_v41, %s13642_s12 }
 0x566   : > { %7976 = vst [vmem:[#allocation4 + $0x1a0] sm:$0xff] %v17056_v43  ;;  %v7550_v27 = vadd.f32 %v7549_v46, %v7536_v32  ;;  %v7566_v56 = vadd.f32 %v7565_v44, %v16794_v40  ;;  %8518 = vrot.lane.b32.xlu2 %v17019_v37, %s13641_s11 }
 0x567   : > { %8655 = vst [vmem:[#allocation4 + $0x798] sm:$0xff] %v17056_v43 }
 0x568   : > { %v7704_v36 = vmax.f32 %v7550_v27, 0.0  ;;  %v17065_v53 = vpop.permute.xlu2 %8170  ;;  %v7580_v59 = vadd.f32 %v7579_v10, %v7566_v56  ;;  %v8555_v10 = vrot.slane %v17028_v31, 4 }
 0x56a   : > { %v7736_v62 = vsel %vm15801_vm0, %v7704_v36, 0.0  ;;  %v7721_v50 = vmax.f32 %v7580_v59, 0.0  ;;  %v8393_v36 = vrot.slane %v17050_v15, 4 }
 0x56b   : > { %v17071_v38 = vpack.c.bf16 %v7737_v13, %v7736_v62  ;;  %v7537_v20 = vpop.f32.mrf.mxu3 }
 0x56c   : > { %v7538_v42 = vadd.f32 %v7537_v20, %v16794_v40  ;;  %8176 = vrot.lane.b32.xlu0 %v16985_v41, %s13641_s11  ;;  %v7753_v22 = vsel %vm15838_vm10, %v7721_v50, 0.0  ;;  %vm18591_vm10 = vcmask 7168  }
 0x56d   : > { %7783 = vst [vmem:[#allocation3 + $0x30] sm:$0xff] %v17071_v38  ;;  %8194 = vrot.lane.b32.xlu1 %v17001_v29, %s13641_s11  ;;  %v7619_v58 = vpop.f32.mrf.mxu0 }
 0x56e   : > { %8309 = vst [vmem:[#allocation4 + $0x428] sm:$0xff] %v17071_v38  ;;  %v7552_v8 = vadd.f32 %v7551_v21, %v7538_v42  ;;  %8040 = vrot.lane.b32.xlu2 %v17001_v29, %s13642_s12  ;;  %v7620_v51 = vadd.f32 %v7619_v58, %v16788_v24 }
 0x56f   : > { %v7633_v48 = vpop.f32.mrf.mxu1 }
 0x570   : > { %v7720_v28 = vmax.f32 %v7552_v8, 0.0  ;;  %v17083_v47 = vpop.permute.xlu2 %8190  ;;  %v7634_v25 = vadd.f32 %v7633_v48, %v7620_v51 }
 0x572   : > { %v7752_v3 = vsel %vm15801_vm0, %v7720_v28, 0.0  ;;  %v7591_v29 = vpop.f32.mrf.mxu2  ;;  %v7707_v35 = vmax.f32 %v7634_v25, 0.0  ;;  %vm18590_vm0 = vmmov %vm18582_vm4 }
 0x573   : > { %v17089_v4 = vpack.c.bf16 %v7753_v22, %v7752_v3  ;;  %v7592_v26 = vadd.f32 %v7591_v29, %v16788_v24  ;;  %vm18592_vm7 = vmmov %vm18590_vm0 }
 0x574   : > { %v17091_v57 = vld [vmem:[#allocation3 + $0x2c] sm:$0xff]  ;;  %8536 = vrot.lane.b32.xlu0 %v17036_v5, %s13641_s11  ;;  %v7605_v55 = vpop.f32.mrf.mxu3  ;;  %v7739_v45 = vsel %vm15696_vm13, %v7707_v35, 0.0  ;;  %vm18593_vm15 = vmmov %vm18590_vm0 }
 0x575   : > { %7969 = vst [vmem:[#allocation4 + $0x128] sm:$0xff] %v17091_v57  ;;  %8022 = vrot.lane.b32.xlu1 %v16985_v41, %s13642_s12  ;;  %v7606_v16 = vadd.f32 %v7605_v55, %v7592_v26  ;;  %v7621_v61 = vpop.f32.mrf.mxu0  ;;  %vm18594_vm4 = vmmov %vm18583_vm3 }
 0x576   : > { %8648 = vst [vmem:[#allocation4 + $0x720] sm:$0xff] %v17091_v57  ;;  %8702 = vrot.lane.b32.xlu2 %v17038_v0, %s13642_s12  ;;  %v17102_v7 = vpop.permute.xlu1 %8512  ;;  %v7622_v41 = vadd.f32 %v7621_v61, %v16794_v40  ;;  %vm18595_vm3 = vmmov %vm18591_vm10 }
 0x577   : > { %7791 = vst [vmem:[#allocation3 + $0x80] sm:$0xff] %v17089_v4  ;;  %v8547_v54 = vrot.slane %v17102_v7, 4  ;;  %v7635_v6 = vpop.f32.mrf.mxu1  ;;  %v7706_v18 = vmax.f32 %v7606_v16, 0.0  ;;  %vm18598_vm11 = vmmov %vm18590_vm0 }
 0x578   : > { %8317 = vst [vmem:[#allocation4 + $0x4a8] sm:$0xff] %v17089_v4  ;;  %v17111_v34 = vpop.permute.xlu2 %8016  ;;  %v7636_v46 = vadd.f32 %v7635_v6, %v7622_v41  ;;  %vm18599_vm14 = vmmov %vm18590_vm0 }
 0x579   : > { %v8564_v33 = vsel %vm18590_vm0, %v8546_v17, %v8547_v54  ;;  %v7738_v2 = vsel %vm15676_vm12, %v7706_v18, 0.0  ;;  %vm18600_vm6 = vmmov %vm18595_vm3 }
 0x57a   : > { %v8565_v30 = vsel %vm18591_vm10, %v8511_v9, %v8564_v33  ;;  %v17120_v23 = vpack.c.bf16 %v7739_v45, %v7738_v2  ;;  %v7593_v60 = vpop.f32.mrf.mxu2  ;;  %v7723_v59 = vmax.f32 %v7636_v46, 0.0  ;;  %v8216_v45 = vrot.slane %v17083_v47, 4  ;;  %vm18601_vm1 = vmmov %vm18595_vm3 }
 0x57b   : > { %8612 = vst [vmem:[#allocation4 + $0x600] sm:$0xff] %v8565_v30  ;;  %v7594_v12 = vadd.f32 %v7593_v60, %v16794_v40  ;;  %vm18602_vm2 = vmmov %vm18590_vm0 }
 0x57c   : > { %8364 = vrot.lane.b32.xlu0 %v17019_v37, %s13642_s12  ;;  %v7607_v32 = vpop.f32.mrf.mxu3  ;;  %7784 = vst [vmem:[#allocation3 + $0x38] sm:$0xff] %v17120_v23  ;;  %v7755_v58 = vsel %vm15696_vm13, %v7723_v59, 0.0  ;;  %vm18597_vm13 = vmmov %vm18594_vm4 }
 0x57d   : > { %8382 = vrot.lane.b32.xlu1 %v17036_v5, %s13642_s12  ;;  %v7608_v20 = vadd.f32 %v7607_v32, %v7594_v12  ;;  %8310 = vst [vmem:[#allocation4 + $0x430] sm:$0xff] %v17120_v23  ;;  %vm18604_vm9 = vmmov %vm18601_vm1 }
 0x57e   : > { %v17124_v44 = vld [vmem:[#allocation3 + $0x7c] sm:$0xff]  ;;  %7854 = vrot.lane.b32.xlu2 %v16937_v52, %s13641_s11  ;;  %v8357_v27 = vpop.permute.xlu1 %8356  ;;  %v17129_v56 = vpop.permute.xlu0 %8530  ;;  %vm18605_vm10 = vmmov %vm18601_vm1 }
 0x57f   : > { %7977 = vst [vmem:[#allocation4 + $0x1a8] sm:$0xff] %v17124_v44  ;;  %v8392_v13 = vrot.slane %v8357_v27, 4  ;;  %v8556_v62 = vrot.slane %v17129_v56, 4  ;;  %v7722_v50 = vmax.f32 %v7608_v20, 0.0  ;;  %v7689_v41 = vpop.f32.mrf.mxu0 }
 0x580   : > { %8656 = vst [vmem:[#allocation4 + $0x7a0] sm:$0xff] %v17124_v44  ;;  %v17143_v42 = vpop.permute.xlu2 %8036 }
 0x581   : > { %v8410_v52 = vsel %vm18592_vm7, %v8392_v13, %v8393_v36  ;;  %v8580_v21 = vsel %vm18593_vm15, %v8555_v10, %v8556_v62  ;;  %v7754_v48 = vsel %vm15676_vm12, %v7722_v50, 0.0  ;;  %vm18596_vm12 = vmmov %vm18590_vm0 }
 0x582   : > { %v8411_v8 = vsel %vm18594_vm4, %v8357_v27, %v8410_v52  ;;  %v8581_v28 = vsel %vm18595_vm3, %v17028_v31, %v8580_v21  ;;  %v17155_v51 = vpack.c.bf16 %v7755_v58, %v7754_v48  ;;  %v12707_v29 = vld [vmem:[#allocation4 + $0x600] sm:$0xf]  ;;  %v13462_v55 = vld [vmem:[#allocation4 + $0x604] sm:$0xf]  ;;  %vm18606_vm7 = vmmov %vm18590_vm0 }
 0x583   : > { %8458 = vst [vmem:[#allocation4 + $0x500] sm:$0xff] %v8411_v8  ;;  %v17165_v3 = vld [vmem:[#allocation3 + $0x34] sm:$0xff]  ;;  %vm18607_vm15 = vmmov %vm18594_vm4 }
 0x584   : > { %8620 = vst [vmem:[#allocation4 + $0x680] sm:$0xff] %v8581_v28  ;;  %8720 = vrot.lane.b32.xlu0 %v17056_v43, %s13642_s12  ;;  %vm18608_vm4 = vmmov %vm18590_vm0 }
 0x585   : > { %7836 = vrot.lane.b32.xlu1 %v16922_v49, %s13641_s11  ;;  %7792 = vst [vmem:[#allocation3 + $0x88] sm:$0xff] %v17155_v51  ;;  %v7661_v60 = vpop.f32.mrf.mxu2  ;;  %vm18609_vm3 = vmmov %vm18597_vm13 }
 0x586   : > { %8024 = vrot.lane.b32.xlu2 %v17038_v0, %s13642_s12  ;;  %v17161_v31 = vpop.permute.xlu1 %8376  ;;  %v8375_v22 = vpop.permute.xlu0 %8374  ;;  %8318 = vst [vmem:[#allocation4 + $0x4b0] sm:$0xff] %v17155_v51 }
 0x587   : > { %v8402_v11 = vrot.slane %v17161_v31, 4  ;;  %v8401_v19 = vrot.slane %v8375_v22, 4  ;;  %7970 = vst [vmem:[#allocation4 + $0x130] sm:$0xff] %v17165_v3 }
 0x588   : > { %v17172_v9 = vpop.permute.xlu2 %8696  ;;  %8649 = vst [vmem:[#allocation4 + $0x728] sm:$0xff] %v17165_v3 }
 0x589   : > { %v8426_v49 = vsel %vm18596_vm12, %v8401_v19, %v8402_v11  ;;  %v13438_v19 = vld [vmem:[#allocation4 + $0x47c] sm:$0xf0]  ;;  %vm18610_vm12 = vmmov %vm18590_vm0 }
 0x58a   : > { %v8427_v25 = vsel %vm18597_vm13, %v8375_v22, %v8426_v49  ;;  %v12643_v10 = vld [vmem:[#allocation4 + $0x500] sm:$0xf]  ;;  %v13446_v21 = vld [vmem:[#allocation4 + $0x504] sm:$0xf]  ;;  %vm18612_vm13 = vmmov %vm18590_vm0 }
 0x58b   : > { %8466 = vst [vmem:[#allocation4 + $0x580] sm:$0xff] %v8427_v25  ;;  %v13470_v26 = vld [vmem:[#allocation4 + $0x67c] sm:$0xf0]  ;;  %v12709_v17 = vld [vmem:[#allocation4 + $0x680] sm:$0xf0] }
 0x58c   : > { %8178 = vrot.lane.b32.xlu0 %v17038_v0, %s13641_s11  ;;  %v12708_v35 = vor.u32 %v13470_v26, %v12707_v29  ;;  %v12712_v16 = vor.u32 %v13462_v55, %v12709_v17  ;;  %v17180_v6 = vld [vmem:[#allocation3 + $0x84] sm:$0xff]  ;;  %v8206_v0 = vrot.slane %v17065_v53, 4  ;;  %v12579_v22 = vld [vmem:[#allocation4 + $0x400] sm:$0xf] }
 0x58d   : > { %v7675_v61 = vpop.f32.mrf.mxu1  ;;  %8196 = vrot.lane.b32.xlu1 %v17056_v43, %s13641_s11  ;;  %7978 = vst [vmem:[#allocation4 + $0x1b0] sm:$0xff] %v17180_v6  ;;  %v12581_v25 = vld [vmem:[#allocation4 + $0x480] sm:$0xf0] }
 0x58e   : > { %v7676_v33 = vadd.f32 %v7675_v61, %v16788_v24  ;;  %8538 = vrot.lane.b32.xlu2 %v17089_v4, %s13641_s11  ;;  %9693 = vmatpush.bf16.msra.mxu2 %v12708_v35  ;;  %v17185_v18 = vpop.permute.xlu0 %8172  ;;  %v8189_v30 = vpop.permute.xlu1 %8188  ;;  %8657 = vst [vmem:[#allocation4 + $0x7a8] sm:$0xff] %v17180_v6  ;;  %v12580_v35 = vor.u32 %v13438_v19, %v12579_v22  ;;  %v8062_v19 = vrot.slane %v17143_v42, 4 }
 0x58f   : > { %9719 = vmatpush.bf16.msra.mxu0 %v12712_v16  ;;  %v8207_v2 = vrot.slane %v17185_v18, 4  ;;  %v8215_v46 = vrot.slane %v8189_v30, 4  ;;  %v7691_v61 = vpop.f32.mrf.mxu0 }
 0x590   : > { %v17198_v27 = vpop.permute.xlu2 %8716  ;;  %v7690_v13 = vadd.f32 %v7689_v41, %v7676_v33 }
 0x591   : > { %v8224_v32 = vsel %vm18598_vm11, %v8206_v0, %v8207_v2  ;;  %v8240_v12 = vsel %vm18599_vm14, %v8215_v46, %v8216_v45  ;;  %vm18613_vm11 = vmmov %vm18609_vm3 }
 0x592   : > { %v8225_v59 = vsel %vm18600_vm6, %v17065_v53, %v8224_v32  ;;  %v8241_v20 = vsel %vm18601_vm1, %v8189_v30, %v8240_v12  ;;  %v13454_v52 = vld [vmem:[#allocation4 + $0x57c] sm:$0xf0]  ;;  %v12645_v50 = vld [vmem:[#allocation4 + $0x580] sm:$0xf0]  ;;  %v7709_v29 = vmax.f32 %v7690_v13, 0.0  ;;  %vm18614_vm14 = vmmov %vm18590_vm0 }
 0x593   : > { %v7647_v8 = vpop.f32.mrf.mxu3  ;;  %8272 = vst [vmem:[#allocation4 + $0x300] sm:$0xff] %v8225_v59  ;;  %v12644_v28 = vor.u32 %v13454_v52, %v12643_v10  ;;  %v12648_v58 = vor.u32 %v13446_v21, %v12645_v50  ;;  %v13430_v53 = vld [vmem:[#allocation4 + $0x404] sm:$0xf]  ;;  %vm18615_vm6 = vmmov %vm18609_vm3 }
 0x594   : > { %v7648_v48 = vadd.f32 %v7647_v8, %v16788_v24  ;;  %8280 = vst [vmem:[#allocation4 + $0x380] sm:$0xff] %v8241_v20  ;;  %8042 = vrot.lane.b32.xlu0 %v17056_v43, %s13642_s12  ;;  %v12584_v33 = vor.u32 %v13430_v53, %v12581_v25  ;;  %v7741_v0 = vsel %vm15588_vm5, %v7709_v29, 0.0  ;;  %v7663_v20 = vpop.f32.mrf.mxu2  ;;  %vm18616_vm1 = vmmov %vm18590_vm0 }
 0x595   : > { %v7677_v49 = vpop.f32.mrf.mxu1  ;;  %8520 = vrot.lane.b32.xlu1 %v17071_v38, %s13641_s11  ;;  %9694 = vmatpush.bf16.msra.mxu2 %v12644_v28 }
 0x596   : > { %v7662_v55 = vadd.f32 %v7661_v60, %v7648_v48  ;;  %7838 = vrot.lane.b32.xlu2 %v16968_v63, %s13641_s11  ;;  %9720 = vmatpush.bf16.msra.mxu0 %v12648_v58  ;;  %v17210_v24 = vpop.permute.xlu0 %8514  ;;  %v7678_v26 = vadd.f32 %v7677_v49, %v16794_v40 }
 0x597   : > { %v8548_v43 = vrot.slane %v17210_v24, 4  ;;  %v17214_v17 = vpop.permute.xlu1 %8532 }
 0x598   : > { %v7708_v16 = vmax.f32 %v7662_v55, 0.0  ;;  %v8557_v41 = vrot.slane %v17214_v17, 4  ;;  %v17222_v30 = vpop.permute.xlu2 %7850  ;;  %v7692_v13 = vadd.f32 %v7691_v61, %v7678_v26 }
 0x599   : > { %v8566_v63 = vsel %vm18602_vm2, %v8547_v54, %v8548_v43  ;;  %9695 = vmatpush.bf16.msra.mxu2 %v12580_v35  ;;  %vm18617_vm2 = vmmov %vm18604_vm9 }
 0x59a   : > { %v7740_v46 = vsel %vm18603_vm8, %v7708_v16, 0.0  ;;  %v8567_v60 = vsel %vm18604_vm9, %v17102_v7, %v8566_v63  ;;  %v8582_v32 = vsel %vm18590_vm0, %v8556_v62, %v8557_v41  ;;  %9721 = vmatpush.bf16.msra.mxu0 %v12584_v33  ;;  %v12515_v54 = vld [vmem:[#allocation4 + $0x300] sm:$0xf]  ;;  %v13414_v12 = vld [vmem:[#allocation4 + $0x304] sm:$0xf]  ;;  %v7725_v58 = vmax.f32 %v7692_v13, 0.0  ;;  %vm18619_vm9 = vmmov %vm18609_vm3 }
 0x59b   : > { %v17235_v10 = vpack.c.bf16 %v7741_v0, %v7740_v46  ;;  %v7649_v59 = vpop.f32.mrf.mxu3  ;;  %8613 = vst [vmem:[#allocation4 + $0x608] sm:$0xff] %v8567_v60  ;;  %v8583_v52 = vsel %vm18605_vm10, %v17129_v56, %v8582_v32  ;;  %v13422_v21 = vld [vmem:[#allocation4 + $0x37c] sm:$0xf0]  ;;  %v12517_v7 = vld [vmem:[#allocation4 + $0x380] sm:$0xf0]  ;;  %vm18620_vm10 = vmmov %vm18609_vm3 }
 0x59c   : > { %v7650_v50 = vadd.f32 %v7649_v59, %v16794_v40  ;;  %8621 = vst [vmem:[#allocation4 + $0x688] sm:$0xff] %v8583_v52  ;;  %8366 = vrot.lane.b32.xlu0 %v17071_v38, %s13642_s12  ;;  %v12516_v62 = vor.u32 %v13422_v21, %v12515_v54  ;;  %v12520_v8 = vor.u32 %v13414_v12, %v12517_v7  ;;  %v8052_v40 = vrot.slane %v17111_v34, 4 }
 0x59d   : > { %7785 = vst [vmem:[#allocation3 + $0x40] sm:$0xff] %v17235_v10  ;;  %8384 = vrot.lane.b32.xlu1 %v17089_v4, %s13642_s12  ;;  %v7757_v16 = vsel %vm15588_vm5, %v7725_v58, 0.0  ;;  %vm18611_vm5 = vmmov %vm18609_vm3 }
 0x59e   : > { %8311 = vst [vmem:[#allocation4 + $0x438] sm:$0xff] %v17235_v10  ;;  %v7664_v28 = vadd.f32 %v7663_v20, %v7650_v50  ;;  %8722 = vrot.lane.b32.xlu2 %v17124_v44, %s13642_s12  ;;  %9696 = vmatpush.bf16.msra.mxu2 %v12516_v62  ;;  %v8019_v56 = vpop.permute.xlu0 %8018 }
 0x59f   : > { %9722 = vmatpush.bf16.msra.mxu0 %v12520_v8  ;;  %v8053_v48 = vrot.slane %v8019_v56, 4  ;;  %v8035_v22 = vpop.permute.xlu1 %8034  ;;  %v13390_v8 = vld [vmem:[#allocation4 + $0x17c] sm:$0xf0] }
 0x5a0   : > { %v7724_v49 = vmax.f32 %v7664_v28, 0.0  ;;  %v8061_v53 = vrot.slane %v8035_v22, 4  ;;  %v17251_v25 = vpop.permute.xlu2 %8020 }
 0x5a1   : > { %v8070_v4 = vsel %vm18606_vm7, %v8052_v40, %v8053_v48  ;;  %v8054_v35 = vrot.slane %v17251_v25, 4  ;;  %v8732_v40 = vrot.slane %v17172_v9, 4  ;;  %vm18621_vm7 = vmmov %vm18590_vm0 }
 0x5a2   : > { %v7756_v29 = vsel %vm18603_vm8, %v7724_v49, 0.0  ;;  %v8071_v55 = vsel %vm18607_vm15, %v17111_v34, %v8070_v4  ;;  %v8086_v26 = vsel %vm18608_vm4, %v8061_v53, %v8062_v19  ;;  %v8742_v49 = vrot.slane %v17198_v27, 4  ;;  %vm18618_vm8 = vmmov %vm18590_vm0 }
 0x5a3   : > { %8118 = vst [vmem:[#allocation4 + $0x200] sm:$0xff] %v8071_v55  ;;  %v8087_v61 = vsel %vm18609_vm3, %v8035_v22, %v8086_v26  ;;  %v17266_v14 = vpack.c.bf16 %v7757_v16, %v7756_v29  ;;  %v8072_v34 = vsel %vm18610_vm12, %v8053_v48, %v8054_v35  ;;  %vm18622_vm15 = vmmov %vm18590_vm0 }
 0x5a4   : > { %v17264_v33 = vld [vmem:[#allocation3 + $0x3c] sm:$0xff]  ;;  %v8635_v63 = vld [vmem:[#allocation3 + $0x44] sm:$0xff]  ;;  %8126 = vst [vmem:[#allocation4 + $0x280] sm:$0xff] %v8087_v61  ;;  %7856 = vrot.lane.b32.xlu0 %v16983_v39, %s13641_s11  ;;  %v8073_v0 = vsel %vm18611_vm5, %v8019_v56, %v8072_v34  ;;  %vm18623_vm4 = vmmov %vm18590_vm0 }
 0x5a5   : > { %7971 = vst [vmem:[#allocation4 + $0x138] sm:$0xff] %v17264_v33  ;;  %8704 = vrot.lane.b32.xlu1 %v17091_v57, %s13642_s12  ;;  %v12389_v56 = vld [vmem:[#allocation4 + $0x180] sm:$0xf0]  ;;  %vm18624_vm3 = vmmov %vm18617_vm2 }
 0x5a6   : > { %8650 = vst [vmem:[#allocation4 + $0x730] sm:$0xff] %v17264_v33  ;;  %8522 = vrot.lane.b32.xlu2 %v17120_v23, %s13641_s11  ;;  %v17279_v1 = vpop.permute.xlu0 %8360  ;;  %vm18625_vm12 = vmmov %vm18617_vm2 }
 0x5a7   : > { %8651 = vst [vmem:[#allocation4 + $0x738] sm:$0xff] %v8635_v63  ;;  %v8394_v46 = vrot.slane %v17279_v1, 4  ;;  %v17283_v60 = vpop.permute.xlu1 %8378  ;;  %vm18626_vm5 = vmmov %vm18617_vm2 }
 0x5a8   : > { %7793 = vst [vmem:[#allocation3 + $0x90] sm:$0xff] %v17266_v14  ;;  %v8403_v39 = vrot.slane %v17283_v60, 4  ;;  %v17293_v54 = vpop.permute.xlu2 %8534 }
 0x5a9   : > { %8319 = vst [vmem:[#allocation4 + $0x4b8] sm:$0xff] %v17266_v14  ;;  %v8412_v32 = vsel %vm18612_vm13, %v8393_v36, %v8394_v46  ;;  %v8558_v59 = vrot.slane %v17293_v54, 4  ;;  %vm18627_vm13 = vmmov %vm18590_vm0 }
 0x5aa   : > { %8119 = vst [vmem:[#allocation4 + $0x208] sm:$0xff] %v8073_v0  ;;  %v8413_v12 = vsel %vm18613_vm11, %v17050_v15, %v8412_v32  ;;  %v8428_v13 = vsel %vm18614_vm14, %v8402_v11, %v8403_v39  ;;  %v12451_v20 = vld [vmem:[#allocation4 + $0x200] sm:$0xf]  ;;  %v13398_v52 = vld [vmem:[#allocation4 + $0x204] sm:$0xf]  ;;  %vm18628_vm11 = vmmov %vm18615_vm6 }
 0x5ab   : > { %8459 = vst [vmem:[#allocation4 + $0x508] sm:$0xff] %v8413_v12  ;;  %v8429_v36 = vsel %vm18615_vm6, %v17161_v31, %v8428_v13  ;;  %v13406_v21 = vld [vmem:[#allocation4 + $0x27c] sm:$0xf0]  ;;  %v12453_v7 = vld [vmem:[#allocation4 + $0x280] sm:$0xf0]  ;;  %v8584_v15 = vsel %vm18616_vm1, %v8557_v41, %v8558_v59  ;;  %v7876_v13 = vrot.slane %v17222_v30, 4  ;;  %vm18629_vm14 = vmmov %vm18590_vm0 }
 0x5ac   : > { %8467 = vst [vmem:[#allocation4 + $0x588] sm:$0xff] %v8429_v36  ;;  %8180 = vrot.lane.b32.xlu0 %v17091_v57, %s13641_s11  ;;  %v12452_v11 = vor.u32 %v13406_v21, %v12451_v20  ;;  %v12456_v50 = vor.u32 %v13398_v52, %v12453_v7  ;;  %v8585_v62 = vsel %vm18617_vm2, %v17214_v17, %v8584_v15  ;;  %v12387_v31 = vld [vmem:[#allocation4 + $0x100] sm:$0xf]  ;;  %v13382_v41 = vld [vmem:[#allocation4 + $0x104] sm:$0xf]  ;;  %vm18630_vm6 = vmmov %vm18617_vm2 }
 0x5ad   : > { %8198 = vrot.lane.b32.xlu1 %v17124_v44, %s13641_s11  ;;  %8622 = vst [vmem:[#allocation4 + $0x690] sm:$0xff] %v8585_v62  ;;  %v12388_v53 = vor.u32 %v13390_v8, %v12387_v31  ;;  %v12392_v55 = vor.u32 %v13382_v41, %v12389_v56  ;;  %v13487_v21 = vld [vmem:[#allocation4 + $0x784] sm:$0xf0]  ;;  %v12781_v56 = vld [vmem:[#allocation4 + $0x788] sm:$0xf0]  ;;  %vm18631_vm1 = vmmov %vm18590_vm0 }
 0x5ae   : > { %8044 = vrot.lane.b32.xlu2 %v17124_v44, %s13642_s12  ;;  %9697 = vmatpush.bf16.msra.mxu2 %v12452_v11  ;;  %v17318_v28 = vpop.permute.xlu0 %8698 }
 0x5af   : > { %v17321_v58 = vld [vmem:[#allocation3 + $0x8c] sm:$0xff]  ;;  %v17323_v48 = vld [vmem:[#allocation3 + $0x94] sm:$0xff]  ;;  %9723 = vmatpush.bf16.msra.mxu0 %v12456_v50  ;;  %v8733_v17 = vrot.slane %v17318_v28, 4  ;;  %v8715_v22 = vpop.permute.xlu1 %8714 }
 0x5b0   : > { %7979 = vst [vmem:[#allocation4 + $0x1b8] sm:$0xff] %v17321_v58  ;;  %v8741_v44 = vrot.slane %v8715_v22, 4  ;;  %v17332_v29 = vpop.permute.xlu2 %7834 }
 0x5b1   : > { %8658 = vst [vmem:[#allocation4 + $0x7b0] sm:$0xff] %v17321_v58  ;;  %v8750_v4 = vsel %vm18618_vm8, %v8732_v40, %v8733_v17  ;;  %v7868_v32 = vrot.slane %v17332_v29, 4  ;;  %vm18632_vm8 = vmmov %vm18590_vm0 }
 0x5b2   : > { %8659 = vst [vmem:[#allocation4 + $0x7b8] sm:$0xff] %v17323_v48  ;;  %v8751_v26 = vsel %vm18619_vm9, %v17172_v9, %v8750_v4  ;;  %v8766_v16 = vsel %vm18590_vm0, %v8741_v44, %v8742_v49  ;;  %9698 = vmatpush.bf16.msra.mxu2 %v12388_v53  ;;  %v12779_v53 = vld [vmem:[#allocation4 + $0x708] sm:$0xf] }
 0x5b3   : > { %8798 = vst [vmem:[#allocation4 + $0x800] sm:$0xff] %v8751_v26  ;;  %v8767_v61 = vsel %vm18620_vm10, %v8715_v22, %v8766_v16  ;;  %9724 = vmatpush.bf16.msra.mxu0 %v12392_v55  ;;  %v13479_v16 = vld [vmem:[#allocation4 + $0x70c] sm:$0xf]  ;;  %vm18633_vm10 = vmmov %vm18590_vm0 }
 0x5b4   : > { %8806 = vst [vmem:[#allocation4 + $0x880] sm:$0xff] %v8767_v61  ;;  %8540 = vrot.lane.b32.xlu0 %v17155_v51, %s13641_s11  ;;  %v12715_v61 = vld [vmem:[#allocation4 + $0x608] sm:$0xf] }
 0x5b5   : > { %8026 = vrot.lane.b32.xlu1 %v17091_v57, %s13642_s12 }
 0x5b6   : > { %8706 = vrot.lane.b32.xlu2 %v17165_v3, %s13642_s12  ;;  %v13547_v63 = vpop.permute.xlu0 %13546 }
 0x5b7   : > { %v13549_v34 = vunpack.i.h.bf16 %v13547_v63  ;;  %v13548_v9 = vunpack.i.l.bf16 %v13547_v63  ;;  %v7833_v0 = vpop.permute.xlu1 %7832  ;;  %v12780_v63 = vor.u32 %v13487_v21, %v12779_v53 }
 0x5b8   : > { %v7867_v12 = vrot.slane %v7833_v0, 4  ;;  %v17347_v36 = vpop.permute.xlu2 %8718 }
 0x5b9   : > { %v7875_v20 = vrot.slane %v13549_v34, 4  ;;  %v7866_v52 = vrot.slane %v13548_v9, 4  ;;  %v8743_v7 = vrot.slane %v17347_v36, 4 }
 0x5ba   : > { %v7886_v57 = vsel %vm18621_vm7, %v7867_v12, %v7868_v32  ;;  %v12835_v15 = vld [vmem:[#allocation4 + $0x800] sm:$0xf]  ;;  %v13494_v11 = vld [vmem:[#allocation4 + $0x804] sm:$0xf]  ;;  %vm18634_vm7 = vcmask 130048  }
 0x5bb   : > { %v7900_v50 = vsel %vm18622_vm15, %v7875_v20, %v7876_v13  ;;  %v7884_v62 = vsel %vm18623_vm4, %v7866_v52, %v7867_v12  ;;  %v7887_v31 = vsel %vm18624_vm3, %v7833_v0, %v7886_v57  ;;  %v13502_v8 = vld [vmem:[#allocation4 + $0x87c] sm:$0xf0]  ;;  %v12837_v41 = vld [vmem:[#allocation4 + $0x880] sm:$0xf0]  ;;  %v8768_v44 = vsel %vm18627_vm13, %v8742_v49, %v8743_v7  ;;  %v13471_v0 = vld [vmem:[#allocation4 + $0x684] sm:$0xf0] }
 0x5bc   : > { %v7901_v40 = vsel %vm18625_vm12, %v13549_v34, %v7900_v50  ;;  %v7885_v22 = vsel %vm18626_vm5, %v13548_v9, %v7884_v62  ;;  %7933 = vst [vmem:[#allocation4 + $0x8] sm:$0xff] %v7887_v31  ;;  %8368 = vrot.lane.b32.xlu0 %v17120_v23, %s13642_s12  ;;  %v8769_v4 = vsel %vm18628_vm11, %v17198_v27, %v8768_v44  ;;  %v13463_v34 = vld [vmem:[#allocation4 + $0x60c] sm:$0xf]  ;;  %v8814_v27 = vld [vmem:[%s18281_s6] sm:$0xf]  ;;  %vm18635_vm15 = vmmov %vm18634_vm7 }
 0x5bd   : > { %7940 = vst [vmem:[#allocation4 + $0x80] sm:$0xff] %v7901_v40  ;;  %8386 = vrot.lane.b32.xlu1 %v17155_v51, %s13642_s12  ;;  %v12836_v55 = vor.u32 %v13502_v8, %v12835_v15  ;;  %v12840_v26 = vor.u32 %v13494_v11, %v12837_v41  ;;  %v12784_v23 = vor.u32 %v13479_v16, %v12781_v56  ;;  %v12717_v12 = vld [vmem:[#allocation4 + $0x688] sm:$0xf0]  ;;  %v12651_v50 = vld [vmem:[#allocation4 + $0x508] sm:$0xf]  ;;  %vm18636_vm4 = vmmov %vm18617_vm2 }
 0x5be   : > { %7932 = vst [vmem:[#allocation4] sm:$0xff] %v7885_v22  ;;  %7858 = vrot.lane.b32.xlu2 %v17036_v5, %s13641_s11  ;;  %v17371_v49 = vpop.permute.xlu0 %8174  ;;  %v12716_v15 = vor.u32 %v13471_v0, %v12715_v61  ;;  %v12720_v11 = vor.u32 %v13463_v34, %v12717_v12  ;;  %v13447_v62 = vld [vmem:[#allocation4 + $0x50c] sm:$0xf]  ;;  %vm18637_vm3 = vmmov %vm18617_vm2 }
 0x5bf   : > { %8807 = vst [vmem:[#allocation4 + $0x888] sm:$0xff] %v8769_v4  ;;  %9712 = vmatpush.bf16.msra.mxu3 %v12836_v55  ;;  %9738 = vmatpush.bf16.msra.mxu1 %v12840_v26  ;;  %v8208_v51 = vrot.slane %v17371_v49, 4  ;;  %v17377_v9 = vpop.permute.xlu1 %8192  ;;  %v12653_v8 = vld [vmem:[#allocation4 + $0x588] sm:$0xf0]  ;;  %v13439_v4 = vld [vmem:[#allocation4 + $0x484] sm:$0xf0]  ;;  %vm18638_vm12 = vmmov %vm18590_vm0 }
 0x5c0   : > { %v8217_v5 = vrot.slane %v17377_v9, 4  ;;  %8966 = vst [vmem:[#allocation1] ss:$4 sm:$0xff] %v8814_v27  ;;  %v17385_v52 = vpop.permute.xlu2 %8518  ;;  %v12656_v22 = vor.u32 %v13447_v62, %v12653_v8  ;;  %v12589_v55 = vld [vmem:[#allocation4 + $0x488] sm:$0xf0]  ;;  %vm18639_vm5 = vmmov %vm18619_vm9 }
 0x5c1   : > { %v8226_v20 = vsel %vm18629_vm14, %v8207_v2, %v8208_v51  ;;  %v13455_v2 = vld [vmem:[#allocation4 + $0x584] sm:$0xf0]  ;;  %v13431_v34 = vld [vmem:[#allocation4 + $0x40c] sm:$0xf]  ;;  %vm18640_vm13 = vmmov %vm18590_vm0 }
 0x5c2   : > { %v8227_v21 = vsel %vm18630_vm6, %v17185_v18, %v8226_v20  ;;  %v8242_v57 = vsel %vm18631_vm1, %v8216_v45, %v8217_v5  ;;  %v12592_v20 = vor.u32 %v13431_v34, %v12589_v55  ;;  %vm18641_vm11 = vmmov %vm18639_vm5  ;;  %v12397_v34 = vld [vmem:[#allocation4 + $0x188] sm:$0xf0] }
 0x5c3   : > { %9744 = vmatpush.bf16.msrb.mxu3 %v12780_v63  ;;  %9770 = vmatpush.bf16.msrb.mxu1 %v12784_v23  ;;  %8273 = vst [vmem:[#allocation4 + $0x308] sm:$0xff] %v8227_v21  ;;  %v8243_v31 = vsel %vm18617_vm2, %v17083_v47, %v8242_v57  ;;  %v12652_v47 = vor.u32 %v13455_v2, %v12651_v50  ;;  %v8550_v63 = vrot.slane %v17385_v52, 4  ;;  %vm18642_vm14 = vmmov %vm18590_vm0 }
 0x5c4   : > { %8281 = vst [vmem:[#allocation4 + $0x388] sm:$0xff] %v8243_v31  ;;  %v13374_v18 = vld [vmem:[#allocation4 + $0x7c] sm:$0xf0]  ;;  %v12325_v41 = vld [vmem:[#allocation4 + $0x80] sm:$0xf0]  ;;  %8724 = vrot.lane.b32.xlu0 %v17180_v6, %s13642_s12  ;;  %vm18643_vm6 = vmmov %vm18639_vm5 }
 0x5c5   : > { %7840 = vrot.lane.b32.xlu1 %v17019_v37, %s13641_s11  ;;  %v12323_v45 = vld [vmem:[#allocation4] sm:$0xf]  ;;  %v13366_v56 = vld [vmem:[#allocation4 + $0x4] sm:$0xf]  ;;  %v12587_v37 = vld [vmem:[#allocation4 + $0x408] sm:$0xf] }
 0x5c6   : > { %8028 = vrot.lane.b32.xlu2 %v17165_v3, %s13642_s12  ;;  %v8039_v40 = vpop.permute.xlu0 %8038  ;;  %v12324_v44 = vor.u32 %v13374_v18, %v12323_v45  ;;  %v12328_v53 = vor.u32 %v13366_v56, %v12325_v41  ;;  %v12588_v12 = vor.u32 %v13439_v4, %v12587_v37  ;;  %vm18644_vm1 = vmmov %vm18590_vm0 }
 0x5c7   : > { %9745 = vmatpush.bf16.msrb.mxu3 %v12716_v15  ;;  %9771 = vmatpush.bf16.msrb.mxu1 %v12720_v11  ;;  %v8063_v26 = vrot.slane %v8039_v40, 4  ;;  %v8517_v16 = vpop.permute.xlu1 %8516  ;;  %v17402_v61 = vld.sshfl [vmem:[#allocation1 + $0x8] sm:$0xff pattern:$0x73625140] }
 0x5c8   : > { %v8549_v23 = vrot.slane %v8517_v16, 4  ;;  %v17408_v0 = vpop.permute.xlu2 %8040  ;;  %9699 = vmatpush.bf16.msra.mxu2 %v12324_v44  ;;  %9725 = vmatpush.bf16.msra.mxu0 %v12328_v53  ;;  %v17410_v21 = vld.sshfl [vmem:[#allocation1] sm:$0xff pattern:$0x73625140]  ;;  %v12459_v44 = vld [vmem:[#allocation4 + $0x208] sm:$0xf] }
 0x5c9   : > { %v8088_v27 = vsel %vm18632_vm8, %v8062_v19, %v8063_v26  ;;  %v8064_v19 = vrot.slane %v17408_v0, 4  ;;  %12897 = vmatmul.msk.bf16.vlgmr.msra.gmra.mxu3 %vm18634_vm7, %v17402_v61  ;;  %12898 = vmatmul.msk.bf16.vlgmr.msra.gmra.mxu1 %vm18635_vm15, %v17402_v61  ;;  %vm18645_vm8 = vmmov %vm18590_vm0 }
 0x5ca   : > { %v8089_v57 = vsel %vm18619_vm9, %v17143_v42, %v8088_v27  ;;  %v8568_v15 = vsel %vm18590_vm0, %v8548_v43, %v8549_v23  ;;  %v8570_v11 = vsel %vm18633_vm10, %v8549_v23, %v8550_v63  ;;  %v12523_v50 = vld [vmem:[#allocation4 + $0x308] sm:$0xf]  ;;  %v13415_v62 = vld [vmem:[#allocation4 + $0x30c] sm:$0xf]  ;;  %vm18646_vm9 = vmmov %vm18590_vm0 }
 0x5cb   : > { %9746 = vmatpush.bf16.msrb.mxu3 %v12652_v47  ;;  %9772 = vmatpush.bf16.msrb.mxu1 %v12656_v22  ;;  %8127 = vst [vmem:[#allocation4 + $0x288] sm:$0xff] %v8089_v57  ;;  %v8569_v42 = vsel %vm18636_vm4, %v17210_v24, %v8568_v15  ;;  %v8571_v43 = vsel %vm18637_vm3, %v8517_v16, %v8570_v11  ;;  %v13423_v31 = vld [vmem:[#allocation4 + $0x384] sm:$0xf0]  ;;  %v12525_v2 = vld [vmem:[#allocation4 + $0x388] sm:$0xf0]  ;;  %vm18647_vm0 = vmmov %vm18639_vm5 }
 0x5cc   : > { %8614 = vst [vmem:[#allocation4 + $0x610] sm:$0xff] %v8569_v42  ;;  %v8090_v8 = vsel %vm18638_vm12, %v8063_v26, %v8064_v19  ;;  %v12524_v18 = vor.u32 %v13423_v31, %v12523_v50  ;;  %v12528_v41 = vor.u32 %v13415_v62, %v12525_v2  ;;  %8182 = vrot.lane.b32.xlu0 %v17165_v3, %s13641_s11  ;;  %v13399_v26 = vld [vmem:[#allocation4 + $0x20c] sm:$0xf]  ;;  %vm18648_vm10 = vmmov %vm18647_vm0 }
 0x5cd   : > { %8615 = vst [vmem:[#allocation4 + $0x618] sm:$0xff] %v8571_v43  ;;  %v8091_v45 = vsel %vm18639_vm5, %v8039_v40, %v8090_v8  ;;  %8200 = vrot.lane.b32.xlu1 %v17180_v6, %s13641_s11  ;;  %9700 = vmatmul.bf16.vlgmr.msra.gmra.mxu2 %v17410_v21  ;;  %v13383_v11 = vld [vmem:[#allocation4 + $0x10c] sm:$0xf]  ;;  %vm18649_vm7 = vmmov %vm18644_vm1 }
 0x5ce   : > { %8128 = vst [vmem:[#allocation4 + $0x290] sm:$0xff] %v8091_v45  ;;  %8542 = vrot.lane.b32.xlu2 %v17266_v14, %s13641_s11  ;;  %v17438_v24 = vpop.permute.xlu0 %8362  ;;  %9726 = vmatmul.bf16.vlgmr.msra.gmra.mxu0 %v17410_v21  ;;  %v12400_v62 = vor.u32 %v13383_v11, %v12397_v34  ;;  %vm18650_vm15 = vmmov %vm18617_vm2  ;;  %v8491_v45 = vld [vmem:[#allocation3 + $0x98] sm:$0xf]  ;;  %v13480_v11 = vld [vmem:[#allocation4 + $0x714] sm:$0xf] }
 0x5cf   : > { %9747 = vmatpush.bf16.msrb.mxu3 %v12588_v12  ;;  %9773 = vmatpush.bf16.msrb.mxu1 %v12592_v20  ;;  %v8395_v56 = vrot.slane %v17438_v24, 4  ;;  %v17442_v47 = vpop.permute.xlu1 %8380  ;;  %vm18651_vm4 = vmmov %vm18644_vm1 }
 0x5d0   : > { %v8404_v40 = vrot.slane %v17442_v47, 4  ;;  %v17451_v22 = vpop.permute.xlu2 %8702  ;;  %vm18652_vm3 = vmmov %vm18617_vm2 }
 0x5d1   : > { %v8414_v3 = vsel %vm18640_vm13, %v8394_v46, %v8395_v56  ;;  %v8735_v20 = vrot.slane %v17451_v22, 4  ;;  %vm18653_vm12 = vmmov %vm18644_vm1 }
 0x5d2   : > { %v8415_v53 = vsel %vm18641_vm11, %v17279_v1, %v8414_v3  ;;  %v8430_v4 = vsel %vm18642_vm14, %v8403_v39, %v8404_v40  ;;  %v13407_v55 = vld [vmem:[#allocation4 + $0x284] sm:$0xf0]  ;;  %v12461_v16 = vld [vmem:[#allocation4 + $0x288] sm:$0xf0]  ;;  %vm18654_vm5 = vmmov %vm18617_vm2 }
 0x5d3   : > { %9748 = vmatpush.bf16.msrb.mxu3 %v12524_v18  ;;  %9774 = vmatpush.bf16.msrb.mxu1 %v12528_v41  ;;  %8460 = vst [vmem:[#allocation4 + $0x510] sm:$0xff] %v8415_v53  ;;  %v8431_v23 = vsel %vm18643_vm6, %v17283_v60, %v8430_v4  ;;  %v12460_v46 = vor.u32 %v13407_v55, %v12459_v44  ;;  %v13391_v1 = vld [vmem:[#allocation4 + $0x184] sm:$0xf0]  ;;  %v13367_v4 = vld [vmem:[#allocation4 + $0xc] sm:$0xf]  ;;  %vm18655_vm13 = vmmov %vm18644_vm1 }
 0x5d4   : > { %v12464_v37 = vor.u32 %v13399_v26, %v12461_v16  ;;  %8468 = vst [vmem:[#allocation4 + $0x590] sm:$0xff] %v8431_v23  ;;  %8046 = vrot.lane.b32.xlu0 %v17180_v6, %s13642_s12  ;;  %v12395_v60 = vld [vmem:[#allocation4 + $0x108] sm:$0xf]  ;;  %v13488_v55 = vld [vmem:[#allocation4 + $0x78c] sm:$0xf0]  ;;  %vm18656_vm11 = vmmov %vm18617_vm2 }
 0x5d5   : > { %8524 = vrot.lane.b32.xlu1 %v17235_v10, %s13641_s11  ;;  %v12396_v15 = vor.u32 %v13391_v1, %v12395_v60  ;;  %v8482_v41 = vld [vmem:[#allocation3 + $0x48] sm:$0xf]  ;;  %v12845_v1 = vld [vmem:[#allocation4 + $0x888] sm:$0xf0]  ;;  %vm18657_vm14 = vmmov %vm18644_vm1 }
 0x5d6   : > { %7842 = vrot.lane.b32.xlu2 %v17071_v38, %s13641_s11  ;;  %v7853_v39 = vpop.permute.xlu0 %7852  ;;  %v12331_v44 = vld [vmem:[#allocation4 + $0x8] sm:$0xf]  ;;  %v13550_v23 = vpack.i.bf16 %v8491_v45, %v8482_v41  ;;  %v13472_v41 = vld [vmem:[#allocation4 + $0x68c] sm:$0xf0]  ;;  %v13464_v45 = vld [vmem:[#allocation4 + $0x614] sm:$0xf] }
 0x5d7   : > { %9749 = vmatpush.bf16.msrb.mxu3 %v12460_v46  ;;  %9775 = vmatpush.bf16.msrb.mxu1 %v12464_v37  ;;  %v7877_v27 = vrot.slane %v7853_v39, 4  ;;  %v8701_v12 = vpop.permute.xlu1 %8700  ;;  %v13503_v53 = vld [vmem:[#allocation4 + $0x884] sm:$0xf0]  ;;  %vm18658_vm6 = vmmov %vm18644_vm1 }
 0x5d8   : > { %v8734_v57 = vrot.slane %v8701_v12, 4  ;;  %v17472_v50 = vpop.permute.xlu2 %7854 }
 0x5d9   : > { %v7902_v6 = vsel %vm18644_vm1, %v7876_v13, %v7877_v27  ;;  %v7878_v31 = vrot.slane %v17472_v50, 4  ;;  %vm18659_vm1 = vcmask 130048  }
 0x5da   : > { %v7903_v38 = vsel %vm18617_vm2, %v17222_v30, %v7902_v6  ;;  %v8752_v42 = vsel %vm18645_vm8, %v8733_v17, %v8734_v57  ;;  %v8754_v43 = vsel %vm18646_vm9, %v8734_v57, %v8735_v20  ;;  %vm18660_vm2 = vmmov %vm18647_vm0 }
 0x5db   : > { %9750 = vmatpush.bf16.msrb.mxu3 %v12396_v15  ;;  %7941 = vst [vmem:[#allocation4 + $0x88] sm:$0xff] %v7903_v38  ;;  %v8753_v13 = vsel %vm18647_vm0, %v17318_v28, %v8752_v42  ;;  %v8755_v2 = vsel %vm18648_vm10, %v8701_v12, %v8754_v43  ;;  %9776 = vmatpush.bf16.msrb.mxu1 %v12400_v62  ;;  %v12789_v15 = vld [vmem:[#allocation4 + $0x790] sm:$0xf0]  ;;  %v12723_v62 = vld [vmem:[#allocation4 + $0x610] sm:$0xf]  ;;  %vm18661_vm8 = vmmov %vm18647_vm0 }
 0x5dc   : > { %8799 = vst [vmem:[#allocation4 + $0x808] sm:$0xff] %v8753_v13  ;;  %v7904_v30 = vsel %vm18649_vm7, %v7877_v27, %v7878_v31  ;;  %8370 = vrot.lane.b32.xlu0 %v17235_v10, %s13642_s12  ;;  %v8328_v38 = vld [vmem:[#allocation3 + $0x48] sm:$0xf]  ;;  %v8337_v42 = vld [vmem:[#allocation3 + $0x98] sm:$0xf]  ;;  %vm18662_vm9 = vmmov %vm18659_vm1 }
 0x5dd   : > { %8800 = vst [vmem:[#allocation4 + $0x810] sm:$0xff] %v8755_v2  ;;  %v7905_v17 = vsel %vm18650_vm15, %v7853_v39, %v7904_v30  ;;  %8388 = vrot.lane.b32.xlu1 %v17266_v14, %s13642_s12  ;;  %v12792_v2 = vor.u32 %v13480_v11, %v12789_v15  ;;  %vm18663_vm0 = vmmov %vm18651_vm4  ;;  %v13440_v15 = vld [vmem:[#allocation4 + $0x48c] sm:$0xf0]  ;;  %v12597_v11 = vld [vmem:[#allocation4 + $0x490] sm:$0xf0] }
 0x5de   : > { %7942 = vst [vmem:[#allocation4 + $0x90] sm:$0xff] %v7905_v17  ;;  %8726 = vrot.lane.b32.xlu2 %v17321_v58, %s13642_s12  ;;  %v17496_v28 = vpop.permute.xlu0 %8176  ;;  %vm18664_vm10 = vmmov %vm18652_vm3 }
 0x5df   : > { %v8209_v8 = vrot.slane %v17496_v28, 4  ;;  %v17499_v18 = vpop.permute.xlu1 %8194  ;;  %vm18665_vm7 = vmmov %vm18663_vm0 }
 0x5e0   : > { %v8218_v3 = vrot.slane %v17499_v18, 4  ;;  %v17507_v14 = vpop.permute.xlu2 %8024  ;;  %vm18666_vm15 = vmmov %vm18660_vm2 }
 0x5e1   : > { %v8228_v10 = vsel %vm18651_vm4, %v8208_v51, %v8209_v8  ;;  %v8056_v30 = vrot.slane %v17507_v14, 4  ;;  %vm18667_vm4 = vmmov %vm18663_vm0 }
 0x5e2   : > { %v8229_v26 = vsel %vm18652_vm3, %v17371_v49, %v8228_v10  ;;  %v8244_v16 = vsel %vm18653_vm12, %v8217_v5, %v8218_v3  ;;  %v13375_v46 = vld [vmem:[#allocation4 + $0x84] sm:$0xf0]  ;;  %v12333_v37 = vld [vmem:[#allocation4 + $0x88] sm:$0xf0]  ;;  %v7809_v49 = vld [vmem:[#allocation3 + $0x80] sm:$0xff] }
 0x5e3   : > { %8274 = vst [vmem:[#allocation4 + $0x310] sm:$0xff] %v8229_v26  ;;  %v8245_v51 = vsel %vm18654_vm5, %v17377_v9, %v8244_v16  ;;  %v12332_v39 = vor.u32 %v13375_v46, %v12331_v44  ;;  %v12843_v34 = vld [vmem:[#allocation4 + $0x808] sm:$0xf]  ;;  %v12336_v27 = vor.u32 %v13367_v4, %v12333_v37  ;;  %v13495_v12 = vld [vmem:[#allocation4 + $0x80c] sm:$0xf]  ;;  %v13555_v4 = vpack.i.bf16 %v8337_v42, %v8328_v38  ;;  %vm18668_vm3 = vmmov %vm18660_vm2 }
 0x5e4   : > { %8282 = vst [vmem:[#allocation4 + $0x390] sm:$0xff] %v8245_v51  ;;  %v12844_v60 = vor.u32 %v13503_v53, %v12843_v34  ;;  %v12848_v57 = vor.u32 %v13495_v12, %v12845_v1  ;;  %7860 = vrot.lane.b32.xlu0 %v7809_v49, %s13641_s11  ;;  %v12787_v5 = vld [vmem:[#allocation4 + $0x710] sm:$0xf]  ;;  %v12724_v53 = vor.u32 %v13472_v41, %v12723_v62  ;;  %v12661_v34 = vld [vmem:[#allocation4 + $0x590] sm:$0xf0]  ;;  %vm18669_vm12 = vmmov %vm18663_vm0 }
 0x5e5   : > { %8708 = vrot.lane.b32.xlu1 %v17264_v33, %s13642_s12  ;;  %9751 = vmatpush.bf16.msrb.mxu3 %v12332_v39  ;;  %v12788_v6 = vor.u32 %v13488_v55, %v12787_v5  ;;  %v13456_v1 = vld [vmem:[#allocation4 + $0x58c] sm:$0xf0]  ;;  %v13448_v39 = vld [vmem:[#allocation4 + $0x514] sm:$0xf]  ;;  %vm18670_vm5 = vmmov %vm18660_vm2 }
 0x5e6   : > { %13551 = vrot.lane.b32.xlu2 %v13550_v23, %s13641_s11  ;;  %v8537_v9 = vpop.permute.xlu0 %8536  ;;  %9764 = vmatpush.bf16.msrb.mxu2 %v12844_v60  ;;  %v12725_v23 = vld [vmem:[#allocation4 + $0x690] sm:$0xf0]  ;;  %v12595_v62 = vld [vmem:[#allocation4 + $0x410] sm:$0xf] }
 0x5e7   : > { %9777 = vmatpush.bf16.msrb.mxu1 %v12336_v27  ;;  %v8559_v43 = vrot.slane %v8537_v9, 4  ;;  %v8023_v13 = vpop.permute.xlu1 %8022  ;;  %9790 = vmatpush.bf16.msrb.mxu0 %v12848_v57  ;;  %v12728_v37 = vor.u32 %v13464_v45, %v12725_v23  ;;  %v12664_v57 = vor.u32 %v13448_v39, %v12661_v34  ;;  %v12469_v34 = vld [vmem:[#allocation4 + $0x290] sm:$0xf0] }
 0x5e8   : > { %v8055_v17 = vrot.slane %v8023_v13, 4  ;;  %v17526_v44 = vpop.permute.xlu2 %8538  ;;  %9752 = vmatmul.bf16.vlgmr.msrb.gmra.mxu3 %v17410_v21 }
 0x5e9   : > { %v8586_v10 = vsel %vm18655_vm13, %v8558_v59, %v8559_v43  ;;  %v8560_v59 = vrot.slane %v17526_v44, 4  ;;  %12899 = vmatmul.msk.bf16.vlgmr.msrb.gmra.mxu2 %vm18659_vm1, %v17402_v61  ;;  %vm18671_vm13 = vmmov %vm18663_vm0 }
 0x5ea   : > { %9796 = vmatpush.bf16.msra.mxu2 %v12788_v6  ;;  %v8587_v55 = vsel %vm18656_vm11, %v17293_v54, %v8586_v10  ;;  %v8074_v26 = vsel %vm18657_vm14, %v8054_v35, %v8055_v17  ;;  %v8076_v16 = vsel %vm18658_vm6, %v8055_v17, %v8056_v30  ;;  %9778 = vmatmul.bf16.vlgmr.msrb.gmra.mxu1 %v17410_v21  ;;  %v12659_v35 = vld [vmem:[#allocation4 + $0x510] sm:$0xf]  ;;  %v13416_v45 = vld [vmem:[#allocation4 + $0x314] sm:$0xf]  ;;  %vm18672_vm11 = vmmov %vm18663_vm0 }
 0x5eb   : > { %9822 = vmatpush.bf16.msra.mxu0 %v12792_v2  ;;  %8623 = vst [vmem:[#allocation4 + $0x698] sm:$0xff] %v8587_v55  ;;  %v8075_v54 = vsel %vm18660_vm2, %v17251_v25, %v8074_v26  ;;  %v8077_v46 = vsel %vm18661_vm8, %v8023_v13, %v8076_v16  ;;  %v8588_v51 = vsel %vm18663_vm0, %v8559_v43, %v8560_v59  ;;  %v13432_v13 = vld [vmem:[#allocation4 + $0x414] sm:$0xf]  ;;  %v12531_v17 = vld [vmem:[#allocation4 + $0x310] sm:$0xf]  ;;  %vm18673_vm14 = vmmov %vm18664_vm10 }
 0x5ec   : > { %12900 = vmatmul.msk.bf16.vlgmr.msrb.gmra.mxu0 %vm18662_vm9, %v17402_v61  ;;  %8120 = vst [vmem:[#allocation4 + $0x210] sm:$0xff] %v8075_v54  ;;  %v8589_v27 = vsel %vm18664_vm10, %v8537_v9, %v8588_v51  ;;  %8184 = vrot.lane.b32.xlu0 %v17264_v33, %s13641_s11  ;;  %v12660_v12 = vor.u32 %v13456_v1, %v12659_v35  ;;  %v13424_v41 = vld [vmem:[#allocation4 + $0x38c] sm:$0xf0]  ;;  %v12533_v10 = vld [vmem:[#allocation4 + $0x390] sm:$0xf0]  ;;  %vm18674_vm6 = vmmov %vm18664_vm10 }
 0x5ed   : > { %8121 = vst [vmem:[#allocation4 + $0x218] sm:$0xff] %v8077_v46  ;;  %8202 = vrot.lane.b32.xlu1 %v17321_v58, %s13641_s11  ;;  %v12596_v43 = vor.u32 %v13440_v15, %v12595_v62  ;;  %v12536_v26 = vor.u32 %v13416_v45, %v12533_v10  ;;  %v13408_v54 = vld [vmem:[#allocation4 + $0x28c] sm:$0xf0]  ;;  %vm18675_vm1 = vmmov %vm18663_vm0  ;;  %v13496_v10 = vld [vmem:[#allocation4 + $0x814] sm:$0xf] }
 0x5ee   : > { %9797 = vmatpush.bf16.msra.mxu2 %v12724_v53  ;;  %8624 = vst [vmem:[#allocation4 + $0x6a0] sm:$0xff] %v8589_v27  ;;  %13556 = vrot.lane.b32.xlu2 %v13555_v4, %s13642_s12  ;;  %v17555_v25 = vpop.permute.xlu0 %8364  ;;  %v12532_v53 = vor.u32 %v13424_v41, %v12531_v17  ;;  %vm18676_vm8 = vmmov %vm18663_vm0  ;;  %v13376_v41 = vld [vmem:[#allocation4 + $0x8c] sm:$0xf0] }
 0x5ef   : > { %9823 = vmatpush.bf16.msra.mxu0 %v12728_v37  ;;  %v8396_v49 = vrot.slane %v17555_v25, 4  ;;  %v17558_v60 = vpop.permute.xlu1 %8382  ;;  %v12851_v45 = vld [vmem:[#allocation4 + $0x810] sm:$0xf]  ;;  %vm18677_vm9 = vmmov %vm18674_vm6 }
 0x5f0   : > { %v8405_v5 = vrot.slane %v17558_v60, 4  ;;  %v17566_v6 = vpop.permute.xlu2 %7838  ;;  %vm18678_vm10 = vmmov %vm18674_vm6 }
 0x5f1   : > { %v8416_v9 = vsel %vm18665_vm7, %v8395_v56, %v8396_v49  ;;  %v12600_v56 = vor.u32 %v13432_v13, %v12597_v11  ;;  %v7870_v16 = vrot.slane %v17566_v6, 4  ;;  %v8151_v11 = vld [vmem:[#allocation3 + $0x94] sm:$0xf]  ;;  %vm18679_vm7 = vmmov %vm18663_vm0 }
 0x5f2   : > { %9798 = vmatpush.bf16.msra.mxu2 %v12660_v12  ;;  %v8417_v38 = vsel %vm18666_vm15, %v17438_v24, %v8416_v9  ;;  %v8432_v42 = vsel %vm18667_vm4, %v8404_v40, %v8405_v5  ;;  %v7801_v24 = vld [vmem:[#allocation3 + $0x38] sm:$0xff]  ;;  %v12403_v9 = vld [vmem:[#allocation4 + $0x110] sm:$0xf]  ;;  %vm18680_vm15 = vcmask 130048   ;;  %vm18681_vm4 = vmmov %vm18660_vm2 }
 0x5f3   : > { %9824 = vmatpush.bf16.msra.mxu0 %v12664_v57  ;;  %8461 = vst [vmem:[#allocation4 + $0x518] sm:$0xff] %v8417_v38  ;;  %v8433_v2 = vsel %vm18668_vm3, %v17442_v47, %v8432_v42  ;;  %v12467_v47 = vld [vmem:[#allocation4 + $0x210] sm:$0xf]  ;;  %v13400_v46 = vld [vmem:[#allocation4 + $0x214] sm:$0xf]  ;;  %vm18682_vm3 = vmmov %vm18663_vm0 }
 0x5f4   : > { %8469 = vst [vmem:[#allocation4 + $0x598] sm:$0xff] %v8433_v2  ;;  %8030 = vrot.lane.b32.xlu0 %v17264_v33, %s13642_s12  ;;  %v12468_v33 = vor.u32 %v13408_v54, %v12467_v47  ;;  %v12472_v12 = vor.u32 %v13400_v46, %v12469_v34  ;;  %v13392_v57 = vld [vmem:[#allocation4 + $0x18c] sm:$0xf0]  ;;  %v13384_v42 = vld [vmem:[#allocation4 + $0x114] sm:$0xf] }
 0x5f5   : > { %8048 = vrot.lane.b32.xlu1 %v17321_v58, %s13642_s12  ;;  %v12404_v38 = vor.u32 %v13392_v57, %v12403_v9  ;;  %v8142_v46 = vld [vmem:[#allocation3 + $0x44] sm:$0xf] }
 0x5f6   : > { %9799 = vmatpush.bf16.msra.mxu2 %v12596_v43  ;;  %7844 = vrot.lane.b32.xlu2 %v7801_v24, %s13641_s11  ;;  %v8721_v40 = vpop.permute.xlu0 %8720  ;;  %v13489_v24 = vld [vmem:[#allocation4 + $0x794] sm:$0xf0] }
 0x5f7   : > { %9825 = vmatpush.bf16.msra.mxu0 %v12600_v56  ;;  %v8744_v4 = vrot.slane %v8721_v40, 4  ;;  %v7837_v55 = vpop.permute.xlu1 %7836 }
 0x5f8   : > { %v7869_v23 = vrot.slane %v7837_v55, 4  ;;  %v17586_v37 = vpop.permute.xlu2 %8722 }
 0x5f9   : > { %v8770_v58 = vsel %vm18669_vm12, %v8743_v7, %v8744_v4  ;;  %v8745_v39 = vrot.slane %v17586_v37, 4  ;;  %vm18683_vm12 = vmmov %vm18663_vm0 }
 0x5fa   : > { %9800 = vmatpush.bf16.msra.mxu2 %v12532_v53  ;;  %v8771_v35 = vsel %vm18670_vm5, %v17347_v36, %v8770_v58  ;;  %v7888_v1 = vsel %vm18671_vm13, %v7868_v32, %v7869_v23  ;;  %v7890_v51 = vsel %vm18672_vm11, %v7869_v23, %v7870_v16  ;;  %v12405_v36 = vld [vmem:[#allocation4 + $0x190] sm:$0xf0]  ;;  %vm18684_vm5 = vmmov %vm18674_vm6 }
 0x5fb   : > { %9826 = vmatpush.bf16.msra.mxu0 %v12536_v26  ;;  %8808 = vst [vmem:[#allocation4 + $0x890] sm:$0xff] %v8771_v35  ;;  %v7889_v7 = vsel %vm18673_vm14, %v17332_v29, %v7888_v1  ;;  %v7891_v27 = vsel %vm18674_vm6, %v7837_v55, %v7890_v51  ;;  %v8772_v32 = vsel %vm18675_vm1, %v8744_v4, %v8745_v39  ;;  %v8667_v29 = vld [vmem:[#allocation3 + $0x44] sm:$0xff]  ;;  %v12341_v4 = vld [vmem:[#allocation4 + $0x90] sm:$0xf0]  ;;  %v12797_v35 = vld [vmem:[#allocation4 + $0x798] sm:$0xf0] }
 0x5fc   : > { %7934 = vst [vmem:[#allocation4 + $0x10] sm:$0xff] %v7889_v7  ;;  %v8773_v15 = vsel %vm18660_vm2, %v8721_v40, %v8772_v32  ;;  %8710 = vrot.lane.b32.xlu0 %v8667_v29, %s13642_s12  ;;  %v12408_v2 = vor.u32 %v13384_v42, %v12405_v36  ;;  %v7810_v1 = vld [vmem:[#allocation3 + $0x88] sm:$0xff]  ;;  %v12795_v51 = vld [vmem:[#allocation4 + $0x718] sm:$0xf]  ;;  %v13481_v7 = vld [vmem:[#allocation4 + $0x71c] sm:$0xf] }
 0x5fd   : > { %7935 = vst [vmem:[#allocation4 + $0x18] sm:$0xff] %v7891_v27  ;;  %8728 = vrot.lane.b32.xlu1 %v17323_v48, %s13642_s12  ;;  %v12796_v34 = vor.u32 %v13489_v24, %v12795_v51  ;;  %v13473_v27 = vld [vmem:[#allocation4 + $0x694] sm:$0xf0]  ;;  %v12800_v32 = vor.u32 %v13481_v7, %v12797_v35  ;;  %v12733_v29 = vld [vmem:[#allocation4 + $0x698] sm:$0xf0]  ;;  %vm18685_vm13 = vmmov %vm18684_vm5 }
 0x5fe   : > { %9801 = vmatpush.bf16.msra.mxu2 %v12468_v33  ;;  %8809 = vst [vmem:[#allocation4 + $0x898] sm:$0xff] %v8773_v15  ;;  %8204 = vrot.lane.b32.xlu2 %v8151_v11, %s13641_s11  ;;  %v17608_v62 = vpop.permute.xlu0 %8178  ;;  %v12731_v11 = vld [vmem:[#allocation4 + $0x618] sm:$0xf]  ;;  %vm18686_vm11 = vmmov %vm18680_vm15  ;;  %v12605_v51 = vld [vmem:[#allocation4 + $0x498] sm:$0xf0] }
 0x5ff   : > { %9827 = vmatpush.bf16.msra.mxu0 %v12472_v12  ;;  %v8210_v43 = vrot.slane %v17608_v62, 4  ;;  %v17611_v13 = vpop.permute.xlu1 %8196  ;;  %v12732_v42 = vor.u32 %v13473_v27, %v12731_v11  ;;  %vm18687_vm14 = vmmov %vm18663_vm0  ;;  %v12603_v7 = vld [vmem:[#allocation4 + $0x418] sm:$0xf] }
 0x600   : > { %v8219_v56 = vrot.slane %v17611_v13, 4  ;;  %v17619_v17 = vpop.permute.xlu2 %8522  ;;  %vm18688_vm6 = vmmov %vm18660_vm2 }
 0x601   : > { %v8230_v48 = vsel %vm18676_vm8, %v8209_v8, %v8210_v43  ;;  %v8552_v36 = vrot.slane %v17619_v17, 4  ;;  %vm18689_vm1 = vmmov %vm18663_vm0 }
 0x602   : > { %9802 = vmatpush.bf16.msra.mxu2 %v12404_v38  ;;  %v8231_v40 = vsel %vm18677_vm9, %v17496_v28, %v8230_v48  ;;  %v8246_v53 = vsel %vm18663_vm0, %v8218_v3, %v8219_v56  ;;  %v13504_v47 = vld [vmem:[#allocation4 + $0x88c] sm:$0xf0]  ;;  %v12853_v55 = vld [vmem:[#allocation4 + $0x890] sm:$0xf0]  ;;  %v7802_v3 = vld [vmem:[#allocation3 + $0x40] sm:$0xf] }
 0x603   : > { %9828 = vmatpush.bf16.msra.mxu0 %v12408_v2  ;;  %8275 = vst [vmem:[#allocation4 + $0x318] sm:$0xff] %v8231_v40  ;;  %v8247_v8 = vsel %vm18678_vm10, %v17499_v18, %v8246_v53  ;;  %v12339_v26 = vld [vmem:[#allocation4 + $0x10] sm:$0xf]  ;;  %v12852_v23 = vor.u32 %v13504_v47, %v12851_v45  ;;  %v13368_v54 = vld [vmem:[#allocation4 + $0x14] sm:$0xf]  ;;  %v12856_v33 = vor.u32 %v13496_v10, %v12853_v55  ;;  %vm18690_vm8 = vmmov %vm18663_vm0 }
 0x604   : > { %8283 = vst [vmem:[#allocation4 + $0x398] sm:$0xff] %v8247_v8  ;;  %v12340_v58 = vor.u32 %v13376_v41, %v12339_v26  ;;  %v12344_v28 = vor.u32 %v13368_v54, %v12341_v4  ;;  %7862 = vrot.lane.b32.xlu0 %v7810_v1, %s13641_s11  ;;  %v13465_v45 = vld [vmem:[#allocation4 + $0x61c] sm:$0xf]  ;;  %v7997_v10 = vld [vmem:[#allocation3 + $0x94] sm:$0xf]  ;;  %vm18691_vm9 = vmmov %vm18660_vm2 }
 0x605   : > { %8186 = vrot.lane.b32.xlu1 %v8142_v46, %s13641_s11  ;;  %9816 = vmatpush.bf16.msra.mxu3 %v12852_v23  ;;  %v12736_v40 = vor.u32 %v13465_v45, %v12733_v29  ;;  %v12667_v53 = vld [vmem:[#allocation4 + $0x518] sm:$0xf]  ;;  %v13449_v55 = vld [vmem:[#allocation4 + $0x51c] sm:$0xf]  ;;  %v8668_v46 = vld [vmem:[#allocation3 + $0x4c] sm:$0xf] }
 0x606   : > { %7846 = vrot.lane.b32.xlu2 %v7802_v3, %s13641_s11  ;;  %v8043_v18 = vpop.permute.xlu0 %8042  ;;  %9803 = vmatpush.bf16.msra.mxu2 %v12340_v58  ;;  %v13457_v47 = vld [vmem:[#allocation4 + $0x594] sm:$0xf0]  ;;  %v12669_v8 = vld [vmem:[#allocation4 + $0x598] sm:$0xf0]  ;;  %vm18692_vm10 = vmmov %vm18684_vm5 }
 0x607   : > { %9829 = vmatpush.bf16.msra.mxu0 %v12344_v28  ;;  %v8065_v12 = vrot.slane %v8043_v18, 4  ;;  %v8521_v57 = vpop.permute.xlu1 %8520  ;;  %9842 = vmatpush.bf16.msra.mxu1 %v12856_v33  ;;  %v12668_v54 = vor.u32 %v13457_v47, %v12667_v53  ;;  %v8677_v58 = vld [vmem:[#allocation3 + $0x9c] sm:$0xf]  ;;  %v12672_v35 = vor.u32 %v13449_v55, %v12669_v8  ;;  %v13441_v1 = vld [vmem:[#allocation4 + $0x494] sm:$0xf0] }
 0x608   : > { %v8551_v15 = vrot.slane %v8521_v57, 4  ;;  %v17637_v38 = vpop.permute.xlu2 %8044  ;;  %12901 = vmatmul.msk.bf16.vlgmr.msra.gmra.mxu3 %vm18680_vm15, %v17402_v61  ;;  %v13560_v27 = vpack.i.bf16 %v8677_v58, %v8668_v46  ;;  %vm18694_vm15 = vmmov %vm18663_vm0 }
 0x609   : > { %9848 = vmatpush.bf16.msrb.mxu3 %v12796_v34  ;;  %v8092_v9 = vsel %vm18679_vm7, %v8064_v19, %v8065_v12  ;;  %v8066_v19 = vrot.slane %v17637_v38, 4  ;;  %9804 = vmatmul.bf16.vlgmr.msra.gmra.mxu2 %v17410_v21  ;;  %vm18693_vm7 = vmmov %vm18663_vm0 }
 0x60a   : > { %v8093_v2 = vsel %vm18681_vm4, %v17408_v0, %v8092_v9  ;;  %v8572_v48 = vsel %vm18682_vm3, %v8550_v63, %v8551_v15  ;;  %v8574_v41 = vsel %vm18683_vm12, %v8551_v15, %v8552_v36  ;;  %9830 = vmatmul.bf16.vlgmr.msra.gmra.mxu0 %v17410_v21  ;;  %v8959_v0 = vld [vmem:[%s18282_s7] sm:$0x7]  ;;  %12902 = vmatmul.msk.bf16.vlgmr.msra.gmra.mxu1 %vm18686_vm11, %v17402_v61  ;;  %v13433_v15 = vld [vmem:[#allocation4 + $0x41c] sm:$0xf]  ;;  %vm18695_vm4 = vmmov %vm18660_vm2 }
 0x60b   : > { %9874 = vmatpush.bf16.msrb.mxu1 %v12800_v32  ;;  %8129 = vst [vmem:[#allocation4 + $0x298] sm:$0xff] %v8093_v2  ;;  %v8573_v63 = vsel %vm18684_vm5, %v17385_v52, %v8572_v48  ;;  %v8575_v24 = vsel %vm18685_vm13, %v8521_v57, %v8574_v41  ;;  %v8094_v4 = vsel %vm18687_vm14, %v8065_v12, %v8066_v19  ;;  %v7988_v52 = vld [vmem:[#allocation3 + $0x44] sm:$0xf]  ;;  %v12539_v29 = vld [vmem:[#allocation4 + $0x318] sm:$0xf]  ;;  %vm18696_vm3 = vmmov %vm18660_vm2 }
 0x60c   : > { %8616 = vst [vmem:[#allocation4 + $0x620] sm:$0xff] %v8573_v63  ;;  %v8095_v26 = vsel %vm18688_vm6, %v8043_v18, %v8094_v4  ;;  %8032 = vrot.lane.b32.xlu0 %v7988_v52, %s13642_s12  ;;  %v12604_v32 = vor.u32 %v13441_v1, %v12603_v7  ;;  %v12608_v11 = vor.u32 %v13433_v15, %v12605_v51  ;;  %v13425_v9 = vld [vmem:[#allocation4 + $0x394] sm:$0xf0]  ;;  %v12541_v2 = vld [vmem:[#allocation4 + $0x398] sm:$0xf0]  ;;  %vm18697_vm12 = vmmov %vm18663_vm0 }
 0x60d   : > { %9849 = vmatpush.bf16.msrb.mxu3 %v12732_v42  ;;  %8617 = vst [vmem:[#allocation4 + $0x628] sm:$0xff] %v8575_v24  ;;  %8050 = vrot.lane.b32.xlu1 %v7997_v10, %s13642_s12  ;;  %v13417_v42 = vld [vmem:[#allocation4 + $0x31c] sm:$0xf]  ;;  %v12540_v48 = vor.u32 %v13425_v9, %v12539_v29  ;;  %v12475_v24 = vld [vmem:[#allocation4 + $0x218] sm:$0xf]  ;;  %vm18698_vm13 = vmmov %vm18663_vm0 }
 0x60e   : > { %8130 = vst [vmem:[#allocation4 + $0x2a0] sm:$0xff] %v8095_v26  ;;  %8962 = vperm.xlu2 %13544, %v8959_v0   ;;  %v17666_v23 = vpop.permute.xlu0 %8366  ;;  %v12544_v0 = vor.u32 %v13417_v42, %v12541_v2  ;;  %v12411_v51 = vld [vmem:[#allocation4 + $0x118] sm:$0xf]  ;;  %v13385_v7 = vld [vmem:[#allocation4 + $0x11c] sm:$0xf]  ;;  %vm18699_vm11 = vmmov %vm18684_vm5 }
 0x60f   : > { %9875 = vmatpush.bf16.msrb.mxu1 %v12736_v40  ;;  %v8397_v28 = vrot.slane %v17666_v23, 4  ;;  %v17669_v33 = vpop.permute.xlu1 %8384  ;;  %v13490_v15 = vld [vmem:[#allocation4 + $0x79c] sm:$0xf0]  ;;  %v12347_v9 = vld [vmem:[#allocation4 + $0x18] sm:$0xf]  ;;  %vm18700_vm14 = vmmov %vm18663_vm0 }
 0x610   : > { %v8406_v3 = vrot.slane %v17669_v33, 4  ;;  %v17677_v34 = vpop.permute.xlu2 %8706  ;;  %v13505_v42 = vld [vmem:[#allocation4 + $0x894] sm:$0xf0]  ;;  %v13369_v2 = vld [vmem:[#allocation4 + $0x1c] sm:$0xf]  ;;  %vm18701_vm6 = vmmov %vm18684_vm5 }
 0x611   : > { %9850 = vmatpush.bf16.msrb.mxu3 %v12668_v54  ;;  %v8418_v18 = vsel %vm18689_vm1, %v8396_v49, %v8397_v28  ;;  %v13401_v54 = vld [vmem:[#allocation4 + $0x21c] sm:$0xf]  ;;  %vm18702_vm1 = vmmov %vm18663_vm0 }
 0x612   : > { %v8419_v12 = vsel %vm18660_vm2, %v17555_v25, %v8418_v18  ;;  %v8434_v57 = vsel %vm18690_vm8, %v8405_v5, %v8406_v3  ;;  %v7811_v25 = vld [vmem:[#allocation3 + $0x90] sm:$0xf]  ;;  %v13409_v41 = vld [vmem:[#allocation4 + $0x294] sm:$0xf0]  ;;  %v12477_v40 = vld [vmem:[#allocation4 + $0x298] sm:$0xf0] }
 0x613   : > { %9876 = vmatpush.bf16.msrb.mxu1 %v12672_v35  ;;  %8462 = vst [vmem:[#allocation4 + $0x520] sm:$0xff] %v8419_v12  ;;  %v8435_v49 = vsel %vm18691_vm9, %v17558_v60, %v8434_v57  ;;  %v8737_v60 = vrot.slane %v17677_v34, 4  ;;  %v12476_v4 = vor.u32 %v13409_v41, %v12475_v24  ;;  %v12480_v58 = vor.u32 %v13401_v54, %v12477_v40  ;;  %v13393_v35 = vld [vmem:[#allocation4 + $0x194] sm:$0xf0]  ;;  %v13466_v54 = vld [vmem:[#allocation4 + $0x624] sm:$0xf]  ;;  %vm18705_vm9 = vmmov %vm18684_vm5 }
 0x614   : > { %8470 = vst [vmem:[#allocation4 + $0x5a0] sm:$0xff] %v8435_v49  ;;  %7864 = vrot.lane.b32.xlu0 %v7811_v25, %s13641_s11  ;;  %v12805_v49 = vld [vmem:[#allocation4 + $0x7a0] sm:$0xf0]  ;;  %vm18703_vm2 = vcmask 130048   ;;  %s12931_s11 = sshll.u32 %s18808_s28, 6 }
 0x615   : > { %9851 = vmatpush.bf16.msrb.mxu3 %v12604_v32  ;;  %13561 = vrot.lane.b32.xlu1 %v13560_v27, %s13642_s12  ;;  %vm18704_vm8 = vmmov %vm18703_vm2  ;;  %s18207_s18 = scalar_lea.vmem %s18283_s8, %s12931_s11 }
 0x616   : > { %v7857_v5 = vpop.permute.xlu0 %7856 }
 0x617   : > { %9877 = vmatpush.bf16.msrb.mxu1 %v12608_v11  ;;  %v7879_v45 = vrot.slane %v7857_v5, 4  ;;  %v8705_v10 = vpop.permute.xlu1 %8704 }
 0x618   : > { %v8736_v63 = vrot.slane %v8705_v10, 4  ;;  %v17694_v47 = vpop.permute.xlu2 %7858 }
 0x619   : > { %9852 = vmatpush.bf16.msrb.mxu3 %v12540_v48  ;;  %v7906_v53 = vsel %vm18663_vm0, %v7878_v31, %v7879_v45  ;;  %v7880_v52 = vrot.slane %v17694_v47, 4 }
 0x61a   : > { %v7907_v55 = vsel %vm18692_vm10, %v17472_v50, %v7906_v53  ;;  %v8756_v8 = vsel %vm18693_vm7, %v8735_v20, %v8736_v63  ;;  %v8758_v26 = vsel %vm18694_vm15, %v8736_v63, %v8737_v60  ;;  %v12413_v50 = vld [vmem:[#allocation4 + $0x198] sm:$0xf0]  ;;  %v12803_v53 = vld [vmem:[#allocation4 + $0x720] sm:$0xf]  ;;  %vm18706_vm10 = vmmov %vm18663_vm0 }
 0x61b   : > { %9878 = vmatpush.bf16.msrb.mxu1 %v12544_v0  ;;  %7943 = vst [vmem:[#allocation4 + $0x98] sm:$0xff] %v7907_v55  ;;  %v8757_v31 = vsel %vm18695_vm4, %v17451_v22, %v8756_v8  ;;  %v8759_v46 = vsel %vm18696_vm3, %v8705_v10, %v8758_v26  ;;  %v7908_v20 = vsel %vm18697_vm12, %v7879_v45, %v7880_v52  ;;  %v12861_v45 = vld [vmem:[#allocation4 + $0x898] sm:$0xf0]  ;;  %v12739_v26 = vld [vmem:[#allocation4 + $0x620] sm:$0xf]  ;;  %vm18707_vm7 = vmmov %vm18696_vm3 }
 0x61c   : > { %8801 = vst [vmem:[#allocation4 + $0x818] sm:$0xff] %v8757_v31  ;;  %v7909_v1 = vsel %vm18684_vm5, %v7857_v5, %v7908_v20  ;;  %v12412_v22 = vor.u32 %v13393_v35, %v12411_v51  ;;  %v12416_v57 = vor.u32 %v13385_v7, %v12413_v50  ;;  %v12804_v55 = vor.u32 %v13490_v15, %v12803_v53  ;;  %v13474_v35 = vld [vmem:[#allocation4 + $0x69c] sm:$0xf0]  ;;  %v12741_v20 = vld [vmem:[#allocation4 + $0x6a0] sm:$0xf0]  ;;  %vm18708_vm15 = vmmov %vm18696_vm3 }
 0x61d   : > { %9853 = vmatpush.bf16.msrb.mxu3 %v12476_v4  ;;  %8802 = vst [vmem:[#allocation4 + $0x820] sm:$0xff] %v8759_v46  ;;  %v13482_v4 = vld [vmem:[#allocation4 + $0x724] sm:$0xf]  ;;  %v12740_v51 = vor.u32 %v13474_v35, %v12739_v26  ;;  %v12675_v7 = vld [vmem:[#allocation4 + $0x520] sm:$0xf]  ;;  %vm18709_vm4 = vmmov %vm18663_vm0 }
 0x61e   : > { %7944 = vst [vmem:[#allocation4 + $0xa0] sm:$0xff] %v7909_v1  ;;  %v17712_v18 = vpop.permute.xlu0 %8180  ;;  %vm18710_vm3 = vmmov %vm18684_vm5 }
 0x61f   : > { %9879 = vmatpush.bf16.msrb.mxu1 %v12480_v58  ;;  %v8211_v27 = vrot.slane %v17712_v18, 4  ;;  %v17715_v12 = vpop.permute.xlu1 %8198  ;;  %vm18711_vm12 = vmmov %vm18663_vm0 }
 0x620   : > { %v8220_v32 = vrot.slane %v17715_v12, 4  ;;  %v17723_v29 = vpop.permute.xlu2 %8028  ;;  %vm18712_vm5 = vmmov %vm18707_vm7 }
 0x621   : > { %9854 = vmatpush.bf16.msrb.mxu3 %v12412_v22  ;;  %v8232_v11 = vsel %vm18698_vm13, %v8210_v43, %v8211_v27  ;;  %v8058_v46 = vrot.slane %v17723_v29, 4  ;;  %v12744_v22 = vor.u32 %v13466_v54, %v12741_v20  ;;  %vm18713_vm13 = vmmov %vm18663_vm0  ;;  %v13410_v20 = vld [vmem:[#allocation4 + $0x29c] sm:$0xf0] }
 0x622   : > { %v8233_v25 = vsel %vm18699_vm11, %v17608_v62, %v8232_v11  ;;  %v8248_v5 = vsel %vm18700_vm14, %v8219_v56, %v8220_v32  ;;  %v13377_v48 = vld [vmem:[#allocation4 + $0x94] sm:$0xf0]  ;;  %v12349_v41 = vld [vmem:[#allocation4 + $0x98] sm:$0xf0]  ;;  %v12808_v56 = vor.u32 %v13482_v4, %v12805_v49  ;;  %v13458_v11 = vld [vmem:[#allocation4 + $0x59c] sm:$0xf0] }
 0x623   : > { %9880 = vmatpush.bf16.msrb.mxu1 %v12416_v57  ;;  %8276 = vst [vmem:[#allocation4 + $0x320] sm:$0xff] %v8233_v25  ;;  %v8249_v43 = vsel %vm18701_vm6, %v17611_v13, %v8248_v5  ;;  %v12348_v10 = vor.u32 %v13377_v48, %v12347_v9  ;;  %v12859_v0 = vld [vmem:[#allocation4 + $0x818] sm:$0xf]  ;;  %v12352_v63 = vor.u32 %v13369_v2, %v12349_v41  ;;  %v13497_v24 = vld [vmem:[#allocation4 + $0x81c] sm:$0xf]  ;;  %vm18714_vm11 = vmmov %vm18712_vm5 }
 0x624   : > { %8284 = vst [vmem:[#allocation4 + $0x3a0] sm:$0xff] %v8249_v43  ;;  %v12860_v40 = vor.u32 %v13505_v42, %v12859_v0  ;;  %v12864_v62 = vor.u32 %v13497_v24, %v12861_v45  ;;  %v13450_v57 = vld [vmem:[#allocation4 + $0x524] sm:$0xf]  ;;  %v12676_v2 = vor.u32 %v13458_v11, %v12675_v7  ;;  %v13442_v48 = vld [vmem:[#allocation4 + $0x49c] sm:$0xf0]  ;;  %vm18715_vm14 = vmmov %vm18663_vm0 }
 0x625   : > { %9855 = vmatpush.bf16.msrb.mxu3 %v12348_v10  ;;  %v12677_v9 = vld [vmem:[#allocation4 + $0x5a0] sm:$0xf0]  ;;  %v12611_v10 = vld [vmem:[#allocation4 + $0x420] sm:$0xf]  ;;  %vm18716_vm6 = vmmov %vm18663_vm0 }
 0x626   : > { %9868 = vmatpush.bf16.msrb.mxu2 %v12860_v40  ;;  %9894 = vmatpush.bf16.msrb.mxu0 %v12864_v62  ;;  %v8541_v8 = vpop.permute.xlu0 %8540  ;;  %v12680_v25 = vor.u32 %v13450_v57, %v12677_v9  ;;  %v12613_v41 = vld [vmem:[#allocation4 + $0x4a0] sm:$0xf0]  ;;  %v12612_v40 = vor.u32 %v13442_v48, %v12611_v10  ;;  %v13394_v9 = vld [vmem:[#allocation4 + $0x19c] sm:$0xf0] }
 0x627   : > { %9881 = vmatpush.bf16.msrb.mxu1 %v12352_v63  ;;  %v8561_v31 = vrot.slane %v8541_v8, 4  ;;  %v8027_v13 = vpop.permute.xlu1 %8026  ;;  %v13434_v0 = vld [vmem:[#allocation4 + $0x424] sm:$0xf] }
 0x628   : > { %v8057_v58 = vrot.slane %v8027_v13, 4  ;;  %9856 = vmatmul.bf16.vlgmr.msrb.gmra.mxu3 %v17410_v21  ;;  %v17740_v1 = vpop.permute.xlu2 %8542  ;;  %v12616_v62 = vor.u32 %v13434_v0, %v12613_v41 }
 0x629   : > { %v8590_v50 = vsel %vm18702_vm1, %v8560_v59, %v8561_v31  ;;  %12903 = vmatmul.msk.bf16.vlgmr.msrb.gmra.mxu2 %vm18703_vm2, %v17402_v61  ;;  %12904 = vmatmul.msk.bf16.vlgmr.msrb.gmra.mxu0 %vm18704_vm8, %v17402_v61  ;;  %v8562_v49 = vrot.slane %v17740_v1, 4  ;;  %vm18717_vm1 = vmmov %vm18663_vm0 }
 0x62a   : > { %9900 = vmatpush.bf16.msra.mxu2 %v12804_v55  ;;  %9926 = vmatpush.bf16.msra.mxu0 %v12808_v56  ;;  %v8078_v15 = vsel %vm18663_vm0, %v8056_v30, %v8057_v58  ;;  %v8080_v59 = vsel %vm18706_vm10, %v8057_v58, %v8058_v46  ;;  %v12547_v53 = vld [vmem:[#allocation4 + $0x320] sm:$0xf]  ;;  %vm18718_vm2 = vmmov %vm18712_vm5 }
 0x62b   : > { %9882 = vmatmul.bf16.vlgmr.msrb.gmra.mxu1 %v17410_v21  ;;  %v8591_v21 = vsel %vm18705_vm9, %v17526_v44, %v8590_v50  ;;  %v8079_v61 = vsel %vm18707_vm7, %v17507_v14, %v8078_v15  ;;  %v8081_v42 = vsel %vm18708_vm15, %v8027_v13, %v8080_v59  ;;  %v8592_v30 = vsel %vm18709_vm4, %v8561_v31, %v8562_v49  ;;  %v13426_v56 = vld [vmem:[#allocation4 + $0x39c] sm:$0xf0]  ;;  %v12549_v26 = vld [vmem:[#allocation4 + $0x3a0] sm:$0xf0]  ;;  %vm18719_vm8 = vmmov %vm18710_vm3 }
 0x62c   : > { %8625 = vst [vmem:[#allocation4 + $0x6a8] sm:$0xff] %v8591_v21  ;;  %v8593_v44 = vsel %vm18710_vm3, %v8541_v8, %v8592_v30  ;;  %v13418_v8 = vld [vmem:[#allocation4 + $0x324] sm:$0xf]  ;;  %v12548_v54 = vor.u32 %v13426_v56, %v12547_v53  ;;  %vm18720_vm9 = vmmov %vm18710_vm3  ;;  %v13491_v56 = vld [vmem:[#allocation4 + $0x7a4] sm:$0xf0] }
 0x62d   : > { %8122 = vst [vmem:[#allocation4 + $0x220] sm:$0xff] %v8079_v61  ;;  %v12552_v31 = vor.u32 %v13418_v8, %v12549_v26  ;;  %v12421_v61 = vld [vmem:[#allocation4 + $0x1a0] sm:$0xf0]  ;;  %vm18721_vm10 = vmmov %vm18718_vm2  ;;  %v12813_v8 = vld [vmem:[#allocation4 + $0x7a8] sm:$0xf0] }
 0x62e   : > { %9901 = vmatpush.bf16.msra.mxu2 %v12740_v51  ;;  %9927 = vmatpush.bf16.msra.mxu0 %v12744_v22  ;;  %8123 = vst [vmem:[#allocation4 + $0x228] sm:$0xff] %v8081_v42  ;;  %v17762_v5 = vpop.permute.xlu0 %8368  ;;  %v12485_v22 = vld [vmem:[#allocation4 + $0x2a0] sm:$0xf0]  ;;  %vm18722_vm7 = vmmov %vm18663_vm0 }
 0x62f   : > { %8626 = vst [vmem:[#allocation4 + $0x6b0] sm:$0xff] %v8593_v44  ;;  %v8398_v14 = vrot.slane %v17762_v5, 4  ;;  %v17765_v45 = vpop.permute.xlu1 %8386  ;;  %v12419_v44 = vld [vmem:[#allocation4 + $0x120] sm:$0xf]  ;;  %vm18723_vm15 = vmmov %vm18663_vm0 }
 0x630   : > { %v8407_v43 = vrot.slane %v17765_v45, 4  ;;  %v17773_v24 = vpop.permute.xlu2 %7842  ;;  %v12420_v48 = vor.u32 %v13394_v9, %v12419_v44  ;;  %vm18724_vm4 = vmmov %vm18710_vm3 }
 0x631   : > { %v8420_v63 = vsel %vm18711_vm12, %v8397_v28, %v8398_v14  ;;  %vm18725_vm12 = vmmov %vm18663_vm0 }
 0x632   : > { %9902 = vmatpush.bf16.msra.mxu2 %v12676_v2  ;;  %9928 = vmatpush.bf16.msra.mxu0 %v12680_v25  ;;  %v8421_v4 = vsel %vm18712_vm5, %v17666_v23, %v8420_v63  ;;  %v8436_v55 = vsel %vm18713_vm13, %v8406_v3, %v8407_v43  ;;  %v7872_v3 = vrot.slane %v17773_v24, 4  ;;  %v13386_v2 = vld [vmem:[#allocation4 + $0x124] sm:$0xf]  ;;  %vm18726_vm5 = vmmov %vm18710_vm3  ;;  %vm18727_vm13 = vcmask 130048  }
 0x633   : > { %8463 = vst [vmem:[#allocation4 + $0x528] sm:$0xff] %v8421_v4  ;;  %v8437_v28 = vsel %vm18714_vm11, %v17669_v33, %v8436_v55  ;;  %v12424_v41 = vor.u32 %v13386_v2, %v12421_v61  ;;  %v12867_v4 = vld [vmem:[#allocation4 + $0x820] sm:$0xf]  ;;  %v12811_v55 = vld [vmem:[#allocation4 + $0x728] sm:$0xf]  ;;  %vm18728_vm11 = vmmov %vm18727_vm13 }
 0x634   : > { %8471 = vst [vmem:[#allocation4 + $0x5a8] sm:$0xff] %v8437_v28  ;;  %v12483_v13 = vld [vmem:[#allocation4 + $0x220] sm:$0xf]  ;;  %v13402_v23 = vld [vmem:[#allocation4 + $0x224] sm:$0xf] }
 0x635   : > { %v12484_v33 = vor.u32 %v13410_v20, %v12483_v13  ;;  %v12488_v57 = vor.u32 %v13402_v23, %v12485_v22  ;;  %v13483_v23 = vld [vmem:[#allocation4 + $0x72c] sm:$0xf] }
 0x636   : > { %9903 = vmatpush.bf16.msra.mxu2 %v12612_v40  ;;  %9929 = vmatpush.bf16.msra.mxu0 %v12616_v62  ;;  %v8725_v58 = vpop.permute.xlu0 %8724 }
 0x637   : > { %v7841_v35 = vpop.permute.xlu1 %7840  ;;  %v8746_v50 = vrot.slane %v8725_v58, 4 }
 0x638   : > { %v7871_v51 = vrot.slane %v7841_v35, 4  ;;  %v17785_v7 = vpop.permute.xlu2 %8726 }
 0x639   : > { %v8774_v21 = vsel %vm18715_vm14, %v8745_v39, %v8746_v50  ;;  %v8747_v11 = vrot.slane %v17785_v7, 4  ;;  %vm18729_vm14 = vmmov %vm18663_vm0 }
 0x63a   : > { %9904 = vmatpush.bf16.msra.mxu2 %v12548_v54  ;;  %9930 = vmatpush.bf16.msra.mxu0 %v12552_v31  ;;  %v7892_v15 = vsel %vm18716_vm6, %v7870_v16, %v7871_v51  ;;  %v7894_v59 = vsel %vm18717_vm1, %v7871_v51, %v7872_v3  ;;  %v8775_v42 = vsel %vm18718_vm2, %v17586_v37, %v8774_v21  ;;  %vm18730_vm6 = vmmov %vm18663_vm0 }
 0x63b   : > { %v7893_v30 = vsel %vm18719_vm8, %v17566_v6, %v7892_v15  ;;  %v7895_v39 = vsel %vm18720_vm9, %v7841_v35, %v7894_v59  ;;  %8810 = vst [vmem:[#allocation4 + $0x8a0] sm:$0xff] %v8775_v42  ;;  %v8776_v16 = vsel %vm18663_vm0, %v8746_v50, %v8747_v11  ;;  %v12816_v21 = vor.u32 %v13483_v23, %v12813_v8  ;;  %v13475_v15 = vld [vmem:[#allocation4 + $0x6a4] sm:$0xf0]  ;;  %vm18731_vm1 = vmmov %vm18718_vm2 }
 0x63c   : > { %7936 = vst [vmem:[#allocation4 + $0x20] sm:$0xff] %v7893_v30  ;;  %v8777_v25 = vsel %vm18721_vm10, %v8725_v58, %v8776_v16  ;;  %v12749_v30 = vld [vmem:[#allocation4 + $0x6a8] sm:$0xf0]  ;;  %v12747_v16 = vld [vmem:[#allocation4 + $0x628] sm:$0xf]  ;;  %vm18732_vm2 = vmmov %vm18710_vm3 }
 0x63d   : > { %7937 = vst [vmem:[#allocation4 + $0x28] sm:$0xff] %v7895_v39  ;;  %vm18733_vm8 = vmmov %vm18663_vm0  ;;  %v13443_v23 = vld [vmem:[#allocation4 + $0x4a4] sm:$0xf0] }
 0x63e   : > { %9905 = vmatpush.bf16.msra.mxu2 %v12484_v33  ;;  %9931 = vmatpush.bf16.msra.mxu0 %v12488_v57  ;;  %8811 = vst [vmem:[#allocation4 + $0x8a8] sm:$0xff] %v8777_v25  ;;  %v17806_v37 = vpop.permute.xlu0 %8182  ;;  %v12357_v33 = vld [vmem:[#allocation4 + $0xa0] sm:$0xf0]  ;;  %v12812_v57 = vor.u32 %v13491_v56, %v12811_v55  ;;  %v13459_v55 = vld [vmem:[#allocation4 + $0x5a4] sm:$0xf0]  ;;  %vm18734_vm9 = vmmov %vm18732_vm2 }
 0x63f   : > { %v17808_v6 = vpop.permute.xlu1 %8200  ;;  %v8212_v10 = vrot.slane %v17806_v37, 4  ;;  %v17836_v25 = vld.sshfl [vmem:[#allocation1 + $0x8] sm:$0xff pattern:$0x73625140]  ;;  %vm18735_vm10 = vmmov %vm18663_vm0 }
 0x640   : > { %v8221_v0 = vrot.slane %v17808_v6, 4  ;;  %v13552_v63 = vpop.permute.xlu2 %13551 }
 0x641   : > { %v8234_v40 = vsel %vm18722_vm7, %v8211_v27, %v8212_v10  ;;  %v13554_v53 = vunpack.i.h.bf16 %v13552_v63  ;;  %v13553_v54 = vunpack.i.l.bf16 %v13552_v63  ;;  %v13498_v27 = vld [vmem:[#allocation4 + $0x824] sm:$0xf]  ;;  %vm18736_vm7 = vmmov %vm18663_vm0 }
 0x642   : > { %9906 = vmatpush.bf16.msra.mxu2 %v12420_v48  ;;  %9932 = vmatpush.bf16.msra.mxu0 %v12424_v41  ;;  %v8250_v62 = vsel %vm18723_vm15, %v8220_v32, %v8221_v0  ;;  %v8235_v26 = vsel %vm18724_vm4, %v17712_v18, %v8234_v40  ;;  %v13506_v31 = vld [vmem:[#allocation4 + $0x89c] sm:$0xf0]  ;;  %v12869_v13 = vld [vmem:[#allocation4 + $0x8a0] sm:$0xf0]  ;;  %v13467_v48 = vld [vmem:[#allocation4 + $0x62c] sm:$0xf] }
 0x643   : > { %v8251_v28 = vsel %vm18710_vm3, %v17715_v12, %v8250_v62  ;;  %8277 = vst [vmem:[#allocation4 + $0x328] sm:$0xff] %v8235_v26  ;;  %v8563_v58 = vrot.slane %v13554_v53, 4  ;;  %v12355_v35 = vld [vmem:[#allocation4 + $0x20] sm:$0xf]  ;;  %v12868_v20 = vor.u32 %v13506_v31, %v12867_v4  ;;  %v12872_v50 = vor.u32 %v13498_v27, %v12869_v13  ;;  %v13370_v22 = vld [vmem:[#allocation4 + $0x24] sm:$0xf]  ;;  %vm18737_vm15 = vmmov %vm18731_vm1 }
 0x644   : > { %v13378_v32 = vld [vmem:[#allocation4 + $0x9c] sm:$0xf0]  ;;  %8285 = vst [vmem:[#allocation4 + $0x3a8] sm:$0xff] %v8251_v28  ;;  %v12360_v12 = vor.u32 %v13370_v22, %v12357_v33  ;;  %v8554_v9 = vrot.slane %v13553_v54, 4  ;;  %v12752_v53 = vor.u32 %v13467_v48, %v12749_v30  ;;  %v12683_v4 = vld [vmem:[#allocation4 + $0x528] sm:$0xf]  ;;  %vm18738_vm4 = vmmov %vm18731_vm1 }
 0x645   : > { %v12356_v51 = vor.u32 %v13378_v32, %v12355_v35  ;;  %v8594_v18 = vsel %vm18725_vm12, %v8562_v49, %v8563_v58  ;;  %9920 = vmatpush.bf16.msra.mxu3 %v12868_v20  ;;  %9946 = vmatpush.bf16.msra.mxu1 %v12872_v50  ;;  %v17850_v62 = vld.sshfl [vmem:[#allocation1] sm:$0xff pattern:$0x73625140]  ;;  %v12685_v28 = vld [vmem:[#allocation4 + $0x5a8] sm:$0xf0]  ;;  %v12684_v27 = vor.u32 %v13459_v55, %v12683_v4  ;;  %vm18739_vm3 = vmmov %vm18663_vm0 }
 0x646   : > { %v8595_v59 = vsel %vm18726_vm5, %v17740_v1, %v8594_v18  ;;  %v17831_v61 = vpop.permute.xlu0 %8046  ;;  %9933 = vmatpush.bf16.msra.mxu0 %v12360_v12  ;;  %v17834_v44 = vpop.f32.mrf.mxu1  ;;  %v12748_v1 = vor.u32 %v13475_v15, %v12747_v16  ;;  %v12621_v58 = vld [vmem:[#allocation4 + $0x4a8] sm:$0xf0]  ;;  %v12619_v22 = vld [vmem:[#allocation4 + $0x428] sm:$0xf]  ;;  %vm18740_vm12 = vmmov %vm18663_vm0 }
 0x647   : > { %9907 = vmatpush.bf16.msra.mxu2 %v12356_v51  ;;  %v8525_v42 = vpop.permute.xlu1 %8524  ;;  %8627 = vst [vmem:[#allocation4 + $0x6b8] sm:$0xff] %v8595_v59  ;;  %v8067_v39 = vrot.slane %v17831_v61, 4  ;;  %v13435_v33 = vld [vmem:[#allocation4 + $0x42c] sm:$0xf]  ;;  %v12620_v12 = vor.u32 %v13443_v23, %v12619_v22  ;;  %vm18741_vm5 = vmmov %vm18731_vm1 }
 0x648   : > { %v8553_v49 = vrot.slane %v8525_v42, 4  ;;  %v13557_v2 = vpop.permute.xlu2 %13556  ;;  %12905 = vmatmul.msk.bf16.vlgmr.msra.gmra.mxu3 %vm18727_vm13, %v17836_v25  ;;  %12906 = vmatmul.msk.bf16.vlgmr.msra.gmra.mxu1 %vm18728_vm11, %v17836_v25  ;;  %vm18742_vm13 = vmmov %vm18732_vm2  ;;  %v13387_v22 = vld [vmem:[#allocation4 + $0x12c] sm:$0xf] }
 0x649   : > { %9952 = vmatpush.bf16.msrb.mxu3 %v12812_v57  ;;  %9978 = vmatpush.bf16.msrb.mxu1 %v12816_v21  ;;  %v8096_v41 = vsel %vm18729_vm14, %v8066_v19, %v8067_v39  ;;  %v13559_v63 = vunpack.i.h.bf16 %v13557_v2  ;;  %v13558_v8 = vunpack.i.l.bf16 %v13557_v2  ;;  %v12624_v21 = vor.u32 %v13435_v33, %v12621_v58  ;;  %vm18743_vm11 = vmmov %vm18731_vm1 }
 0x64a   : > { %v8576_v40 = vsel %vm18730_vm6, %v8552_v36, %v8553_v49  ;;  %9908 = vmatmul.bf16.vlgmr.msra.gmra.mxu2 %v17850_v62  ;;  %v8097_v56 = vsel %vm18731_vm1, %v17637_v38, %v8096_v41  ;;  %v8578_v19 = vsel %vm18733_vm8, %v8553_v49, %v8554_v9  ;;  %9934 = vmatmul.bf16.vlgmr.msra.gmra.mxu0 %v17850_v62  ;;  %v13451_v36 = vld [vmem:[#allocation4 + $0x52c] sm:$0xf]  ;;  %v12555_v49 = vld [vmem:[#allocation4 + $0x328] sm:$0xf]  ;;  %vm18744_vm14 = vmmov %vm18663_vm0 }
 0x64b   : > { %v8577_v26 = vsel %vm18732_vm2, %v17619_v17, %v8576_v40  ;;  %8131 = vst [vmem:[#allocation4 + $0x2a8] sm:$0xff] %v8097_v56  ;;  %v8579_v54 = vsel %vm18734_vm9, %v8525_v42, %v8578_v19  ;;  %v17860_v31 = vpop.f32.mrf.mxu0  ;;  %v8409_v13 = vrot.slane %v13559_v63, 4  ;;  %v12688_v17 = vor.u32 %v13451_v36, %v12685_v28  ;;  %v13427_v16 = vld [vmem:[#allocation4 + $0x3a4] sm:$0xf0]  ;;  %v13419_v41 = vld [vmem:[#allocation4 + $0x32c] sm:$0xf]  ;;  %vm18745_vm6 = vmmov %vm18663_vm0 }
 0x64c   : > { %8618 = vst [vmem:[#allocation4 + $0x630] sm:$0xff] %v8577_v26  ;;  %v17862_v38 = vpop.f32.mrf.mxu3  ;;  %v8400_v35 = vrot.slane %v13558_v8, 4  ;;  %v12557_v63 = vld [vmem:[#allocation4 + $0x3a8] sm:$0xf0]  ;;  %v12556_v4 = vor.u32 %v13427_v16, %v12555_v49  ;;  %v12491_v36 = vld [vmem:[#allocation4 + $0x228] sm:$0xf]  ;;  %vm18746_vm8 = vmmov %vm18663_vm0 }
 0x64d   : > { %9953 = vmatpush.bf16.msrb.mxu3 %v12748_v1  ;;  %9979 = vmatpush.bf16.msrb.mxu1 %v12752_v53  ;;  %8619 = vst [vmem:[#allocation4 + $0x638] sm:$0xff] %v8579_v54  ;;  %v12560_v56 = vor.u32 %v13419_v41, %v12557_v63  ;;  %vm18747_vm9 = vmmov %vm18663_vm0 }
 0x64e   : > { %v8371_v20 = vpop.permute.xlu0 %8370  ;;  %v9742_v57 = vpop.f32.mrf.mxu1 }
 0x64f   : > { %v8389_v32 = vpop.permute.xlu1 %8388  ;;  %v8399_v51 = vrot.slane %v8371_v20, 4 }
 0x650   : > { %v8408_v50 = vrot.slane %v8389_v32, 4  ;;  %v17864_v18 = vpop.permute.xlu2 %7844  ;;  %v17866_v15 = vpop.f32.mrf.mxu2 }
 0x651   : > { %9954 = vmatpush.bf16.msrb.mxu3 %v12684_v27  ;;  %9980 = vmatpush.bf16.msrb.mxu1 %v12688_v17  ;;  %v7873_v59 = vrot.slane %v17864_v18, 4  ;;  %v8422_v30 = vsel %vm18736_vm7, %v8398_v14, %v8399_v51  ;;  %v8424_v48 = vsel %vm18739_vm3, %v8399_v51, %v8400_v35  ;;  %v13403_v27 = vld [vmem:[#allocation4 + $0x22c] sm:$0xf]  ;;  %v13395_v35 = vld [vmem:[#allocation4 + $0x1a4] sm:$0xf0]  ;;  %vm18750_vm7 = vmmov %vm18739_vm3 }
 0x652   : > { %v8438_v9 = vsel %vm18663_vm0, %v8407_v43, %v8408_v50  ;;  %v8440_v42 = vsel %vm18735_vm10, %v8408_v50, %v8409_v13  ;;  %v8423_v14 = vsel %vm18741_vm5, %v17762_v5, %v8422_v30  ;;  %v8425_v53 = vsel %vm18743_vm11, %v8371_v20, %v8424_v48  ;;  %v13411_v8 = vld [vmem:[#allocation4 + $0x2a4] sm:$0xf0]  ;;  %v12493_v5 = vld [vmem:[#allocation4 + $0x2a8] sm:$0xf0]  ;;  %vm18748_vm0 = vmmov %vm18732_vm2 }
 0x653   : > { %v8439_v2 = vsel %vm18737_vm15, %v17765_v45, %v8438_v9  ;;  %v8441_v1 = vsel %vm18738_vm4, %v8389_v32, %v8440_v42  ;;  %v7896_v43 = vsel %vm18740_vm12, %v7872_v3, %v7873_v59  ;;  %v9729_v40 = vpop.f32.mrf.mxu0  ;;  %8464 = vst [vmem:[#allocation4 + $0x530] sm:$0xff] %v8423_v14  ;;  %v12492_v54 = vor.u32 %v13411_v8, %v12491_v36  ;;  %v12429_v50 = vld [vmem:[#allocation4 + $0x1a8] sm:$0xf0]  ;;  %v12427_v51 = vld [vmem:[#allocation4 + $0x128] sm:$0xf]  ;;  %vm18749_vm10 = vmmov %vm18748_vm0 }
 0x654   : > { %8472 = vst [vmem:[#allocation4 + $0x5b0] sm:$0xff] %v8439_v2  ;;  %v7897_v45 = vsel %vm18742_vm13, %v17773_v24, %v7896_v43  ;;  %v9716_v55 = vpop.f32.mrf.mxu3  ;;  %v12496_v58 = vor.u32 %v13403_v27, %v12493_v5  ;;  %v12432_v33 = vor.u32 %v13387_v22, %v12429_v50  ;;  %v12821_v42 = vld [vmem:[#allocation4 + $0x7b0] sm:$0xf0]  ;;  %v12363_v2 = vld [vmem:[#allocation4 + $0x28] sm:$0xf]  ;;  %vm18751_vm15 = vmmov %vm18748_vm0  ;;  %vm18754_vm12 = vcmask 130048  }
 0x655   : > { %9955 = vmatpush.bf16.msrb.mxu3 %v12620_v12  ;;  %9981 = vmatpush.bf16.msrb.mxu1 %v12624_v21  ;;  %8473 = vst [vmem:[#allocation4 + $0x5b8] sm:$0xff] %v8441_v1  ;;  %v13507_v1 = vld [vmem:[#allocation4 + $0x8a4] sm:$0xf0]  ;;  %v13371_v48 = vld [vmem:[#allocation4 + $0x2c] sm:$0xf]  ;;  %vm18752_vm4 = vmmov %vm18739_vm3 }
 0x656   : > { %7938 = vst [vmem:[#allocation4 + $0x30] sm:$0xff] %v7897_v45  ;;  %v17892_v26 = vpop.permute.xlu0 %7860  ;;  %vm18753_vm3 = vmmov %vm18748_vm0  ;;  %v12819_v36 = vld [vmem:[#allocation4 + $0x730] sm:$0xf] }
 0x657   : > { %v17890_v3 = vpop.permute.xlu1 %8708  ;;  %8465 = vst [vmem:[#allocation4 + $0x538] sm:$0xff] %v8425_v53  ;;  %v7881_v24 = vrot.slane %v17892_v26, 4  ;;  %vm18755_vm5 = vmmov %vm18754_vm12  ;;  %v13476_v22 = vld [vmem:[#allocation4 + $0x6ac] sm:$0xf0] }
 0x658   : > { %v8738_v19 = vrot.slane %v17890_v3, 4  ;;  %v8205_v28 = vpop.permute.xlu2 %8204  ;;  %v9703_v13 = vpop.f32.mrf.mxu2  ;;  %vm18756_vm13 = vmmov %vm18752_vm4 }
 0x659   : > { %9956 = vmatpush.bf16.msrb.mxu3 %v12556_v4  ;;  %9982 = vmatpush.bf16.msrb.mxu1 %v12560_v56  ;;  %v7910_v23 = vsel %vm18745_vm6, %v7880_v52, %v7881_v24  ;;  %v8223_v52 = vrot.slane %v8205_v28, 4  ;;  %v13484_v28 = vld [vmem:[#allocation4 + $0x734] sm:$0xf]  ;;  %vm18757_vm11 = vmmov %vm18731_vm1 }
 0x65a   : > { %v8760_v17 = vsel %vm18744_vm14, %v8737_v60, %v8738_v19  ;;  %v7911_v20 = vsel %vm18732_vm2, %v17694_v47, %v7910_v23  ;;  %v12428_v60 = vor.u32 %v13395_v35, %v12427_v51  ;;  %v13492_v47 = vld [vmem:[#allocation4 + $0x7ac] sm:$0xf0]  ;;  %vm18758_vm14 = vmmov %vm18752_vm4 }
 0x65b   : > { %v8761_v32 = vsel %vm18731_vm1, %v17677_v34, %v8760_v17  ;;  %7945 = vst [vmem:[#allocation4 + $0xa8] sm:$0xff] %v7911_v20  ;;  %v12755_v23 = vld [vmem:[#allocation4 + $0x630] sm:$0xf]  ;;  %vm18759_vm6 = vmmov %vm18731_vm1 }
 0x65c   : > { %8803 = vst [vmem:[#allocation4 + $0x828] sm:$0xff] %v8761_v32  ;;  %vm18760_vm1 = vmmov %vm18752_vm4 }
 0x65d   : > { %9957 = vmatpush.bf16.msrb.mxu3 %v12492_v54  ;;  %9983 = vmatpush.bf16.msrb.mxu1 %v12496_v58  ;;  %v12824_v54 = vor.u32 %v13484_v28, %v12821_v42  ;;  %v13468_v58 = vld [vmem:[#allocation4 + $0x634] sm:$0xf]  ;;  %vm18761_vm2 = vmmov %vm18759_vm6 }
 0x65e   : > { %v17910_v21 = vpop.permute.xlu0 %8184 }
 0x65f   : > { %v8203_v57 = vpop.permute.xlu1 %8202  ;;  %v8213_v34 = vrot.slane %v17910_v21, 4 }
 0x660   : > { %v8222_v12 = vrot.slane %v8203_v57, 4  ;;  %v7847_v9 = vpop.permute.xlu2 %7846 }
 0x661   : > { %9958 = vmatpush.bf16.msrb.mxu3 %v12428_v60  ;;  %9984 = vmatpush.bf16.msrb.mxu1 %v12432_v33  ;;  %v7874_v16 = vrot.slane %v7847_v9, 4  ;;  %v8236_v43 = vsel %vm18750_vm7, %v8212_v10, %v8213_v34  ;;  %v12757_v33 = vld [vmem:[#allocation4 + $0x6b0] sm:$0xf0]  ;;  %vm18764_vm7 = vmmov %vm18760_vm1 }
 0x662   : > { %v8252_v30 = vsel %vm18746_vm8, %v8221_v0, %v8222_v12  ;;  %v8254_v49 = vsel %vm18747_vm9, %v8222_v12, %v8223_v52  ;;  %v12877_v0 = vld [vmem:[#allocation4 + $0x8a8] sm:$0xf0]  ;;  %v8237_v45 = vsel %vm18751_vm15, %v17806_v37, %v8236_v43  ;;  %v12820_v37 = vor.u32 %v13492_v47, %v12819_v36  ;;  %v12693_v12 = vld [vmem:[#allocation4 + $0x5b0] sm:$0xf0]  ;;  %vm18762_vm8 = vmmov %vm18760_vm1 }
 0x663   : > { %v8253_v41 = vsel %vm18748_vm0, %v17808_v6, %v8252_v30  ;;  %v8255_v63 = vsel %vm18749_vm10, %v8203_v57, %v8254_v49  ;;  %v12875_v14 = vld [vmem:[#allocation4 + $0x828] sm:$0xf]  ;;  %v13499_v40 = vld [vmem:[#allocation4 + $0x82c] sm:$0xf]  ;;  %v7898_v53 = vsel %vm18752_vm4, %v7873_v59, %v7874_v16  ;;  %8278 = vst [vmem:[#allocation4 + $0x330] sm:$0xff] %v8237_v45  ;;  %v12760_v52 = vor.u32 %v13468_v58, %v12757_v33  ;;  %vm18763_vm9 = vmmov %vm18761_vm2 }
 0x664   : > { %8286 = vst [vmem:[#allocation4 + $0x3b0] sm:$0xff] %v8253_v41  ;;  %v13379_v6 = vld [vmem:[#allocation4 + $0xa4] sm:$0xf0]  ;;  %v12876_v4 = vor.u32 %v13507_v1, %v12875_v14  ;;  %v12365_v55 = vld [vmem:[#allocation4 + $0xa8] sm:$0xf0]  ;;  %v12880_v56 = vor.u32 %v13499_v40, %v12877_v0  ;;  %v7899_v8 = vsel %vm18753_vm3, %v17864_v18, %v7898_v53 }
 0x665   : > { %8287 = vst [vmem:[#allocation4 + $0x3b8] sm:$0xff] %v8255_v63  ;;  %v12364_v10 = vor.u32 %v13379_v6, %v12363_v2  ;;  %v12368_v5 = vor.u32 %v13371_v48, %v12365_v55  ;;  %v12691_v49 = vld [vmem:[#allocation4 + $0x530] sm:$0xf]  ;;  %v13452_v16 = vld [vmem:[#allocation4 + $0x534] sm:$0xf] }
 0x666   : > { %9972 = vmatpush.bf16.msrb.mxu2 %v12876_v4  ;;  %9998 = vmatpush.bf16.msrb.mxu0 %v12880_v56  ;;  %7939 = vst [vmem:[#allocation4 + $0x38] sm:$0xff] %v7899_v8  ;;  %v17935_v18 = vpop.permute.xlu0 %8030  ;;  %v13444_v14 = vld [vmem:[#allocation4 + $0x4ac] sm:$0xf0]  ;;  %v12629_v45 = vld [vmem:[#allocation4 + $0x4b0] sm:$0xf0] }
 0x667   : > { %9959 = vmatpush.bf16.msrb.mxu3 %v12364_v10  ;;  %9985 = vmatpush.bf16.msrb.mxu1 %v12368_v5  ;;  %v9779_v59 = vpop.f32.mrf.mxu1  ;;  %v17932_v27 = vpop.permute.xlu1 %8048  ;;  %v8059_v35 = vrot.slane %v17935_v18, 4  ;;  %v12627_v55 = vld [vmem:[#allocation4 + $0x430] sm:$0xf]  ;;  %v13436_v10 = vld [vmem:[#allocation4 + $0x434] sm:$0xf] }
 0x668   : > { %v8068_v13 = vrot.slane %v17932_v27, 4  ;;  %v17938_v32 = vpop.permute.xlu2 %8962  ;;  %v12628_v8 = vor.u32 %v13444_v14, %v12627_v55  ;;  %v12632_v28 = vor.u32 %v13436_v10, %v12629_v45  ;;  %v17990_v58 = vld [vmem:[#allocation4 + $0x1ac] sm:$0xf0]  ;;  %v18036_v55 = vld [vmem:[#allocation4 + $0x5b4] sm:$0xf0] }
 0x669   : > { %v9792_v17 = vpop.f32.mrf.mxu0  ;;  %12907 = vmatmul.msk.bf16.vlgmr.msrb.gmra.mxu2 %vm18754_vm12, %v17836_v25  ;;  %12908 = vmatmul.msk.bf16.vlgmr.msrb.gmra.mxu0 %vm18755_vm5, %v17836_v25  ;;  %v9702_v50 = vadd.f32 %v17866_v15, %v17938_v32  ;;  %v9728_v51 = vadd.f32 %v17860_v31, %v17938_v32  ;;  %v9780_v60 = vadd.f32 %v9779_v59, %v17938_v32  ;;  %v13460_v31 = vld [vmem:[#allocation4 + $0x5ac] sm:$0xf0]  ;;  %vm18769_vm12 = vcmask 7168   ;;  %vm18770_vm5 = vmmov %vm18760_vm1 }
 0x66a   : > { %10004 = vmatpush.bf16.msra.mxu2 %v12820_v37  ;;  %10030 = vmatpush.bf16.msra.mxu0 %v12824_v54  ;;  %v8098_v20 = vsel %vm18756_vm13, %v8067_v39, %v8068_v13  ;;  %v8082_v39 = vsel %vm18758_vm14, %v8058_v46, %v8059_v35  ;;  %v12756_v15 = vor.u32 %v13476_v22, %v12755_v23  ;;  %v17998_v22 = vld [vmem:[#allocation4 + $0x438] sm:$0xf] }
 0x66b   : > { %9960 = vmatmul.bf16.vlgmr.msrb.gmra.mxu3 %v17850_v62  ;;  %v8099_v57 = vsel %vm18757_vm11, %v17831_v61, %v8098_v20  ;;  %9986 = vmatmul.bf16.vlgmr.msrb.gmra.mxu1 %v17850_v62  ;;  %v8083_v9 = vsel %vm18759_vm6, %v17723_v29, %v8082_v39  ;;  %v9715_v47 = vadd.f32 %v17862_v38, %v9702_v50  ;;  %v9753_v30 = vpop.f32.mrf.mxu3  ;;  %v13428_v37 = vld [vmem:[#allocation4 + $0x3ac] sm:$0xf0]  ;;  %v12565_v54 = vld [vmem:[#allocation4 + $0x3b0] sm:$0xf0]  ;;  %vm18773_vm6 = vmmov %vm18769_vm12 }
 0x66c   : > { %8132 = vst [vmem:[#allocation4 + $0x2b0] sm:$0xff] %v8099_v57  ;;  %v9741_v61 = vadd.f32 %v17834_v44, %v9728_v51  ;;  %v9793_v42 = vadd.f32 %v9792_v17, %v9780_v60  ;;  %v9754_v46 = vadd.f32 %v9753_v30, %v17938_v32  ;;  %v9766_v2 = vpop.f32.mrf.mxu2  ;;  %v12692_v29 = vor.u32 %v13460_v31, %v12691_v49  ;;  %v13420_v17 = vld [vmem:[#allocation4 + $0x334] sm:$0xf]  ;;  %v17996_v60 = vld [vmem:[#allocation4 + $0x7b4] sm:$0xf0] }
 0x66d   : > { %8124 = vst [vmem:[#allocation4 + $0x230] sm:$0xff] %v8083_v9  ;;  %v12913_v1 = vmul.f32 -1.442695, %v9715_v47  ;;  %v12696_v38 = vor.u32 %v13452_v16, %v12693_v12  ;;  %v17992_v20 = vld [vmem:[#allocation4 + $0x1b0] sm:$0xf0] }
 0x66e   : > { %10005 = vmatpush.bf16.msra.mxu2 %v12756_v15  ;;  %10031 = vmatpush.bf16.msra.mxu0 %v12760_v52  ;;  %v12914_v48 = vmul.f32 -1.442695, %v9741_v61  ;;  %v12916_v41 = vmul.f32 -1.442695, %v9793_v42  ;;  %v9767_v63 = vadd.f32 %v9766_v2, %v9754_v46  ;;  %v17971_v0 = vpop.permute.xlu0 %8710  ;;  %v17994_v51 = vld [vmem:[#allocation4 + $0x134] sm:$0xf]  ;;  %v12568_v52 = vor.u32 %v13420_v17, %v12565_v54 }
 0x66f   : > { %v17968_v43 = vpop.permute.xlu1 %8728  ;;  %v9781_v44 = vpop.f32.mrf.mxu1  ;;  %13565 = vpow2.f32 %v12913_v1  ;;  %v18317_v4 = vrot.slane %v17971_v0, 4  ;;  %v18004_v9 = vld [vmem:[#allocation4 + $0x738] sm:$0xf]  ;;  %v18006_v47 = vld [vmem:[#allocation4 + $0x7b8] sm:$0xf0] }
 0x670   : > { %v8748_v40 = vrot.slane %v17968_v43, 4  ;;  %13567 = vpow2.f32 %v12914_v48  ;;  %v12915_v6 = vmul.f32 -1.442695, %v9767_v63  ;;  %v12440_v48 = vor.u32 %v17994_v51, %v17992_v20  ;;  %v18021_v63 = vld [vmem:[#allocation4 + $0x638] sm:$0xf] }
 0x671   : > { %v9794_v53 = vpop.f32.mrf.mxu0  ;;  %13569 = vpow2.f32 %v12916_v41  ;;  %v8762_v36 = vsel %vm18762_vm8, %v8738_v19, %v18317_v4  ;;  %v18019_v41 = vld [vmem:[#allocation4 + $0x73c] sm:$0xf]  ;;  %v12828_v45 = vor.u32 %v17996_v60, %v18004_v9  ;;  %vm18776_vm8 = vcmask 130048  }
 0x672   : > { %10006 = vmatpush.bf16.msra.mxu2 %v12692_v29  ;;  %10032 = vmatpush.bf16.msra.mxu0 %v12696_v38  ;;  %v8778_v56 = vsel %vm18760_vm1, %v8747_v11, %v8748_v40  ;;  %13571 = vpow2.f32 %v12915_v6  ;;  %v8763_v59 = vsel %vm18763_vm9, %v17890_v3, %v8762_v36  ;;  %v12563_v11 = vld [vmem:[#allocation4 + $0x330] sm:$0xf]  ;;  %v18000_v3 = vld [vmem:[#allocation4 + $0x4b4] sm:$0xf0]  ;;  %v18023_v29 = vld [vmem:[#allocation4 + $0x63c] sm:$0xf]  ;;  %v12832_v17 = vor.u32 %v18019_v41, %v18006_v47 }
 0x673   : > { %v8779_v5 = vsel %vm18761_vm2, %v17785_v7, %v8778_v56  ;;  %v9755_v23 = vpop.f32.mrf.mxu3  ;;  %8804 = vst [vmem:[#allocation4 + $0x830] sm:$0xff] %v8763_v59  ;;  %v17988_v7 = vld [vmem:[#allocation4 + $0x130] sm:$0xf]  ;;  %v12564_v15 = vor.u32 %v13428_v37, %v12563_v11  ;;  %v12501_v16 = vld [vmem:[#allocation4 + $0x2b0] sm:$0xf0] }
 0x674   : > { %8812 = vst [vmem:[#allocation4 + $0x8b0] sm:$0xff] %v8779_v5  ;;  %v9768_v19 = vpop.f32.mrf.mxu2  ;;  %v12499_v31 = vld [vmem:[#allocation4 + $0x230] sm:$0xf]  ;;  %v13404_v49 = vld [vmem:[#allocation4 + $0x234] sm:$0xf]  ;;  %v12436_v46 = vor.u32 %v17990_v58, %v17988_v7 }
 0x675   : > { %v13566_v50 = vpop.eup %13565  ;;  %v13412_v12 = vld [vmem:[#allocation4 + $0x2ac] sm:$0xf0]  ;;  %v18032_v53 = vld [vmem:[#allocation4 + $0x6b4] sm:$0xf0]  ;;  %v18034_v6 = vld [vmem:[#allocation4 + $0x6b8] sm:$0xf0]  ;;  %v12504_v5 = vor.u32 %v13404_v49, %v12501_v16 }
 0x676   : > { %10007 = vmatpush.bf16.msra.mxu2 %v12628_v8  ;;  %10033 = vmatpush.bf16.msra.mxu0 %v12632_v28  ;;  %v13568_v33 = vpop.eup %13567  ;;  %v18002_v57 = vadd.f32 1.0, %v13566_v50  ;;  %v18010_v30 = vpop.permute.xlu0 %7862  ;;  %v12500_v44 = vor.u32 %v13412_v12, %v12499_v31  ;;  %v18038_v56 = vld [vmem:[#allocation4 + $0x5b8] sm:$0xf0]  ;;  %v18042_v36 = vld [vmem:[#allocation4 + $0x538] sm:$0xf]  ;;  %v12764_v50 = vor.u32 %v18032_v53, %v18021_v63  ;;  %v12768_v60 = vor.u32 %v18023_v29, %v18034_v6 }
 0x677   : > { %v8187_v39 = vpop.permute.xlu1 %8186  ;;  %v13570_v61 = vpop.eup %13569  ;;  %v18008_v42 = vadd.f32 1.0, %v13568_v33  ;;  %v18044_v28 = vld [vmem:[#allocation4 + $0x53c] sm:$0xf]  ;;  %v7882_v9 = vrot.slane %v18010_v30, 4 }
 0x678   : > { %v13572_v2 = vpop.eup %13571  ;;  %13573 = vrcp.f32 %v18002_v57  ;;  %v18015_v1 = vadd.f32 1.0, %v13570_v61  ;;  %v10183_v8 = vand.u32 2147483648, %v18002_v57  ;;  %v8214_v10 = vrot.slane %v8187_v39, 4 }
 0x679   : > { %13575 = vrcp.f32 %v18008_v42  ;;  %v18028_v14 = vadd.f32 1.0, %v13572_v2  ;;  %v10181_v54 = vand.u32 2147483647, %v18002_v57  ;;  %v10198_v59 = vand.u32 2147483648, %v18008_v42 }
 0x67a   : > { %10008 = vmatpush.bf16.msra.mxu2 %v12564_v15  ;;  %10034 = vmatpush.bf16.msra.mxu0 %v12568_v52  ;;  %13577 = vrcp.f32 %v18015_v1  ;;  %v10228_v37 = vand.u32 2147483648, %v18015_v1  ;;  %v10196_v23 = vand.u32 2147483647, %v18008_v42  ;;  %v12883_v19 = vld [vmem:[#allocation4 + $0x830] sm:$0xf]  ;;  %vm10177_vm0 = vweird.f32 %v18002_v57 }
 0x67b   : > { %v13508_v11 = vld [vmem:[#allocation4 + $0x8ac] sm:$0xf0]  ;;  %13579 = vrcp.f32 %v18028_v14  ;;  %v10226_v33 = vand.u32 2147483647, %v18015_v1  ;;  %v12700_v39 = vor.u32 %v18036_v55, %v18042_v36  ;;  %v18065_v31 = vor.u32 1.1754944e-38, %v10183_v8 }
 0x67c   : > { %vm10192_vm10 = vweird.f32 %v18008_v42  ;;  %v8238_v12 = vsel %vm18764_vm7, %v8213_v34, %v8214_v10  ;;  %v12884_v61 = vor.u32 %v13508_v11, %v12883_v19  ;;  %v13500_v49 = vld [vmem:[#allocation4 + $0x834] sm:$0xf]  ;;  %vm10222_vm15 = vweird.f32 %v18015_v1  ;;  %vm18777_vm7 = vmmov %vm18770_vm5 }
 0x67d   : > { %v18075_v63 = vor.u32 1.1754944e-38, %v10228_v37  ;;  %vm18079_vm4 = vcmp.eq.f32.partialorder %v10181_v54, 8.507059e+37  ;;  %v18083_v8 = vor.u32 1.1754944e-38, %v10198_v59  ;;  %v10211_v34 = vand.u32 2147483647, %v18028_v14 }
 0x67e   : > { %10009 = vmatpush.bf16.msra.mxu2 %v12500_v44  ;;  %10035 = vmatpush.bf16.msra.mxu0 %v12504_v5  ;;  %v18063_v52 = vpop.eup %13573  ;;  %v12885_v10 = vld [vmem:[#allocation4 + $0x8b0] sm:$0xf0]  ;;  %v8033_v5 = vpop.permute.xlu0 %8032  ;;  %vm18090_vm3 = vcmp.eq.f32.partialorder %v10196_v23, 8.507059e+37  ;;  %v10213_v54 = vand.u32 2147483648, %v18028_v14  ;;  %v8239_v38 = vsel %vm18769_vm12, %v17910_v21, %v8238_v12  ;;  %v7912_v59 = vsel %vm18770_vm5, %v7881_v24, %v7882_v9  ;;  %vm18778_vm12 = vmmov %vm18770_vm5 }
 0x67f   : > { %v8051_v16 = vpop.permute.xlu1 %8050  ;;  %v18072_v2 = vpop.eup %13575  ;;  %v10173_v44 = vmul.f32 %v18063_v52, %v18002_v57  ;;  %10024 = vmatpush.bf16.msra.mxu3 %v12884_v61  ;;  %vm18107_vm13 = vcmp.eq.f32.partialorder %v10226_v33, 8.507059e+37  ;;  %vm10178_vm11 = vweird.f32 %v18063_v52  ;;  %vm10207_vm14 = vweird.f32 %v18028_v14  ;;  %8279 = vst [vmem:[#allocation4 + $0x338] sm:$0xff] %v8239_v38 }
 0x680   : > { %v18086_v11 = vpop.eup %13577  ;;  %v10188_v19 = vmul.f32 %v18072_v2, %v18008_v42  ;;  %v7913_v24 = vsel %vm18773_vm6, %v17892_v26, %v7912_v59  ;;  %v12888_v58 = vor.u32 %v13500_v49, %v12885_v10  ;;  %v8060_v33 = vrot.slane %v8033_v5, 4  ;;  %vm18149_vm6 = vmor %vm10177_vm0, %vm10178_vm11  ;;  %v13372_v59 = vld [vmem:[#allocation4 + $0x34] sm:$0xf] }
 0x681   : > { %v10218_v23 = vmul.f32 %v18086_v11, %v18015_v1  ;;  %v10174_v4 = vsub.f32 1.0, %v10173_v44  ;;  %v18118_v21 = vpop.eup %13579  ;;  %7946 = vst [vmem:[#allocation4 + $0xb0] sm:$0xff] %v7913_v24  ;;  %vm10193_vm1 = vweird.f32 %v18072_v2  ;;  %vm18124_vm2 = vcmp.eq.f32.partialorder %v10211_v34, 8.507059e+37 }
 0x682   : > { %10010 = vmatpush.bf16.msra.mxu2 %v12436_v46  ;;  %10036 = vmatpush.bf16.msra.mxu0 %v12440_v48  ;;  %v10189_v7 = vsub.f32 1.0, %v10188_v19  ;;  %v8069_v46 = vrot.slane %v8051_v16, 4  ;;  %v10203_v26 = vmul.f32 %v18118_v21, %v18028_v14  ;;  %vm10223_vm9 = vweird.f32 %v18086_v11  ;;  %vm18166_vm0 = vmor %vm10192_vm10, %vm10193_vm1 }
 0x683   : > { %10056 = vmatpush.bf16.msrb.mxu3 %v12828_v45  ;;  %v10219_v12 = vsub.f32 1.0, %v10218_v23  ;;  %v10175_v61 = vmul.f32 %v18063_v52, %v10174_v4  ;;  %10050 = vmatpush.bf16.msra.mxu1 %v12888_v58  ;;  %v8084_v51 = vsel %vm18778_vm12, %v8059_v35, %v8060_v33  ;;  %vm18779_vm5 = vcmask 1039360   ;;  %vm18176_vm11 = vmor %vm10222_vm15, %vm10223_vm9 }
 0x684   : > { %12909 = vmatmul.msk.bf16.vlgmr.msra.gmra.mxu3 %vm18776_vm8, %v17836_v25  ;;  %v10190_v20 = vmul.f32 %v18072_v2, %v10189_v7  ;;  %v8100_v4 = vsel %vm18777_vm7, %v8068_v13, %v8069_v46  ;;  %v10204_v49 = vsub.f32 1.0, %v10203_v26  ;;  %vm10208_vm8 = vweird.f32 %v18118_v21  ;;  %vm18782_vm7 = vmmov %vm18779_vm5  ;;  %v12637_v46 = vld [vmem:[#allocation4 + $0x4b8] sm:$0xf0] }
 0x685   : > { %v10220_v48 = vmul.f32 %v18086_v11, %v10219_v12  ;;  %v10176_v45 = vadd.f32 %v18063_v52, %v10175_v61  ;;  %v8101_v16 = vsel %vm18779_vm5, %v17932_v27, %v8100_v4  ;;  %v10214_v44 = vor.u32 1.1754944e-38, %v10213_v54  ;;  %v12371_v54 = vld [vmem:[#allocation4 + $0x30] sm:$0xf]  ;;  %vm10209_vm15 = vmor %vm10207_vm14, %vm10208_vm8 }
 0x686   : > { %v10191_v35 = vadd.f32 %v18072_v2, %v10190_v20  ;;  %8133 = vst [vmem:[#allocation4 + $0x2b8] sm:$0xff] %v8101_v16  ;;  %v8085_v27 = vsel %vm18782_vm7, %v17935_v18, %v8084_v51  ;;  %v10205_v34 = vmul.f32 %v18118_v21, %v10204_v49  ;;  %v7865_v10 = vpop.permute.xlu0 %7864  ;;  %vm18787_vm10 = vcmask 130048   ;;  %v12571_v12 = vld [vmem:[#allocation4 + $0x338] sm:$0xf] }
 0x687   : > { %10082 = vmatpush.bf16.msrb.mxu1 %v12832_v17  ;;  %10057 = vmatpush.bf16.msrb.mxu3 %v12764_v50  ;;  %v9831_v47 = vpop.f32.mrf.mxu0  ;;  %v13562_v41 = vpop.permute.xlu1 %13561  ;;  %v10221_v17 = vadd.f32 %v18086_v11, %v10220_v48  ;;  %v10180_v57 = vsel %vm18149_vm6, %v18063_v52, %v10176_v45  ;;  %8125 = vst [vmem:[#allocation4 + $0x238] sm:$0xff] %v8085_v27  ;;  %v7883_v58 = vrot.slane %v7865_v10, 4  ;;  %v18792_v26 = vrot.slane %v17971_v0, 4  ;;  %v13437_v45 = vld [vmem:[#allocation4 + $0x43c] sm:$0xf] }
 0x688   : > { %v9832_v18 = vadd.f32 %v9831_v47, %v17938_v32  ;;  %v9844_v5 = vpop.f32.mrf.mxu1  ;;  %v10185_v42 = vsel %vm18079_vm4, %v18065_v31, %v10180_v57  ;;  %v10195_v19 = vsel %vm18166_vm0, %v18072_v2, %v10191_v35  ;;  %v13564_v23 = vunpack.i.h.bf16 %v13562_v41  ;;  %12910 = vmatmul.msk.bf16.vlgmr.msra.gmra.mxu1 %vm18787_vm10, %v17836_v25  ;;  %v13380_v2 = vld [vmem:[#allocation4 + $0xac] sm:$0xf0]  ;;  %v12373_v7 = vld [vmem:[#allocation4 + $0xb0] sm:$0xf0]  ;;  %vm18788_vm4 = vmmov %vm18778_vm12 }
 0x689   : > { %v13563_v24 = vunpack.i.l.bf16 %v13562_v41  ;;  %v10225_v1 = vsel %vm18176_vm11, %v18086_v11, %v10221_v17  ;;  %v10200_v53 = vsel %vm18090_vm3, %v18083_v8, %v10195_v19  ;;  %v10206_v31 = vadd.f32 %v18118_v21, %v10205_v34  ;;  %vm18789_vm3 = vmmov %vm18788_vm4  ;;  %v13429_v49 = vld [vmem:[#allocation4 + $0x3b4] sm:$0xf0] }
 0x68a   : > { %v10230_v11 = vsel %vm18107_vm13, %v18075_v63, %v10225_v1  ;;  %v10428_v29 = vrot.slane %v10200_v53, 4  ;;  %v12372_v6 = vor.u32 %v13380_v2, %v12371_v54  ;;  %v12376_v55 = vor.u32 %v13372_v59, %v12373_v7  ;;  %vm18790_vm13 = vmmov %vm18789_vm3  ;;  %v13397_v34 = vld [vmem:[#allocation4 + $0x1b4] sm:$0xf0]  ;;  %v13389_v7 = vld [vmem:[#allocation4 + $0x13c] sm:$0xf] }
 0x68b   : > { %10083 = vmatpush.bf16.msrb.mxu1 %v12768_v60  ;;  %10058 = vmatpush.bf16.msrb.mxu3 %v12700_v39  ;;  %v10429_v36 = vrot.slane %v10230_v11, 4  ;;  %v10210_v60 = vsel %vm10209_vm15, %v18118_v21, %v10206_v31  ;;  %v8749_v39 = vrot.slane %v13564_v23, 4  ;;  %v8740_v15 = vrot.slane %v13563_v24, 4  ;;  %v9818_v63 = vpop.f32.mrf.mxu3  ;;  %vm18791_vm14 = vmmov %vm18789_vm3  ;;  %v12443_v10 = vld [vmem:[#allocation4 + $0x138] sm:$0xf] }
 0x68c   : > { %v10215_v8 = vsel %vm18124_vm2, %v10214_v44, %v10210_v60  ;;  %v10437_v37 = vsel %vm18788_vm4, %v10185_v42, %v10428_v29  ;;  %10011 = vmatpush.bf16.msra.mxu2 %v12372_v6  ;;  %10037 = vmatpush.bf16.msra.mxu0 %v12376_v55  ;;  %v7914_v14 = vsel %vm18789_vm3, %v7882_v9, %v7883_v58  ;;  %v9805_v33 = vpop.f32.mrf.mxu2  ;;  %vm18793_vm1 = vmmov %vm18789_vm3  ;;  %vm18798_vm12 = vcmask 7168   ;;  %v12573_v44 = vld [vmem:[#allocation4 + $0x3b8] sm:$0xf0]  ;;  %v12379_v58 = vld [vmem:[#allocation4 + $0x38] sm:$0xf] }
 0x68d   : > { %v10438_v21 = vsel %vm18790_vm13, %v10215_v8, %v10429_v36  ;;  %10453 = vst [vmem:[%s18207_s18] sm:$0x77] %v10437_v37  ;;  %v8780_v61 = vsel %vm18791_vm14, %v8748_v40, %v8749_v39  ;;  %v8764_v38 = vsel %vm18793_vm1, %v18792_v26, %v8740_v15  ;;  %v18794_v20 = vor.u32 %v18044_v28, %v18038_v56  ;;  %vm18796_vm2 = vmmov %vm18779_vm5  ;;  %v13413_v28 = vld [vmem:[#allocation4 + $0x2b4] sm:$0xf0]  ;;  %v12509_v50 = vld [vmem:[#allocation4 + $0x2b8] sm:$0xf0] }
 0x68e   : > { %v18795_v9 = vor.u32 %v18000_v3, %v17998_v22  ;;  %10454 = vst [vmem:[%s18207_s18 + $0x8] sm:$0x77] %v10438_v21  ;;  %v8781_v4 = vsel %vm18796_vm2, %v17968_v43, %v8780_v61  ;;  %vm18797_vm9 = vmmov %vm18796_vm2  ;;  %v7915_v40 = vsel %vm18798_vm12, %v18010_v30, %v7914_v14  ;;  %v9845_v48 = vadd.f32 %v9844_v5, %v9832_v18  ;;  %v13421_v43 = vld [vmem:[#allocation4 + $0x33c] sm:$0xf]  ;;  %v12507_v35 = vld [vmem:[#allocation4 + $0x238] sm:$0xf] }
 0x68f   : > { %10084 = vmatpush.bf16.msrb.mxu1 %v18794_v20  ;;  %v8765_v51 = vsel %vm18797_vm9, %v17971_v0, %v8764_v38  ;;  %v9833_v16 = vpop.f32.mrf.mxu0  ;;  %8813 = vst [vmem:[#allocation4 + $0x8b8] sm:$0xff] %v8781_v4  ;;  %10012 = vmatmul.bf16.vlgmr.msra.gmra.mxu2 %v17850_v62  ;;  %v12640_v22 = vor.u32 %v13437_v45, %v12637_v46  ;;  %v13405_v57 = vld [vmem:[#allocation4 + $0x23c] sm:$0xf]  ;;  %vm18799_vm5 = vmmov %vm18787_vm10 }
 0x690   : > { %10059 = vmatpush.bf16.msrb.mxu3 %v18795_v9  ;;  %10038 = vmatmul.bf16.vlgmr.msra.gmra.mxu0 %v17850_v62  ;;  %v9806_v3 = vadd.f32 %v9805_v33, %v17938_v32  ;;  %v12572_v56 = vor.u32 %v13429_v49, %v12571_v12  ;;  %v9846_v13 = vpop.f32.mrf.mxu1  ;;  %8805 = vst [vmem:[#allocation4 + $0x838] sm:$0xff] %v8765_v51  ;;  %v12918_v0 = vmul.f32 -1.442695, %v9845_v48  ;;  %v12445_v24 = vld [vmem:[#allocation4 + $0x1b8] sm:$0xf0]  ;;  %vm18800_vm6 = vmmov %vm18799_vm5 }
 0x691   : > { %7947 = vst [vmem:[#allocation4 + $0xb8] sm:$0xff] %v7915_v40  ;;  %v12576_v47 = vor.u32 %v13421_v43, %v12573_v44  ;;  %v12508_v41 = vor.u32 %v13413_v28, %v12507_v35  ;;  %v12512_v42 = vor.u32 %v13405_v57, %v12509_v50  ;;  %v12444_v19 = vor.u32 %v13397_v34, %v12443_v10  ;;  %v13373_v60 = vld [vmem:[#allocation4 + $0x3c] sm:$0xf]  ;;  %vm18801_vm13 = vmmov %vm18793_vm1 }
 0x692   : > { %v9819_v30 = vadd.f32 %v9818_v63, %v9806_v3  ;;  %13581 = vpow2.f32 %v12918_v0  ;;  %v12448_v29 = vor.u32 %v13389_v7, %v12445_v24 }
 0x693   : > { %10085 = vmatpush.bf16.msrb.mxu1 %v12640_v22  ;;  %v9820_v17 = vpop.f32.mrf.mxu3 }
 0x694   : > { %10060 = vmatpush.bf16.msrb.mxu3 %v12572_v56  ;;  %v12917_v27 = vmul.f32 -1.442695, %v9819_v30  ;;  %v9807_v18 = vpop.f32.mrf.mxu2 }
 0x696   : > { %13583 = vpow2.f32 %v12917_v27  ;;  %v13509_v5 = vld [vmem:[#allocation4 + $0x8b4] sm:$0xf0]  ;;  %v12893_v52 = vld [vmem:[#allocation4 + $0x8b8] sm:$0xf0] }
 0x697   : > { %10086 = vmatpush.bf16.msrb.mxu1 %v12576_v47  ;;  %v12891_v54 = vld [vmem:[#allocation4 + $0x838] sm:$0xf]  ;;  %v13501_v59 = vld [vmem:[#allocation4 + $0x83c] sm:$0xf] }
 0x698   : > { %10061 = vmatpush.bf16.msrb.mxu3 %v12508_v41  ;;  %v13582_v23 = vpop.eup %13581  ;;  %v12892_v1 = vor.u32 %v13509_v5, %v12891_v54  ;;  %v12896_v53 = vor.u32 %v13501_v59, %v12893_v52  ;;  %v13381_v31 = vld [vmem:[#allocation4 + $0xb4] sm:$0xf0]  ;;  %v12381_v36 = vld [vmem:[#allocation4 + $0xb8] sm:$0xf0] }
 0x699   : > { %v10161_v2 = vadd.f32 1.0, %v13582_v23  ;;  %v12380_v6 = vor.u32 %v13381_v31, %v12379_v58  ;;  %v12384_v39 = vor.u32 %v13373_v60, %v12381_v36 }
 0x69a   : > { %10076 = vmatpush.bf16.msrb.mxu2 %v12892_v1  ;;  %10102 = vmatpush.bf16.msrb.mxu0 %v12896_v53 }
 0x69b   : > { %10087 = vmatpush.bf16.msrb.mxu1 %v12512_v42  ;;  %13585 = vrcp.f32 %v10161_v2  ;;  %v10258_v14 = vand.u32 2147483648, %v10161_v2  ;;  %v10256_v26 = vand.u32 2147483647, %v10161_v2  ;;  %vm10252_vm7 = vweird.f32 %v10161_v2 }
 0x69c   : > { %10062 = vmatpush.bf16.msrb.mxu3 %v12444_v19  ;;  %v13584_v11 = vpop.eup %13583 }
 0x69d   : > { %v10160_v55 = vadd.f32 1.0, %v13584_v11  ;;  %v10259_v9 = vor.u32 1.1754944e-38, %v10258_v14  ;;  %vm10257_vm10 = vcmp.eq.f32.partialorder %v10256_v26, 8.507059e+37 }
 0x69f   : > { %10088 = vmatpush.bf16.msrb.mxu1 %v12448_v29  ;;  %13587 = vrcp.f32 %v10160_v55  ;;  %12911 = vmatmul.msk.bf16.vlgmr.msrb.gmra.mxu2 %vm18799_vm5, %v17836_v25  ;;  %v10243_v4 = vand.u32 2147483648, %v10160_v55  ;;  %v10241_v40 = vand.u32 2147483647, %v10160_v55  ;;  %vm10237_vm15 = vweird.f32 %v10160_v55 }
 0x6a0   : > { %10063 = vmatpush.bf16.msrb.mxu3 %v12380_v6  ;;  %12912 = vmatmul.msk.bf16.vlgmr.msrb.gmra.mxu0 %vm18800_vm6, %v17836_v25 }
 0x6a1   : > { %v13586_v15 = vpop.eup %13585  ;;  %v10244_v56 = vor.u32 1.1754944e-38, %v10243_v4  ;;  %vm10242_vm3 = vcmp.eq.f32.partialorder %v10241_v40, 8.507059e+37 }
 0x6a2   : > { %v10248_v63 = vmul.f32 %v13586_v15, %v10161_v2  ;;  %vm10253_vm8 = vweird.f32 %v13586_v15 }
 0x6a3   : > { %10064 = vmatmul.bf16.vlgmr.msrb.gmra.mxu3 %v17850_v62  ;;  %10089 = vmatpush.bf16.msrb.mxu1 %v12384_v39  ;;  %vm10254_vm0 = vmor %vm10252_vm7, %vm10253_vm8 }
 0x6a4   : > { %v10249_v37 = vsub.f32 1.0, %v10248_v63  ;;  %vm18802_vm7 = vmmov %vm18801_vm13 }
 0x6a5   : > { %v13588_v8 = vpop.eup %13587 }
 0x6a6   : > { %10090 = vmatmul.bf16.vlgmr.msrb.gmra.mxu1 %v17850_v62  ;;  %v10233_v33 = vmul.f32 %v13588_v8, %v10160_v55  ;;  %v9896_v21 = vpop.f32.mrf.mxu0  ;;  %v10250_v61 = vmul.f32 %v13586_v15, %v10249_v37  ;;  %vm10238_vm11 = vweird.f32 %v13588_v8 }
 0x6a7   : > { %vm10239_vm4 = vmor %vm10237_vm15, %vm10238_vm11 }
 0x6a8   : > { %v9883_v46 = vpop.f32.mrf.mxu1  ;;  %v10234_v38 = vsub.f32 1.0, %v10233_v33  ;;  %v10251_v20 = vadd.f32 %v13586_v15, %v10250_v61 }
 0x6a9   : > { %v9884_v12 = vadd.f32 %v9883_v46, %v17938_v32 }
 0x6aa   : > { %v10235_v51 = vmul.f32 %v13588_v8, %v10234_v38  ;;  %v10255_v62 = vsel %vm10254_vm0, %v13586_v15, %v10251_v20 }
 0x6ab   : > { %v9897_v25 = vadd.f32 %v9896_v21, %v9884_v12  ;;  %v9857_v45 = vpop.f32.mrf.mxu3  ;;  %v10260_v49 = vsel %vm10257_vm10, %v10259_v9, %v10255_v62 }
 0x6ac   : > { %v10236_v16 = vadd.f32 %v13588_v8, %v10235_v51  ;;  %v9858_v22 = vadd.f32 %v9857_v45, %v17938_v32  ;;  %v9870_v3 = vpop.f32.mrf.mxu2  ;;  %v10430_v28 = vrot.slane %v10260_v49, 4 }
 0x6ad   : > { %v12920_v48 = vmul.f32 -1.442695, %v9897_v25 }
 0x6ae   : > { %v10240_v13 = vsel %vm10239_vm4, %v13588_v8, %v10236_v16  ;;  %v9871_v0 = vadd.f32 %v9870_v3, %v9858_v22  ;;  %v9898_v35 = vpop.f32.mrf.mxu0 }
 0x6af   : > { %13589 = vpow2.f32 %v12920_v48  ;;  %v10245_v30 = vsel %vm10242_vm3, %v10244_v56, %v10240_v13 }
 0x6b0   : > { %v9885_v43 = vpop.f32.mrf.mxu1  ;;  %v10439_v44 = vsel %vm18801_vm13, %v10245_v30, %v10430_v28  ;;  %v12919_v27 = vmul.f32 -1.442695, %v9871_v0 }
 0x6b1   : > { %10455 = vst [vmem:[%s18207_s18 + $0x10] sm:$0x77] %v10439_v44 }
 0x6b2   : > { %13591 = vpow2.f32 %v12919_v27 }
 0x6b3   : > { %v9859_v17 = vpop.f32.mrf.mxu3 }
 0x6b4   : > { %v9872_v57 = vpop.f32.mrf.mxu2 }
 0x6b5   : > { %v13590_v47 = vpop.eup %13589 }
 0x6b6   : > { %v10163_v41 = vadd.f32 1.0, %v13590_v47 }
 0x6b8   : > { %13593 = vrcp.f32 %v10163_v41  ;;  %v13592_v50 = vpop.eup %13591  ;;  %v10288_v19 = vand.u32 2147483648, %v10163_v41  ;;  %vm10282_vm1 = vweird.f32 %v10163_v41  ;;  %v10286_v59 = vand.u32 2147483647, %v10163_v41 }
 0x6b9   : > { %v10162_v34 = vadd.f32 1.0, %v13592_v50 }
 0x6ba   : > { %v10289_v53 = vor.u32 1.1754944e-38, %v10288_v19  ;;  %vm10287_vm9 = vcmp.eq.f32.partialorder %v10286_v59, 8.507059e+37 }
 0x6bb   : > { %13595 = vrcp.f32 %v10162_v34  ;;  %v10273_v31 = vand.u32 2147483648, %v10162_v34  ;;  %v10271_v7 = vand.u32 2147483647, %v10162_v34  ;;  %vm10267_vm5 = vweird.f32 %v10162_v34 }
 0x6bd   : > { %v10274_v55 = vor.u32 1.1754944e-38, %v10273_v31  ;;  %vm10272_vm8 = vcmp.eq.f32.partialorder %v10271_v7, 8.507059e+37 }
 0x6be   : > { %v13594_v18 = vpop.eup %13593 }
 0x6bf   : > { %v10278_v10 = vmul.f32 %v13594_v18, %v10163_v41  ;;  %vm10283_vm14 = vweird.f32 %v13594_v18 }
 0x6c0   : > { %vm10284_vm2 = vmor %vm10282_vm1, %vm10283_vm14 }
 0x6c1   : > { %v10279_v5 = vsub.f32 1.0, %v10278_v10  ;;  %v13596_v42 = vpop.eup %13595  ;;  %vm18803_vm1 = vmmov %vm18802_vm7 }
 0x6c2   : > { %v10263_v23 = vmul.f32 %v13596_v42, %v10162_v34  ;;  %vm10268_vm12 = vweird.f32 %v13596_v42 }
 0x6c3   : > { %v10280_v52 = vmul.f32 %v13594_v18, %v10279_v5  ;;  %vm10269_vm6 = vmor %vm10267_vm5, %vm10268_vm12 }
 0x6c4   : > { %v10264_v1 = vsub.f32 1.0, %v10263_v23 }
 0x6c5   : > { %v10281_v54 = vadd.f32 %v13594_v18, %v10280_v52  ;;  %v9948_v58 = vpop.f32.mrf.mxu1 }
 0x6c6   : > { %v10265_v2 = vmul.f32 %v13596_v42, %v10264_v1 }
 0x6c7   : > { %v10285_v24 = vsel %vm10284_vm2, %v13594_v18, %v10281_v54  ;;  %v9935_v6 = vpop.f32.mrf.mxu0 }
 0x6c8   : > { %v10290_v11 = vsel %vm10287_vm9, %v10289_v53, %v10285_v24  ;;  %v10266_v29 = vadd.f32 %v13596_v42, %v10265_v2  ;;  %v9936_v36 = vadd.f32 %v9935_v6, %v17938_v32 }
 0x6c9   : > { %v10431_v60 = vrot.slane %v10290_v11, 4 }
 0x6ca   : > { %v10270_v39 = vsel %vm10269_vm6, %v13596_v42, %v10266_v29  ;;  %v9949_v63 = vadd.f32 %v9948_v58, %v9936_v36 }
 0x6cb   : > { %v10275_v15 = vsel %vm10272_vm8, %v10274_v55, %v10270_v39  ;;  %v9922_v37 = vpop.f32.mrf.mxu3 }
 0x6cc   : > { %v10440_v8 = vsel %vm18802_vm7, %v10275_v15, %v10431_v60  ;;  %v12922_v14 = vmul.f32 -1.442695, %v9949_v63 }
 0x6cd   : > { %10456 = vst [vmem:[%s18207_s18 + $0x18] sm:$0x77] %v10440_v8  ;;  %v9909_v46 = vpop.f32.mrf.mxu2  ;;  %v9950_v12 = vpop.f32.mrf.mxu1 }
 0x6ce   : > { %v9910_v33 = vadd.f32 %v9909_v46, %v17938_v32  ;;  %13597 = vpow2.f32 %v12922_v14 }
 0x6cf   : > { %v9937_v61 = vpop.f32.mrf.mxu0 }
 0x6d0   : > { %v9923_v21 = vadd.f32 %v9922_v37, %v9910_v33 }
 0x6d2   : > { %v12921_v26 = vmul.f32 -1.442695, %v9923_v21 }
 0x6d3   : > { %v9924_v38 = vpop.f32.mrf.mxu3 }
 0x6d4   : > { %13599 = vpow2.f32 %v12921_v26  ;;  %v13598_v25 = vpop.eup %13597 }
 0x6d5   : > { %v9911_v20 = vpop.f32.mrf.mxu2  ;;  %v10165_v9 = vadd.f32 1.0, %v13598_v25 }
 0x6d7   : > { %13601 = vrcp.f32 %v10165_v9  ;;  %v10318_v16 = vand.u32 2147483648, %v10165_v9  ;;  %v10316_v22 = vand.u32 2147483647, %v10165_v9  ;;  %vm10312_vm11 = vweird.f32 %v10165_v9 }
 0x6d9   : > { %v10319_v0 = vor.u32 1.1754944e-38, %v10318_v16  ;;  %vm10317_vm15 = vcmp.eq.f32.partialorder %v10316_v22, 8.507059e+37 }
 0x6da   : > { %v13600_v4 = vpop.eup %13599 }
 0x6db   : > { %v10164_v51 = vadd.f32 1.0, %v13600_v4 }
 0x6dd   : > { %13603 = vrcp.f32 %v10164_v51  ;;  %v13602_v40 = vpop.eup %13601  ;;  %v10303_v35 = vand.u32 2147483648, %v10164_v51  ;;  %v10301_v44 = vand.u32 2147483647, %v10164_v51  ;;  %vm10297_vm3 = vweird.f32 %v10164_v51 }
 0x6de   : > { %v10308_v48 = vmul.f32 %v13602_v40, %v10165_v9  ;;  %vm10313_vm0 = vweird.f32 %v13602_v40 }
 0x6df   : > { %vm10314_vm10 = vmor %vm10312_vm11, %vm10313_vm0  ;;  %v10304_v57 = vor.u32 1.1754944e-38, %v10303_v35  ;;  %vm10302_vm14 = vcmp.eq.f32.partialorder %v10301_v44, 8.507059e+37 }
 0x6e0   : > { %v10309_v62 = vsub.f32 1.0, %v10308_v48  ;;  %vm18804_vm11 = vmmov %vm18803_vm1 }
 0x6e2   : > { %v10310_v49 = vmul.f32 %v13602_v40, %v10309_v62 }
 0x6e3   : > { %v13604_v45 = vpop.eup %13603 }
 0x6e4   : > { %v10293_v3 = vmul.f32 %v13604_v45, %v10164_v51  ;;  %v10311_v56 = vadd.f32 %v13602_v40, %v10310_v49  ;;  %vm10298_vm4 = vweird.f32 %v13604_v45 }
 0x6e5   : > { %vm10299_vm13 = vmor %vm10297_vm3, %vm10298_vm4 }
 0x6e6   : > { %v10294_v43 = vsub.f32 1.0, %v10293_v3  ;;  %v10000_v28 = vpop.f32.mrf.mxu0  ;;  %v10315_v13 = vsel %vm10314_vm10, %v13602_v40, %v10311_v56 }
 0x6e7   : > { %v10320_v47 = vsel %vm10317_vm15, %v10319_v0, %v10315_v13 }
 0x6e8   : > { %v10295_v30 = vmul.f32 %v13604_v45, %v10294_v43  ;;  %v9987_v27 = vpop.f32.mrf.mxu1  ;;  %v10432_v34 = vrot.slane %v10320_v47, 4 }
 0x6e9   : > { %v9988_v41 = vadd.f32 %v9987_v27, %v17938_v32 }
 0x6ea   : > { %v10296_v17 = vadd.f32 %v13604_v45, %v10295_v30 }
 0x6eb   : > { %v10001_v50 = vadd.f32 %v10000_v28, %v9988_v41 }
 0x6ec   : > { %v10300_v18 = vsel %vm10299_vm13, %v13604_v45, %v10296_v17  ;;  %v9974_v10 = vpop.f32.mrf.mxu2 }
 0x6ed   : > { %v10305_v5 = vsel %vm10302_vm14, %v10304_v57, %v10300_v18  ;;  %v12924_v52 = vmul.f32 -1.442695, %v10001_v50 }
 0x6ee   : > { %v9961_v42 = vpop.f32.mrf.mxu3  ;;  %v10441_v19 = vsel %vm18803_vm1, %v10305_v5, %v10432_v34  ;;  %v10002_v59 = vpop.f32.mrf.mxu0 }
 0x6ef   : > { %v9962_v54 = vadd.f32 %v9961_v42, %v17938_v32  ;;  %10457 = vst [vmem:[%s18207_s18 + $0x20] sm:$0x77] %v10441_v19  ;;  %13605 = vpow2.f32 %v12924_v52 }
 0x6f0   : > { %v9989_v24 = vpop.f32.mrf.mxu1 }
 0x6f1   : > { %v9975_v23 = vadd.f32 %v9974_v10, %v9962_v54 }
 0x6f3   : > { %v12923_v1 = vmul.f32 -1.442695, %v9975_v23 }
 0x6f4   : > { %v9976_v53 = vpop.f32.mrf.mxu2 }
 0x6f5   : > { %13607 = vpow2.f32 %v12923_v1  ;;  %v13606_v31 = vpop.eup %13605 }
 0x6f6   : > { %v9963_v2 = vpop.f32.mrf.mxu3  ;;  %v10167_v7 = vadd.f32 1.0, %v13606_v31 }
 0x6f8   : > { %13609 = vrcp.f32 %v10167_v7  ;;  %v10348_v39 = vand.u32 2147483648, %v10167_v7  ;;  %v10346_v15 = vand.u32 2147483647, %v10167_v7  ;;  %vm10342_vm9 = vweird.f32 %v10167_v7 }
 0x6fa   : > { %v10349_v33 = vor.u32 1.1754944e-38, %v10348_v39  ;;  %vm10347_vm5 = vcmp.eq.f32.partialorder %v10346_v15, 8.507059e+37 }
 0x6fb   : > { %v13608_v58 = vpop.eup %13607 }
 0x6fc   : > { %v10166_v11 = vadd.f32 1.0, %v13608_v58 }
 0x6fe   : > { %13611 = vrcp.f32 %v10166_v11  ;;  %v13610_v29 = vpop.eup %13609  ;;  %v10333_v12 = vand.u32 2147483648, %v10166_v11  ;;  %v10331_v26 = vand.u32 2147483647, %v10166_v11  ;;  %vm10327_vm8 = vweird.f32 %v10166_v11 }
 0x6ff   : > { %v10338_v6 = vmul.f32 %v13610_v29, %v10167_v7  ;;  %vm10343_vm2 = vweird.f32 %v13610_v29 }
 0x700   : > { %vm10344_vm12 = vmor %vm10342_vm9, %vm10343_vm2  ;;  %v10334_v20 = vor.u32 1.1754944e-38, %v10333_v12  ;;  %vm10332_vm0 = vcmp.eq.f32.partialorder %v10331_v26, 8.507059e+37 }
 0x701   : > { %v10339_v55 = vsub.f32 1.0, %v10338_v6  ;;  %vm18805_vm9 = vmmov %vm18804_vm11 }
 0x703   : > { %v10340_v60 = vmul.f32 %v13610_v29, %v10339_v55 }
 0x704   : > { %v13612_v36 = vpop.eup %13611 }
 0x705   : > { %v10323_v63 = vmul.f32 %v13612_v36, %v10166_v11  ;;  %v10341_v8 = vadd.f32 %v13610_v29, %v10340_v60  ;;  %v10052_v14 = vpop.f32.mrf.mxu1  ;;  %vm10328_vm6 = vweird.f32 %v13612_v36 }
 0x706   : > { %vm10329_vm7 = vmor %vm10327_vm8, %vm10328_vm6 }
 0x707   : > { %v10324_v37 = vsub.f32 1.0, %v10323_v63  ;;  %v10345_v46 = vsel %vm10344_vm12, %v13610_v29, %v10341_v8  ;;  %v10026_v21 = vpop.f32.mrf.mxu3 }
 0x708   : > { %v10350_v38 = vsel %vm10347_vm5, %v10349_v33, %v10345_v46 }
 0x709   : > { %v10325_v61 = vmul.f32 %v13612_v36, %v10324_v37  ;;  %v10433_v9 = vrot.slane %v10350_v38, 4 }
 0x70b   : > { %v10326_v25 = vadd.f32 %v13612_v36, %v10325_v61 }
 0x70d   : > { %v10330_v4 = vsel %vm10329_vm7, %v13612_v36, %v10326_v25  ;;  %v10039_v40 = vpop.f32.mrf.mxu0  ;;  %v10054_v45 = vpop.f32.mrf.mxu1 }
 0x70e   : > { %v10335_v51 = vsel %vm10332_vm0, %v10334_v20, %v10330_v4  ;;  %v10040_v62 = vadd.f32 %v10039_v40, %v17938_v32 }
 0x70f   : > { %v10442_v48 = vsel %vm18804_vm11, %v10335_v51, %v10433_v9  ;;  %v10028_v49 = vpop.f32.mrf.mxu3 }
 0x710   : > { %10458 = vst [vmem:[%s18207_s18 + $0x28] sm:$0x77] %v10442_v48  ;;  %v10053_v16 = vadd.f32 %v10052_v14, %v10040_v62 }
 0x712   : > { %v12926_v22 = vmul.f32 -1.442695, %v10053_v16  ;;  %v10013_v3 = vpop.f32.mrf.mxu2 }
 0x713   : > { %v10014_v56 = vadd.f32 %v10013_v3, %v17938_v32 }
 0x714   : > { %13613 = vpow2.f32 %v12926_v22 }
 0x715   : > { %v10041_v43 = vpop.f32.mrf.mxu0  ;;  %v10027_v28 = vadd.f32 %v10026_v21, %v10014_v56 }
 0x717   : > { %v12925_v13 = vmul.f32 -1.442695, %v10027_v28 }
 0x719   : > { %13615 = vpow2.f32 %v12925_v13 }
 0x71a   : > { %v13614_v0 = vpop.eup %13613  ;;  %v10015_v30 = vpop.f32.mrf.mxu2 }
 0x71b   : > { %v10169_v35 = vadd.f32 1.0, %v13614_v0 }
 0x71d   : > { %13617 = vrcp.f32 %v10169_v35  ;;  %v10104_v44 = vpop.f32.mrf.mxu0  ;;  %vm10372_vm15 = vweird.f32 %v10169_v35  ;;  %v10378_v24 = vand.u32 2147483648, %v10169_v35  ;;  %v10376_v31 = vand.u32 2147483647, %v10169_v35 }
 0x71f   : > { %v13616_v27 = vpop.eup %13615  ;;  %v10379_v6 = vor.u32 1.1754944e-38, %v10378_v24  ;;  %vm10377_vm3 = vcmp.eq.f32.partialorder %v10376_v31, 8.507059e+37 }
 0x720   : > { %v10168_v47 = vadd.f32 1.0, %v13616_v27 }
 0x722   : > { %13619 = vrcp.f32 %v10168_v47  ;;  %v10078_v57 = vpop.f32.mrf.mxu2  ;;  %v10363_v55 = vand.u32 2147483648, %v10168_v47  ;;  %v10361_v60 = vand.u32 2147483647, %v10168_v47  ;;  %vm10357_vm14 = vweird.f32 %v10168_v47 }
 0x723   : > { %v10091_v41 = vpop.f32.mrf.mxu1  ;;  %v13618_v17 = vpop.eup %13617 }
 0x724   : > { %v10368_v50 = vmul.f32 %v13618_v17, %v10169_v35  ;;  %v10092_v34 = vadd.f32 %v10091_v41, %v17938_v32  ;;  %vm10373_vm10 = vweird.f32 %v13618_v17  ;;  %v10364_v37 = vor.u32 1.1754944e-38, %v10363_v55 }
 0x725   : > { %v10106_v5 = vpop.f32.mrf.mxu0  ;;  %vm10374_vm4 = vmor %vm10372_vm15, %vm10373_vm10  ;;  %vm10362_vm2 = vcmp.eq.f32.partialorder %v10361_v60, 8.507059e+37 }
 0x726   : > { %v10065_v18 = vpop.f32.mrf.mxu3  ;;  %v10369_v52 = vsub.f32 1.0, %v10368_v50  ;;  %v10105_v42 = vadd.f32 %v10104_v44, %v10092_v34  ;;  %vm18806_vm15 = vmmov %vm18805_vm9 }
 0x727   : > { %v10066_v10 = vadd.f32 %v10065_v18, %v17938_v32 }
 0x728   : > { %v10370_v54 = vmul.f32 %v13618_v17, %v10369_v52  ;;  %v12928_v59 = vmul.f32 -1.442695, %v10105_v42  ;;  %v13620_v23 = vpop.eup %13619 }
 0x729   : > { %v10079_v19 = vadd.f32 %v10078_v57, %v10066_v10  ;;  %v10353_v2 = vmul.f32 %v13620_v23, %v10168_v47  ;;  %vm10358_vm13 = vweird.f32 %v13620_v23 }
 0x72a   : > { %v10371_v53 = vadd.f32 %v13618_v17, %v10370_v54  ;;  %13621 = vpow2.f32 %v12928_v59  ;;  %v10080_v58 = vpop.f32.mrf.mxu2  ;;  %vm10359_vm1 = vmor %vm10357_vm14, %vm10358_vm13 }
 0x72b   : > { %v12927_v1 = vmul.f32 -1.442695, %v10079_v19  ;;  %v10093_v7 = vpop.f32.mrf.mxu1  ;;  %v10354_v11 = vsub.f32 1.0, %v10353_v2 }
 0x72c   : > { %v10375_v32 = vsel %vm10374_vm4, %v13618_v17, %v10371_v53 }
 0x72d   : > { %13623 = vpow2.f32 %v12927_v1  ;;  %v10355_v36 = vmul.f32 %v13620_v23, %v10354_v11  ;;  %v10380_v39 = vsel %vm10377_vm3, %v10379_v6, %v10375_v32 }
 0x72e   : > { %v10067_v29 = vpop.f32.mrf.mxu3  ;;  %v10434_v46 = vrot.slane %v10380_v39, 4 }
 0x72f   : > { %v10356_v63 = vadd.f32 %v13620_v23, %v10355_v36 }
 0x730   : > { %v13622_v15 = vpop.eup %13621 }
 0x731   : > { %v10171_v14 = vadd.f32 1.0, %v13622_v15  ;;  %v10360_v33 = vsel %vm10359_vm1, %v13620_v23, %v10356_v63 }
 0x732   : > { %v10365_v21 = vsel %vm10362_vm2, %v10364_v37, %v10360_v33 }
 0x733   : > { %v13624_v8 = vpop.eup %13623  ;;  %13625 = vrcp.f32 %v10171_v14  ;;  %v10443_v61 = vsel %vm18805_vm9, %v10365_v21, %v10434_v46  ;;  %v10408_v4 = vand.u32 2147483648, %v10171_v14  ;;  %v10406_v48 = vand.u32 2147483647, %v10171_v14 }
 0x734   : > { %v10170_v12 = vadd.f32 1.0, %v13624_v8  ;;  %10459 = vst [vmem:[%s18207_s18 + $0x30] sm:$0x77] %v10443_v61  ;;  %vm10402_vm6 = vweird.f32 %v10171_v14 }
 0x735   : > { %v10409_v22 = vor.u32 1.1754944e-38, %v10408_v4  ;;  %vm10407_vm0 = vcmp.eq.f32.partialorder %v10406_v48, 8.507059e+37 }
 0x736   : > { %13627 = vrcp.f32 %v10170_v12  ;;  %v10393_v62 = vand.u32 2147483648, %v10170_v12  ;;  %v10391_v49 = vand.u32 2147483647, %v10170_v12  ;;  %vm10387_vm7 = vweird.f32 %v10170_v12 }
 0x738   : > { %v10394_v43 = vor.u32 1.1754944e-38, %v10393_v62  ;;  %vm10392_vm10 = vcmp.eq.f32.partialorder %v10391_v49, 8.507059e+37 }
 0x739   : > { %v13626_v26 = vpop.eup %13625 }
 0x73a   : > { %v10398_v25 = vmul.f32 %v13626_v26, %v10171_v14  ;;  %vm10403_vm12 = vweird.f32 %v13626_v26 }
 0x73b   : > { %vm10404_vm8 = vmor %vm10402_vm6, %vm10403_vm12 }
 0x73c   : > { %v13628_v38 = vpop.eup %13627  ;;  %v10399_v9 = vsub.f32 1.0, %v10398_v25 }
 0x73d   : > { %v10383_v20 = vmul.f32 %v13628_v38, %v10170_v12  ;;  %vm10388_vm5 = vweird.f32 %v13628_v38 }
 0x73e   : > { %v10400_v40 = vmul.f32 %v13626_v26, %v10399_v9  ;;  %vm10389_vm11 = vmor %vm10387_vm7, %vm10388_vm5 }
 0x73f   : > { %v10384_v51 = vsub.f32 1.0, %v10383_v20 }
 0x740   : > { %v10401_v16 = vadd.f32 %v13626_v26, %v10400_v40 }
 0x741   : > { %v10385_v45 = vmul.f32 %v13628_v38, %v10384_v51 }
 0x742   : > { %v10405_v56 = vsel %vm10404_vm8, %v13626_v26, %v10401_v16 }
 0x743   : > { %v10386_v3 = vadd.f32 %v13628_v38, %v10385_v45  ;;  %v10410_v28 = vsel %vm10407_vm0, %v10409_v22, %v10405_v56 }
 0x744   : > { %v10435_v0 = vrot.slane %v10410_v28, 4 }
 0x745   : > { %v10390_v13 = vsel %vm10389_vm11, %v13628_v38, %v10386_v3 }
 0x746   : > { %v10395_v35 = vsel %vm10392_vm10, %v10394_v43, %v10390_v13 }
 0x747   : > { %v10444_v30 = vsel %vm18806_vm15, %v10395_v35, %v10435_v0 }
 0x748   : > { %10460 = vst [vmem:[%s18207_s18 + $0x38] sm:$0x77] %v10444_v30 }
 0x749 PF: > { %s18_s27 = sadd.s32 1, %s13639_s27  }
 0x74a   : > { %p15_p4 = scmp.ge.s32.totalorder %s18_s27, 4  }
 0x74c   :  { %17 = sbr.rel (!%p15_p4) target bundleno = 1 (0x1), region = 85 }

</bundles_post_ra>
